<compile_context>
chip_gen: v5e
topology: v5e:2x2
jax: 0.10.0
libtpu: 0.0.40
codegen_flags: <defaults>
</compile_context>

<pallas_src>
import math

import jax
import jax.numpy as jnp
import numpy as np
from jax.experimental import pallas as pl
from jax.experimental.pallas import tpu as pltpu


# ----------------------------------------------------------------------------- kernel

def _policy_kernel(x_ref,
                   srow_ref, brow_ref, scol_ref, bcol_ref,
                   ifw1_ref, ifb1_ref, ifw2_ref, ifb2_ref,
                   wqkv_ref, wp_ref, wo_ref, uv_ref, ln_ref,
                   gwyrz_ref, gwyg_ref, gwx_ref, gwg_ref, gbrz_ref, gbg_ref,
                   fw1_ref, fb1_ref, fw2_ref, fb2_ref,
                   prel_ref,
                   qsel_ref, caw1_ref, cab1_ref, cw2_ref, cb2_ref, aw2_ref, ab2_ref,
                   vlw_ref, vlb_ref, dw_ref, db_ref,
                   o_ref):
    f32, bf16 = jnp.float32, jnp.bfloat16
    T = x_ref.shape[0]                         # B * S tokens, batch-major rows (b*S + s)
    L, H, hd3 = wqkv_ref.shape
    hd = hd3 // 3
    n_heads, d_head = wo_ref.shape[1], wo_ref.shape[2]
    S, B, _ = qsel_ref.shape
    n_tot = dw_ref.shape[1]
    scale = 1.0 / math.sqrt(d_head)

    def _b(a):                                 # cast to bf16 only when not already bf16
        return a if a.dtype == bf16 else a.astype(bf16)

    def mm(a, b):                              # MXU matmul: bf16 operands, f32 accumulate
        return jnp.dot(_b(a), _b(b), preferred_element_type=f32)

    def mm_nt(a, b):                           # a @ b.T without an explicit transpose
        return jax.lax.dot_general(_b(a), _b(b), (((1,), (1,)), ((), ())),
                                   preferred_element_type=f32)

    def layer_norm(v, g, bta):                 # f32 elementwise path (v5e-safe)
        mu = jnp.mean(v, axis=-1, keepdims=True)
        var = jnp.mean((v - mu) ** 2, axis=-1, keepdims=True)
        return (v - mu) * jax.lax.rsqrt(var + 1e-5) * g + bta

    def gate(xg, yg, wy_rz, wy_g, wx, wg, b_rz, b_g):
        # GRU-style GTrXL gating; weights pre-split host-side (no in-kernel weight
        # slicing), bg folded into b_rz, ONE fused sigmoid over the (T, 2H) slab.
        xb, yb = _b(xg), _b(yg)
        rz = jax.nn.sigmoid(mm(yb, wy_rz) + mm(xb, wx) + b_rz)
        r, z = rz[:, :H], rz[:, H:]
        hh = jnp.tanh(mm(yb, wy_g) + mm(r * xg, wg) + b_g)
        return xg + z * (hh - xg)              # == (1 - z) * x + z * h

    # ---- block-diag causal mask + rel-shift distance masks (built in-kernel, hoisted
    # ---- once; only tiny O(B*S) index constants are DMA'd) ---------------------------
    same_b = brow_ref[...] == bcol_ref[...]                         # (n_heads*T, T)
    dd = srow_ref[...] - scol_ref[...]                              # exact small ints in f32
    neg_mask = jnp.where(jnp.logical_and(same_b, dd >= 0.0), 0.0, -1e30).astype(f32)
    dmask = [jnp.where(jnp.logical_and(same_b, dd == float(d)), 1.0, 0.0).astype(f32)
             for d in range(S)]

    # ---- input_feat two-layer tanh MLP on all B*S observations -----------------------
    h0 = jnp.tanh(mm(x_ref[...], ifw1_ref[...]) + ifb1_ref[...])
    x = jnp.tanh(mm(h0, ifw2_ref[...]) + ifb2_ref[...])             # (T, H) f32

    # ---- positional projections of ALL layers with one matmul ------------------------
    p_all = mm(prel_ref[...], wp_ref[...])                          # (S, L*hd)
    uvv = uv_ref[...]                                               # (2, 1, hd): u / v bias

    # ---- StableTransformerXL (GTrXL) layers, fully unrolled --------------------------
    for l in range(L):
        ln_l = ln_ref[l]                                            # (4, H): g1, b1, g2, b2
        # --- relative multi-head attention (pre-LN); all batches as one fused seq -----
        xn = layer_norm(x, ln_l[0:1, :], ln_l[1:2, :])
        qkv = mm(xn, wqkv_ref[l])                                   # (T, 3*hd) fused q/k/v
        q = qkv[:, :hd]
        k_b = _b(qkv[:, hd:2 * hd])
        v_b = _b(qkv[:, 2 * hd:])
        p_b = _b(p_all[:, l * hd:(l + 1) * hd])                     # (S, hd)
        qu_b = _b(q + uvv[0])                                       # content-bias query
        qv_b = _b(q + uvv[1])                                       # position-bias query
        wo_l = wo_ref[l]                                            # (n_heads, d_head, H)

        content, mdist = [], []
        for h in range(n_heads):                                    # per-head MXU matmuls
            lo, hi = h * d_head, (h + 1) * d_head
            content.append(mm_nt(qu_b[:, lo:hi], k_b[:, lo:hi]))    # (T, T)
            mdist.append(mm_nt(qv_b[:, lo:hi], p_b[:, lo:hi]))      # (T, S)
        # heads stacked along sublanes -> ONE rel-shift / mask-add / softmax per layer
        scores = jnp.concatenate(content, axis=0)                   # (n_heads*T, T)
        md = jnp.concatenate(mdist, axis=0)                         # (n_heads*T, S)
        for d in range(S):                                          # rel-shift: S rank-1
            scores = scores + md[:, d:d + 1] * dmask[d]             #   FMAs, no 3-D temps
        scores = scores * scale + neg_mask                          # additive causal mask
        mrow = jnp.max(scores, axis=-1, keepdims=True)
        e = jnp.exp(scores - mrow)
        attn_b = _b(e * pl.reciprocal(jnp.sum(e, axis=-1, keepdims=True), approx=True))

        mha = None
        for h in range(n_heads):
            head = mm(attn_b[h * T:(h + 1) * T, :],                 # sublane-aligned slice
                      v_b[:, h * d_head:(h + 1) * d_head])          # (T, d_head)
            part = mm(head, wo_l[h])                                # fold W_o per head, sum
            mha = part if mha is None else mha + part               # (T, H); lout: no bias

        g_yrz, g_yg, g_x, g_g = gwyrz_ref[l], gwyg_ref[l], gwx_ref[l], gwg_ref[l]
        b_rz, b_g = gbrz_ref[l], gbg_ref[l]
        x = gate(x, mha, g_yrz[0], g_yg[0], g_x[0], g_g[0], b_rz[0], b_g[0])

        # --- position-wise feed-forward (pre-LN) ---
        xn2 = layer_norm(x, ln_l[2:3, :], ln_l[3:4, :])
        ff = mm(jnp.maximum(mm(xn2, fw1_ref[l]) + fb1_ref[l], 0.0), fw2_ref[l]) + fb2_ref[l]
        x = gate(x, ff, g_yrz[1], g_yg[1], g_x[1], g_g[1], b_rz[1], b_g[1])

    # ---- feat == torch (S, B, H).view(B, S*H): the raw-buffer view (it mixes batch rows)
    # ---- is folded into the critic/actor layer-1 matmuls via one-hot row selection on
    # ---- the MXU -- no row gather / lane-concat epilogue. -----------------------------
    x_b = _b(x)
    h1 = cab1_ref[...]                                              # (1, 2H) -> broadcast
    for kk in range(S):
        h1 = h1 + mm(mm(qsel_ref[kk], x_b), caw1_ref[kk])           # (B, 2H)
    h1 = jnp.tanh(h1)                                               # fused critic|actor L1
    hc = jnp.tanh(mm(h1[:, :H], cw2_ref[...]) + cb2_ref[...])       # hidden_critic
    ha = jnp.tanh(mm(h1[:, H:], aw2_ref[...]) + ab2_ref[...])       # hidden_actor
    value = mm(hc, vlw_ref[...]) + vlb_ref[...]                     # (B, 1)
    logits = mm(ha, dw_ref[...]) + db_ref[...]                      # (B, sum(n_i))

    pad = o_ref.shape[1] - (1 + H + n_tot)
    o_ref[...] = jnp.concatenate(                                   # lane-dense packed out
        [value, ha, logits, jnp.zeros((B, pad), f32)], axis=-1)


# ----------------------------------------------------------------------------- wrapper

def _full_spec(arr):
    nd = arr.ndim
    return pl.BlockSpec(arr.shape, lambda i, _nd=nd: (0,) * _nd)


def policy_forward(params, inputs, action_ns):
    """PolicyAME base forward + Categorical logit heads (single fused Pallas kernel).

    inputs: (num_conf=S, batch=B, obs_dim) -- torch.stack of per-conf observations.
    returns: value (B, 1), hidden_actor (B, hidden), [logits_i (B, n_i)]
    """
    S, B, obs_dim = inputs.shape
    H = params["if_w2"].shape[1]
    T = S * B
    n_heads = params["wo"].shape[1]
    NHT = n_heads * T
    n_tot = int(sum(action_ns))
    out_w = 128 * pl.cdiv(1 + H + n_tot, 128)       # lane-dense padded output width

    # batch-major token layout: row b*S + s  <->  inputs[s, b]
    x_bm = jnp.transpose(inputs, (1, 0, 2)).reshape(T, obs_dim)

    # tiny O(B*S) index constants; the (NHT,T) mask / rel-shift masks are built in-kernel
    t_idx = np.arange(T)
    s_of_t = (t_idx % S).astype(np.float32)
    b_of_t = (t_idx // S).astype(np.float32)
    srow = jnp.asarray(np.tile(s_of_t, n_heads).reshape(NHT, 1))
    brow = jnp.asarray(np.tile(b_of_t, n_heads).reshape(NHT, 1))
    scol = jnp.asarray(s_of_t.reshape(1, T))
    bcol = jnp.asarray(b_of_t.reshape(1, T))

    # one-hot row selection reproducing torch's (S, B, H).view(B, S*H) buffer view
    qsel_np = np.zeros((S, B, T), np.float32)
    for i in range(B):
        for kk in range(S):
            r = i * S + kk                           # seq-major flat row r = s*B + b'
            qsel_np[kk, i, (r % B) * S + (r // B)] = 1.0
    qsel = jnp.asarray(qsel_np, jnp.bfloat16)

    args = (x_bm, srow, brow, scol, bcol,
            params["if_w1"], params["if_b1"], params["if_w2"], params["if_b2"],
            params["wqkv"], params["wp_all"], params["wo"], params["uv"], params["ln"],
            params["gw_yrz"], params["gw_yg"], params["gw_x"], params["gw_g"],
            params["gb_rz"], params["gb_g"],
            params["fw1"], params["fb1"], params["fw2"], params["fb2"],
            params["prel"],
            qsel, params["caw1"], params["cab1"], params["cw2"], params["cb2"],
            params["aw2"], params["ab2"],
            params["vlw"], params["vlb"], params["dw"], params["db"])

    out = pl.pallas_call(
        _policy_kernel,
        out_shape=jax.ShapeDtypeStruct((B, out_w), jnp.float32),
        grid=(1,),
        in_specs=[_full_spec(a) for a in args],
        out_specs=pl.BlockSpec((B, out_w), lambda i: (0, 0)),
        compiler_params=pltpu.CompilerParams(
            dimension_semantics=("arbitrary",),
            vmem_limit_bytes=32 * 1024 * 1024),     # comfortably within v7x's 64 MiB
    )(*args)

    value = out[:, 0:1]
    hidden_actor = out[:, 1:1 + H]
    logits, off = [], 1 + H
    for n in action_ns:
        logits.append(out[:, off:off + n])
        off += n
    return value, hidden_actor, logits


# ----------------------------------------------------------------------------- params

def init_params(key, obs_dim, num_conf, hidden, n_layers, n_heads, d_head, d_ff, action_ns):
    keys = iter(jax.random.split(key, 64))

    def nk():
        return next(keys)

    H, S, L, dff = hidden, num_conf, n_layers, d_ff
    hd = n_heads * d_head
    n_tot = int(sum(action_ns))
    g2 = math.sqrt(2)

    def w(shape, scale):                     # weights stored bf16 (matmul operands)
        return (jax.random.normal(nk(), shape, jnp.float32) * scale).astype(jnp.bfloat16)

    p = {}
    # input_feat / critic / actor / critic_linear / dist heads
    p["if_w1"] = w((obs_dim, H), g2 / math.sqrt(obs_dim))
    p["if_b1"] = jnp.zeros((1, H), jnp.float32)
    p["if_w2"] = w((H, H), g2 / math.sqrt(H))
    p["if_b2"] = jnp.zeros((1, H), jnp.float32)
    # critic|actor layer-1 fused and pre-reshaped to (S, H, 2H): caw1[k] multiplies the
    # k-th H-wide segment of feat = (S, B, H).view(B, S*H)
    p["caw1"] = w((S, H, 2 * H), g2 / math.sqrt(S * H))
    p["cab1"] = jnp.zeros((1, 2 * H), jnp.float32)
    p["cw2"] = w((H, H), g2 / math.sqrt(H))
    p["cb2"] = jnp.zeros((1, H), jnp.float32)
    p["aw2"] = w((H, H), g2 / math.sqrt(H))
    p["ab2"] = jnp.zeros((1, H), jnp.float32)
    p["vlw"] = w((H, 1), 1.0 / math.sqrt(H))
    p["vlb"] = jnp.zeros((1, 1), jnp.float32)
    p["dw"] = w((H, n_tot), 0.01 / math.sqrt(H))                    # packed Categorical heads
    p["db"] = jnp.zeros((1, n_tot), jnp.float32)

    # StableTransformerXL: per-layer weights stacked along a leading layer axis.
    p["wqkv"] = w((L, H, 3 * hd), 1.0 / math.sqrt(H))               # fused q/k/v projection
    p["wp_all"] = w((H, L * hd), 1.0 / math.sqrt(H))                # positional proj, all layers
    p["wo"] = w((L, n_heads, d_head, H), 1.0 / math.sqrt(hd))       # pre-split per head
    # shared u/v biases, pre-flattened head-major (added once per layer, not per head)
    p["uv"] = jax.random.normal(nk(), (2, 1, hd), jnp.float32) * 0.05
    ln = np.zeros((L, 4, H), np.float32)
    ln[:, 0] = 1.0
    ln[:, 2] = 1.0                                                  # [g1, b1, g2, b2]
    p["ln"] = jnp.asarray(ln)
    # GRU gate weights pre-split host-side: y->(r|z), y->g, x->(r|z), (r*x)->g
    p["gw_yrz"] = w((L, 2, H, 2 * H), 1.0 / math.sqrt(H))
    p["gw_yg"] = w((L, 2, H, H), 1.0 / math.sqrt(H))
    p["gw_x"] = w((L, 2, H, 2 * H), 1.0 / math.sqrt(H))
    p["gw_g"] = w((L, 2, H, H), 1.0 / math.sqrt(H))
    gb_rz = np.zeros((L, 2, 1, 2 * H), np.float32)
    gb_rz[..., H:] = -0.1                                           # GTrXL bg folded into z bias
    p["gb_rz"] = jnp.asarray(gb_rz)
    p["gb_g"] = jnp.zeros((L, 2, 1, H), jnp.float32)
    p["fw1"] = w((L, H, dff), 1.0 / math.sqrt(H))
    p["fb1"] = jnp.zeros((L, 1, dff), jnp.float32)
    p["fw2"] = w((L, dff, H), 1.0 / math.sqrt(dff))
    p["fb2"] = jnp.zeros((L, 1, H), jnp.float32)

    # sinusoidal relative-position embeddings, row d = posemb(distance d); bf16 (MXU operand)
    d_vals = np.arange(S, dtype=np.float32)
    inv_freq = 1.0 / (10000.0 ** (np.arange(0.0, H, 2.0, dtype=np.float32) / H))
    sinus = np.outer(d_vals, inv_freq)
    p["prel"] = jnp.asarray(np.concatenate([np.sin(sinus), np.cos(sinus)], axis=-1),
                            jnp.bfloat16)
    return p


# ----------------------------------------------------------------------------- main

if __name__ == "__main__":
    OBS_DIM, NUM_CONF, BATCH, HIDDEN = 12, 8, 2, 32
    N_LAYERS, N_HEADS, D_HEAD, D_FF = 3, 4, 32, 64
    ACTION_NS = (5, 3)                                              # two Discrete action spaces

    key = jax.random.PRNGKey(0)
    pkey, xkey = jax.random.split(key)
    params = init_params(pkey, OBS_DIM, NUM_CONF, HIDDEN,
                         N_LAYERS, N_HEADS, D_HEAD, D_FF, ACTION_NS)
    inputs = jax.random.normal(xkey, (NUM_CONF, BATCH, OBS_DIM), jnp.float32)

    fwd = jax.jit(policy_forward, static_argnames=("action_ns",))
    value, actor_feat, logits = fwd(params, inputs, action_ns=ACTION_NS)
    jax.block_until_ready((value, actor_feat, logits))

    assert value.shape == (BATCH, 1)
    assert actor_feat.shape == (BATCH, HIDDEN)
    assert tuple(l.shape for l in logits) == tuple((BATCH, n) for n in ACTION_NS)
    assert all(bool(jnp.all(jnp.isfinite(a))) for a in (value, actor_feat, *logits))
    print("KERNEL_OK")
</pallas_src>

<mosaic_0001>
module attributes {stable_mosaic.version = 11 : i64} {
  func.func @_policy_kernel(%arg0: i32, %arg1: memref<16x12xf32, #tpu.memory_space<vmem>>, %arg2: memref<64x1xf32, #tpu.memory_space<vmem>>, %arg3: memref<64x1xf32, #tpu.memory_space<vmem>>, %arg4: memref<1x16xf32, #tpu.memory_space<vmem>>, %arg5: memref<1x16xf32, #tpu.memory_space<vmem>>, %arg6: memref<12x32xbf16, #tpu.memory_space<vmem>>, %arg7: memref<1x32xf32, #tpu.memory_space<vmem>>, %arg8: memref<32x32xbf16, #tpu.memory_space<vmem>>, %arg9: memref<1x32xf32, #tpu.memory_space<vmem>>, %arg10: memref<3x32x384xbf16, #tpu.memory_space<vmem>>, %arg11: memref<32x384xbf16, #tpu.memory_space<vmem>>, %arg12: memref<3x4x32x32xbf16, #tpu.memory_space<vmem>>, %arg13: memref<2x1x128xf32, #tpu.memory_space<vmem>>, %arg14: memref<3x4x32xf32, #tpu.memory_space<vmem>>, %arg15: memref<3x2x32x64xbf16, #tpu.memory_space<vmem>>, %arg16: memref<3x2x32x32xbf16, #tpu.memory_space<vmem>>, %arg17: memref<3x2x32x64xbf16, #tpu.memory_space<vmem>>, %arg18: memref<3x2x32x32xbf16, #tpu.memory_space<vmem>>, %arg19: memref<3x2x1x64xf32, #tpu.memory_space<vmem>>, %arg20: memref<3x2x1x32xf32, #tpu.memory_space<vmem>>, %arg21: memref<3x32x64xbf16, #tpu.memory_space<vmem>>, %arg22: memref<3x1x64xf32, #tpu.memory_space<vmem>>, %arg23: memref<3x64x32xbf16, #tpu.memory_space<vmem>>, %arg24: memref<3x1x32xf32, #tpu.memory_space<vmem>>, %arg25: memref<8x32xbf16, #tpu.memory_space<vmem>>, %arg26: memref<8x2x16xbf16, #tpu.memory_space<vmem>>, %arg27: memref<8x32x64xbf16, #tpu.memory_space<vmem>>, %arg28: memref<1x64xf32, #tpu.memory_space<vmem>>, %arg29: memref<32x32xbf16, #tpu.memory_space<vmem>>, %arg30: memref<1x32xf32, #tpu.memory_space<vmem>>, %arg31: memref<32x32xbf16, #tpu.memory_space<vmem>>, %arg32: memref<1x32xf32, #tpu.memory_space<vmem>>, %arg33: memref<32x1xbf16, #tpu.memory_space<vmem>>, %arg34: memref<1x1xf32, #tpu.memory_space<vmem>>, %arg35: memref<32x8xbf16, #tpu.memory_space<vmem>>, %arg36: memref<1x8xf32, #tpu.memory_space<vmem>>, %arg37: memref<2x128xf32, #tpu.memory_space<vmem>>) attributes {dimension_semantics = [#tpu.dimension_semantics<arbitrary>], iteration_bounds = array<i64: 1>, scalar_prefetch = 0 : i64, scratch_operands = 0 : i64, tpu.core_type = #tpu.core_type<tc>, window_params = [{pipeline_mode = #tpu.pipeline_mode<synchronous>, transform_indices = @transform_0, window_bounds = array<i64: 16, 12>}, {pipeline_mode = #tpu.pipeline_mode<synchronous>, transform_indices = @transform_1, window_bounds = array<i64: 64, 1>}, {pipeline_mode = #tpu.pipeline_mode<synchronous>, transform_indices = @transform_2, window_bounds = array<i64: 64, 1>}, {pipeline_mode = #tpu.pipeline_mode<synchronous>, transform_indices = @transform_3, window_bounds = array<i64: 1, 16>}, {pipeline_mode = #tpu.pipeline_mode<synchronous>, transform_indices = @transform_4, window_bounds = array<i64: 1, 16>}, {pipeline_mode = #tpu.pipeline_mode<synchronous>, transform_indices = @transform_5, window_bounds = array<i64: 12, 32>}, {pipeline_mode = #tpu.pipeline_mode<synchronous>, transform_indices = @transform_6, window_bounds = array<i64: 1, 32>}, {pipeline_mode = #tpu.pipeline_mode<synchronous>, transform_indices = @transform_7, window_bounds = array<i64: 32, 32>}, {pipeline_mode = #tpu.pipeline_mode<synchronous>, transform_indices = @transform_8, window_bounds = array<i64: 1, 32>}, {pipeline_mode = #tpu.pipeline_mode<synchronous>, transform_indices = @transform_9, window_bounds = array<i64: 3, 32, 384>}, {pipeline_mode = #tpu.pipeline_mode<synchronous>, transform_indices = @transform_10, window_bounds = array<i64: 32, 384>}, {pipeline_mode = #tpu.pipeline_mode<synchronous>, transform_indices = @transform_11, window_bounds = array<i64: 3, 4, 32, 32>}, {pipeline_mode = #tpu.pipeline_mode<synchronous>, transform_indices = @transform_12, window_bounds = array<i64: 2, 1, 128>}, {pipeline_mode = #tpu.pipeline_mode<synchronous>, transform_indices = @transform_13, window_bounds = array<i64: 3, 4, 32>}, {pipeline_mode = #tpu.pipeline_mode<synchronous>, transform_indices = @transform_14, window_bounds = array<i64: 3, 2, 32, 64>}, {pipeline_mode = #tpu.pipeline_mode<synchronous>, transform_indices = @transform_15, window_bounds = array<i64: 3, 2, 32, 32>}, {pipeline_mode = #tpu.pipeline_mode<synchronous>, transform_indices = @transform_16, window_bounds = array<i64: 3, 2, 32, 64>}, {pipeline_mode = #tpu.pipeline_mode<synchronous>, transform_indices = @transform_17, window_bounds = array<i64: 3, 2, 32, 32>}, {pipeline_mode = #tpu.pipeline_mode<synchronous>, transform_indices = @transform_18, window_bounds = array<i64: 3, 2, 1, 64>}, {pipeline_mode = #tpu.pipeline_mode<synchronous>, transform_indices = @transform_19, window_bounds = array<i64: 3, 2, 1, 32>}, {pipeline_mode = #tpu.pipeline_mode<synchronous>, transform_indices = @transform_20, window_bounds = array<i64: 3, 32, 64>}, {pipeline_mode = #tpu.pipeline_mode<synchronous>, transform_indices = @transform_21, window_bounds = array<i64: 3, 1, 64>}, {pipeline_mode = #tpu.pipeline_mode<synchronous>, transform_indices = @transform_22, window_bounds = array<i64: 3, 64, 32>}, {pipeline_mode = #tpu.pipeline_mode<synchronous>, transform_indices = @transform_23, window_bounds = array<i64: 3, 1, 32>}, {pipeline_mode = #tpu.pipeline_mode<synchronous>, transform_indices = @transform_24, window_bounds = array<i64: 8, 32>}, {pipeline_mode = #tpu.pipeline_mode<synchronous>, transform_indices = @transform_25, window_bounds = array<i64: 8, 2, 16>}, {pipeline_mode = #tpu.pipeline_mode<synchronous>, transform_indices = @transform_26, window_bounds = array<i64: 8, 32, 64>}, {pipeline_mode = #tpu.pipeline_mode<synchronous>, transform_indices = @transform_27, window_bounds = array<i64: 1, 64>}, {pipeline_mode = #tpu.pipeline_mode<synchronous>, transform_indices = @transform_28, window_bounds = array<i64: 32, 32>}, {pipeline_mode = #tpu.pipeline_mode<synchronous>, transform_indices = @transform_29, window_bounds = array<i64: 1, 32>}, {pipeline_mode = #tpu.pipeline_mode<synchronous>, transform_indices = @transform_30, window_bounds = array<i64: 32, 32>}, {pipeline_mode = #tpu.pipeline_mode<synchronous>, transform_indices = @transform_31, window_bounds = array<i64: 1, 32>}, {pipeline_mode = #tpu.pipeline_mode<synchronous>, transform_indices = @transform_32, window_bounds = array<i64: 32, 1>}, {pipeline_mode = #tpu.pipeline_mode<synchronous>, transform_indices = @transform_33, window_bounds = array<i64: 1, 1>}, {pipeline_mode = #tpu.pipeline_mode<synchronous>, transform_indices = @transform_34, window_bounds = array<i64: 32, 8>}, {pipeline_mode = #tpu.pipeline_mode<synchronous>, transform_indices = @transform_35, window_bounds = array<i64: 1, 8>}, {pipeline_mode = #tpu.pipeline_mode<synchronous>, transform_indices = @transform_36, window_bounds = array<i64: 2, 128>}]} {
    %c0 = arith.constant 0 : index
    %c0_0 = arith.constant 0 : index
    %0 = vector.load %arg3[%c0, %c0_0] : memref<64x1xf32, #tpu.memory_space<vmem>>, vector<64x1xf32>
    %c0_1 = arith.constant 0 : index
    %c0_2 = arith.constant 0 : index
    %1 = vector.load %arg5[%c0_1, %c0_2] : memref<1x16xf32, #tpu.memory_space<vmem>>, vector<1x16xf32>
    %2 = vector.broadcast %0 : vector<64x1xf32> to vector<64x16xf32>
    %3 = vector.broadcast %1 : vector<1x16xf32> to vector<64x16xf32>
    %4 = arith.cmpf oeq, %2, %3 : vector<64x16xf32>
    %c0_3 = arith.constant 0 : index
    %c0_4 = arith.constant 0 : index
    %5 = vector.load %arg2[%c0_3, %c0_4] : memref<64x1xf32, #tpu.memory_space<vmem>>, vector<64x1xf32>
    %c0_5 = arith.constant 0 : index
    %c0_6 = arith.constant 0 : index
    %6 = vector.load %arg4[%c0_5, %c0_6] : memref<1x16xf32, #tpu.memory_space<vmem>>, vector<1x16xf32>
    %7 = vector.broadcast %5 : vector<64x1xf32> to vector<64x16xf32>
    %8 = vector.broadcast %6 : vector<1x16xf32> to vector<64x16xf32>
    %9 = arith.subf %7, %8 : vector<64x16xf32>
    %cst = arith.constant 0.000000e+00 : f32
    %10 = vector.broadcast %cst : f32 to vector<64x16xf32>
    %11 = arith.cmpf oge, %9, %10 : vector<64x16xf32>
    %12 = arith.andi %4, %11 : vector<64x16xi1>
    %cst_7 = arith.constant 0.000000e+00 : f32
    %cst_8 = arith.constant -1.000000e+30 : f32
    %13 = vector.broadcast %cst_7 : f32 to vector<64x16xf32>
    %14 = vector.broadcast %cst_8 : f32 to vector<64x16xf32>
    %15 = arith.select %12, %13, %14 : vector<64x16xi1>, vector<64x16xf32>
    %cst_9 = arith.constant 0.000000e+00 : f32
    %16 = vector.broadcast %cst_9 : f32 to vector<64x16xf32>
    %17 = arith.cmpf oeq, %9, %16 : vector<64x16xf32>
    %18 = arith.andi %4, %17 : vector<64x16xi1>
    %cst_10 = arith.constant 1.000000e+00 : f32
    %cst_11 = arith.constant 0.000000e+00 : f32
    %19 = vector.broadcast %cst_10 : f32 to vector<64x16xf32>
    %20 = vector.broadcast %cst_11 : f32 to vector<64x16xf32>
    %21 = arith.select %18, %19, %20 : vector<64x16xi1>, vector<64x16xf32>
    %cst_12 = arith.constant 1.000000e+00 : f32
    %22 = vector.broadcast %cst_12 : f32 to vector<64x16xf32>
    %23 = arith.cmpf oeq, %9, %22 : vector<64x16xf32>
    %24 = arith.andi %4, %23 : vector<64x16xi1>
    %cst_13 = arith.constant 1.000000e+00 : f32
    %cst_14 = arith.constant 0.000000e+00 : f32
    %25 = vector.broadcast %cst_13 : f32 to vector<64x16xf32>
    %26 = vector.broadcast %cst_14 : f32 to vector<64x16xf32>
    %27 = arith.select %24, %25, %26 : vector<64x16xi1>, vector<64x16xf32>
    %cst_15 = arith.constant 2.000000e+00 : f32
    %28 = vector.broadcast %cst_15 : f32 to vector<64x16xf32>
    %29 = arith.cmpf oeq, %9, %28 : vector<64x16xf32>
    %30 = arith.andi %4, %29 : vector<64x16xi1>
    %cst_16 = arith.constant 1.000000e+00 : f32
    %cst_17 = arith.constant 0.000000e+00 : f32
    %31 = vector.broadcast %cst_16 : f32 to vector<64x16xf32>
    %32 = vector.broadcast %cst_17 : f32 to vector<64x16xf32>
    %33 = arith.select %30, %31, %32 : vector<64x16xi1>, vector<64x16xf32>
    %cst_18 = arith.constant 3.000000e+00 : f32
    %34 = vector.broadcast %cst_18 : f32 to vector<64x16xf32>
    %35 = arith.cmpf oeq, %9, %34 : vector<64x16xf32>
    %36 = arith.andi %4, %35 : vector<64x16xi1>
    %cst_19 = arith.constant 1.000000e+00 : f32
    %cst_20 = arith.constant 0.000000e+00 : f32
    %37 = vector.broadcast %cst_19 : f32 to vector<64x16xf32>
    %38 = vector.broadcast %cst_20 : f32 to vector<64x16xf32>
    %39 = arith.select %36, %37, %38 : vector<64x16xi1>, vector<64x16xf32>
    %cst_21 = arith.constant 4.000000e+00 : f32
    %40 = vector.broadcast %cst_21 : f32 to vector<64x16xf32>
    %41 = arith.cmpf oeq, %9, %40 : vector<64x16xf32>
    %42 = arith.andi %4, %41 : vector<64x16xi1>
    %cst_22 = arith.constant 1.000000e+00 : f32
    %cst_23 = arith.constant 0.000000e+00 : f32
    %43 = vector.broadcast %cst_22 : f32 to vector<64x16xf32>
    %44 = vector.broadcast %cst_23 : f32 to vector<64x16xf32>
    %45 = arith.select %42, %43, %44 : vector<64x16xi1>, vector<64x16xf32>
    %cst_24 = arith.constant 5.000000e+00 : f32
    %46 = vector.broadcast %cst_24 : f32 to vector<64x16xf32>
    %47 = arith.cmpf oeq, %9, %46 : vector<64x16xf32>
    %48 = arith.andi %4, %47 : vector<64x16xi1>
    %cst_25 = arith.constant 1.000000e+00 : f32
    %cst_26 = arith.constant 0.000000e+00 : f32
    %49 = vector.broadcast %cst_25 : f32 to vector<64x16xf32>
    %50 = vector.broadcast %cst_26 : f32 to vector<64x16xf32>
    %51 = arith.select %48, %49, %50 : vector<64x16xi1>, vector<64x16xf32>
    %cst_27 = arith.constant 6.000000e+00 : f32
    %52 = vector.broadcast %cst_27 : f32 to vector<64x16xf32>
    %53 = arith.cmpf oeq, %9, %52 : vector<64x16xf32>
    %54 = arith.andi %4, %53 : vector<64x16xi1>
    %cst_28 = arith.constant 1.000000e+00 : f32
    %cst_29 = arith.constant 0.000000e+00 : f32
    %55 = vector.broadcast %cst_28 : f32 to vector<64x16xf32>
    %56 = vector.broadcast %cst_29 : f32 to vector<64x16xf32>
    %57 = arith.select %54, %55, %56 : vector<64x16xi1>, vector<64x16xf32>
    %cst_30 = arith.constant 7.000000e+00 : f32
    %58 = vector.broadcast %cst_30 : f32 to vector<64x16xf32>
    %59 = arith.cmpf oeq, %9, %58 : vector<64x16xf32>
    %60 = arith.andi %4, %59 : vector<64x16xi1>
    %cst_31 = arith.constant 1.000000e+00 : f32
    %cst_32 = arith.constant 0.000000e+00 : f32
    %61 = vector.broadcast %cst_31 : f32 to vector<64x16xf32>
    %62 = vector.broadcast %cst_32 : f32 to vector<64x16xf32>
    %63 = arith.select %60, %61, %62 : vector<64x16xi1>, vector<64x16xf32>
    %c0_33 = arith.constant 0 : index
    %c0_34 = arith.constant 0 : index
    %64 = vector.load %arg1[%c0_33, %c0_34] : memref<16x12xf32, #tpu.memory_space<vmem>>, vector<16x12xf32>
    %c0_35 = arith.constant 0 : index
    %c0_36 = arith.constant 0 : index
    %65 = vector.load %arg6[%c0_35, %c0_36] : memref<12x32xbf16, #tpu.memory_space<vmem>>, vector<12x32xbf16>
    %66 = arith.truncf %64 : vector<16x12xf32> to vector<16x12xbf16>
    %cst_37 = arith.constant dense<0.000000e+00> : vector<16x32xf32>
    %67 = tpu.matmul %66, %65, %cst_37 {dimension_numbers = #tpu.dot_dimension_numbers<[1], [0], [0], [1], [0, 0, 1, 1], [], []>} : vector<16x12xbf16>, vector<12x32xbf16>, vector<16x32xf32> -> vector<16x32xf32>
    %c0_38 = arith.constant 0 : index
    %c0_39 = arith.constant 0 : index
    %68 = vector.load %arg7[%c0_38, %c0_39] : memref<1x32xf32, #tpu.memory_space<vmem>>, vector<1x32xf32>
    %69 = vector.broadcast %68 : vector<1x32xf32> to vector<16x32xf32>
    %70 = arith.addf %67, %69 : vector<16x32xf32>
    %71 = math.tanh %70 : vector<16x32xf32>
    %c0_40 = arith.constant 0 : index
    %c0_41 = arith.constant 0 : index
    %72 = vector.load %arg8[%c0_40, %c0_41] : memref<32x32xbf16, #tpu.memory_space<vmem>>, vector<32x32xbf16>
    %73 = arith.truncf %71 : vector<16x32xf32> to vector<16x32xbf16>
    %cst_42 = arith.constant dense<0.000000e+00> : vector<16x32xf32>
    %74 = tpu.matmul %73, %72, %cst_42 {dimension_numbers = #tpu.dot_dimension_numbers<[1], [0], [0], [1], [0, 0, 1, 1], [], []>} : vector<16x32xbf16>, vector<32x32xbf16>, vector<16x32xf32> -> vector<16x32xf32>
    %c0_43 = arith.constant 0 : index
    %c0_44 = arith.constant 0 : index
    %75 = vector.load %arg9[%c0_43, %c0_44] : memref<1x32xf32, #tpu.memory_space<vmem>>, vector<1x32xf32>
    %76 = vector.broadcast %75 : vector<1x32xf32> to vector<16x32xf32>
    %77 = arith.addf %74, %76 : vector<16x32xf32>
    %78 = math.tanh %77 : vector<16x32xf32>
    %c0_45 = arith.constant 0 : index
    %c0_46 = arith.constant 0 : index
    %79 = vector.load %arg25[%c0_45, %c0_46] : memref<8x32xbf16, #tpu.memory_space<vmem>>, vector<8x32xbf16>
    %c0_47 = arith.constant 0 : index
    %c0_48 = arith.constant 0 : index
    %80 = vector.load %arg11[%c0_47, %c0_48] : memref<32x384xbf16, #tpu.memory_space<vmem>>, vector<32x384xbf16>
    %cst_49 = arith.constant dense<0.000000e+00> : vector<8x384xf32>
    %81 = tpu.matmul %79, %80, %cst_49 {dimension_numbers = #tpu.dot_dimension_numbers<[1], [0], [0], [1], [0, 0, 1, 1], [], []>} : vector<8x32xbf16>, vector<32x384xbf16>, vector<8x384xf32> -> vector<8x384xf32>
    %c0_50 = arith.constant 0 : index
    %c0_51 = arith.constant 0 : index
    %c0_52 = arith.constant 0 : index
    %82 = vector.load %arg13[%c0_50, %c0_51, %c0_52] : memref<2x1x128xf32, #tpu.memory_space<vmem>>, vector<2x1x128xf32>
    %c0_53 = arith.constant 0 : index
    %c0_54 = arith.constant 0 : index
    %c0_55 = arith.constant 0 : index
    %83 = vector.load %arg14[%c0_53, %c0_54, %c0_55] : memref<3x4x32xf32, #tpu.memory_space<vmem>>, vector<1x4x32xf32>
    %84 = vector.shape_cast %83 : vector<1x4x32xf32> to vector<4x32xf32>
    %85 = vector.extract_strided_slice %84 {offsets = [0, 0], sizes = [1, 32], strides = [1, 1]} : vector<4x32xf32> to vector<1x32xf32>
    %86 = vector.extract_strided_slice %84 {offsets = [1, 0], sizes = [1, 32], strides = [1, 1]} : vector<4x32xf32> to vector<1x32xf32>
    %cst_56 = arith.constant dense<0.000000e+00> : vector<16xf32>
    %87 = vector.multi_reduction <add>, %78, %cst_56 [1] : vector<16x32xf32> to vector<16xf32>
    %88 = vector.shape_cast %87 : vector<16xf32> to vector<16x1xf32>
    %cst_57 = arith.constant 3.200000e+01 : f32
    %89 = vector.broadcast %cst_57 : f32 to vector<16x1xf32>
    %90 = arith.divf %88, %89 : vector<16x1xf32>
    %91 = vector.broadcast %90 : vector<16x1xf32> to vector<16x32xf32>
    %92 = arith.subf %78, %91 : vector<16x32xf32>
    %93 = arith.mulf %92, %92 : vector<16x32xf32>
    %cst_58 = arith.constant dense<0.000000e+00> : vector<16xf32>
    %94 = vector.multi_reduction <add>, %93, %cst_58 [1] : vector<16x32xf32> to vector<16xf32>
    %95 = vector.shape_cast %94 : vector<16xf32> to vector<16x1xf32>
    %cst_59 = arith.constant 3.200000e+01 : f32
    %96 = vector.broadcast %cst_59 : f32 to vector<16x1xf32>
    %97 = arith.divf %95, %96 : vector<16x1xf32>
    %98 = vector.broadcast %90 : vector<16x1xf32> to vector<16x32xf32>
    %99 = arith.subf %78, %98 : vector<16x32xf32>
    %cst_60 = arith.constant 9.99999974E-6 : f32
    %100 = vector.broadcast %cst_60 : f32 to vector<16x1xf32>
    %101 = arith.addf %97, %100 : vector<16x1xf32>
    %102 = math.rsqrt %101 : vector<16x1xf32>
    %103 = vector.broadcast %102 : vector<16x1xf32> to vector<16x32xf32>
    %104 = arith.mulf %99, %103 : vector<16x32xf32>
    %105 = vector.broadcast %85 : vector<1x32xf32> to vector<16x32xf32>
    %106 = arith.mulf %104, %105 : vector<16x32xf32>
    %107 = vector.broadcast %86 : vector<1x32xf32> to vector<16x32xf32>
    %108 = arith.addf %106, %107 : vector<16x32xf32>
    %c0_61 = arith.constant 0 : index
    %c0_62 = arith.constant 0 : index
    %c0_63 = arith.constant 0 : index
    %109 = vector.load %arg10[%c0_61, %c0_62, %c0_63] : memref<3x32x384xbf16, #tpu.memory_space<vmem>>, vector<1x32x384xbf16>
    %110 = vector.shape_cast %109 : vector<1x32x384xbf16> to vector<32x384xbf16>
    %111 = arith.truncf %108 : vector<16x32xf32> to vector<16x32xbf16>
    %cst_64 = arith.constant dense<0.000000e+00> : vector<16x384xf32>
    %112 = tpu.matmul %111, %110, %cst_64 {dimension_numbers = #tpu.dot_dimension_numbers<[1], [0], [0], [1], [0, 0, 1, 1], [], []>} : vector<16x32xbf16>, vector<32x384xbf16>, vector<16x384xf32> -> vector<16x384xf32>
    %113 = vector.extract_strided_slice %112 {offsets = [0, 0], sizes = [16, 128], strides = [1, 1]} : vector<16x384xf32> to vector<16x128xf32>
    %114 = vector.extract_strided_slice %112 {offsets = [0, 128], sizes = [16, 128], strides = [1, 1]} : vector<16x384xf32> to vector<16x128xf32>
    %115 = arith.truncf %114 : vector<16x128xf32> to vector<16x128xbf16>
    %116 = vector.extract_strided_slice %112 {offsets = [0, 256], sizes = [16, 128], strides = [1, 1]} : vector<16x384xf32> to vector<16x128xf32>
    %117 = arith.truncf %116 : vector<16x128xf32> to vector<16x128xbf16>
    %118 = vector.extract_strided_slice %81 {offsets = [0, 0], sizes = [8, 128], strides = [1, 1]} : vector<8x384xf32> to vector<8x128xf32>
    %119 = arith.truncf %118 : vector<8x128xf32> to vector<8x128xbf16>
    %120 = vector.extract_strided_slice %82 {offsets = [0, 0, 0], sizes = [1, 1, 128], strides = [1, 1, 1]} : vector<2x1x128xf32> to vector<1x1x128xf32>
    %121 = vector.shape_cast %120 : vector<1x1x128xf32> to vector<1x128xf32>
    %122 = vector.broadcast %121 : vector<1x128xf32> to vector<16x128xf32>
    %123 = arith.addf %113, %122 : vector<16x128xf32>
    %124 = arith.truncf %123 : vector<16x128xf32> to vector<16x128xbf16>
    %125 = vector.extract_strided_slice %82 {offsets = [1, 0, 0], sizes = [1, 1, 128], strides = [1, 1, 1]} : vector<2x1x128xf32> to vector<1x1x128xf32>
    %126 = vector.shape_cast %125 : vector<1x1x128xf32> to vector<1x128xf32>
    %127 = vector.broadcast %126 : vector<1x128xf32> to vector<16x128xf32>
    %128 = arith.addf %113, %127 : vector<16x128xf32>
    %129 = arith.truncf %128 : vector<16x128xf32> to vector<16x128xbf16>
    %c0_65 = arith.constant 0 : index
    %c0_66 = arith.constant 0 : index
    %c0_67 = arith.constant 0 : index
    %c0_68 = arith.constant 0 : index
    %130 = vector.load %arg12[%c0_65, %c0_66, %c0_67, %c0_68] : memref<3x4x32x32xbf16, #tpu.memory_space<vmem>>, vector<1x4x32x32xbf16>
    %131 = vector.shape_cast %130 : vector<1x4x32x32xbf16> to vector<4x32x32xbf16>
    %132 = vector.extract_strided_slice %124 {offsets = [0, 0], sizes = [16, 32], strides = [1, 1]} : vector<16x128xbf16> to vector<16x32xbf16>
    %133 = vector.extract_strided_slice %115 {offsets = [0, 0], sizes = [16, 32], strides = [1, 1]} : vector<16x128xbf16> to vector<16x32xbf16>
    %cst_69 = arith.constant dense<0.000000e+00> : vector<16x16xf32>
    %134 = tpu.matmul %132, %133, %cst_69 {dimension_numbers = #tpu.dot_dimension_numbers<[1], [1], [0], [0], [0, 0, 1, 0], [], []>} : vector<16x32xbf16>, vector<16x32xbf16>, vector<16x16xf32> -> vector<16x16xf32>
    %135 = vector.extract_strided_slice %129 {offsets = [0, 0], sizes = [16, 32], strides = [1, 1]} : vector<16x128xbf16> to vector<16x32xbf16>
    %136 = vector.extract_strided_slice %119 {offsets = [0, 0], sizes = [8, 32], strides = [1, 1]} : vector<8x128xbf16> to vector<8x32xbf16>
    %cst_70 = arith.constant dense<0.000000e+00> : vector<16x8xf32>
    %137 = tpu.matmul %135, %136, %cst_70 {dimension_numbers = #tpu.dot_dimension_numbers<[1], [1], [0], [0], [0, 0, 1, 0], [], []>} : vector<16x32xbf16>, vector<8x32xbf16>, vector<16x8xf32> -> vector<16x8xf32>
    %138 = vector.extract_strided_slice %124 {offsets = [0, 32], sizes = [16, 32], strides = [1, 1]} : vector<16x128xbf16> to vector<16x32xbf16>
    %139 = vector.extract_strided_slice %115 {offsets = [0, 32], sizes = [16, 32], strides = [1, 1]} : vector<16x128xbf16> to vector<16x32xbf16>
    %cst_71 = arith.constant dense<0.000000e+00> : vector<16x16xf32>
    %140 = tpu.matmul %138, %139, %cst_71 {dimension_numbers = #tpu.dot_dimension_numbers<[1], [1], [0], [0], [0, 0, 1, 0], [], []>} : vector<16x32xbf16>, vector<16x32xbf16>, vector<16x16xf32> -> vector<16x16xf32>
    %141 = vector.extract_strided_slice %129 {offsets = [0, 32], sizes = [16, 32], strides = [1, 1]} : vector<16x128xbf16> to vector<16x32xbf16>
    %142 = vector.extract_strided_slice %119 {offsets = [0, 32], sizes = [8, 32], strides = [1, 1]} : vector<8x128xbf16> to vector<8x32xbf16>
    %cst_72 = arith.constant dense<0.000000e+00> : vector<16x8xf32>
    %143 = tpu.matmul %141, %142, %cst_72 {dimension_numbers = #tpu.dot_dimension_numbers<[1], [1], [0], [0], [0, 0, 1, 0], [], []>} : vector<16x32xbf16>, vector<8x32xbf16>, vector<16x8xf32> -> vector<16x8xf32>
    %144 = vector.extract_strided_slice %124 {offsets = [0, 64], sizes = [16, 32], strides = [1, 1]} : vector<16x128xbf16> to vector<16x32xbf16>
    %145 = vector.extract_strided_slice %115 {offsets = [0, 64], sizes = [16, 32], strides = [1, 1]} : vector<16x128xbf16> to vector<16x32xbf16>
    %cst_73 = arith.constant dense<0.000000e+00> : vector<16x16xf32>
    %146 = tpu.matmul %144, %145, %cst_73 {dimension_numbers = #tpu.dot_dimension_numbers<[1], [1], [0], [0], [0, 0, 1, 0], [], []>} : vector<16x32xbf16>, vector<16x32xbf16>, vector<16x16xf32> -> vector<16x16xf32>
    %147 = vector.extract_strided_slice %129 {offsets = [0, 64], sizes = [16, 32], strides = [1, 1]} : vector<16x128xbf16> to vector<16x32xbf16>
    %148 = vector.extract_strided_slice %119 {offsets = [0, 64], sizes = [8, 32], strides = [1, 1]} : vector<8x128xbf16> to vector<8x32xbf16>
    %cst_74 = arith.constant dense<0.000000e+00> : vector<16x8xf32>
    %149 = tpu.matmul %147, %148, %cst_74 {dimension_numbers = #tpu.dot_dimension_numbers<[1], [1], [0], [0], [0, 0, 1, 0], [], []>} : vector<16x32xbf16>, vector<8x32xbf16>, vector<16x8xf32> -> vector<16x8xf32>
    %150 = vector.extract_strided_slice %124 {offsets = [0, 96], sizes = [16, 32], strides = [1, 1]} : vector<16x128xbf16> to vector<16x32xbf16>
    %151 = vector.extract_strided_slice %115 {offsets = [0, 96], sizes = [16, 32], strides = [1, 1]} : vector<16x128xbf16> to vector<16x32xbf16>
    %cst_75 = arith.constant dense<0.000000e+00> : vector<16x16xf32>
    %152 = tpu.matmul %150, %151, %cst_75 {dimension_numbers = #tpu.dot_dimension_numbers<[1], [1], [0], [0], [0, 0, 1, 0], [], []>} : vector<16x32xbf16>, vector<16x32xbf16>, vector<16x16xf32> -> vector<16x16xf32>
    %153 = vector.extract_strided_slice %129 {offsets = [0, 96], sizes = [16, 32], strides = [1, 1]} : vector<16x128xbf16> to vector<16x32xbf16>
    %154 = vector.extract_strided_slice %119 {offsets = [0, 96], sizes = [8, 32], strides = [1, 1]} : vector<8x128xbf16> to vector<8x32xbf16>
    %cst_76 = arith.constant dense<0.000000e+00> : vector<16x8xf32>
    %155 = tpu.matmul %153, %154, %cst_76 {dimension_numbers = #tpu.dot_dimension_numbers<[1], [1], [0], [0], [0, 0, 1, 0], [], []>} : vector<16x32xbf16>, vector<8x32xbf16>, vector<16x8xf32> -> vector<16x8xf32>
    %156 = tpu.concatenate %134, %140, %146, %152 in 0 : vector<16x16xf32>, vector<16x16xf32>, vector<16x16xf32>, vector<16x16xf32> -> vector<64x16xf32>
    %157 = tpu.concatenate %137, %143, %149, %155 in 0 : vector<16x8xf32>, vector<16x8xf32>, vector<16x8xf32>, vector<16x8xf32> -> vector<64x8xf32>
    %158 = vector.extract_strided_slice %157 {offsets = [0, 0], sizes = [64, 1], strides = [1, 1]} : vector<64x8xf32> to vector<64x1xf32>
    %159 = vector.broadcast %158 : vector<64x1xf32> to vector<64x16xf32>
    %160 = arith.mulf %159, %21 : vector<64x16xf32>
    %161 = arith.addf %156, %160 : vector<64x16xf32>
    %162 = vector.extract_strided_slice %157 {offsets = [0, 1], sizes = [64, 1], strides = [1, 1]} : vector<64x8xf32> to vector<64x1xf32>
    %163 = vector.broadcast %162 : vector<64x1xf32> to vector<64x16xf32>
    %164 = arith.mulf %163, %27 : vector<64x16xf32>
    %165 = arith.addf %161, %164 : vector<64x16xf32>
    %166 = vector.extract_strided_slice %157 {offsets = [0, 2], sizes = [64, 1], strides = [1, 1]} : vector<64x8xf32> to vector<64x1xf32>
    %167 = vector.broadcast %166 : vector<64x1xf32> to vector<64x16xf32>
    %168 = arith.mulf %167, %33 : vector<64x16xf32>
    %169 = arith.addf %165, %168 : vector<64x16xf32>
    %170 = vector.extract_strided_slice %157 {offsets = [0, 3], sizes = [64, 1], strides = [1, 1]} : vector<64x8xf32> to vector<64x1xf32>
    %171 = vector.broadcast %170 : vector<64x1xf32> to vector<64x16xf32>
    %172 = arith.mulf %171, %39 : vector<64x16xf32>
    %173 = arith.addf %169, %172 : vector<64x16xf32>
    %174 = vector.extract_strided_slice %157 {offsets = [0, 4], sizes = [64, 1], strides = [1, 1]} : vector<64x8xf32> to vector<64x1xf32>
    %175 = vector.broadcast %174 : vector<64x1xf32> to vector<64x16xf32>
    %176 = arith.mulf %175, %45 : vector<64x16xf32>
    %177 = arith.addf %173, %176 : vector<64x16xf32>
    %178 = vector.extract_strided_slice %157 {offsets = [0, 5], sizes = [64, 1], strides = [1, 1]} : vector<64x8xf32> to vector<64x1xf32>
    %179 = vector.broadcast %178 : vector<64x1xf32> to vector<64x16xf32>
    %180 = arith.mulf %179, %51 : vector<64x16xf32>
    %181 = arith.addf %177, %180 : vector<64x16xf32>
    %182 = vector.extract_strided_slice %157 {offsets = [0, 6], sizes = [64, 1], strides = [1, 1]} : vector<64x8xf32> to vector<64x1xf32>
    %183 = vector.broadcast %182 : vector<64x1xf32> to vector<64x16xf32>
    %184 = arith.mulf %183, %57 : vector<64x16xf32>
    %185 = arith.addf %181, %184 : vector<64x16xf32>
    %186 = vector.extract_strided_slice %157 {offsets = [0, 7], sizes = [64, 1], strides = [1, 1]} : vector<64x8xf32> to vector<64x1xf32>
    %187 = vector.broadcast %186 : vector<64x1xf32> to vector<64x16xf32>
    %188 = arith.mulf %187, %63 : vector<64x16xf32>
    %189 = arith.addf %185, %188 : vector<64x16xf32>
    %cst_77 = arith.constant 0.176776692 : f32
    %190 = vector.broadcast %cst_77 : f32 to vector<64x16xf32>
    %191 = arith.mulf %189, %190 : vector<64x16xf32>
    %192 = arith.addf %191, %15 : vector<64x16xf32>
    %cst_78 = arith.constant dense<0xFF800000> : vector<64xf32>
    %193 = vector.multi_reduction <maximumf>, %192, %cst_78 [1] : vector<64x16xf32> to vector<64xf32>
    %194 = vector.shape_cast %193 : vector<64xf32> to vector<64x1xf32>
    %195 = vector.broadcast %194 : vector<64x1xf32> to vector<64x16xf32>
    %196 = arith.subf %192, %195 : vector<64x16xf32>
    %197 = math.exp %196 : vector<64x16xf32>
    %cst_79 = arith.constant dense<0.000000e+00> : vector<64xf32>
    %198 = vector.multi_reduction <add>, %197, %cst_79 [1] : vector<64x16xf32> to vector<64xf32>
    %199 = vector.shape_cast %198 : vector<64xf32> to vector<64x1xf32>
    %200 = tpu.reciprocal %199 {approx = true} : vector<64x1xf32> -> vector<64x1xf32>
    %201 = vector.broadcast %200 : vector<64x1xf32> to vector<64x16xf32>
    %202 = arith.mulf %197, %201 : vector<64x16xf32>
    %203 = arith.truncf %202 : vector<64x16xf32> to vector<64x16xbf16>
    %204 = vector.extract_strided_slice %203 {offsets = [0, 0], sizes = [16, 16], strides = [1, 1]} : vector<64x16xbf16> to vector<16x16xbf16>
    %205 = vector.extract_strided_slice %117 {offsets = [0, 0], sizes = [16, 32], strides = [1, 1]} : vector<16x128xbf16> to vector<16x32xbf16>
    %cst_80 = arith.constant dense<0.000000e+00> : vector<16x32xf32>
    %206 = tpu.matmul %204, %205, %cst_80 {dimension_numbers = #tpu.dot_dimension_numbers<[1], [0], [0], [1], [0, 0, 1, 1], [], []>} : vector<16x16xbf16>, vector<16x32xbf16>, vector<16x32xf32> -> vector<16x32xf32>
    %207 = vector.extract_strided_slice %131 {offsets = [0, 0, 0], sizes = [1, 32, 32], strides = [1, 1, 1]} : vector<4x32x32xbf16> to vector<1x32x32xbf16>
    %208 = vector.shape_cast %207 : vector<1x32x32xbf16> to vector<32x32xbf16>
    %209 = arith.truncf %206 : vector<16x32xf32> to vector<16x32xbf16>
    %cst_81 = arith.constant dense<0.000000e+00> : vector<16x32xf32>
    %210 = tpu.matmul %209, %208, %cst_81 {dimension_numbers = #tpu.dot_dimension_numbers<[1], [0], [0], [1], [0, 0, 1, 1], [], []>} : vector<16x32xbf16>, vector<32x32xbf16>, vector<16x32xf32> -> vector<16x32xf32>
    %211 = vector.extract_strided_slice %203 {offsets = [16, 0], sizes = [16, 16], strides = [1, 1]} : vector<64x16xbf16> to vector<16x16xbf16>
    %212 = vector.extract_strided_slice %117 {offsets = [0, 32], sizes = [16, 32], strides = [1, 1]} : vector<16x128xbf16> to vector<16x32xbf16>
    %cst_82 = arith.constant dense<0.000000e+00> : vector<16x32xf32>
    %213 = tpu.matmul %211, %212, %cst_82 {dimension_numbers = #tpu.dot_dimension_numbers<[1], [0], [0], [1], [0, 0, 1, 1], [], []>} : vector<16x16xbf16>, vector<16x32xbf16>, vector<16x32xf32> -> vector<16x32xf32>
    %214 = vector.extract_strided_slice %131 {offsets = [1, 0, 0], sizes = [1, 32, 32], strides = [1, 1, 1]} : vector<4x32x32xbf16> to vector<1x32x32xbf16>
    %215 = vector.shape_cast %214 : vector<1x32x32xbf16> to vector<32x32xbf16>
    %216 = arith.truncf %213 : vector<16x32xf32> to vector<16x32xbf16>
    %cst_83 = arith.constant dense<0.000000e+00> : vector<16x32xf32>
    %217 = tpu.matmul %216, %215, %cst_83 {dimension_numbers = #tpu.dot_dimension_numbers<[1], [0], [0], [1], [0, 0, 1, 1], [], []>} : vector<16x32xbf16>, vector<32x32xbf16>, vector<16x32xf32> -> vector<16x32xf32>
    %218 = arith.addf %210, %217 : vector<16x32xf32>
    %219 = vector.extract_strided_slice %203 {offsets = [32, 0], sizes = [16, 16], strides = [1, 1]} : vector<64x16xbf16> to vector<16x16xbf16>
    %220 = vector.extract_strided_slice %117 {offsets = [0, 64], sizes = [16, 32], strides = [1, 1]} : vector<16x128xbf16> to vector<16x32xbf16>
    %cst_84 = arith.constant dense<0.000000e+00> : vector<16x32xf32>
    %221 = tpu.matmul %219, %220, %cst_84 {dimension_numbers = #tpu.dot_dimension_numbers<[1], [0], [0], [1], [0, 0, 1, 1], [], []>} : vector<16x16xbf16>, vector<16x32xbf16>, vector<16x32xf32> -> vector<16x32xf32>
    %222 = vector.extract_strided_slice %131 {offsets = [2, 0, 0], sizes = [1, 32, 32], strides = [1, 1, 1]} : vector<4x32x32xbf16> to vector<1x32x32xbf16>
    %223 = vector.shape_cast %222 : vector<1x32x32xbf16> to vector<32x32xbf16>
    %224 = arith.truncf %221 : vector<16x32xf32> to vector<16x32xbf16>
    %cst_85 = arith.constant dense<0.000000e+00> : vector<16x32xf32>
    %225 = tpu.matmul %224, %223, %cst_85 {dimension_numbers = #tpu.dot_dimension_numbers<[1], [0], [0], [1], [0, 0, 1, 1], [], []>} : vector<16x32xbf16>, vector<32x32xbf16>, vector<16x32xf32> -> vector<16x32xf32>
    %226 = arith.addf %218, %225 : vector<16x32xf32>
    %227 = vector.extract_strided_slice %203 {offsets = [48, 0], sizes = [16, 16], strides = [1, 1]} : vector<64x16xbf16> to vector<16x16xbf16>
    %228 = vector.extract_strided_slice %117 {offsets = [0, 96], sizes = [16, 32], strides = [1, 1]} : vector<16x128xbf16> to vector<16x32xbf16>
    %cst_86 = arith.constant dense<0.000000e+00> : vector<16x32xf32>
    %229 = tpu.matmul %227, %228, %cst_86 {dimension_numbers = #tpu.dot_dimension_numbers<[1], [0], [0], [1], [0, 0, 1, 1], [], []>} : vector<16x16xbf16>, vector<16x32xbf16>, vector<16x32xf32> -> vector<16x32xf32>
    %230 = vector.extract_strided_slice %131 {offsets = [3, 0, 0], sizes = [1, 32, 32], strides = [1, 1, 1]} : vector<4x32x32xbf16> to vector<1x32x32xbf16>
    %231 = vector.shape_cast %230 : vector<1x32x32xbf16> to vector<32x32xbf16>
    %232 = arith.truncf %229 : vector<16x32xf32> to vector<16x32xbf16>
    %cst_87 = arith.constant dense<0.000000e+00> : vector<16x32xf32>
    %233 = tpu.matmul %232, %231, %cst_87 {dimension_numbers = #tpu.dot_dimension_numbers<[1], [0], [0], [1], [0, 0, 1, 1], [], []>} : vector<16x32xbf16>, vector<32x32xbf16>, vector<16x32xf32> -> vector<16x32xf32>
    %234 = arith.addf %226, %233 : vector<16x32xf32>
    %c0_88 = arith.constant 0 : index
    %c0_89 = arith.constant 0 : index
    %c0_90 = arith.constant 0 : index
    %c0_91 = arith.constant 0 : index
    %235 = vector.load %arg15[%c0_88, %c0_89, %c0_90, %c0_91] : memref<3x2x32x64xbf16, #tpu.memory_space<vmem>>, vector<1x2x32x64xbf16>
    %236 = vector.shape_cast %235 : vector<1x2x32x64xbf16> to vector<2x32x64xbf16>
    %c0_92 = arith.constant 0 : index
    %c0_93 = arith.constant 0 : index
    %c0_94 = arith.constant 0 : index
    %c0_95 = arith.constant 0 : index
    %237 = vector.load %arg16[%c0_92, %c0_93, %c0_94, %c0_95] : memref<3x2x32x32xbf16, #tpu.memory_space<vmem>>, vector<1x2x32x32xbf16>
    %238 = vector.shape_cast %237 : vector<1x2x32x32xbf16> to vector<2x32x32xbf16>
    %c0_96 = arith.constant 0 : index
    %c0_97 = arith.constant 0 : index
    %c0_98 = arith.constant 0 : index
    %c0_99 = arith.constant 0 : index
    %239 = vector.load %arg17[%c0_96, %c0_97, %c0_98, %c0_99] : memref<3x2x32x64xbf16, #tpu.memory_space<vmem>>, vector<1x2x32x64xbf16>
    %240 = vector.shape_cast %239 : vector<1x2x32x64xbf16> to vector<2x32x64xbf16>
    %c0_100 = arith.constant 0 : index
    %c0_101 = arith.constant 0 : index
    %c0_102 = arith.constant 0 : index
    %c0_103 = arith.constant 0 : index
    %241 = vector.load %arg18[%c0_100, %c0_101, %c0_102, %c0_103] : memref<3x2x32x32xbf16, #tpu.memory_space<vmem>>, vector<1x2x32x32xbf16>
    %242 = vector.shape_cast %241 : vector<1x2x32x32xbf16> to vector<2x32x32xbf16>
    %c0_104 = arith.constant 0 : index
    %c0_105 = arith.constant 0 : index
    %c0_106 = arith.constant 0 : index
    %c0_107 = arith.constant 0 : index
    %243 = vector.load %arg19[%c0_104, %c0_105, %c0_106, %c0_107] : memref<3x2x1x64xf32, #tpu.memory_space<vmem>>, vector<1x2x1x64xf32>
    %244 = vector.shape_cast %243 : vector<1x2x1x64xf32> to vector<2x1x64xf32>
    %c0_108 = arith.constant 0 : index
    %c0_109 = arith.constant 0 : index
    %c0_110 = arith.constant 0 : index
    %c0_111 = arith.constant 0 : index
    %245 = vector.load %arg20[%c0_108, %c0_109, %c0_110, %c0_111] : memref<3x2x1x32xf32, #tpu.memory_space<vmem>>, vector<1x2x1x32xf32>
    %246 = vector.shape_cast %245 : vector<1x2x1x32xf32> to vector<2x1x32xf32>
    %247 = vector.extract_strided_slice %236 {offsets = [0, 0, 0], sizes = [1, 32, 64], strides = [1, 1, 1]} : vector<2x32x64xbf16> to vector<1x32x64xbf16>
    %248 = vector.shape_cast %247 : vector<1x32x64xbf16> to vector<32x64xbf16>
    %249 = vector.extract_strided_slice %238 {offsets = [0, 0, 0], sizes = [1, 32, 32], strides = [1, 1, 1]} : vector<2x32x32xbf16> to vector<1x32x32xbf16>
    %250 = vector.shape_cast %249 : vector<1x32x32xbf16> to vector<32x32xbf16>
    %251 = vector.extract_strided_slice %240 {offsets = [0, 0, 0], sizes = [1, 32, 64], strides = [1, 1, 1]} : vector<2x32x64xbf16> to vector<1x32x64xbf16>
    %252 = vector.shape_cast %251 : vector<1x32x64xbf16> to vector<32x64xbf16>
    %253 = vector.extract_strided_slice %242 {offsets = [0, 0, 0], sizes = [1, 32, 32], strides = [1, 1, 1]} : vector<2x32x32xbf16> to vector<1x32x32xbf16>
    %254 = vector.shape_cast %253 : vector<1x32x32xbf16> to vector<32x32xbf16>
    %255 = vector.extract_strided_slice %244 {offsets = [0, 0, 0], sizes = [1, 1, 64], strides = [1, 1, 1]} : vector<2x1x64xf32> to vector<1x1x64xf32>
    %256 = vector.shape_cast %255 : vector<1x1x64xf32> to vector<1x64xf32>
    %257 = vector.extract_strided_slice %246 {offsets = [0, 0, 0], sizes = [1, 1, 32], strides = [1, 1, 1]} : vector<2x1x32xf32> to vector<1x1x32xf32>
    %258 = vector.shape_cast %257 : vector<1x1x32xf32> to vector<1x32xf32>
    %259 = arith.truncf %78 : vector<16x32xf32> to vector<16x32xbf16>
    %260 = arith.truncf %234 : vector<16x32xf32> to vector<16x32xbf16>
    %cst_112 = arith.constant dense<0.000000e+00> : vector<16x64xf32>
    %261 = tpu.matmul %260, %248, %cst_112 {dimension_numbers = #tpu.dot_dimension_numbers<[1], [0], [0], [1], [0, 0, 1, 1], [], []>} : vector<16x32xbf16>, vector<32x64xbf16>, vector<16x64xf32> -> vector<16x64xf32>
    %cst_113 = arith.constant dense<0.000000e+00> : vector<16x64xf32>
    %262 = tpu.matmul %259, %252, %cst_113 {dimension_numbers = #tpu.dot_dimension_numbers<[1], [0], [0], [1], [0, 0, 1, 1], [], []>} : vector<16x32xbf16>, vector<32x64xbf16>, vector<16x64xf32> -> vector<16x64xf32>
    %263 = arith.addf %261, %262 : vector<16x64xf32>
    %264 = vector.broadcast %256 : vector<1x64xf32> to vector<16x64xf32>
    %265 = arith.addf %263, %264 : vector<16x64xf32>
    %266 = arith.negf %265 : vector<16x64xf32>
    %267 = math.exp %266 : vector<16x64xf32>
    %cst_114 = arith.constant 1.000000e+00 : f32
    %268 = vector.broadcast %cst_114 : f32 to vector<16x64xf32>
    %269 = arith.addf %268, %267 : vector<16x64xf32>
    %270 = arith.divf %268, %269 : vector<16x64xf32>
    %271 = vector.extract_strided_slice %270 {offsets = [0, 0], sizes = [16, 32], strides = [1, 1]} : vector<16x64xf32> to vector<16x32xf32>
    %272 = vector.extract_strided_slice %270 {offsets = [0, 32], sizes = [16, 32], strides = [1, 1]} : vector<16x64xf32> to vector<16x32xf32>
    %cst_115 = arith.constant dense<0.000000e+00> : vector<16x32xf32>
    %273 = tpu.matmul %260, %250, %cst_115 {dimension_numbers = #tpu.dot_dimension_numbers<[1], [0], [0], [1], [0, 0, 1, 1], [], []>} : vector<16x32xbf16>, vector<32x32xbf16>, vector<16x32xf32> -> vector<16x32xf32>
    %274 = arith.mulf %271, %78 : vector<16x32xf32>
    %275 = arith.truncf %274 : vector<16x32xf32> to vector<16x32xbf16>
    %cst_116 = arith.constant dense<0.000000e+00> : vector<16x32xf32>
    %276 = tpu.matmul %275, %254, %cst_116 {dimension_numbers = #tpu.dot_dimension_numbers<[1], [0], [0], [1], [0, 0, 1, 1], [], []>} : vector<16x32xbf16>, vector<32x32xbf16>, vector<16x32xf32> -> vector<16x32xf32>
    %277 = arith.addf %273, %276 : vector<16x32xf32>
    %278 = vector.broadcast %258 : vector<1x32xf32> to vector<16x32xf32>
    %279 = arith.addf %277, %278 : vector<16x32xf32>
    %280 = math.tanh %279 : vector<16x32xf32>
    %281 = arith.subf %280, %78 : vector<16x32xf32>
    %282 = arith.mulf %272, %281 : vector<16x32xf32>
    %283 = arith.addf %78, %282 : vector<16x32xf32>
    %284 = vector.extract_strided_slice %84 {offsets = [2, 0], sizes = [1, 32], strides = [1, 1]} : vector<4x32xf32> to vector<1x32xf32>
    %285 = vector.extract_strided_slice %84 {offsets = [3, 0], sizes = [1, 32], strides = [1, 1]} : vector<4x32xf32> to vector<1x32xf32>
    %cst_117 = arith.constant dense<0.000000e+00> : vector<16xf32>
    %286 = vector.multi_reduction <add>, %283, %cst_117 [1] : vector<16x32xf32> to vector<16xf32>
    %287 = vector.shape_cast %286 : vector<16xf32> to vector<16x1xf32>
    %cst_118 = arith.constant 3.200000e+01 : f32
    %288 = vector.broadcast %cst_118 : f32 to vector<16x1xf32>
    %289 = arith.divf %287, %288 : vector<16x1xf32>
    %290 = vector.broadcast %289 : vector<16x1xf32> to vector<16x32xf32>
    %291 = arith.subf %283, %290 : vector<16x32xf32>
    %292 = arith.mulf %291, %291 : vector<16x32xf32>
    %cst_119 = arith.constant dense<0.000000e+00> : vector<16xf32>
    %293 = vector.multi_reduction <add>, %292, %cst_119 [1] : vector<16x32xf32> to vector<16xf32>
    %294 = vector.shape_cast %293 : vector<16xf32> to vector<16x1xf32>
    %cst_120 = arith.constant 3.200000e+01 : f32
    %295 = vector.broadcast %cst_120 : f32 to vector<16x1xf32>
    %296 = arith.divf %294, %295 : vector<16x1xf32>
    %297 = vector.broadcast %289 : vector<16x1xf32> to vector<16x32xf32>
    %298 = arith.subf %283, %297 : vector<16x32xf32>
    %cst_121 = arith.constant 9.99999974E-6 : f32
    %299 = vector.broadcast %cst_121 : f32 to vector<16x1xf32>
    %300 = arith.addf %296, %299 : vector<16x1xf32>
    %301 = math.rsqrt %300 : vector<16x1xf32>
    %302 = vector.broadcast %301 : vector<16x1xf32> to vector<16x32xf32>
    %303 = arith.mulf %298, %302 : vector<16x32xf32>
    %304 = vector.broadcast %284 : vector<1x32xf32> to vector<16x32xf32>
    %305 = arith.mulf %303, %304 : vector<16x32xf32>
    %306 = vector.broadcast %285 : vector<1x32xf32> to vector<16x32xf32>
    %307 = arith.addf %305, %306 : vector<16x32xf32>
    %c0_122 = arith.constant 0 : index
    %c0_123 = arith.constant 0 : index
    %c0_124 = arith.constant 0 : index
    %308 = vector.load %arg21[%c0_122, %c0_123, %c0_124] : memref<3x32x64xbf16, #tpu.memory_space<vmem>>, vector<1x32x64xbf16>
    %309 = vector.shape_cast %308 : vector<1x32x64xbf16> to vector<32x64xbf16>
    %310 = arith.truncf %307 : vector<16x32xf32> to vector<16x32xbf16>
    %cst_125 = arith.constant dense<0.000000e+00> : vector<16x64xf32>
    %311 = tpu.matmul %310, %309, %cst_125 {dimension_numbers = #tpu.dot_dimension_numbers<[1], [0], [0], [1], [0, 0, 1, 1], [], []>} : vector<16x32xbf16>, vector<32x64xbf16>, vector<16x64xf32> -> vector<16x64xf32>
    %c0_126 = arith.constant 0 : index
    %c0_127 = arith.constant 0 : index
    %c0_128 = arith.constant 0 : index
    %312 = vector.load %arg22[%c0_126, %c0_127, %c0_128] : memref<3x1x64xf32, #tpu.memory_space<vmem>>, vector<1x1x64xf32>
    %313 = vector.shape_cast %312 : vector<1x1x64xf32> to vector<1x64xf32>
    %314 = vector.broadcast %313 : vector<1x64xf32> to vector<16x64xf32>
    %315 = arith.addf %311, %314 : vector<16x64xf32>
    %cst_129 = arith.constant 0.000000e+00 : f32
    %316 = vector.broadcast %cst_129 : f32 to vector<16x64xf32>
    %317 = arith.maximumf %315, %316 : vector<16x64xf32>
    %c0_130 = arith.constant 0 : index
    %c0_131 = arith.constant 0 : index
    %c0_132 = arith.constant 0 : index
    %318 = vector.load %arg23[%c0_130, %c0_131, %c0_132] : memref<3x64x32xbf16, #tpu.memory_space<vmem>>, vector<1x64x32xbf16>
    %319 = vector.shape_cast %318 : vector<1x64x32xbf16> to vector<64x32xbf16>
    %320 = arith.truncf %317 : vector<16x64xf32> to vector<16x64xbf16>
    %cst_133 = arith.constant dense<0.000000e+00> : vector<16x32xf32>
    %321 = tpu.matmul %320, %319, %cst_133 {dimension_numbers = #tpu.dot_dimension_numbers<[1], [0], [0], [1], [0, 0, 1, 1], [], []>} : vector<16x64xbf16>, vector<64x32xbf16>, vector<16x32xf32> -> vector<16x32xf32>
    %c0_134 = arith.constant 0 : index
    %c0_135 = arith.constant 0 : index
    %c0_136 = arith.constant 0 : index
    %322 = vector.load %arg24[%c0_134, %c0_135, %c0_136] : memref<3x1x32xf32, #tpu.memory_space<vmem>>, vector<1x1x32xf32>
    %323 = vector.shape_cast %322 : vector<1x1x32xf32> to vector<1x32xf32>
    %324 = vector.broadcast %323 : vector<1x32xf32> to vector<16x32xf32>
    %325 = arith.addf %321, %324 : vector<16x32xf32>
    %326 = vector.extract_strided_slice %236 {offsets = [1, 0, 0], sizes = [1, 32, 64], strides = [1, 1, 1]} : vector<2x32x64xbf16> to vector<1x32x64xbf16>
    %327 = vector.shape_cast %326 : vector<1x32x64xbf16> to vector<32x64xbf16>
    %328 = vector.extract_strided_slice %238 {offsets = [1, 0, 0], sizes = [1, 32, 32], strides = [1, 1, 1]} : vector<2x32x32xbf16> to vector<1x32x32xbf16>
    %329 = vector.shape_cast %328 : vector<1x32x32xbf16> to vector<32x32xbf16>
    %330 = vector.extract_strided_slice %240 {offsets = [1, 0, 0], sizes = [1, 32, 64], strides = [1, 1, 1]} : vector<2x32x64xbf16> to vector<1x32x64xbf16>
    %331 = vector.shape_cast %330 : vector<1x32x64xbf16> to vector<32x64xbf16>
    %332 = vector.extract_strided_slice %242 {offsets = [1, 0, 0], sizes = [1, 32, 32], strides = [1, 1, 1]} : vector<2x32x32xbf16> to vector<1x32x32xbf16>
    %333 = vector.shape_cast %332 : vector<1x32x32xbf16> to vector<32x32xbf16>
    %334 = vector.extract_strided_slice %244 {offsets = [1, 0, 0], sizes = [1, 1, 64], strides = [1, 1, 1]} : vector<2x1x64xf32> to vector<1x1x64xf32>
    %335 = vector.shape_cast %334 : vector<1x1x64xf32> to vector<1x64xf32>
    %336 = vector.extract_strided_slice %246 {offsets = [1, 0, 0], sizes = [1, 1, 32], strides = [1, 1, 1]} : vector<2x1x32xf32> to vector<1x1x32xf32>
    %337 = vector.shape_cast %336 : vector<1x1x32xf32> to vector<1x32xf32>
    %338 = arith.truncf %283 : vector<16x32xf32> to vector<16x32xbf16>
    %339 = arith.truncf %325 : vector<16x32xf32> to vector<16x32xbf16>
    %cst_137 = arith.constant dense<0.000000e+00> : vector<16x64xf32>
    %340 = tpu.matmul %339, %327, %cst_137 {dimension_numbers = #tpu.dot_dimension_numbers<[1], [0], [0], [1], [0, 0, 1, 1], [], []>} : vector<16x32xbf16>, vector<32x64xbf16>, vector<16x64xf32> -> vector<16x64xf32>
    %cst_138 = arith.constant dense<0.000000e+00> : vector<16x64xf32>
    %341 = tpu.matmul %338, %331, %cst_138 {dimension_numbers = #tpu.dot_dimension_numbers<[1], [0], [0], [1], [0, 0, 1, 1], [], []>} : vector<16x32xbf16>, vector<32x64xbf16>, vector<16x64xf32> -> vector<16x64xf32>
    %342 = arith.addf %340, %341 : vector<16x64xf32>
    %343 = vector.broadcast %335 : vector<1x64xf32> to vector<16x64xf32>
    %344 = arith.addf %342, %343 : vector<16x64xf32>
    %345 = arith.negf %344 : vector<16x64xf32>
    %346 = math.exp %345 : vector<16x64xf32>
    %cst_139 = arith.constant 1.000000e+00 : f32
    %347 = vector.broadcast %cst_139 : f32 to vector<16x64xf32>
    %348 = arith.addf %347, %346 : vector<16x64xf32>
    %349 = arith.divf %347, %348 : vector<16x64xf32>
    %350 = vector.extract_strided_slice %349 {offsets = [0, 0], sizes = [16, 32], strides = [1, 1]} : vector<16x64xf32> to vector<16x32xf32>
    %351 = vector.extract_strided_slice %349 {offsets = [0, 32], sizes = [16, 32], strides = [1, 1]} : vector<16x64xf32> to vector<16x32xf32>
    %cst_140 = arith.constant dense<0.000000e+00> : vector<16x32xf32>
    %352 = tpu.matmul %339, %329, %cst_140 {dimension_numbers = #tpu.dot_dimension_numbers<[1], [0], [0], [1], [0, 0, 1, 1], [], []>} : vector<16x32xbf16>, vector<32x32xbf16>, vector<16x32xf32> -> vector<16x32xf32>
    %353 = arith.mulf %350, %283 : vector<16x32xf32>
    %354 = arith.truncf %353 : vector<16x32xf32> to vector<16x32xbf16>
    %cst_141 = arith.constant dense<0.000000e+00> : vector<16x32xf32>
    %355 = tpu.matmul %354, %333, %cst_141 {dimension_numbers = #tpu.dot_dimension_numbers<[1], [0], [0], [1], [0, 0, 1, 1], [], []>} : vector<16x32xbf16>, vector<32x32xbf16>, vector<16x32xf32> -> vector<16x32xf32>
    %356 = arith.addf %352, %355 : vector<16x32xf32>
    %357 = vector.broadcast %337 : vector<1x32xf32> to vector<16x32xf32>
    %358 = arith.addf %356, %357 : vector<16x32xf32>
    %359 = math.tanh %358 : vector<16x32xf32>
    %360 = arith.subf %359, %283 : vector<16x32xf32>
    %361 = arith.mulf %351, %360 : vector<16x32xf32>
    %362 = arith.addf %283, %361 : vector<16x32xf32>
    %c1 = arith.constant 1 : index
    %c0_142 = arith.constant 0 : index
    %c0_143 = arith.constant 0 : index
    %363 = vector.load %arg14[%c1, %c0_142, %c0_143] : memref<3x4x32xf32, #tpu.memory_space<vmem>>, vector<1x4x32xf32>
    %364 = vector.shape_cast %363 : vector<1x4x32xf32> to vector<4x32xf32>
    %365 = vector.extract_strided_slice %364 {offsets = [0, 0], sizes = [1, 32], strides = [1, 1]} : vector<4x32xf32> to vector<1x32xf32>
    %366 = vector.extract_strided_slice %364 {offsets = [1, 0], sizes = [1, 32], strides = [1, 1]} : vector<4x32xf32> to vector<1x32xf32>
    %cst_144 = arith.constant dense<0.000000e+00> : vector<16xf32>
    %367 = vector.multi_reduction <add>, %362, %cst_144 [1] : vector<16x32xf32> to vector<16xf32>
    %368 = vector.shape_cast %367 : vector<16xf32> to vector<16x1xf32>
    %cst_145 = arith.constant 3.200000e+01 : f32
    %369 = vector.broadcast %cst_145 : f32 to vector<16x1xf32>
    %370 = arith.divf %368, %369 : vector<16x1xf32>
    %371 = vector.broadcast %370 : vector<16x1xf32> to vector<16x32xf32>
    %372 = arith.subf %362, %371 : vector<16x32xf32>
    %373 = arith.mulf %372, %372 : vector<16x32xf32>
    %cst_146 = arith.constant dense<0.000000e+00> : vector<16xf32>
    %374 = vector.multi_reduction <add>, %373, %cst_146 [1] : vector<16x32xf32> to vector<16xf32>
    %375 = vector.shape_cast %374 : vector<16xf32> to vector<16x1xf32>
    %cst_147 = arith.constant 3.200000e+01 : f32
    %376 = vector.broadcast %cst_147 : f32 to vector<16x1xf32>
    %377 = arith.divf %375, %376 : vector<16x1xf32>
    %378 = vector.broadcast %370 : vector<16x1xf32> to vector<16x32xf32>
    %379 = arith.subf %362, %378 : vector<16x32xf32>
    %cst_148 = arith.constant 9.99999974E-6 : f32
    %380 = vector.broadcast %cst_148 : f32 to vector<16x1xf32>
    %381 = arith.addf %377, %380 : vector<16x1xf32>
    %382 = math.rsqrt %381 : vector<16x1xf32>
    %383 = vector.broadcast %382 : vector<16x1xf32> to vector<16x32xf32>
    %384 = arith.mulf %379, %383 : vector<16x32xf32>
    %385 = vector.broadcast %365 : vector<1x32xf32> to vector<16x32xf32>
    %386 = arith.mulf %384, %385 : vector<16x32xf32>
    %387 = vector.broadcast %366 : vector<1x32xf32> to vector<16x32xf32>
    %388 = arith.addf %386, %387 : vector<16x32xf32>
    %c1_149 = arith.constant 1 : index
    %c0_150 = arith.constant 0 : index
    %c0_151 = arith.constant 0 : index
    %389 = vector.load %arg10[%c1_149, %c0_150, %c0_151] : memref<3x32x384xbf16, #tpu.memory_space<vmem>>, vector<1x32x384xbf16>
    %390 = vector.shape_cast %389 : vector<1x32x384xbf16> to vector<32x384xbf16>
    %391 = arith.truncf %388 : vector<16x32xf32> to vector<16x32xbf16>
    %cst_152 = arith.constant dense<0.000000e+00> : vector<16x384xf32>
    %392 = tpu.matmul %391, %390, %cst_152 {dimension_numbers = #tpu.dot_dimension_numbers<[1], [0], [0], [1], [0, 0, 1, 1], [], []>} : vector<16x32xbf16>, vector<32x384xbf16>, vector<16x384xf32> -> vector<16x384xf32>
    %393 = vector.extract_strided_slice %392 {offsets = [0, 0], sizes = [16, 128], strides = [1, 1]} : vector<16x384xf32> to vector<16x128xf32>
    %394 = vector.extract_strided_slice %392 {offsets = [0, 128], sizes = [16, 128], strides = [1, 1]} : vector<16x384xf32> to vector<16x128xf32>
    %395 = arith.truncf %394 : vector<16x128xf32> to vector<16x128xbf16>
    %396 = vector.extract_strided_slice %392 {offsets = [0, 256], sizes = [16, 128], strides = [1, 1]} : vector<16x384xf32> to vector<16x128xf32>
    %397 = arith.truncf %396 : vector<16x128xf32> to vector<16x128xbf16>
    %398 = vector.extract_strided_slice %81 {offsets = [0, 128], sizes = [8, 128], strides = [1, 1]} : vector<8x384xf32> to vector<8x128xf32>
    %399 = arith.truncf %398 : vector<8x128xf32> to vector<8x128xbf16>
    %400 = vector.extract_strided_slice %82 {offsets = [0, 0, 0], sizes = [1, 1, 128], strides = [1, 1, 1]} : vector<2x1x128xf32> to vector<1x1x128xf32>
    %401 = vector.shape_cast %400 : vector<1x1x128xf32> to vector<1x128xf32>
    %402 = vector.broadcast %401 : vector<1x128xf32> to vector<16x128xf32>
    %403 = arith.addf %393, %402 : vector<16x128xf32>
    %404 = arith.truncf %403 : vector<16x128xf32> to vector<16x128xbf16>
    %405 = vector.extract_strided_slice %82 {offsets = [1, 0, 0], sizes = [1, 1, 128], strides = [1, 1, 1]} : vector<2x1x128xf32> to vector<1x1x128xf32>
    %406 = vector.shape_cast %405 : vector<1x1x128xf32> to vector<1x128xf32>
    %407 = vector.broadcast %406 : vector<1x128xf32> to vector<16x128xf32>
    %408 = arith.addf %393, %407 : vector<16x128xf32>
    %409 = arith.truncf %408 : vector<16x128xf32> to vector<16x128xbf16>
    %c1_153 = arith.constant 1 : index
    %c0_154 = arith.constant 0 : index
    %c0_155 = arith.constant 0 : index
    %c0_156 = arith.constant 0 : index
    %410 = vector.load %arg12[%c1_153, %c0_154, %c0_155, %c0_156] : memref<3x4x32x32xbf16, #tpu.memory_space<vmem>>, vector<1x4x32x32xbf16>
    %411 = vector.shape_cast %410 : vector<1x4x32x32xbf16> to vector<4x32x32xbf16>
    %412 = vector.extract_strided_slice %404 {offsets = [0, 0], sizes = [16, 32], strides = [1, 1]} : vector<16x128xbf16> to vector<16x32xbf16>
    %413 = vector.extract_strided_slice %395 {offsets = [0, 0], sizes = [16, 32], strides = [1, 1]} : vector<16x128xbf16> to vector<16x32xbf16>
    %cst_157 = arith.constant dense<0.000000e+00> : vector<16x16xf32>
    %414 = tpu.matmul %412, %413, %cst_157 {dimension_numbers = #tpu.dot_dimension_numbers<[1], [1], [0], [0], [0, 0, 1, 0], [], []>} : vector<16x32xbf16>, vector<16x32xbf16>, vector<16x16xf32> -> vector<16x16xf32>
    %415 = vector.extract_strided_slice %409 {offsets = [0, 0], sizes = [16, 32], strides = [1, 1]} : vector<16x128xbf16> to vector<16x32xbf16>
    %416 = vector.extract_strided_slice %399 {offsets = [0, 0], sizes = [8, 32], strides = [1, 1]} : vector<8x128xbf16> to vector<8x32xbf16>
    %cst_158 = arith.constant dense<0.000000e+00> : vector<16x8xf32>
    %417 = tpu.matmul %415, %416, %cst_158 {dimension_numbers = #tpu.dot_dimension_numbers<[1], [1], [0], [0], [0, 0, 1, 0], [], []>} : vector<16x32xbf16>, vector<8x32xbf16>, vector<16x8xf32> -> vector<16x8xf32>
    %418 = vector.extract_strided_slice %404 {offsets = [0, 32], sizes = [16, 32], strides = [1, 1]} : vector<16x128xbf16> to vector<16x32xbf16>
    %419 = vector.extract_strided_slice %395 {offsets = [0, 32], sizes = [16, 32], strides = [1, 1]} : vector<16x128xbf16> to vector<16x32xbf16>
    %cst_159 = arith.constant dense<0.000000e+00> : vector<16x16xf32>
    %420 = tpu.matmul %418, %419, %cst_159 {dimension_numbers = #tpu.dot_dimension_numbers<[1], [1], [0], [0], [0, 0, 1, 0], [], []>} : vector<16x32xbf16>, vector<16x32xbf16>, vector<16x16xf32> -> vector<16x16xf32>
    %421 = vector.extract_strided_slice %409 {offsets = [0, 32], sizes = [16, 32], strides = [1, 1]} : vector<16x128xbf16> to vector<16x32xbf16>
    %422 = vector.extract_strided_slice %399 {offsets = [0, 32], sizes = [8, 32], strides = [1, 1]} : vector<8x128xbf16> to vector<8x32xbf16>
    %cst_160 = arith.constant dense<0.000000e+00> : vector<16x8xf32>
    %423 = tpu.matmul %421, %422, %cst_160 {dimension_numbers = #tpu.dot_dimension_numbers<[1], [1], [0], [0], [0, 0, 1, 0], [], []>} : vector<16x32xbf16>, vector<8x32xbf16>, vector<16x8xf32> -> vector<16x8xf32>
    %424 = vector.extract_strided_slice %404 {offsets = [0, 64], sizes = [16, 32], strides = [1, 1]} : vector<16x128xbf16> to vector<16x32xbf16>
    %425 = vector.extract_strided_slice %395 {offsets = [0, 64], sizes = [16, 32], strides = [1, 1]} : vector<16x128xbf16> to vector<16x32xbf16>
    %cst_161 = arith.constant dense<0.000000e+00> : vector<16x16xf32>
    %426 = tpu.matmul %424, %425, %cst_161 {dimension_numbers = #tpu.dot_dimension_numbers<[1], [1], [0], [0], [0, 0, 1, 0], [], []>} : vector<16x32xbf16>, vector<16x32xbf16>, vector<16x16xf32> -> vector<16x16xf32>
    %427 = vector.extract_strided_slice %409 {offsets = [0, 64], sizes = [16, 32], strides = [1, 1]} : vector<16x128xbf16> to vector<16x32xbf16>
    %428 = vector.extract_strided_slice %399 {offsets = [0, 64], sizes = [8, 32], strides = [1, 1]} : vector<8x128xbf16> to vector<8x32xbf16>
    %cst_162 = arith.constant dense<0.000000e+00> : vector<16x8xf32>
    %429 = tpu.matmul %427, %428, %cst_162 {dimension_numbers = #tpu.dot_dimension_numbers<[1], [1], [0], [0], [0, 0, 1, 0], [], []>} : vector<16x32xbf16>, vector<8x32xbf16>, vector<16x8xf32> -> vector<16x8xf32>
    %430 = vector.extract_strided_slice %404 {offsets = [0, 96], sizes = [16, 32], strides = [1, 1]} : vector<16x128xbf16> to vector<16x32xbf16>
    %431 = vector.extract_strided_slice %395 {offsets = [0, 96], sizes = [16, 32], strides = [1, 1]} : vector<16x128xbf16> to vector<16x32xbf16>
    %cst_163 = arith.constant dense<0.000000e+00> : vector<16x16xf32>
    %432 = tpu.matmul %430, %431, %cst_163 {dimension_numbers = #tpu.dot_dimension_numbers<[1], [1], [0], [0], [0, 0, 1, 0], [], []>} : vector<16x32xbf16>, vector<16x32xbf16>, vector<16x16xf32> -> vector<16x16xf32>
    %433 = vector.extract_strided_slice %409 {offsets = [0, 96], sizes = [16, 32], strides = [1, 1]} : vector<16x128xbf16> to vector<16x32xbf16>
    %434 = vector.extract_strided_slice %399 {offsets = [0, 96], sizes = [8, 32], strides = [1, 1]} : vector<8x128xbf16> to vector<8x32xbf16>
    %cst_164 = arith.constant dense<0.000000e+00> : vector<16x8xf32>
    %435 = tpu.matmul %433, %434, %cst_164 {dimension_numbers = #tpu.dot_dimension_numbers<[1], [1], [0], [0], [0, 0, 1, 0], [], []>} : vector<16x32xbf16>, vector<8x32xbf16>, vector<16x8xf32> -> vector<16x8xf32>
    %436 = tpu.concatenate %414, %420, %426, %432 in 0 : vector<16x16xf32>, vector<16x16xf32>, vector<16x16xf32>, vector<16x16xf32> -> vector<64x16xf32>
    %437 = tpu.concatenate %417, %423, %429, %435 in 0 : vector<16x8xf32>, vector<16x8xf32>, vector<16x8xf32>, vector<16x8xf32> -> vector<64x8xf32>
    %438 = vector.extract_strided_slice %437 {offsets = [0, 0], sizes = [64, 1], strides = [1, 1]} : vector<64x8xf32> to vector<64x1xf32>
    %439 = vector.broadcast %438 : vector<64x1xf32> to vector<64x16xf32>
    %440 = arith.mulf %439, %21 : vector<64x16xf32>
    %441 = arith.addf %436, %440 : vector<64x16xf32>
    %442 = vector.extract_strided_slice %437 {offsets = [0, 1], sizes = [64, 1], strides = [1, 1]} : vector<64x8xf32> to vector<64x1xf32>
    %443 = vector.broadcast %442 : vector<64x1xf32> to vector<64x16xf32>
    %444 = arith.mulf %443, %27 : vector<64x16xf32>
    %445 = arith.addf %441, %444 : vector<64x16xf32>
    %446 = vector.extract_strided_slice %437 {offsets = [0, 2], sizes = [64, 1], strides = [1, 1]} : vector<64x8xf32> to vector<64x1xf32>
    %447 = vector.broadcast %446 : vector<64x1xf32> to vector<64x16xf32>
    %448 = arith.mulf %447, %33 : vector<64x16xf32>
    %449 = arith.addf %445, %448 : vector<64x16xf32>
    %450 = vector.extract_strided_slice %437 {offsets = [0, 3], sizes = [64, 1], strides = [1, 1]} : vector<64x8xf32> to vector<64x1xf32>
    %451 = vector.broadcast %450 : vector<64x1xf32> to vector<64x16xf32>
    %452 = arith.mulf %451, %39 : vector<64x16xf32>
    %453 = arith.addf %449, %452 : vector<64x16xf32>
    %454 = vector.extract_strided_slice %437 {offsets = [0, 4], sizes = [64, 1], strides = [1, 1]} : vector<64x8xf32> to vector<64x1xf32>
    %455 = vector.broadcast %454 : vector<64x1xf32> to vector<64x16xf32>
    %456 = arith.mulf %455, %45 : vector<64x16xf32>
    %457 = arith.addf %453, %456 : vector<64x16xf32>
    %458 = vector.extract_strided_slice %437 {offsets = [0, 5], sizes = [64, 1], strides = [1, 1]} : vector<64x8xf32> to vector<64x1xf32>
    %459 = vector.broadcast %458 : vector<64x1xf32> to vector<64x16xf32>
    %460 = arith.mulf %459, %51 : vector<64x16xf32>
    %461 = arith.addf %457, %460 : vector<64x16xf32>
    %462 = vector.extract_strided_slice %437 {offsets = [0, 6], sizes = [64, 1], strides = [1, 1]} : vector<64x8xf32> to vector<64x1xf32>
    %463 = vector.broadcast %462 : vector<64x1xf32> to vector<64x16xf32>
    %464 = arith.mulf %463, %57 : vector<64x16xf32>
    %465 = arith.addf %461, %464 : vector<64x16xf32>
    %466 = vector.extract_strided_slice %437 {offsets = [0, 7], sizes = [64, 1], strides = [1, 1]} : vector<64x8xf32> to vector<64x1xf32>
    %467 = vector.broadcast %466 : vector<64x1xf32> to vector<64x16xf32>
    %468 = arith.mulf %467, %63 : vector<64x16xf32>
    %469 = arith.addf %465, %468 : vector<64x16xf32>
    %cst_165 = arith.constant 0.176776692 : f32
    %470 = vector.broadcast %cst_165 : f32 to vector<64x16xf32>
    %471 = arith.mulf %469, %470 : vector<64x16xf32>
    %472 = arith.addf %471, %15 : vector<64x16xf32>
    %cst_166 = arith.constant dense<0xFF800000> : vector<64xf32>
    %473 = vector.multi_reduction <maximumf>, %472, %cst_166 [1] : vector<64x16xf32> to vector<64xf32>
    %474 = vector.shape_cast %473 : vector<64xf32> to vector<64x1xf32>
    %475 = vector.broadcast %474 : vector<64x1xf32> to vector<64x16xf32>
    %476 = arith.subf %472, %475 : vector<64x16xf32>
    %477 = math.exp %476 : vector<64x16xf32>
    %cst_167 = arith.constant dense<0.000000e+00> : vector<64xf32>
    %478 = vector.multi_reduction <add>, %477, %cst_167 [1] : vector<64x16xf32> to vector<64xf32>
    %479 = vector.shape_cast %478 : vector<64xf32> to vector<64x1xf32>
    %480 = tpu.reciprocal %479 {approx = true} : vector<64x1xf32> -> vector<64x1xf32>
    %481 = vector.broadcast %480 : vector<64x1xf32> to vector<64x16xf32>
    %482 = arith.mulf %477, %481 : vector<64x16xf32>
    %483 = arith.truncf %482 : vector<64x16xf32> to vector<64x16xbf16>
    %484 = vector.extract_strided_slice %483 {offsets = [0, 0], sizes = [16, 16], strides = [1, 1]} : vector<64x16xbf16> to vector<16x16xbf16>
    %485 = vector.extract_strided_slice %397 {offsets = [0, 0], sizes = [16, 32], strides = [1, 1]} : vector<16x128xbf16> to vector<16x32xbf16>
    %cst_168 = arith.constant dense<0.000000e+00> : vector<16x32xf32>
    %486 = tpu.matmul %484, %485, %cst_168 {dimension_numbers = #tpu.dot_dimension_numbers<[1], [0], [0], [1], [0, 0, 1, 1], [], []>} : vector<16x16xbf16>, vector<16x32xbf16>, vector<16x32xf32> -> vector<16x32xf32>
    %487 = vector.extract_strided_slice %411 {offsets = [0, 0, 0], sizes = [1, 32, 32], strides = [1, 1, 1]} : vector<4x32x32xbf16> to vector<1x32x32xbf16>
    %488 = vector.shape_cast %487 : vector<1x32x32xbf16> to vector<32x32xbf16>
    %489 = arith.truncf %486 : vector<16x32xf32> to vector<16x32xbf16>
    %cst_169 = arith.constant dense<0.000000e+00> : vector<16x32xf32>
    %490 = tpu.matmul %489, %488, %cst_169 {dimension_numbers = #tpu.dot_dimension_numbers<[1], [0], [0], [1], [0, 0, 1, 1], [], []>} : vector<16x32xbf16>, vector<32x32xbf16>, vector<16x32xf32> -> vector<16x32xf32>
    %491 = vector.extract_strided_slice %483 {offsets = [16, 0], sizes = [16, 16], strides = [1, 1]} : vector<64x16xbf16> to vector<16x16xbf16>
    %492 = vector.extract_strided_slice %397 {offsets = [0, 32], sizes = [16, 32], strides = [1, 1]} : vector<16x128xbf16> to vector<16x32xbf16>
    %cst_170 = arith.constant dense<0.000000e+00> : vector<16x32xf32>
    %493 = tpu.matmul %491, %492, %cst_170 {dimension_numbers = #tpu.dot_dimension_numbers<[1], [0], [0], [1], [0, 0, 1, 1], [], []>} : vector<16x16xbf16>, vector<16x32xbf16>, vector<16x32xf32> -> vector<16x32xf32>
    %494 = vector.extract_strided_slice %411 {offsets = [1, 0, 0], sizes = [1, 32, 32], strides = [1, 1, 1]} : vector<4x32x32xbf16> to vector<1x32x32xbf16>
    %495 = vector.shape_cast %494 : vector<1x32x32xbf16> to vector<32x32xbf16>
    %496 = arith.truncf %493 : vector<16x32xf32> to vector<16x32xbf16>
    %cst_171 = arith.constant dense<0.000000e+00> : vector<16x32xf32>
    %497 = tpu.matmul %496, %495, %cst_171 {dimension_numbers = #tpu.dot_dimension_numbers<[1], [0], [0], [1], [0, 0, 1, 1], [], []>} : vector<16x32xbf16>, vector<32x32xbf16>, vector<16x32xf32> -> vector<16x32xf32>
    %498 = arith.addf %490, %497 : vector<16x32xf32>
    %499 = vector.extract_strided_slice %483 {offsets = [32, 0], sizes = [16, 16], strides = [1, 1]} : vector<64x16xbf16> to vector<16x16xbf16>
    %500 = vector.extract_strided_slice %397 {offsets = [0, 64], sizes = [16, 32], strides = [1, 1]} : vector<16x128xbf16> to vector<16x32xbf16>
    %cst_172 = arith.constant dense<0.000000e+00> : vector<16x32xf32>
    %501 = tpu.matmul %499, %500, %cst_172 {dimension_numbers = #tpu.dot_dimension_numbers<[1], [0], [0], [1], [0, 0, 1, 1], [], []>} : vector<16x16xbf16>, vector<16x32xbf16>, vector<16x32xf32> -> vector<16x32xf32>
    %502 = vector.extract_strided_slice %411 {offsets = [2, 0, 0], sizes = [1, 32, 32], strides = [1, 1, 1]} : vector<4x32x32xbf16> to vector<1x32x32xbf16>
    %503 = vector.shape_cast %502 : vector<1x32x32xbf16> to vector<32x32xbf16>
    %504 = arith.truncf %501 : vector<16x32xf32> to vector<16x32xbf16>
    %cst_173 = arith.constant dense<0.000000e+00> : vector<16x32xf32>
    %505 = tpu.matmul %504, %503, %cst_173 {dimension_numbers = #tpu.dot_dimension_numbers<[1], [0], [0], [1], [0, 0, 1, 1], [], []>} : vector<16x32xbf16>, vector<32x32xbf16>, vector<16x32xf32> -> vector<16x32xf32>
    %506 = arith.addf %498, %505 : vector<16x32xf32>
    %507 = vector.extract_strided_slice %483 {offsets = [48, 0], sizes = [16, 16], strides = [1, 1]} : vector<64x16xbf16> to vector<16x16xbf16>
    %508 = vector.extract_strided_slice %397 {offsets = [0, 96], sizes = [16, 32], strides = [1, 1]} : vector<16x128xbf16> to vector<16x32xbf16>
    %cst_174 = arith.constant dense<0.000000e+00> : vector<16x32xf32>
    %509 = tpu.matmul %507, %508, %cst_174 {dimension_numbers = #tpu.dot_dimension_numbers<[1], [0], [0], [1], [0, 0, 1, 1], [], []>} : vector<16x16xbf16>, vector<16x32xbf16>, vector<16x32xf32> -> vector<16x32xf32>
    %510 = vector.extract_strided_slice %411 {offsets = [3, 0, 0], sizes = [1, 32, 32], strides = [1, 1, 1]} : vector<4x32x32xbf16> to vector<1x32x32xbf16>
    %511 = vector.shape_cast %510 : vector<1x32x32xbf16> to vector<32x32xbf16>
    %512 = arith.truncf %509 : vector<16x32xf32> to vector<16x32xbf16>
    %cst_175 = arith.constant dense<0.000000e+00> : vector<16x32xf32>
    %513 = tpu.matmul %512, %511, %cst_175 {dimension_numbers = #tpu.dot_dimension_numbers<[1], [0], [0], [1], [0, 0, 1, 1], [], []>} : vector<16x32xbf16>, vector<32x32xbf16>, vector<16x32xf32> -> vector<16x32xf32>
    %514 = arith.addf %506, %513 : vector<16x32xf32>
    %c1_176 = arith.constant 1 : index
    %c0_177 = arith.constant 0 : index
    %c0_178 = arith.constant 0 : index
    %c0_179 = arith.constant 0 : index
    %515 = vector.load %arg15[%c1_176, %c0_177, %c0_178, %c0_179] : memref<3x2x32x64xbf16, #tpu.memory_space<vmem>>, vector<1x2x32x64xbf16>
    %516 = vector.shape_cast %515 : vector<1x2x32x64xbf16> to vector<2x32x64xbf16>
    %c1_180 = arith.constant 1 : index
    %c0_181 = arith.constant 0 : index
    %c0_182 = arith.constant 0 : index
    %c0_183 = arith.constant 0 : index
    %517 = vector.load %arg16[%c1_180, %c0_181, %c0_182, %c0_183] : memref<3x2x32x32xbf16, #tpu.memory_space<vmem>>, vector<1x2x32x32xbf16>
    %518 = vector.shape_cast %517 : vector<1x2x32x32xbf16> to vector<2x32x32xbf16>
    %c1_184 = arith.constant 1 : index
    %c0_185 = arith.constant 0 : index
    %c0_186 = arith.constant 0 : index
    %c0_187 = arith.constant 0 : index
    %519 = vector.load %arg17[%c1_184, %c0_185, %c0_186, %c0_187] : memref<3x2x32x64xbf16, #tpu.memory_space<vmem>>, vector<1x2x32x64xbf16>
    %520 = vector.shape_cast %519 : vector<1x2x32x64xbf16> to vector<2x32x64xbf16>
    %c1_188 = arith.constant 1 : index
    %c0_189 = arith.constant 0 : index
    %c0_190 = arith.constant 0 : index
    %c0_191 = arith.constant 0 : index
    %521 = vector.load %arg18[%c1_188, %c0_189, %c0_190, %c0_191] : memref<3x2x32x32xbf16, #tpu.memory_space<vmem>>, vector<1x2x32x32xbf16>
    %522 = vector.shape_cast %521 : vector<1x2x32x32xbf16> to vector<2x32x32xbf16>
    %c1_192 = arith.constant 1 : index
    %c0_193 = arith.constant 0 : index
    %c0_194 = arith.constant 0 : index
    %c0_195 = arith.constant 0 : index
    %523 = vector.load %arg19[%c1_192, %c0_193, %c0_194, %c0_195] : memref<3x2x1x64xf32, #tpu.memory_space<vmem>>, vector<1x2x1x64xf32>
    %524 = vector.shape_cast %523 : vector<1x2x1x64xf32> to vector<2x1x64xf32>
    %c1_196 = arith.constant 1 : index
    %c0_197 = arith.constant 0 : index
    %c0_198 = arith.constant 0 : index
    %c0_199 = arith.constant 0 : index
    %525 = vector.load %arg20[%c1_196, %c0_197, %c0_198, %c0_199] : memref<3x2x1x32xf32, #tpu.memory_space<vmem>>, vector<1x2x1x32xf32>
    %526 = vector.shape_cast %525 : vector<1x2x1x32xf32> to vector<2x1x32xf32>
    %527 = vector.extract_strided_slice %516 {offsets = [0, 0, 0], sizes = [1, 32, 64], strides = [1, 1, 1]} : vector<2x32x64xbf16> to vector<1x32x64xbf16>
    %528 = vector.shape_cast %527 : vector<1x32x64xbf16> to vector<32x64xbf16>
    %529 = vector.extract_strided_slice %518 {offsets = [0, 0, 0], sizes = [1, 32, 32], strides = [1, 1, 1]} : vector<2x32x32xbf16> to vector<1x32x32xbf16>
    %530 = vector.shape_cast %529 : vector<1x32x32xbf16> to vector<32x32xbf16>
    %531 = vector.extract_strided_slice %520 {offsets = [0, 0, 0], sizes = [1, 32, 64], strides = [1, 1, 1]} : vector<2x32x64xbf16> to vector<1x32x64xbf16>
    %532 = vector.shape_cast %531 : vector<1x32x64xbf16> to vector<32x64xbf16>
    %533 = vector.extract_strided_slice %522 {offsets = [0, 0, 0], sizes = [1, 32, 32], strides = [1, 1, 1]} : vector<2x32x32xbf16> to vector<1x32x32xbf16>
    %534 = vector.shape_cast %533 : vector<1x32x32xbf16> to vector<32x32xbf16>
    %535 = vector.extract_strided_slice %524 {offsets = [0, 0, 0], sizes = [1, 1, 64], strides = [1, 1, 1]} : vector<2x1x64xf32> to vector<1x1x64xf32>
    %536 = vector.shape_cast %535 : vector<1x1x64xf32> to vector<1x64xf32>
    %537 = vector.extract_strided_slice %526 {offsets = [0, 0, 0], sizes = [1, 1, 32], strides = [1, 1, 1]} : vector<2x1x32xf32> to vector<1x1x32xf32>
    %538 = vector.shape_cast %537 : vector<1x1x32xf32> to vector<1x32xf32>
    %539 = arith.truncf %362 : vector<16x32xf32> to vector<16x32xbf16>
    %540 = arith.truncf %514 : vector<16x32xf32> to vector<16x32xbf16>
    %cst_200 = arith.constant dense<0.000000e+00> : vector<16x64xf32>
    %541 = tpu.matmul %540, %528, %cst_200 {dimension_numbers = #tpu.dot_dimension_numbers<[1], [0], [0], [1], [0, 0, 1, 1], [], []>} : vector<16x32xbf16>, vector<32x64xbf16>, vector<16x64xf32> -> vector<16x64xf32>
    %cst_201 = arith.constant dense<0.000000e+00> : vector<16x64xf32>
    %542 = tpu.matmul %539, %532, %cst_201 {dimension_numbers = #tpu.dot_dimension_numbers<[1], [0], [0], [1], [0, 0, 1, 1], [], []>} : vector<16x32xbf16>, vector<32x64xbf16>, vector<16x64xf32> -> vector<16x64xf32>
    %543 = arith.addf %541, %542 : vector<16x64xf32>
    %544 = vector.broadcast %536 : vector<1x64xf32> to vector<16x64xf32>
    %545 = arith.addf %543, %544 : vector<16x64xf32>
    %546 = arith.negf %545 : vector<16x64xf32>
    %547 = math.exp %546 : vector<16x64xf32>
    %cst_202 = arith.constant 1.000000e+00 : f32
    %548 = vector.broadcast %cst_202 : f32 to vector<16x64xf32>
    %549 = arith.addf %548, %547 : vector<16x64xf32>
    %550 = arith.divf %548, %549 : vector<16x64xf32>
    %551 = vector.extract_strided_slice %550 {offsets = [0, 0], sizes = [16, 32], strides = [1, 1]} : vector<16x64xf32> to vector<16x32xf32>
    %552 = vector.extract_strided_slice %550 {offsets = [0, 32], sizes = [16, 32], strides = [1, 1]} : vector<16x64xf32> to vector<16x32xf32>
    %cst_203 = arith.constant dense<0.000000e+00> : vector<16x32xf32>
    %553 = tpu.matmul %540, %530, %cst_203 {dimension_numbers = #tpu.dot_dimension_numbers<[1], [0], [0], [1], [0, 0, 1, 1], [], []>} : vector<16x32xbf16>, vector<32x32xbf16>, vector<16x32xf32> -> vector<16x32xf32>
    %554 = arith.mulf %551, %362 : vector<16x32xf32>
    %555 = arith.truncf %554 : vector<16x32xf32> to vector<16x32xbf16>
    %cst_204 = arith.constant dense<0.000000e+00> : vector<16x32xf32>
    %556 = tpu.matmul %555, %534, %cst_204 {dimension_numbers = #tpu.dot_dimension_numbers<[1], [0], [0], [1], [0, 0, 1, 1], [], []>} : vector<16x32xbf16>, vector<32x32xbf16>, vector<16x32xf32> -> vector<16x32xf32>
    %557 = arith.addf %553, %556 : vector<16x32xf32>
    %558 = vector.broadcast %538 : vector<1x32xf32> to vector<16x32xf32>
    %559 = arith.addf %557, %558 : vector<16x32xf32>
    %560 = math.tanh %559 : vector<16x32xf32>
    %561 = arith.subf %560, %362 : vector<16x32xf32>
    %562 = arith.mulf %552, %561 : vector<16x32xf32>
    %563 = arith.addf %362, %562 : vector<16x32xf32>
    %564 = vector.extract_strided_slice %364 {offsets = [2, 0], sizes = [1, 32], strides = [1, 1]} : vector<4x32xf32> to vector<1x32xf32>
    %565 = vector.extract_strided_slice %364 {offsets = [3, 0], sizes = [1, 32], strides = [1, 1]} : vector<4x32xf32> to vector<1x32xf32>
    %cst_205 = arith.constant dense<0.000000e+00> : vector<16xf32>
    %566 = vector.multi_reduction <add>, %563, %cst_205 [1] : vector<16x32xf32> to vector<16xf32>
    %567 = vector.shape_cast %566 : vector<16xf32> to vector<16x1xf32>
    %cst_206 = arith.constant 3.200000e+01 : f32
    %568 = vector.broadcast %cst_206 : f32 to vector<16x1xf32>
    %569 = arith.divf %567, %568 : vector<16x1xf32>
    %570 = vector.broadcast %569 : vector<16x1xf32> to vector<16x32xf32>
    %571 = arith.subf %563, %570 : vector<16x32xf32>
    %572 = arith.mulf %571, %571 : vector<16x32xf32>
    %cst_207 = arith.constant dense<0.000000e+00> : vector<16xf32>
    %573 = vector.multi_reduction <add>, %572, %cst_207 [1] : vector<16x32xf32> to vector<16xf32>
    %574 = vector.shape_cast %573 : vector<16xf32> to vector<16x1xf32>
    %cst_208 = arith.constant 3.200000e+01 : f32
    %575 = vector.broadcast %cst_208 : f32 to vector<16x1xf32>
    %576 = arith.divf %574, %575 : vector<16x1xf32>
    %577 = vector.broadcast %569 : vector<16x1xf32> to vector<16x32xf32>
    %578 = arith.subf %563, %577 : vector<16x32xf32>
    %cst_209 = arith.constant 9.99999974E-6 : f32
    %579 = vector.broadcast %cst_209 : f32 to vector<16x1xf32>
    %580 = arith.addf %576, %579 : vector<16x1xf32>
    %581 = math.rsqrt %580 : vector<16x1xf32>
    %582 = vector.broadcast %581 : vector<16x1xf32> to vector<16x32xf32>
    %583 = arith.mulf %578, %582 : vector<16x32xf32>
    %584 = vector.broadcast %564 : vector<1x32xf32> to vector<16x32xf32>
    %585 = arith.mulf %583, %584 : vector<16x32xf32>
    %586 = vector.broadcast %565 : vector<1x32xf32> to vector<16x32xf32>
    %587 = arith.addf %585, %586 : vector<16x32xf32>
    %c1_210 = arith.constant 1 : index
    %c0_211 = arith.constant 0 : index
    %c0_212 = arith.constant 0 : index
    %588 = vector.load %arg21[%c1_210, %c0_211, %c0_212] : memref<3x32x64xbf16, #tpu.memory_space<vmem>>, vector<1x32x64xbf16>
    %589 = vector.shape_cast %588 : vector<1x32x64xbf16> to vector<32x64xbf16>
    %590 = arith.truncf %587 : vector<16x32xf32> to vector<16x32xbf16>
    %cst_213 = arith.constant dense<0.000000e+00> : vector<16x64xf32>
    %591 = tpu.matmul %590, %589, %cst_213 {dimension_numbers = #tpu.dot_dimension_numbers<[1], [0], [0], [1], [0, 0, 1, 1], [], []>} : vector<16x32xbf16>, vector<32x64xbf16>, vector<16x64xf32> -> vector<16x64xf32>
    %c1_214 = arith.constant 1 : index
    %c0_215 = arith.constant 0 : index
    %c0_216 = arith.constant 0 : index
    %592 = vector.load %arg22[%c1_214, %c0_215, %c0_216] : memref<3x1x64xf32, #tpu.memory_space<vmem>>, vector<1x1x64xf32>
    %593 = vector.shape_cast %592 : vector<1x1x64xf32> to vector<1x64xf32>
    %594 = vector.broadcast %593 : vector<1x64xf32> to vector<16x64xf32>
    %595 = arith.addf %591, %594 : vector<16x64xf32>
    %cst_217 = arith.constant 0.000000e+00 : f32
    %596 = vector.broadcast %cst_217 : f32 to vector<16x64xf32>
    %597 = arith.maximumf %595, %596 : vector<16x64xf32>
    %c1_218 = arith.constant 1 : index
    %c0_219 = arith.constant 0 : index
    %c0_220 = arith.constant 0 : index
    %598 = vector.load %arg23[%c1_218, %c0_219, %c0_220] : memref<3x64x32xbf16, #tpu.memory_space<vmem>>, vector<1x64x32xbf16>
    %599 = vector.shape_cast %598 : vector<1x64x32xbf16> to vector<64x32xbf16>
    %600 = arith.truncf %597 : vector<16x64xf32> to vector<16x64xbf16>
    %cst_221 = arith.constant dense<0.000000e+00> : vector<16x32xf32>
    %601 = tpu.matmul %600, %599, %cst_221 {dimension_numbers = #tpu.dot_dimension_numbers<[1], [0], [0], [1], [0, 0, 1, 1], [], []>} : vector<16x64xbf16>, vector<64x32xbf16>, vector<16x32xf32> -> vector<16x32xf32>
    %c1_222 = arith.constant 1 : index
    %c0_223 = arith.constant 0 : index
    %c0_224 = arith.constant 0 : index
    %602 = vector.load %arg24[%c1_222, %c0_223, %c0_224] : memref<3x1x32xf32, #tpu.memory_space<vmem>>, vector<1x1x32xf32>
    %603 = vector.shape_cast %602 : vector<1x1x32xf32> to vector<1x32xf32>
    %604 = vector.broadcast %603 : vector<1x32xf32> to vector<16x32xf32>
    %605 = arith.addf %601, %604 : vector<16x32xf32>
    %606 = vector.extract_strided_slice %516 {offsets = [1, 0, 0], sizes = [1, 32, 64], strides = [1, 1, 1]} : vector<2x32x64xbf16> to vector<1x32x64xbf16>
    %607 = vector.shape_cast %606 : vector<1x32x64xbf16> to vector<32x64xbf16>
    %608 = vector.extract_strided_slice %518 {offsets = [1, 0, 0], sizes = [1, 32, 32], strides = [1, 1, 1]} : vector<2x32x32xbf16> to vector<1x32x32xbf16>
    %609 = vector.shape_cast %608 : vector<1x32x32xbf16> to vector<32x32xbf16>
    %610 = vector.extract_strided_slice %520 {offsets = [1, 0, 0], sizes = [1, 32, 64], strides = [1, 1, 1]} : vector<2x32x64xbf16> to vector<1x32x64xbf16>
    %611 = vector.shape_cast %610 : vector<1x32x64xbf16> to vector<32x64xbf16>
    %612 = vector.extract_strided_slice %522 {offsets = [1, 0, 0], sizes = [1, 32, 32], strides = [1, 1, 1]} : vector<2x32x32xbf16> to vector<1x32x32xbf16>
    %613 = vector.shape_cast %612 : vector<1x32x32xbf16> to vector<32x32xbf16>
    %614 = vector.extract_strided_slice %524 {offsets = [1, 0, 0], sizes = [1, 1, 64], strides = [1, 1, 1]} : vector<2x1x64xf32> to vector<1x1x64xf32>
    %615 = vector.shape_cast %614 : vector<1x1x64xf32> to vector<1x64xf32>
    %616 = vector.extract_strided_slice %526 {offsets = [1, 0, 0], sizes = [1, 1, 32], strides = [1, 1, 1]} : vector<2x1x32xf32> to vector<1x1x32xf32>
    %617 = vector.shape_cast %616 : vector<1x1x32xf32> to vector<1x32xf32>
    %618 = arith.truncf %563 : vector<16x32xf32> to vector<16x32xbf16>
    %619 = arith.truncf %605 : vector<16x32xf32> to vector<16x32xbf16>
    %cst_225 = arith.constant dense<0.000000e+00> : vector<16x64xf32>
    %620 = tpu.matmul %619, %607, %cst_225 {dimension_numbers = #tpu.dot_dimension_numbers<[1], [0], [0], [1], [0, 0, 1, 1], [], []>} : vector<16x32xbf16>, vector<32x64xbf16>, vector<16x64xf32> -> vector<16x64xf32>
    %cst_226 = arith.constant dense<0.000000e+00> : vector<16x64xf32>
    %621 = tpu.matmul %618, %611, %cst_226 {dimension_numbers = #tpu.dot_dimension_numbers<[1], [0], [0], [1], [0, 0, 1, 1], [], []>} : vector<16x32xbf16>, vector<32x64xbf16>, vector<16x64xf32> -> vector<16x64xf32>
    %622 = arith.addf %620, %621 : vector<16x64xf32>
    %623 = vector.broadcast %615 : vector<1x64xf32> to vector<16x64xf32>
    %624 = arith.addf %622, %623 : vector<16x64xf32>
    %625 = arith.negf %624 : vector<16x64xf32>
    %626 = math.exp %625 : vector<16x64xf32>
    %cst_227 = arith.constant 1.000000e+00 : f32
    %627 = vector.broadcast %cst_227 : f32 to vector<16x64xf32>
    %628 = arith.addf %627, %626 : vector<16x64xf32>
    %629 = arith.divf %627, %628 : vector<16x64xf32>
    %630 = vector.extract_strided_slice %629 {offsets = [0, 0], sizes = [16, 32], strides = [1, 1]} : vector<16x64xf32> to vector<16x32xf32>
    %631 = vector.extract_strided_slice %629 {offsets = [0, 32], sizes = [16, 32], strides = [1, 1]} : vector<16x64xf32> to vector<16x32xf32>
    %cst_228 = arith.constant dense<0.000000e+00> : vector<16x32xf32>
    %632 = tpu.matmul %619, %609, %cst_228 {dimension_numbers = #tpu.dot_dimension_numbers<[1], [0], [0], [1], [0, 0, 1, 1], [], []>} : vector<16x32xbf16>, vector<32x32xbf16>, vector<16x32xf32> -> vector<16x32xf32>
    %633 = arith.mulf %630, %563 : vector<16x32xf32>
    %634 = arith.truncf %633 : vector<16x32xf32> to vector<16x32xbf16>
    %cst_229 = arith.constant dense<0.000000e+00> : vector<16x32xf32>
    %635 = tpu.matmul %634, %613, %cst_229 {dimension_numbers = #tpu.dot_dimension_numbers<[1], [0], [0], [1], [0, 0, 1, 1], [], []>} : vector<16x32xbf16>, vector<32x32xbf16>, vector<16x32xf32> -> vector<16x32xf32>
    %636 = arith.addf %632, %635 : vector<16x32xf32>
    %637 = vector.broadcast %617 : vector<1x32xf32> to vector<16x32xf32>
    %638 = arith.addf %636, %637 : vector<16x32xf32>
    %639 = math.tanh %638 : vector<16x32xf32>
    %640 = arith.subf %639, %563 : vector<16x32xf32>
    %641 = arith.mulf %631, %640 : vector<16x32xf32>
    %642 = arith.addf %563, %641 : vector<16x32xf32>
    %c2 = arith.constant 2 : index
    %c0_230 = arith.constant 0 : index
    %c0_231 = arith.constant 0 : index
    %643 = vector.load %arg14[%c2, %c0_230, %c0_231] : memref<3x4x32xf32, #tpu.memory_space<vmem>>, vector<1x4x32xf32>
    %644 = vector.shape_cast %643 : vector<1x4x32xf32> to vector<4x32xf32>
    %645 = vector.extract_strided_slice %644 {offsets = [0, 0], sizes = [1, 32], strides = [1, 1]} : vector<4x32xf32> to vector<1x32xf32>
    %646 = vector.extract_strided_slice %644 {offsets = [1, 0], sizes = [1, 32], strides = [1, 1]} : vector<4x32xf32> to vector<1x32xf32>
    %cst_232 = arith.constant dense<0.000000e+00> : vector<16xf32>
    %647 = vector.multi_reduction <add>, %642, %cst_232 [1] : vector<16x32xf32> to vector<16xf32>
    %648 = vector.shape_cast %647 : vector<16xf32> to vector<16x1xf32>
    %cst_233 = arith.constant 3.200000e+01 : f32
    %649 = vector.broadcast %cst_233 : f32 to vector<16x1xf32>
    %650 = arith.divf %648, %649 : vector<16x1xf32>
    %651 = vector.broadcast %650 : vector<16x1xf32> to vector<16x32xf32>
    %652 = arith.subf %642, %651 : vector<16x32xf32>
    %653 = arith.mulf %652, %652 : vector<16x32xf32>
    %cst_234 = arith.constant dense<0.000000e+00> : vector<16xf32>
    %654 = vector.multi_reduction <add>, %653, %cst_234 [1] : vector<16x32xf32> to vector<16xf32>
    %655 = vector.shape_cast %654 : vector<16xf32> to vector<16x1xf32>
    %cst_235 = arith.constant 3.200000e+01 : f32
    %656 = vector.broadcast %cst_235 : f32 to vector<16x1xf32>
    %657 = arith.divf %655, %656 : vector<16x1xf32>
    %658 = vector.broadcast %650 : vector<16x1xf32> to vector<16x32xf32>
    %659 = arith.subf %642, %658 : vector<16x32xf32>
    %cst_236 = arith.constant 9.99999974E-6 : f32
    %660 = vector.broadcast %cst_236 : f32 to vector<16x1xf32>
    %661 = arith.addf %657, %660 : vector<16x1xf32>
    %662 = math.rsqrt %661 : vector<16x1xf32>
    %663 = vector.broadcast %662 : vector<16x1xf32> to vector<16x32xf32>
    %664 = arith.mulf %659, %663 : vector<16x32xf32>
    %665 = vector.broadcast %645 : vector<1x32xf32> to vector<16x32xf32>
    %666 = arith.mulf %664, %665 : vector<16x32xf32>
    %667 = vector.broadcast %646 : vector<1x32xf32> to vector<16x32xf32>
    %668 = arith.addf %666, %667 : vector<16x32xf32>
    %c2_237 = arith.constant 2 : index
    %c0_238 = arith.constant 0 : index
    %c0_239 = arith.constant 0 : index
    %669 = vector.load %arg10[%c2_237, %c0_238, %c0_239] : memref<3x32x384xbf16, #tpu.memory_space<vmem>>, vector<1x32x384xbf16>
    %670 = vector.shape_cast %669 : vector<1x32x384xbf16> to vector<32x384xbf16>
    %671 = arith.truncf %668 : vector<16x32xf32> to vector<16x32xbf16>
    %cst_240 = arith.constant dense<0.000000e+00> : vector<16x384xf32>
    %672 = tpu.matmul %671, %670, %cst_240 {dimension_numbers = #tpu.dot_dimension_numbers<[1], [0], [0], [1], [0, 0, 1, 1], [], []>} : vector<16x32xbf16>, vector<32x384xbf16>, vector<16x384xf32> -> vector<16x384xf32>
    %673 = vector.extract_strided_slice %672 {offsets = [0, 0], sizes = [16, 128], strides = [1, 1]} : vector<16x384xf32> to vector<16x128xf32>
    %674 = vector.extract_strided_slice %672 {offsets = [0, 128], sizes = [16, 128], strides = [1, 1]} : vector<16x384xf32> to vector<16x128xf32>
    %675 = arith.truncf %674 : vector<16x128xf32> to vector<16x128xbf16>
    %676 = vector.extract_strided_slice %672 {offsets = [0, 256], sizes = [16, 128], strides = [1, 1]} : vector<16x384xf32> to vector<16x128xf32>
    %677 = arith.truncf %676 : vector<16x128xf32> to vector<16x128xbf16>
    %678 = vector.extract_strided_slice %81 {offsets = [0, 256], sizes = [8, 128], strides = [1, 1]} : vector<8x384xf32> to vector<8x128xf32>
    %679 = arith.truncf %678 : vector<8x128xf32> to vector<8x128xbf16>
    %680 = vector.extract_strided_slice %82 {offsets = [0, 0, 0], sizes = [1, 1, 128], strides = [1, 1, 1]} : vector<2x1x128xf32> to vector<1x1x128xf32>
    %681 = vector.shape_cast %680 : vector<1x1x128xf32> to vector<1x128xf32>
    %682 = vector.broadcast %681 : vector<1x128xf32> to vector<16x128xf32>
    %683 = arith.addf %673, %682 : vector<16x128xf32>
    %684 = arith.truncf %683 : vector<16x128xf32> to vector<16x128xbf16>
    %685 = vector.extract_strided_slice %82 {offsets = [1, 0, 0], sizes = [1, 1, 128], strides = [1, 1, 1]} : vector<2x1x128xf32> to vector<1x1x128xf32>
    %686 = vector.shape_cast %685 : vector<1x1x128xf32> to vector<1x128xf32>
    %687 = vector.broadcast %686 : vector<1x128xf32> to vector<16x128xf32>
    %688 = arith.addf %673, %687 : vector<16x128xf32>
    %689 = arith.truncf %688 : vector<16x128xf32> to vector<16x128xbf16>
    %c2_241 = arith.constant 2 : index
    %c0_242 = arith.constant 0 : index
    %c0_243 = arith.constant 0 : index
    %c0_244 = arith.constant 0 : index
    %690 = vector.load %arg12[%c2_241, %c0_242, %c0_243, %c0_244] : memref<3x4x32x32xbf16, #tpu.memory_space<vmem>>, vector<1x4x32x32xbf16>
    %691 = vector.shape_cast %690 : vector<1x4x32x32xbf16> to vector<4x32x32xbf16>
    %692 = vector.extract_strided_slice %684 {offsets = [0, 0], sizes = [16, 32], strides = [1, 1]} : vector<16x128xbf16> to vector<16x32xbf16>
    %693 = vector.extract_strided_slice %675 {offsets = [0, 0], sizes = [16, 32], strides = [1, 1]} : vector<16x128xbf16> to vector<16x32xbf16>
    %cst_245 = arith.constant dense<0.000000e+00> : vector<16x16xf32>
    %694 = tpu.matmul %692, %693, %cst_245 {dimension_numbers = #tpu.dot_dimension_numbers<[1], [1], [0], [0], [0, 0, 1, 0], [], []>} : vector<16x32xbf16>, vector<16x32xbf16>, vector<16x16xf32> -> vector<16x16xf32>
    %695 = vector.extract_strided_slice %689 {offsets = [0, 0], sizes = [16, 32], strides = [1, 1]} : vector<16x128xbf16> to vector<16x32xbf16>
    %696 = vector.extract_strided_slice %679 {offsets = [0, 0], sizes = [8, 32], strides = [1, 1]} : vector<8x128xbf16> to vector<8x32xbf16>
    %cst_246 = arith.constant dense<0.000000e+00> : vector<16x8xf32>
    %697 = tpu.matmul %695, %696, %cst_246 {dimension_numbers = #tpu.dot_dimension_numbers<[1], [1], [0], [0], [0, 0, 1, 0], [], []>} : vector<16x32xbf16>, vector<8x32xbf16>, vector<16x8xf32> -> vector<16x8xf32>
    %698 = vector.extract_strided_slice %684 {offsets = [0, 32], sizes = [16, 32], strides = [1, 1]} : vector<16x128xbf16> to vector<16x32xbf16>
    %699 = vector.extract_strided_slice %675 {offsets = [0, 32], sizes = [16, 32], strides = [1, 1]} : vector<16x128xbf16> to vector<16x32xbf16>
    %cst_247 = arith.constant dense<0.000000e+00> : vector<16x16xf32>
    %700 = tpu.matmul %698, %699, %cst_247 {dimension_numbers = #tpu.dot_dimension_numbers<[1], [1], [0], [0], [0, 0, 1, 0], [], []>} : vector<16x32xbf16>, vector<16x32xbf16>, vector<16x16xf32> -> vector<16x16xf32>
    %701 = vector.extract_strided_slice %689 {offsets = [0, 32], sizes = [16, 32], strides = [1, 1]} : vector<16x128xbf16> to vector<16x32xbf16>
    %702 = vector.extract_strided_slice %679 {offsets = [0, 32], sizes = [8, 32], strides = [1, 1]} : vector<8x128xbf16> to vector<8x32xbf16>
    %cst_248 = arith.constant dense<0.000000e+00> : vector<16x8xf32>
    %703 = tpu.matmul %701, %702, %cst_248 {dimension_numbers = #tpu.dot_dimension_numbers<[1], [1], [0], [0], [0, 0, 1, 0], [], []>} : vector<16x32xbf16>, vector<8x32xbf16>, vector<16x8xf32> -> vector<16x8xf32>
    %704 = vector.extract_strided_slice %684 {offsets = [0, 64], sizes = [16, 32], strides = [1, 1]} : vector<16x128xbf16> to vector<16x32xbf16>
    %705 = vector.extract_strided_slice %675 {offsets = [0, 64], sizes = [16, 32], strides = [1, 1]} : vector<16x128xbf16> to vector<16x32xbf16>
    %cst_249 = arith.constant dense<0.000000e+00> : vector<16x16xf32>
    %706 = tpu.matmul %704, %705, %cst_249 {dimension_numbers = #tpu.dot_dimension_numbers<[1], [1], [0], [0], [0, 0, 1, 0], [], []>} : vector<16x32xbf16>, vector<16x32xbf16>, vector<16x16xf32> -> vector<16x16xf32>
    %707 = vector.extract_strided_slice %689 {offsets = [0, 64], sizes = [16, 32], strides = [1, 1]} : vector<16x128xbf16> to vector<16x32xbf16>
    %708 = vector.extract_strided_slice %679 {offsets = [0, 64], sizes = [8, 32], strides = [1, 1]} : vector<8x128xbf16> to vector<8x32xbf16>
    %cst_250 = arith.constant dense<0.000000e+00> : vector<16x8xf32>
    %709 = tpu.matmul %707, %708, %cst_250 {dimension_numbers = #tpu.dot_dimension_numbers<[1], [1], [0], [0], [0, 0, 1, 0], [], []>} : vector<16x32xbf16>, vector<8x32xbf16>, vector<16x8xf32> -> vector<16x8xf32>
    %710 = vector.extract_strided_slice %684 {offsets = [0, 96], sizes = [16, 32], strides = [1, 1]} : vector<16x128xbf16> to vector<16x32xbf16>
    %711 = vector.extract_strided_slice %675 {offsets = [0, 96], sizes = [16, 32], strides = [1, 1]} : vector<16x128xbf16> to vector<16x32xbf16>
    %cst_251 = arith.constant dense<0.000000e+00> : vector<16x16xf32>
    %712 = tpu.matmul %710, %711, %cst_251 {dimension_numbers = #tpu.dot_dimension_numbers<[1], [1], [0], [0], [0, 0, 1, 0], [], []>} : vector<16x32xbf16>, vector<16x32xbf16>, vector<16x16xf32> -> vector<16x16xf32>
    %713 = vector.extract_strided_slice %689 {offsets = [0, 96], sizes = [16, 32], strides = [1, 1]} : vector<16x128xbf16> to vector<16x32xbf16>
    %714 = vector.extract_strided_slice %679 {offsets = [0, 96], sizes = [8, 32], strides = [1, 1]} : vector<8x128xbf16> to vector<8x32xbf16>
    %cst_252 = arith.constant dense<0.000000e+00> : vector<16x8xf32>
    %715 = tpu.matmul %713, %714, %cst_252 {dimension_numbers = #tpu.dot_dimension_numbers<[1], [1], [0], [0], [0, 0, 1, 0], [], []>} : vector<16x32xbf16>, vector<8x32xbf16>, vector<16x8xf32> -> vector<16x8xf32>
    %716 = tpu.concatenate %694, %700, %706, %712 in 0 : vector<16x16xf32>, vector<16x16xf32>, vector<16x16xf32>, vector<16x16xf32> -> vector<64x16xf32>
    %717 = tpu.concatenate %697, %703, %709, %715 in 0 : vector<16x8xf32>, vector<16x8xf32>, vector<16x8xf32>, vector<16x8xf32> -> vector<64x8xf32>
    %718 = vector.extract_strided_slice %717 {offsets = [0, 0], sizes = [64, 1], strides = [1, 1]} : vector<64x8xf32> to vector<64x1xf32>
    %719 = vector.broadcast %718 : vector<64x1xf32> to vector<64x16xf32>
    %720 = arith.mulf %719, %21 : vector<64x16xf32>
    %721 = arith.addf %716, %720 : vector<64x16xf32>
    %722 = vector.extract_strided_slice %717 {offsets = [0, 1], sizes = [64, 1], strides = [1, 1]} : vector<64x8xf32> to vector<64x1xf32>
    %723 = vector.broadcast %722 : vector<64x1xf32> to vector<64x16xf32>
    %724 = arith.mulf %723, %27 : vector<64x16xf32>
    %725 = arith.addf %721, %724 : vector<64x16xf32>
    %726 = vector.extract_strided_slice %717 {offsets = [0, 2], sizes = [64, 1], strides = [1, 1]} : vector<64x8xf32> to vector<64x1xf32>
    %727 = vector.broadcast %726 : vector<64x1xf32> to vector<64x16xf32>
    %728 = arith.mulf %727, %33 : vector<64x16xf32>
    %729 = arith.addf %725, %728 : vector<64x16xf32>
    %730 = vector.extract_strided_slice %717 {offsets = [0, 3], sizes = [64, 1], strides = [1, 1]} : vector<64x8xf32> to vector<64x1xf32>
    %731 = vector.broadcast %730 : vector<64x1xf32> to vector<64x16xf32>
    %732 = arith.mulf %731, %39 : vector<64x16xf32>
    %733 = arith.addf %729, %732 : vector<64x16xf32>
    %734 = vector.extract_strided_slice %717 {offsets = [0, 4], sizes = [64, 1], strides = [1, 1]} : vector<64x8xf32> to vector<64x1xf32>
    %735 = vector.broadcast %734 : vector<64x1xf32> to vector<64x16xf32>
    %736 = arith.mulf %735, %45 : vector<64x16xf32>
    %737 = arith.addf %733, %736 : vector<64x16xf32>
    %738 = vector.extract_strided_slice %717 {offsets = [0, 5], sizes = [64, 1], strides = [1, 1]} : vector<64x8xf32> to vector<64x1xf32>
    %739 = vector.broadcast %738 : vector<64x1xf32> to vector<64x16xf32>
    %740 = arith.mulf %739, %51 : vector<64x16xf32>
    %741 = arith.addf %737, %740 : vector<64x16xf32>
    %742 = vector.extract_strided_slice %717 {offsets = [0, 6], sizes = [64, 1], strides = [1, 1]} : vector<64x8xf32> to vector<64x1xf32>
    %743 = vector.broadcast %742 : vector<64x1xf32> to vector<64x16xf32>
    %744 = arith.mulf %743, %57 : vector<64x16xf32>
    %745 = arith.addf %741, %744 : vector<64x16xf32>
    %746 = vector.extract_strided_slice %717 {offsets = [0, 7], sizes = [64, 1], strides = [1, 1]} : vector<64x8xf32> to vector<64x1xf32>
    %747 = vector.broadcast %746 : vector<64x1xf32> to vector<64x16xf32>
    %748 = arith.mulf %747, %63 : vector<64x16xf32>
    %749 = arith.addf %745, %748 : vector<64x16xf32>
    %cst_253 = arith.constant 0.176776692 : f32
    %750 = vector.broadcast %cst_253 : f32 to vector<64x16xf32>
    %751 = arith.mulf %749, %750 : vector<64x16xf32>
    %752 = arith.addf %751, %15 : vector<64x16xf32>
    %cst_254 = arith.constant dense<0xFF800000> : vector<64xf32>
    %753 = vector.multi_reduction <maximumf>, %752, %cst_254 [1] : vector<64x16xf32> to vector<64xf32>
    %754 = vector.shape_cast %753 : vector<64xf32> to vector<64x1xf32>
    %755 = vector.broadcast %754 : vector<64x1xf32> to vector<64x16xf32>
    %756 = arith.subf %752, %755 : vector<64x16xf32>
    %757 = math.exp %756 : vector<64x16xf32>
    %cst_255 = arith.constant dense<0.000000e+00> : vector<64xf32>
    %758 = vector.multi_reduction <add>, %757, %cst_255 [1] : vector<64x16xf32> to vector<64xf32>
    %759 = vector.shape_cast %758 : vector<64xf32> to vector<64x1xf32>
    %760 = tpu.reciprocal %759 {approx = true} : vector<64x1xf32> -> vector<64x1xf32>
    %761 = vector.broadcast %760 : vector<64x1xf32> to vector<64x16xf32>
    %762 = arith.mulf %757, %761 : vector<64x16xf32>
    %763 = arith.truncf %762 : vector<64x16xf32> to vector<64x16xbf16>
    %764 = vector.extract_strided_slice %763 {offsets = [0, 0], sizes = [16, 16], strides = [1, 1]} : vector<64x16xbf16> to vector<16x16xbf16>
    %765 = vector.extract_strided_slice %677 {offsets = [0, 0], sizes = [16, 32], strides = [1, 1]} : vector<16x128xbf16> to vector<16x32xbf16>
    %cst_256 = arith.constant dense<0.000000e+00> : vector<16x32xf32>
    %766 = tpu.matmul %764, %765, %cst_256 {dimension_numbers = #tpu.dot_dimension_numbers<[1], [0], [0], [1], [0, 0, 1, 1], [], []>} : vector<16x16xbf16>, vector<16x32xbf16>, vector<16x32xf32> -> vector<16x32xf32>
    %767 = vector.extract_strided_slice %691 {offsets = [0, 0, 0], sizes = [1, 32, 32], strides = [1, 1, 1]} : vector<4x32x32xbf16> to vector<1x32x32xbf16>
    %768 = vector.shape_cast %767 : vector<1x32x32xbf16> to vector<32x32xbf16>
    %769 = arith.truncf %766 : vector<16x32xf32> to vector<16x32xbf16>
    %cst_257 = arith.constant dense<0.000000e+00> : vector<16x32xf32>
    %770 = tpu.matmul %769, %768, %cst_257 {dimension_numbers = #tpu.dot_dimension_numbers<[1], [0], [0], [1], [0, 0, 1, 1], [], []>} : vector<16x32xbf16>, vector<32x32xbf16>, vector<16x32xf32> -> vector<16x32xf32>
    %771 = vector.extract_strided_slice %763 {offsets = [16, 0], sizes = [16, 16], strides = [1, 1]} : vector<64x16xbf16> to vector<16x16xbf16>
    %772 = vector.extract_strided_slice %677 {offsets = [0, 32], sizes = [16, 32], strides = [1, 1]} : vector<16x128xbf16> to vector<16x32xbf16>
    %cst_258 = arith.constant dense<0.000000e+00> : vector<16x32xf32>
    %773 = tpu.matmul %771, %772, %cst_258 {dimension_numbers = #tpu.dot_dimension_numbers<[1], [0], [0], [1], [0, 0, 1, 1], [], []>} : vector<16x16xbf16>, vector<16x32xbf16>, vector<16x32xf32> -> vector<16x32xf32>
    %774 = vector.extract_strided_slice %691 {offsets = [1, 0, 0], sizes = [1, 32, 32], strides = [1, 1, 1]} : vector<4x32x32xbf16> to vector<1x32x32xbf16>
    %775 = vector.shape_cast %774 : vector<1x32x32xbf16> to vector<32x32xbf16>
    %776 = arith.truncf %773 : vector<16x32xf32> to vector<16x32xbf16>
    %cst_259 = arith.constant dense<0.000000e+00> : vector<16x32xf32>
    %777 = tpu.matmul %776, %775, %cst_259 {dimension_numbers = #tpu.dot_dimension_numbers<[1], [0], [0], [1], [0, 0, 1, 1], [], []>} : vector<16x32xbf16>, vector<32x32xbf16>, vector<16x32xf32> -> vector<16x32xf32>
    %778 = arith.addf %770, %777 : vector<16x32xf32>
    %779 = vector.extract_strided_slice %763 {offsets = [32, 0], sizes = [16, 16], strides = [1, 1]} : vector<64x16xbf16> to vector<16x16xbf16>
    %780 = vector.extract_strided_slice %677 {offsets = [0, 64], sizes = [16, 32], strides = [1, 1]} : vector<16x128xbf16> to vector<16x32xbf16>
    %cst_260 = arith.constant dense<0.000000e+00> : vector<16x32xf32>
    %781 = tpu.matmul %779, %780, %cst_260 {dimension_numbers = #tpu.dot_dimension_numbers<[1], [0], [0], [1], [0, 0, 1, 1], [], []>} : vector<16x16xbf16>, vector<16x32xbf16>, vector<16x32xf32> -> vector<16x32xf32>
    %782 = vector.extract_strided_slice %691 {offsets = [2, 0, 0], sizes = [1, 32, 32], strides = [1, 1, 1]} : vector<4x32x32xbf16> to vector<1x32x32xbf16>
    %783 = vector.shape_cast %782 : vector<1x32x32xbf16> to vector<32x32xbf16>
    %784 = arith.truncf %781 : vector<16x32xf32> to vector<16x32xbf16>
    %cst_261 = arith.constant dense<0.000000e+00> : vector<16x32xf32>
    %785 = tpu.matmul %784, %783, %cst_261 {dimension_numbers = #tpu.dot_dimension_numbers<[1], [0], [0], [1], [0, 0, 1, 1], [], []>} : vector<16x32xbf16>, vector<32x32xbf16>, vector<16x32xf32> -> vector<16x32xf32>
    %786 = arith.addf %778, %785 : vector<16x32xf32>
    %787 = vector.extract_strided_slice %763 {offsets = [48, 0], sizes = [16, 16], strides = [1, 1]} : vector<64x16xbf16> to vector<16x16xbf16>
    %788 = vector.extract_strided_slice %677 {offsets = [0, 96], sizes = [16, 32], strides = [1, 1]} : vector<16x128xbf16> to vector<16x32xbf16>
    %cst_262 = arith.constant dense<0.000000e+00> : vector<16x32xf32>
    %789 = tpu.matmul %787, %788, %cst_262 {dimension_numbers = #tpu.dot_dimension_numbers<[1], [0], [0], [1], [0, 0, 1, 1], [], []>} : vector<16x16xbf16>, vector<16x32xbf16>, vector<16x32xf32> -> vector<16x32xf32>
    %790 = vector.extract_strided_slice %691 {offsets = [3, 0, 0], sizes = [1, 32, 32], strides = [1, 1, 1]} : vector<4x32x32xbf16> to vector<1x32x32xbf16>
    %791 = vector.shape_cast %790 : vector<1x32x32xbf16> to vector<32x32xbf16>
    %792 = arith.truncf %789 : vector<16x32xf32> to vector<16x32xbf16>
    %cst_263 = arith.constant dense<0.000000e+00> : vector<16x32xf32>
    %793 = tpu.matmul %792, %791, %cst_263 {dimension_numbers = #tpu.dot_dimension_numbers<[1], [0], [0], [1], [0, 0, 1, 1], [], []>} : vector<16x32xbf16>, vector<32x32xbf16>, vector<16x32xf32> -> vector<16x32xf32>
    %794 = arith.addf %786, %793 : vector<16x32xf32>
    %c2_264 = arith.constant 2 : index
    %c0_265 = arith.constant 0 : index
    %c0_266 = arith.constant 0 : index
    %c0_267 = arith.constant 0 : index
    %795 = vector.load %arg15[%c2_264, %c0_265, %c0_266, %c0_267] : memref<3x2x32x64xbf16, #tpu.memory_space<vmem>>, vector<1x2x32x64xbf16>
    %796 = vector.shape_cast %795 : vector<1x2x32x64xbf16> to vector<2x32x64xbf16>
    %c2_268 = arith.constant 2 : index
    %c0_269 = arith.constant 0 : index
    %c0_270 = arith.constant 0 : index
    %c0_271 = arith.constant 0 : index
    %797 = vector.load %arg16[%c2_268, %c0_269, %c0_270, %c0_271] : memref<3x2x32x32xbf16, #tpu.memory_space<vmem>>, vector<1x2x32x32xbf16>
    %798 = vector.shape_cast %797 : vector<1x2x32x32xbf16> to vector<2x32x32xbf16>
    %c2_272 = arith.constant 2 : index
    %c0_273 = arith.constant 0 : index
    %c0_274 = arith.constant 0 : index
    %c0_275 = arith.constant 0 : index
    %799 = vector.load %arg17[%c2_272, %c0_273, %c0_274, %c0_275] : memref<3x2x32x64xbf16, #tpu.memory_space<vmem>>, vector<1x2x32x64xbf16>
    %800 = vector.shape_cast %799 : vector<1x2x32x64xbf16> to vector<2x32x64xbf16>
    %c2_276 = arith.constant 2 : index
    %c0_277 = arith.constant 0 : index
    %c0_278 = arith.constant 0 : index
    %c0_279 = arith.constant 0 : index
    %801 = vector.load %arg18[%c2_276, %c0_277, %c0_278, %c0_279] : memref<3x2x32x32xbf16, #tpu.memory_space<vmem>>, vector<1x2x32x32xbf16>
    %802 = vector.shape_cast %801 : vector<1x2x32x32xbf16> to vector<2x32x32xbf16>
    %c2_280 = arith.constant 2 : index
    %c0_281 = arith.constant 0 : index
    %c0_282 = arith.constant 0 : index
    %c0_283 = arith.constant 0 : index
    %803 = vector.load %arg19[%c2_280, %c0_281, %c0_282, %c0_283] : memref<3x2x1x64xf32, #tpu.memory_space<vmem>>, vector<1x2x1x64xf32>
    %804 = vector.shape_cast %803 : vector<1x2x1x64xf32> to vector<2x1x64xf32>
    %c2_284 = arith.constant 2 : index
    %c0_285 = arith.constant 0 : index
    %c0_286 = arith.constant 0 : index
    %c0_287 = arith.constant 0 : index
    %805 = vector.load %arg20[%c2_284, %c0_285, %c0_286, %c0_287] : memref<3x2x1x32xf32, #tpu.memory_space<vmem>>, vector<1x2x1x32xf32>
    %806 = vector.shape_cast %805 : vector<1x2x1x32xf32> to vector<2x1x32xf32>
    %807 = vector.extract_strided_slice %796 {offsets = [0, 0, 0], sizes = [1, 32, 64], strides = [1, 1, 1]} : vector<2x32x64xbf16> to vector<1x32x64xbf16>
    %808 = vector.shape_cast %807 : vector<1x32x64xbf16> to vector<32x64xbf16>
    %809 = vector.extract_strided_slice %798 {offsets = [0, 0, 0], sizes = [1, 32, 32], strides = [1, 1, 1]} : vector<2x32x32xbf16> to vector<1x32x32xbf16>
    %810 = vector.shape_cast %809 : vector<1x32x32xbf16> to vector<32x32xbf16>
    %811 = vector.extract_strided_slice %800 {offsets = [0, 0, 0], sizes = [1, 32, 64], strides = [1, 1, 1]} : vector<2x32x64xbf16> to vector<1x32x64xbf16>
    %812 = vector.shape_cast %811 : vector<1x32x64xbf16> to vector<32x64xbf16>
    %813 = vector.extract_strided_slice %802 {offsets = [0, 0, 0], sizes = [1, 32, 32], strides = [1, 1, 1]} : vector<2x32x32xbf16> to vector<1x32x32xbf16>
    %814 = vector.shape_cast %813 : vector<1x32x32xbf16> to vector<32x32xbf16>
    %815 = vector.extract_strided_slice %804 {offsets = [0, 0, 0], sizes = [1, 1, 64], strides = [1, 1, 1]} : vector<2x1x64xf32> to vector<1x1x64xf32>
    %816 = vector.shape_cast %815 : vector<1x1x64xf32> to vector<1x64xf32>
    %817 = vector.extract_strided_slice %806 {offsets = [0, 0, 0], sizes = [1, 1, 32], strides = [1, 1, 1]} : vector<2x1x32xf32> to vector<1x1x32xf32>
    %818 = vector.shape_cast %817 : vector<1x1x32xf32> to vector<1x32xf32>
    %819 = arith.truncf %642 : vector<16x32xf32> to vector<16x32xbf16>
    %820 = arith.truncf %794 : vector<16x32xf32> to vector<16x32xbf16>
    %cst_288 = arith.constant dense<0.000000e+00> : vector<16x64xf32>
    %821 = tpu.matmul %820, %808, %cst_288 {dimension_numbers = #tpu.dot_dimension_numbers<[1], [0], [0], [1], [0, 0, 1, 1], [], []>} : vector<16x32xbf16>, vector<32x64xbf16>, vector<16x64xf32> -> vector<16x64xf32>
    %cst_289 = arith.constant dense<0.000000e+00> : vector<16x64xf32>
    %822 = tpu.matmul %819, %812, %cst_289 {dimension_numbers = #tpu.dot_dimension_numbers<[1], [0], [0], [1], [0, 0, 1, 1], [], []>} : vector<16x32xbf16>, vector<32x64xbf16>, vector<16x64xf32> -> vector<16x64xf32>
    %823 = arith.addf %821, %822 : vector<16x64xf32>
    %824 = vector.broadcast %816 : vector<1x64xf32> to vector<16x64xf32>
    %825 = arith.addf %823, %824 : vector<16x64xf32>
    %826 = arith.negf %825 : vector<16x64xf32>
    %827 = math.exp %826 : vector<16x64xf32>
    %cst_290 = arith.constant 1.000000e+00 : f32
    %828 = vector.broadcast %cst_290 : f32 to vector<16x64xf32>
    %829 = arith.addf %828, %827 : vector<16x64xf32>
    %830 = arith.divf %828, %829 : vector<16x64xf32>
    %831 = vector.extract_strided_slice %830 {offsets = [0, 0], sizes = [16, 32], strides = [1, 1]} : vector<16x64xf32> to vector<16x32xf32>
    %832 = vector.extract_strided_slice %830 {offsets = [0, 32], sizes = [16, 32], strides = [1, 1]} : vector<16x64xf32> to vector<16x32xf32>
    %cst_291 = arith.constant dense<0.000000e+00> : vector<16x32xf32>
    %833 = tpu.matmul %820, %810, %cst_291 {dimension_numbers = #tpu.dot_dimension_numbers<[1], [0], [0], [1], [0, 0, 1, 1], [], []>} : vector<16x32xbf16>, vector<32x32xbf16>, vector<16x32xf32> -> vector<16x32xf32>
    %834 = arith.mulf %831, %642 : vector<16x32xf32>
    %835 = arith.truncf %834 : vector<16x32xf32> to vector<16x32xbf16>
    %cst_292 = arith.constant dense<0.000000e+00> : vector<16x32xf32>
    %836 = tpu.matmul %835, %814, %cst_292 {dimension_numbers = #tpu.dot_dimension_numbers<[1], [0], [0], [1], [0, 0, 1, 1], [], []>} : vector<16x32xbf16>, vector<32x32xbf16>, vector<16x32xf32> -> vector<16x32xf32>
    %837 = arith.addf %833, %836 : vector<16x32xf32>
    %838 = vector.broadcast %818 : vector<1x32xf32> to vector<16x32xf32>
    %839 = arith.addf %837, %838 : vector<16x32xf32>
    %840 = math.tanh %839 : vector<16x32xf32>
    %841 = arith.subf %840, %642 : vector<16x32xf32>
    %842 = arith.mulf %832, %841 : vector<16x32xf32>
    %843 = arith.addf %642, %842 : vector<16x32xf32>
    %844 = vector.extract_strided_slice %644 {offsets = [2, 0], sizes = [1, 32], strides = [1, 1]} : vector<4x32xf32> to vector<1x32xf32>
    %845 = vector.extract_strided_slice %644 {offsets = [3, 0], sizes = [1, 32], strides = [1, 1]} : vector<4x32xf32> to vector<1x32xf32>
    %cst_293 = arith.constant dense<0.000000e+00> : vector<16xf32>
    %846 = vector.multi_reduction <add>, %843, %cst_293 [1] : vector<16x32xf32> to vector<16xf32>
    %847 = vector.shape_cast %846 : vector<16xf32> to vector<16x1xf32>
    %cst_294 = arith.constant 3.200000e+01 : f32
    %848 = vector.broadcast %cst_294 : f32 to vector<16x1xf32>
    %849 = arith.divf %847, %848 : vector<16x1xf32>
    %850 = vector.broadcast %849 : vector<16x1xf32> to vector<16x32xf32>
    %851 = arith.subf %843, %850 : vector<16x32xf32>
    %852 = arith.mulf %851, %851 : vector<16x32xf32>
    %cst_295 = arith.constant dense<0.000000e+00> : vector<16xf32>
    %853 = vector.multi_reduction <add>, %852, %cst_295 [1] : vector<16x32xf32> to vector<16xf32>
    %854 = vector.shape_cast %853 : vector<16xf32> to vector<16x1xf32>
    %cst_296 = arith.constant 3.200000e+01 : f32
    %855 = vector.broadcast %cst_296 : f32 to vector<16x1xf32>
    %856 = arith.divf %854, %855 : vector<16x1xf32>
    %857 = vector.broadcast %849 : vector<16x1xf32> to vector<16x32xf32>
    %858 = arith.subf %843, %857 : vector<16x32xf32>
    %cst_297 = arith.constant 9.99999974E-6 : f32
    %859 = vector.broadcast %cst_297 : f32 to vector<16x1xf32>
    %860 = arith.addf %856, %859 : vector<16x1xf32>
    %861 = math.rsqrt %860 : vector<16x1xf32>
    %862 = vector.broadcast %861 : vector<16x1xf32> to vector<16x32xf32>
    %863 = arith.mulf %858, %862 : vector<16x32xf32>
    %864 = vector.broadcast %844 : vector<1x32xf32> to vector<16x32xf32>
    %865 = arith.mulf %863, %864 : vector<16x32xf32>
    %866 = vector.broadcast %845 : vector<1x32xf32> to vector<16x32xf32>
    %867 = arith.addf %865, %866 : vector<16x32xf32>
    %c2_298 = arith.constant 2 : index
    %c0_299 = arith.constant 0 : index
    %c0_300 = arith.constant 0 : index
    %868 = vector.load %arg21[%c2_298, %c0_299, %c0_300] : memref<3x32x64xbf16, #tpu.memory_space<vmem>>, vector<1x32x64xbf16>
    %869 = vector.shape_cast %868 : vector<1x32x64xbf16> to vector<32x64xbf16>
    %870 = arith.truncf %867 : vector<16x32xf32> to vector<16x32xbf16>
    %cst_301 = arith.constant dense<0.000000e+00> : vector<16x64xf32>
    %871 = tpu.matmul %870, %869, %cst_301 {dimension_numbers = #tpu.dot_dimension_numbers<[1], [0], [0], [1], [0, 0, 1, 1], [], []>} : vector<16x32xbf16>, vector<32x64xbf16>, vector<16x64xf32> -> vector<16x64xf32>
    %c2_302 = arith.constant 2 : index
    %c0_303 = arith.constant 0 : index
    %c0_304 = arith.constant 0 : index
    %872 = vector.load %arg22[%c2_302, %c0_303, %c0_304] : memref<3x1x64xf32, #tpu.memory_space<vmem>>, vector<1x1x64xf32>
    %873 = vector.shape_cast %872 : vector<1x1x64xf32> to vector<1x64xf32>
    %874 = vector.broadcast %873 : vector<1x64xf32> to vector<16x64xf32>
    %875 = arith.addf %871, %874 : vector<16x64xf32>
    %cst_305 = arith.constant 0.000000e+00 : f32
    %876 = vector.broadcast %cst_305 : f32 to vector<16x64xf32>
    %877 = arith.maximumf %875, %876 : vector<16x64xf32>
    %c2_306 = arith.constant 2 : index
    %c0_307 = arith.constant 0 : index
    %c0_308 = arith.constant 0 : index
    %878 = vector.load %arg23[%c2_306, %c0_307, %c0_308] : memref<3x64x32xbf16, #tpu.memory_space<vmem>>, vector<1x64x32xbf16>
    %879 = vector.shape_cast %878 : vector<1x64x32xbf16> to vector<64x32xbf16>
    %880 = arith.truncf %877 : vector<16x64xf32> to vector<16x64xbf16>
    %cst_309 = arith.constant dense<0.000000e+00> : vector<16x32xf32>
    %881 = tpu.matmul %880, %879, %cst_309 {dimension_numbers = #tpu.dot_dimension_numbers<[1], [0], [0], [1], [0, 0, 1, 1], [], []>} : vector<16x64xbf16>, vector<64x32xbf16>, vector<16x32xf32> -> vector<16x32xf32>
    %c2_310 = arith.constant 2 : index
    %c0_311 = arith.constant 0 : index
    %c0_312 = arith.constant 0 : index
    %882 = vector.load %arg24[%c2_310, %c0_311, %c0_312] : memref<3x1x32xf32, #tpu.memory_space<vmem>>, vector<1x1x32xf32>
    %883 = vector.shape_cast %882 : vector<1x1x32xf32> to vector<1x32xf32>
    %884 = vector.broadcast %883 : vector<1x32xf32> to vector<16x32xf32>
    %885 = arith.addf %881, %884 : vector<16x32xf32>
    %886 = vector.extract_strided_slice %796 {offsets = [1, 0, 0], sizes = [1, 32, 64], strides = [1, 1, 1]} : vector<2x32x64xbf16> to vector<1x32x64xbf16>
    %887 = vector.shape_cast %886 : vector<1x32x64xbf16> to vector<32x64xbf16>
    %888 = vector.extract_strided_slice %798 {offsets = [1, 0, 0], sizes = [1, 32, 32], strides = [1, 1, 1]} : vector<2x32x32xbf16> to vector<1x32x32xbf16>
    %889 = vector.shape_cast %888 : vector<1x32x32xbf16> to vector<32x32xbf16>
    %890 = vector.extract_strided_slice %800 {offsets = [1, 0, 0], sizes = [1, 32, 64], strides = [1, 1, 1]} : vector<2x32x64xbf16> to vector<1x32x64xbf16>
    %891 = vector.shape_cast %890 : vector<1x32x64xbf16> to vector<32x64xbf16>
    %892 = vector.extract_strided_slice %802 {offsets = [1, 0, 0], sizes = [1, 32, 32], strides = [1, 1, 1]} : vector<2x32x32xbf16> to vector<1x32x32xbf16>
    %893 = vector.shape_cast %892 : vector<1x32x32xbf16> to vector<32x32xbf16>
    %894 = vector.extract_strided_slice %804 {offsets = [1, 0, 0], sizes = [1, 1, 64], strides = [1, 1, 1]} : vector<2x1x64xf32> to vector<1x1x64xf32>
    %895 = vector.shape_cast %894 : vector<1x1x64xf32> to vector<1x64xf32>
    %896 = vector.extract_strided_slice %806 {offsets = [1, 0, 0], sizes = [1, 1, 32], strides = [1, 1, 1]} : vector<2x1x32xf32> to vector<1x1x32xf32>
    %897 = vector.shape_cast %896 : vector<1x1x32xf32> to vector<1x32xf32>
    %898 = arith.truncf %843 : vector<16x32xf32> to vector<16x32xbf16>
    %899 = arith.truncf %885 : vector<16x32xf32> to vector<16x32xbf16>
    %cst_313 = arith.constant dense<0.000000e+00> : vector<16x64xf32>
    %900 = tpu.matmul %899, %887, %cst_313 {dimension_numbers = #tpu.dot_dimension_numbers<[1], [0], [0], [1], [0, 0, 1, 1], [], []>} : vector<16x32xbf16>, vector<32x64xbf16>, vector<16x64xf32> -> vector<16x64xf32>
    %cst_314 = arith.constant dense<0.000000e+00> : vector<16x64xf32>
    %901 = tpu.matmul %898, %891, %cst_314 {dimension_numbers = #tpu.dot_dimension_numbers<[1], [0], [0], [1], [0, 0, 1, 1], [], []>} : vector<16x32xbf16>, vector<32x64xbf16>, vector<16x64xf32> -> vector<16x64xf32>
    %902 = arith.addf %900, %901 : vector<16x64xf32>
    %903 = vector.broadcast %895 : vector<1x64xf32> to vector<16x64xf32>
    %904 = arith.addf %902, %903 : vector<16x64xf32>
    %905 = arith.negf %904 : vector<16x64xf32>
    %906 = math.exp %905 : vector<16x64xf32>
    %cst_315 = arith.constant 1.000000e+00 : f32
    %907 = vector.broadcast %cst_315 : f32 to vector<16x64xf32>
    %908 = arith.addf %907, %906 : vector<16x64xf32>
    %909 = arith.divf %907, %908 : vector<16x64xf32>
    %910 = vector.extract_strided_slice %909 {offsets = [0, 0], sizes = [16, 32], strides = [1, 1]} : vector<16x64xf32> to vector<16x32xf32>
    %911 = vector.extract_strided_slice %909 {offsets = [0, 32], sizes = [16, 32], strides = [1, 1]} : vector<16x64xf32> to vector<16x32xf32>
    %cst_316 = arith.constant dense<0.000000e+00> : vector<16x32xf32>
    %912 = tpu.matmul %899, %889, %cst_316 {dimension_numbers = #tpu.dot_dimension_numbers<[1], [0], [0], [1], [0, 0, 1, 1], [], []>} : vector<16x32xbf16>, vector<32x32xbf16>, vector<16x32xf32> -> vector<16x32xf32>
    %913 = arith.mulf %910, %843 : vector<16x32xf32>
    %914 = arith.truncf %913 : vector<16x32xf32> to vector<16x32xbf16>
    %cst_317 = arith.constant dense<0.000000e+00> : vector<16x32xf32>
    %915 = tpu.matmul %914, %893, %cst_317 {dimension_numbers = #tpu.dot_dimension_numbers<[1], [0], [0], [1], [0, 0, 1, 1], [], []>} : vector<16x32xbf16>, vector<32x32xbf16>, vector<16x32xf32> -> vector<16x32xf32>
    %916 = arith.addf %912, %915 : vector<16x32xf32>
    %917 = vector.broadcast %897 : vector<1x32xf32> to vector<16x32xf32>
    %918 = arith.addf %916, %917 : vector<16x32xf32>
    %919 = math.tanh %918 : vector<16x32xf32>
    %920 = arith.subf %919, %843 : vector<16x32xf32>
    %921 = arith.mulf %911, %920 : vector<16x32xf32>
    %922 = arith.addf %843, %921 : vector<16x32xf32>
    %923 = arith.truncf %922 : vector<16x32xf32> to vector<16x32xbf16>
    %c0_318 = arith.constant 0 : index
    %c0_319 = arith.constant 0 : index
    %924 = vector.load %arg28[%c0_318, %c0_319] : memref<1x64xf32, #tpu.memory_space<vmem>>, vector<1x64xf32>
    %c0_320 = arith.constant 0 : index
    %c0_321 = arith.constant 0 : index
    %c0_322 = arith.constant 0 : index
    %925 = vector.load %arg26[%c0_320, %c0_321, %c0_322] : memref<8x2x16xbf16, #tpu.memory_space<vmem>>, vector<1x2x16xbf16>
    %926 = vector.shape_cast %925 : vector<1x2x16xbf16> to vector<2x16xbf16>
    %cst_323 = arith.constant dense<0.000000e+00> : vector<2x32xf32>
    %927 = tpu.matmul %926, %923, %cst_323 {dimension_numbers = #tpu.dot_dimension_numbers<[1], [0], [0], [1], [0, 0, 1, 1], [], []>} : vector<2x16xbf16>, vector<16x32xbf16>, vector<2x32xf32> -> vector<2x32xf32>
    %c0_324 = arith.constant 0 : index
    %c0_325 = arith.constant 0 : index
    %c0_326 = arith.constant 0 : index
    %928 = vector.load %arg27[%c0_324, %c0_325, %c0_326] : memref<8x32x64xbf16, #tpu.memory_space<vmem>>, vector<1x32x64xbf16>
    %929 = vector.shape_cast %928 : vector<1x32x64xbf16> to vector<32x64xbf16>
    %930 = arith.truncf %927 : vector<2x32xf32> to vector<2x32xbf16>
    %cst_327 = arith.constant dense<0.000000e+00> : vector<2x64xf32>
    %931 = tpu.matmul %930, %929, %cst_327 {dimension_numbers = #tpu.dot_dimension_numbers<[1], [0], [0], [1], [0, 0, 1, 1], [], []>} : vector<2x32xbf16>, vector<32x64xbf16>, vector<2x64xf32> -> vector<2x64xf32>
    %932 = vector.broadcast %924 : vector<1x64xf32> to vector<2x64xf32>
    %933 = arith.addf %932, %931 : vector<2x64xf32>
    %c1_328 = arith.constant 1 : index
    %c0_329 = arith.constant 0 : index
    %c0_330 = arith.constant 0 : index
    %934 = vector.load %arg26[%c1_328, %c0_329, %c0_330] : memref<8x2x16xbf16, #tpu.memory_space<vmem>>, vector<1x2x16xbf16>
    %935 = vector.shape_cast %934 : vector<1x2x16xbf16> to vector<2x16xbf16>
    %cst_331 = arith.constant dense<0.000000e+00> : vector<2x32xf32>
    %936 = tpu.matmul %935, %923, %cst_331 {dimension_numbers = #tpu.dot_dimension_numbers<[1], [0], [0], [1], [0, 0, 1, 1], [], []>} : vector<2x16xbf16>, vector<16x32xbf16>, vector<2x32xf32> -> vector<2x32xf32>
    %c1_332 = arith.constant 1 : index
    %c0_333 = arith.constant 0 : index
    %c0_334 = arith.constant 0 : index
    %937 = vector.load %arg27[%c1_332, %c0_333, %c0_334] : memref<8x32x64xbf16, #tpu.memory_space<vmem>>, vector<1x32x64xbf16>
    %938 = vector.shape_cast %937 : vector<1x32x64xbf16> to vector<32x64xbf16>
    %939 = arith.truncf %936 : vector<2x32xf32> to vector<2x32xbf16>
    %cst_335 = arith.constant dense<0.000000e+00> : vector<2x64xf32>
    %940 = tpu.matmul %939, %938, %cst_335 {dimension_numbers = #tpu.dot_dimension_numbers<[1], [0], [0], [1], [0, 0, 1, 1], [], []>} : vector<2x32xbf16>, vector<32x64xbf16>, vector<2x64xf32> -> vector<2x64xf32>
    %941 = arith.addf %933, %940 : vector<2x64xf32>
    %c2_336 = arith.constant 2 : index
    %c0_337 = arith.constant 0 : index
    %c0_338 = arith.constant 0 : index
    %942 = vector.load %arg26[%c2_336, %c0_337, %c0_338] : memref<8x2x16xbf16, #tpu.memory_space<vmem>>, vector<1x2x16xbf16>
    %943 = vector.shape_cast %942 : vector<1x2x16xbf16> to vector<2x16xbf16>
    %cst_339 = arith.constant dense<0.000000e+00> : vector<2x32xf32>
    %944 = tpu.matmul %943, %923, %cst_339 {dimension_numbers = #tpu.dot_dimension_numbers<[1], [0], [0], [1], [0, 0, 1, 1], [], []>} : vector<2x16xbf16>, vector<16x32xbf16>, vector<2x32xf32> -> vector<2x32xf32>
    %c2_340 = arith.constant 2 : index
    %c0_341 = arith.constant 0 : index
    %c0_342 = arith.constant 0 : index
    %945 = vector.load %arg27[%c2_340, %c0_341, %c0_342] : memref<8x32x64xbf16, #tpu.memory_space<vmem>>, vector<1x32x64xbf16>
    %946 = vector.shape_cast %945 : vector<1x32x64xbf16> to vector<32x64xbf16>
    %947 = arith.truncf %944 : vector<2x32xf32> to vector<2x32xbf16>
    %cst_343 = arith.constant dense<0.000000e+00> : vector<2x64xf32>
    %948 = tpu.matmul %947, %946, %cst_343 {dimension_numbers = #tpu.dot_dimension_numbers<[1], [0], [0], [1], [0, 0, 1, 1], [], []>} : vector<2x32xbf16>, vector<32x64xbf16>, vector<2x64xf32> -> vector<2x64xf32>
    %949 = arith.addf %941, %948 : vector<2x64xf32>
    %c3 = arith.constant 3 : index
    %c0_344 = arith.constant 0 : index
    %c0_345 = arith.constant 0 : index
    %950 = vector.load %arg26[%c3, %c0_344, %c0_345] : memref<8x2x16xbf16, #tpu.memory_space<vmem>>, vector<1x2x16xbf16>
    %951 = vector.shape_cast %950 : vector<1x2x16xbf16> to vector<2x16xbf16>
    %cst_346 = arith.constant dense<0.000000e+00> : vector<2x32xf32>
    %952 = tpu.matmul %951, %923, %cst_346 {dimension_numbers = #tpu.dot_dimension_numbers<[1], [0], [0], [1], [0, 0, 1, 1], [], []>} : vector<2x16xbf16>, vector<16x32xbf16>, vector<2x32xf32> -> vector<2x32xf32>
    %c3_347 = arith.constant 3 : index
    %c0_348 = arith.constant 0 : index
    %c0_349 = arith.constant 0 : index
    %953 = vector.load %arg27[%c3_347, %c0_348, %c0_349] : memref<8x32x64xbf16, #tpu.memory_space<vmem>>, vector<1x32x64xbf16>
    %954 = vector.shape_cast %953 : vector<1x32x64xbf16> to vector<32x64xbf16>
    %955 = arith.truncf %952 : vector<2x32xf32> to vector<2x32xbf16>
    %cst_350 = arith.constant dense<0.000000e+00> : vector<2x64xf32>
    %956 = tpu.matmul %955, %954, %cst_350 {dimension_numbers = #tpu.dot_dimension_numbers<[1], [0], [0], [1], [0, 0, 1, 1], [], []>} : vector<2x32xbf16>, vector<32x64xbf16>, vector<2x64xf32> -> vector<2x64xf32>
    %957 = arith.addf %949, %956 : vector<2x64xf32>
    %c4 = arith.constant 4 : index
    %c0_351 = arith.constant 0 : index
    %c0_352 = arith.constant 0 : index
    %958 = vector.load %arg26[%c4, %c0_351, %c0_352] : memref<8x2x16xbf16, #tpu.memory_space<vmem>>, vector<1x2x16xbf16>
    %959 = vector.shape_cast %958 : vector<1x2x16xbf16> to vector<2x16xbf16>
    %cst_353 = arith.constant dense<0.000000e+00> : vector<2x32xf32>
    %960 = tpu.matmul %959, %923, %cst_353 {dimension_numbers = #tpu.dot_dimension_numbers<[1], [0], [0], [1], [0, 0, 1, 1], [], []>} : vector<2x16xbf16>, vector<16x32xbf16>, vector<2x32xf32> -> vector<2x32xf32>
    %c4_354 = arith.constant 4 : index
    %c0_355 = arith.constant 0 : index
    %c0_356 = arith.constant 0 : index
    %961 = vector.load %arg27[%c4_354, %c0_355, %c0_356] : memref<8x32x64xbf16, #tpu.memory_space<vmem>>, vector<1x32x64xbf16>
    %962 = vector.shape_cast %961 : vector<1x32x64xbf16> to vector<32x64xbf16>
    %963 = arith.truncf %960 : vector<2x32xf32> to vector<2x32xbf16>
    %cst_357 = arith.constant dense<0.000000e+00> : vector<2x64xf32>
    %964 = tpu.matmul %963, %962, %cst_357 {dimension_numbers = #tpu.dot_dimension_numbers<[1], [0], [0], [1], [0, 0, 1, 1], [], []>} : vector<2x32xbf16>, vector<32x64xbf16>, vector<2x64xf32> -> vector<2x64xf32>
    %965 = arith.addf %957, %964 : vector<2x64xf32>
    %c5 = arith.constant 5 : index
    %c0_358 = arith.constant 0 : index
    %c0_359 = arith.constant 0 : index
    %966 = vector.load %arg26[%c5, %c0_358, %c0_359] : memref<8x2x16xbf16, #tpu.memory_space<vmem>>, vector<1x2x16xbf16>
    %967 = vector.shape_cast %966 : vector<1x2x16xbf16> to vector<2x16xbf16>
    %cst_360 = arith.constant dense<0.000000e+00> : vector<2x32xf32>
    %968 = tpu.matmul %967, %923, %cst_360 {dimension_numbers = #tpu.dot_dimension_numbers<[1], [0], [0], [1], [0, 0, 1, 1], [], []>} : vector<2x16xbf16>, vector<16x32xbf16>, vector<2x32xf32> -> vector<2x32xf32>
    %c5_361 = arith.constant 5 : index
    %c0_362 = arith.constant 0 : index
    %c0_363 = arith.constant 0 : index
    %969 = vector.load %arg27[%c5_361, %c0_362, %c0_363] : memref<8x32x64xbf16, #tpu.memory_space<vmem>>, vector<1x32x64xbf16>
    %970 = vector.shape_cast %969 : vector<1x32x64xbf16> to vector<32x64xbf16>
    %971 = arith.truncf %968 : vector<2x32xf32> to vector<2x32xbf16>
    %cst_364 = arith.constant dense<0.000000e+00> : vector<2x64xf32>
    %972 = tpu.matmul %971, %970, %cst_364 {dimension_numbers = #tpu.dot_dimension_numbers<[1], [0], [0], [1], [0, 0, 1, 1], [], []>} : vector<2x32xbf16>, vector<32x64xbf16>, vector<2x64xf32> -> vector<2x64xf32>
    %973 = arith.addf %965, %972 : vector<2x64xf32>
    %c6 = arith.constant 6 : index
    %c0_365 = arith.constant 0 : index
    %c0_366 = arith.constant 0 : index
    %974 = vector.load %arg26[%c6, %c0_365, %c0_366] : memref<8x2x16xbf16, #tpu.memory_space<vmem>>, vector<1x2x16xbf16>
    %975 = vector.shape_cast %974 : vector<1x2x16xbf16> to vector<2x16xbf16>
    %cst_367 = arith.constant dense<0.000000e+00> : vector<2x32xf32>
    %976 = tpu.matmul %975, %923, %cst_367 {dimension_numbers = #tpu.dot_dimension_numbers<[1], [0], [0], [1], [0, 0, 1, 1], [], []>} : vector<2x16xbf16>, vector<16x32xbf16>, vector<2x32xf32> -> vector<2x32xf32>
    %c6_368 = arith.constant 6 : index
    %c0_369 = arith.constant 0 : index
    %c0_370 = arith.constant 0 : index
    %977 = vector.load %arg27[%c6_368, %c0_369, %c0_370] : memref<8x32x64xbf16, #tpu.memory_space<vmem>>, vector<1x32x64xbf16>
    %978 = vector.shape_cast %977 : vector<1x32x64xbf16> to vector<32x64xbf16>
    %979 = arith.truncf %976 : vector<2x32xf32> to vector<2x32xbf16>
    %cst_371 = arith.constant dense<0.000000e+00> : vector<2x64xf32>
    %980 = tpu.matmul %979, %978, %cst_371 {dimension_numbers = #tpu.dot_dimension_numbers<[1], [0], [0], [1], [0, 0, 1, 1], [], []>} : vector<2x32xbf16>, vector<32x64xbf16>, vector<2x64xf32> -> vector<2x64xf32>
    %981 = arith.addf %973, %980 : vector<2x64xf32>
    %c7 = arith.constant 7 : index
    %c0_372 = arith.constant 0 : index
    %c0_373 = arith.constant 0 : index
    %982 = vector.load %arg26[%c7, %c0_372, %c0_373] : memref<8x2x16xbf16, #tpu.memory_space<vmem>>, vector<1x2x16xbf16>
    %983 = vector.shape_cast %982 : vector<1x2x16xbf16> to vector<2x16xbf16>
    %cst_374 = arith.constant dense<0.000000e+00> : vector<2x32xf32>
    %984 = tpu.matmul %983, %923, %cst_374 {dimension_numbers = #tpu.dot_dimension_numbers<[1], [0], [0], [1], [0, 0, 1, 1], [], []>} : vector<2x16xbf16>, vector<16x32xbf16>, vector<2x32xf32> -> vector<2x32xf32>
    %c7_375 = arith.constant 7 : index
    %c0_376 = arith.constant 0 : index
    %c0_377 = arith.constant 0 : index
    %985 = vector.load %arg27[%c7_375, %c0_376, %c0_377] : memref<8x32x64xbf16, #tpu.memory_space<vmem>>, vector<1x32x64xbf16>
    %986 = vector.shape_cast %985 : vector<1x32x64xbf16> to vector<32x64xbf16>
    %987 = arith.truncf %984 : vector<2x32xf32> to vector<2x32xbf16>
    %cst_378 = arith.constant dense<0.000000e+00> : vector<2x64xf32>
    %988 = tpu.matmul %987, %986, %cst_378 {dimension_numbers = #tpu.dot_dimension_numbers<[1], [0], [0], [1], [0, 0, 1, 1], [], []>} : vector<2x32xbf16>, vector<32x64xbf16>, vector<2x64xf32> -> vector<2x64xf32>
    %989 = arith.addf %981, %988 : vector<2x64xf32>
    %990 = math.tanh %989 : vector<2x64xf32>
    %991 = vector.extract_strided_slice %990 {offsets = [0, 0], sizes = [2, 32], strides = [1, 1]} : vector<2x64xf32> to vector<2x32xf32>
    %c0_379 = arith.constant 0 : index
    %c0_380 = arith.constant 0 : index
    %992 = vector.load %arg29[%c0_379, %c0_380] : memref<32x32xbf16, #tpu.memory_space<vmem>>, vector<32x32xbf16>
    %993 = arith.truncf %991 : vector<2x32xf32> to vector<2x32xbf16>
    %cst_381 = arith.constant dense<0.000000e+00> : vector<2x32xf32>
    %994 = tpu.matmul %993, %992, %cst_381 {dimension_numbers = #tpu.dot_dimension_numbers<[1], [0], [0], [1], [0, 0, 1, 1], [], []>} : vector<2x32xbf16>, vector<32x32xbf16>, vector<2x32xf32> -> vector<2x32xf32>
    %c0_382 = arith.constant 0 : index
    %c0_383 = arith.constant 0 : index
    %995 = vector.load %arg30[%c0_382, %c0_383] : memref<1x32xf32, #tpu.memory_space<vmem>>, vector<1x32xf32>
    %996 = vector.broadcast %995 : vector<1x32xf32> to vector<2x32xf32>
    %997 = arith.addf %994, %996 : vector<2x32xf32>
    %998 = math.tanh %997 : vector<2x32xf32>
    %999 = vector.extract_strided_slice %990 {offsets = [0, 32], sizes = [2, 32], strides = [1, 1]} : vector<2x64xf32> to vector<2x32xf32>
    %c0_384 = arith.constant 0 : index
    %c0_385 = arith.constant 0 : index
    %1000 = vector.load %arg31[%c0_384, %c0_385] : memref<32x32xbf16, #tpu.memory_space<vmem>>, vector<32x32xbf16>
    %1001 = arith.truncf %999 : vector<2x32xf32> to vector<2x32xbf16>
    %cst_386 = arith.constant dense<0.000000e+00> : vector<2x32xf32>
    %1002 = tpu.matmul %1001, %1000, %cst_386 {dimension_numbers = #tpu.dot_dimension_numbers<[1], [0], [0], [1], [0, 0, 1, 1], [], []>} : vector<2x32xbf16>, vector<32x32xbf16>, vector<2x32xf32> -> vector<2x32xf32>
    %c0_387 = arith.constant 0 : index
    %c0_388 = arith.constant 0 : index
    %1003 = vector.load %arg32[%c0_387, %c0_388] : memref<1x32xf32, #tpu.memory_space<vmem>>, vector<1x32xf32>
    %1004 = vector.broadcast %1003 : vector<1x32xf32> to vector<2x32xf32>
    %1005 = arith.addf %1002, %1004 : vector<2x32xf32>
    %1006 = math.tanh %1005 : vector<2x32xf32>
    %c0_389 = arith.constant 0 : index
    %c0_390 = arith.constant 0 : index
    %1007 = vector.load %arg33[%c0_389, %c0_390] : memref<32x1xbf16, #tpu.memory_space<vmem>>, vector<32x1xbf16>
    %1008 = arith.truncf %998 : vector<2x32xf32> to vector<2x32xbf16>
    %cst_391 = arith.constant dense<0.000000e+00> : vector<2x1xf32>
    %1009 = tpu.matmul %1008, %1007, %cst_391 {dimension_numbers = #tpu.dot_dimension_numbers<[1], [0], [0], [1], [0, 0, 1, 1], [], []>} : vector<2x32xbf16>, vector<32x1xbf16>, vector<2x1xf32> -> vector<2x1xf32>
    %c0_392 = arith.constant 0 : index
    %c0_393 = arith.constant 0 : index
    %1010 = vector.load %arg34[%c0_392, %c0_393] : memref<1x1xf32, #tpu.memory_space<vmem>>, vector<1x1xf32>
    %1011 = vector.broadcast %1010 : vector<1x1xf32> to vector<2x1xf32>
    %1012 = arith.addf %1009, %1011 : vector<2x1xf32>
    %c0_394 = arith.constant 0 : index
    %c0_395 = arith.constant 0 : index
    %1013 = vector.load %arg35[%c0_394, %c0_395] : memref<32x8xbf16, #tpu.memory_space<vmem>>, vector<32x8xbf16>
    %1014 = arith.truncf %1006 : vector<2x32xf32> to vector<2x32xbf16>
    %cst_396 = arith.constant dense<0.000000e+00> : vector<2x8xf32>
    %1015 = tpu.matmul %1014, %1013, %cst_396 {dimension_numbers = #tpu.dot_dimension_numbers<[1], [0], [0], [1], [0, 0, 1, 1], [], []>} : vector<2x32xbf16>, vector<32x8xbf16>, vector<2x8xf32> -> vector<2x8xf32>
    %c0_397 = arith.constant 0 : index
    %c0_398 = arith.constant 0 : index
    %1016 = vector.load %arg36[%c0_397, %c0_398] : memref<1x8xf32, #tpu.memory_space<vmem>>, vector<1x8xf32>
    %1017 = vector.broadcast %1016 : vector<1x8xf32> to vector<2x8xf32>
    %1018 = arith.addf %1015, %1017 : vector<2x8xf32>
    %cst_399 = arith.constant 0.000000e+00 : f32
    %1019 = vector.broadcast %cst_399 : f32 to vector<2x87xf32>
    %1020 = tpu.concatenate %1012, %1006, %1018, %1019 in 1 : vector<2x1xf32>, vector<2x32xf32>, vector<2x8xf32>, vector<2x87xf32> -> vector<2x128xf32>
    %c0_400 = arith.constant 0 : index
    %c0_401 = arith.constant 0 : index
    %1021 = vector.load %arg37[%c0_400, %c0_401] : memref<2x128xf32, #tpu.memory_space<vmem>>, vector<2x128xf32>
    tpu.vector_store %arg37[%c0_400, %c0_401], %1020 {strides = array<i32>} : memref<2x128xf32, #tpu.memory_space<vmem>>, vector<2x128xf32>,
    return
  }
  func.func @transform_0(%arg0: i32) -> (i32, i32) {
    %c0_i32 = arith.constant 0 : i32
    %c0_i32_0 = arith.constant 0 : i32
    %c0_i32_1 = arith.constant 0 : i32
    return %c0_i32, %c0_i32_0 : i32, i32
  }
  func.func @transform_1(%arg0: i32) -> (i32, i32) {
    %c0_i32 = arith.constant 0 : i32
    %c0_i32_0 = arith.constant 0 : i32
    %c0_i32_1 = arith.constant 0 : i32
    return %c0_i32, %c0_i32_0 : i32, i32
  }
  func.func @transform_2(%arg0: i32) -> (i32, i32) {
    %c0_i32 = arith.constant 0 : i32
    %c0_i32_0 = arith.constant 0 : i32
    %c0_i32_1 = arith.constant 0 : i32
    return %c0_i32, %c0_i32_0 : i32, i32
  }
  func.func @transform_3(%arg0: i32) -> (i32, i32) {
    %c0_i32 = arith.constant 0 : i32
    %c0_i32_0 = arith.constant 0 : i32
    %c0_i32_1 = arith.constant 0 : i32
    return %c0_i32, %c0_i32_0 : i32, i32
  }
  func.func @transform_4(%arg0: i32) -> (i32, i32) {
    %c0_i32 = arith.constant 0 : i32
    %c0_i32_0 = arith.constant 0 : i32
    %c0_i32_1 = arith.constant 0 : i32
    return %c0_i32, %c0_i32_0 : i32, i32
  }
  func.func @transform_5(%arg0: i32) -> (i32, i32) {
    %c0_i32 = arith.constant 0 : i32
    %c0_i32_0 = arith.constant 0 : i32
    %c0_i32_1 = arith.constant 0 : i32
    return %c0_i32, %c0_i32_0 : i32, i32
  }
  func.func @transform_6(%arg0: i32) -> (i32, i32) {
    %c0_i32 = arith.constant 0 : i32
    %c0_i32_0 = arith.constant 0 : i32
    %c0_i32_1 = arith.constant 0 : i32
    return %c0_i32, %c0_i32_0 : i32, i32
  }
  func.func @transform_7(%arg0: i32) -> (i32, i32) {
    %c0_i32 = arith.constant 0 : i32
    %c0_i32_0 = arith.constant 0 : i32
    %c0_i32_1 = arith.constant 0 : i32
    return %c0_i32, %c0_i32_0 : i32, i32
  }
  func.func @transform_8(%arg0: i32) -> (i32, i32) {
    %c0_i32 = arith.constant 0 : i32
    %c0_i32_0 = arith.constant 0 : i32
    %c0_i32_1 = arith.constant 0 : i32
    return %c0_i32, %c0_i32_0 : i32, i32
  }
  func.func @transform_9(%arg0: i32) -> (i32, i32, i32) {
    %c0_i32 = arith.constant 0 : i32
    %c0_i32_0 = arith.constant 0 : i32
    %c0_i32_1 = arith.constant 0 : i32
    %c0_i32_2 = arith.constant 0 : i32
    return %c0_i32, %c0_i32_0, %c0_i32_1 : i32, i32, i32
  }
  func.func @transform_10(%arg0: i32) -> (i32, i32) {
    %c0_i32 = arith.constant 0 : i32
    %c0_i32_0 = arith.constant 0 : i32
    %c0_i32_1 = arith.constant 0 : i32
    return %c0_i32, %c0_i32_0 : i32, i32
  }
  func.func @transform_11(%arg0: i32) -> (i32, i32, i32, i32) {
    %c0_i32 = arith.constant 0 : i32
    %c0_i32_0 = arith.constant 0 : i32
    %c0_i32_1 = arith.constant 0 : i32
    %c0_i32_2 = arith.constant 0 : i32
    %c0_i32_3 = arith.constant 0 : i32
    return %c0_i32, %c0_i32_0, %c0_i32_1, %c0_i32_2 : i32, i32, i32, i32
  }
  func.func @transform_12(%arg0: i32) -> (i32, i32, i32) {
    %c0_i32 = arith.constant 0 : i32
    %c0_i32_0 = arith.constant 0 : i32
    %c0_i32_1 = arith.constant 0 : i32
    %c0_i32_2 = arith.constant 0 : i32
    return %c0_i32, %c0_i32_0, %c0_i32_1 : i32, i32, i32
  }
  func.func @transform_13(%arg0: i32) -> (i32, i32, i32) {
    %c0_i32 = arith.constant 0 : i32
    %c0_i32_0 = arith.constant 0 : i32
    %c0_i32_1 = arith.constant 0 : i32
    %c0_i32_2 = arith.constant 0 : i32
    return %c0_i32, %c0_i32_0, %c0_i32_1 : i32, i32, i32
  }
  func.func @transform_14(%arg0: i32) -> (i32, i32, i32, i32) {
    %c0_i32 = arith.constant 0 : i32
    %c0_i32_0 = arith.constant 0 : i32
    %c0_i32_1 = arith.constant 0 : i32
    %c0_i32_2 = arith.constant 0 : i32
    %c0_i32_3 = arith.constant 0 : i32
    return %c0_i32, %c0_i32_0, %c0_i32_1, %c0_i32_2 : i32, i32, i32, i32
  }
  func.func @transform_15(%arg0: i32) -> (i32, i32, i32, i32) {
    %c0_i32 = arith.constant 0 : i32
    %c0_i32_0 = arith.constant 0 : i32
    %c0_i32_1 = arith.constant 0 : i32
    %c0_i32_2 = arith.constant 0 : i32
    %c0_i32_3 = arith.constant 0 : i32
    return %c0_i32, %c0_i32_0, %c0_i32_1, %c0_i32_2 : i32, i32, i32, i32
  }
  func.func @transform_16(%arg0: i32) -> (i32, i32, i32, i32) {
    %c0_i32 = arith.constant 0 : i32
    %c0_i32_0 = arith.constant 0 : i32
    %c0_i32_1 = arith.constant 0 : i32
    %c0_i32_2 = arith.constant 0 : i32
    %c0_i32_3 = arith.constant 0 : i32
    return %c0_i32, %c0_i32_0, %c0_i32_1, %c0_i32_2 : i32, i32, i32, i32
  }
  func.func @transform_17(%arg0: i32) -> (i32, i32, i32, i32) {
    %c0_i32 = arith.constant 0 : i32
    %c0_i32_0 = arith.constant 0 : i32
    %c0_i32_1 = arith.constant 0 : i32
    %c0_i32_2 = arith.constant 0 : i32
    %c0_i32_3 = arith.constant 0 : i32
    return %c0_i32, %c0_i32_0, %c0_i32_1, %c0_i32_2 : i32, i32, i32, i32
  }
  func.func @transform_18(%arg0: i32) -> (i32, i32, i32, i32) {
    %c0_i32 = arith.constant 0 : i32
    %c0_i32_0 = arith.constant 0 : i32
    %c0_i32_1 = arith.constant 0 : i32
    %c0_i32_2 = arith.constant 0 : i32
    %c0_i32_3 = arith.constant 0 : i32
    return %c0_i32, %c0_i32_0, %c0_i32_1, %c0_i32_2 : i32, i32, i32, i32
  }
  func.func @transform_19(%arg0: i32) -> (i32, i32, i32, i32) {
    %c0_i32 = arith.constant 0 : i32
    %c0_i32_0 = arith.constant 0 : i32
    %c0_i32_1 = arith.constant 0 : i32
    %c0_i32_2 = arith.constant 0 : i32
    %c0_i32_3 = arith.constant 0 : i32
    return %c0_i32, %c0_i32_0, %c0_i32_1, %c0_i32_2 : i32, i32, i32, i32
  }
  func.func @transform_20(%arg0: i32) -> (i32, i32, i32) {
    %c0_i32 = arith.constant 0 : i32
    %c0_i32_0 = arith.constant 0 : i32
    %c0_i32_1 = arith.constant 0 : i32
    %c0_i32_2 = arith.constant 0 : i32
    return %c0_i32, %c0_i32_0, %c0_i32_1 : i32, i32, i32
  }
  func.func @transform_21(%arg0: i32) -> (i32, i32, i32) {
    %c0_i32 = arith.constant 0 : i32
    %c0_i32_0 = arith.constant 0 : i32
    %c0_i32_1 = arith.constant 0 : i32
    %c0_i32_2 = arith.constant 0 : i32
    return %c0_i32, %c0_i32_0, %c0_i32_1 : i32, i32, i32
  }
  func.func @transform_22(%arg0: i32) -> (i32, i32, i32) {
    %c0_i32 = arith.constant 0 : i32
    %c0_i32_0 = arith.constant 0 : i32
    %c0_i32_1 = arith.constant 0 : i32
    %c0_i32_2 = arith.constant 0 : i32
    return %c0_i32, %c0_i32_0, %c0_i32_1 : i32, i32, i32
  }
  func.func @transform_23(%arg0: i32) -> (i32, i32, i32) {
    %c0_i32 = arith.constant 0 : i32
    %c0_i32_0 = arith.constant 0 : i32
    %c0_i32_1 = arith.constant 0 : i32
    %c0_i32_2 = arith.constant 0 : i32
    return %c0_i32, %c0_i32_0, %c0_i32_1 : i32, i32, i32
  }
  func.func @transform_24(%arg0: i32) -> (i32, i32) {
    %c0_i32 = arith.constant 0 : i32
    %c0_i32_0 = arith.constant 0 : i32
    %c0_i32_1 = arith.constant 0 : i32
    return %c0_i32, %c0_i32_0 : i32, i32
  }
  func.func @transform_25(%arg0: i32) -> (i32, i32, i32) {
    %c0_i32 = arith.constant 0 : i32
    %c0_i32_0 = arith.constant 0 : i32
    %c0_i32_1 = arith.constant 0 : i32
    %c0_i32_2 = arith.constant 0 : i32
    return %c0_i32, %c0_i32_0, %c0_i32_1 : i32, i32, i32
  }
  func.func @transform_26(%arg0: i32) -> (i32, i32, i32) {
    %c0_i32 = arith.constant 0 : i32
    %c0_i32_0 = arith.constant 0 : i32
    %c0_i32_1 = arith.constant 0 : i32
    %c0_i32_2 = arith.constant 0 : i32
    return %c0_i32, %c0_i32_0, %c0_i32_1 : i32, i32, i32
  }
  func.func @transform_27(%arg0: i32) -> (i32, i32) {
    %c0_i32 = arith.constant 0 : i32
    %c0_i32_0 = arith.constant 0 : i32
    %c0_i32_1 = arith.constant 0 : i32
    return %c0_i32, %c0_i32_0 : i32, i32
  }
  func.func @transform_28(%arg0: i32) -> (i32, i32) {
    %c0_i32 = arith.constant 0 : i32
    %c0_i32_0 = arith.constant 0 : i32
    %c0_i32_1 = arith.constant 0 : i32
    return %c0_i32, %c0_i32_0 : i32, i32
  }
  func.func @transform_29(%arg0: i32) -> (i32, i32) {
    %c0_i32 = arith.constant 0 : i32
    %c0_i32_0 = arith.constant 0 : i32
    %c0_i32_1 = arith.constant 0 : i32
    return %c0_i32, %c0_i32_0 : i32, i32
  }
  func.func @transform_30(%arg0: i32) -> (i32, i32) {
    %c0_i32 = arith.constant 0 : i32
    %c0_i32_0 = arith.constant 0 : i32
    %c0_i32_1 = arith.constant 0 : i32
    return %c0_i32, %c0_i32_0 : i32, i32
  }
  func.func @transform_31(%arg0: i32) -> (i32, i32) {
    %c0_i32 = arith.constant 0 : i32
    %c0_i32_0 = arith.constant 0 : i32
    %c0_i32_1 = arith.constant 0 : i32
    return %c0_i32, %c0_i32_0 : i32, i32
  }
  func.func @transform_32(%arg0: i32) -> (i32, i32) {
    %c0_i32 = arith.constant 0 : i32
    %c0_i32_0 = arith.constant 0 : i32
    %c0_i32_1 = arith.constant 0 : i32
    return %c0_i32, %c0_i32_0 : i32, i32
  }
  func.func @transform_33(%arg0: i32) -> (i32, i32) {
    %c0_i32 = arith.constant 0 : i32
    %c0_i32_0 = arith.constant 0 : i32
    %c0_i32_1 = arith.constant 0 : i32
    return %c0_i32, %c0_i32_0 : i32, i32
  }
  func.func @transform_34(%arg0: i32) -> (i32, i32) {
    %c0_i32 = arith.constant 0 : i32
    %c0_i32_0 = arith.constant 0 : i32
    %c0_i32_1 = arith.constant 0 : i32
    return %c0_i32, %c0_i32_0 : i32, i32
  }
  func.func @transform_35(%arg0: i32) -> (i32, i32) {
    %c0_i32 = arith.constant 0 : i32
    %c0_i32_0 = arith.constant 0 : i32
    %c0_i32_1 = arith.constant 0 : i32
    return %c0_i32, %c0_i32_0 : i32, i32
  }
  func.func @transform_36(%arg0: i32) -> (i32, i32) {
    %c0_i32 = arith.constant 0 : i32
    %c0_i32_0 = arith.constant 0 : i32
    %c0_i32_1 = arith.constant 0 : i32
    return %c0_i32, %c0_i32_0 : i32, i32
  }
}

</mosaic_0001>

<bundles_post_ra>
// kernel: policy_forward.1
= control target key start
LH: loop header
LB: loop body
LE: loop exit
PB: predicated region body
PF: predicated region fallthrough
CT: control target
= control target key end

     0   :  { %s8695_s6 = smov 1   ;;  %s8696_s10 = smov 2   ;;  %s11069_s0 = inlined_call_operand.smem [shape: u32[37], index: -1, kind: input, shape index: {}] }
   0x1   :  { %s8786_s5 = sld [smem:[%s11069_s0]]   ;;  %s8697_s14 = smov 3  }
   0x2   :  { %s8791_s9 = sld [smem:[%s11069_s0 + %s8695_s6]]   ;;  %s8698_s18 = smov 4  }
   0x3   :  { %s8796_s13 = sld [smem:[%s11069_s0 + %s8696_s10]]   ;;  %s8699_s22 = smov 5  }
   0x4   :  { %s8801_s17 = sld [smem:[%s11069_s0 + %s8697_s14]]   ;;  %s8700_s26 = smov 6  }
   0x5   :  { %s8806_s21 = sld [smem:[%s11069_s0 + %s8698_s18]]   ;;  %s8701_s30 = smov 7  }
   0x6   :  { %s8811_s25 = sld [smem:[%s11069_s0 + %s8699_s22]]   ;;  %s8702_s4 = smov 8  }
   0x7   :  { %11251 = sst [smem:[#allocation54_spill]] %s8786_s5  ;;  %s8703_s10 = smov 9  }
   0x8   :  { %s8816_s29 = sld [smem:[%s11069_s0 + %s8700_s26]]   ;;  %s8704_s15 = smov 10  }
   0x9   :  { %s8821_s3 = sld [smem:[%s11069_s0 + %s8701_s30]]   ;;  %s8705_s20 = smov 11  }
   0xa   :  { %11252 = sst [smem:[#allocation55_spill]] %s8801_s17  ;;  %s8706_s26 = smov 12  }
   0xb   :  { %11253 = sst [smem:[#allocation56_spill]] %s8806_s21  ;;  %s8707_s1 = smov 13  }
   0xc   :  { %11254 = sst [smem:[#allocation57_spill]] %s8811_s25  ;;  %s8708_s7 = smov 14  }
   0xd   :  { %s8826_s8 = sld [smem:[%s11069_s0 + %s8702_s4]]   ;;  %s8710_s22 = smov 16  }
   0xe   :  { %s8831_s14 = sld [smem:[%s11069_s0 + %s8703_s10]]   ;;  %s8711_s28 = smov 17  }
   0xf   :  { %11255 = sst [smem:[#allocation58_spill]] %s8821_s3  ;;  %s8728_s10 = smov 34  }
  0x10   :  { %s8836_s19 = sld [smem:[%s11069_s0 + %s8704_s15]]   ;;  %s8709_s15 = smov 15  }
  0x11   :  { %s8841_s24 = sld [smem:[%s11069_s0 + %s8705_s20]]   ;;  %s8729_s16 = smov 35  }
  0x12   :  { %s8846_s30 = sld [smem:[%s11069_s0 + %s8706_s26]]   ;;  %s8730_s23 = smov 36  }
  0x13   :  { %s8851_s6 = sld [smem:[%s11069_s0 + %s8707_s1]]  }
  0x14   :  { %11256 = sst [smem:[#allocation59_spill]] %s8831_s14 }
  0x15   :  { %s8856_s12 = sld [smem:[%s11069_s0 + %s8708_s7]]   ;;  %s8712_s7 = smov 18  }
  0x16   :  { %11257 = sst [smem:[#allocation60_spill]] %s8836_s19 }
  0x17   :  { %s8861_s20 = sld [smem:[%s11069_s0 + %s8709_s15]]   ;;  %s8713_s15 = smov 19  }
  0x18   :  { %11258 = sst [smem:[#allocation61_spill]] %s8846_s30 }
  0x19   :  { %s8866_s27 = sld [smem:[%s11069_s0 + %s8710_s22]]   ;;  %s8714_s22 = smov 20  }
  0x1a   :  { %s8871_s4 = sld [smem:[%s11069_s0 + %s8711_s28]]   ;;  %s8715_s28 = smov 21  }
  0x1b   :  { %11259 = sst [smem:[#allocation62_spill]] %s8856_s12 }
  0x1c   :  { %s8876_s21 = sld [smem:[%s11069_s0 + %s8712_s7]]   ;;  %s8716_s7 = smov 22  }
  0x1d   :  { %s8881_s17 = sld [smem:[%s11069_s0 + %s8713_s15]]   ;;  %s8717_s15 = smov 23  }
  0x1e   :  { %s8886_s14 = sld [smem:[%s11069_s0 + %s8714_s22]]   ;;  %s8718_s22 = smov 24  }
  0x1f   :  { %11260 = sst [smem:[#allocation63_spill]] %s8866_s27 }
  0x20   :  { %s8891_s3 = sld [smem:[%s11069_s0 + %s8715_s28]]   ;;  %s8719_s28 = smov 25  }
  0x21   :  { %s8896_s5 = sld [smem:[%s11069_s0 + %s8716_s7]]   ;;  %s8720_s7 = smov 26  }
  0x22   :  { %11261 = sst [smem:[#allocation64_spill]] %s8876_s21 }
  0x23   :  { %s8901_s25 = sld [smem:[%s11069_s0 + %s8717_s15]]   ;;  %s8721_s15 = smov 27  }
  0x24   :  { %11262 = sst [smem:[#allocation65_spill]] %s8886_s14 }
  0x25   :  { %s8906_s14 = sld [smem:[%s11069_s0 + %s8718_s22]]   ;;  %s8722_s22 = smov 28  }
  0x26   :  { %s8911_s21 = sld [smem:[%s11069_s0 + %s8719_s28]]   ;;  %s8723_s28 = smov 29  }
  0x27   :  { %11263 = sst [smem:[#allocation66_spill]] %s8896_s5 }
  0x28   :  { %s8916_s5 = sld [smem:[%s11069_s0 + %s8720_s7]]   ;;  %s8724_s7 = smov 30  }
  0x29   :  { %11264 = sst [smem:[#allocation67_spill]] %s8901_s25 }
  0x2a   :  { %s8921_s25 = sld [smem:[%s11069_s0 + %s8721_s15]]   ;;  %s8725_s15 = smov 31  }
  0x2b   :  { %s8926_s27 = sld [smem:[%s11069_s0 + %s8722_s22]]   ;;  %s8726_s22 = smov 32  }
  0x2c   :  { %11265 = sst [smem:[#allocation68_spill]] %s8911_s21 }
  0x2d   :  { %s8931_s21 = sld [smem:[%s11069_s0 + %s8723_s28]]   ;;  %s8727_s28 = smov 33  }
  0x2e   :  { %11266 = sst [smem:[#allocation69_spill]] %s8916_s5 }
  0x2f   :  { %s8936_s5 = sld [smem:[%s11069_s0 + %s8724_s7]]  }
  0x30   :  { %s8941_s12 = sld [smem:[%s11069_s0 + %s8725_s15]]  }
  0x31   :  { %11267 = sst [smem:[#allocation70_spill]] %s8926_s27 }
  0x32   :  { %s8946_s27 = sld [smem:[%s11069_s0 + %s8726_s22]]  }
  0x33   :  { %s6689_s30 = sld [smem:[%s11069_s0 + %s8727_s28]]  }
  0x34   :  { %s8959_s19 = sld [smem:[%s11069_s0 + %s8729_s16]]  }
  0x35   :  { %11268 = sst [smem:[#allocation71_spill]] %s8936_s5 }
  0x36   :  { %s8954_s5 = sld [smem:[%s11069_s0 + %s8728_s10]]  }
  0x38   :  { %11269 = sst [smem:[#allocation72_spill]] %s8946_s27 }
  0x39   :  { %s8964_s27 = sld [smem:[%s11069_s0 + %s8730_s23]]   ;;  %v78_v0 = vstv %s6689_s30 }
  0x3a   :  { %79 = vst [vmem:[#allocation2] sm:$0x1] %v78_v0 }
  0x3b   :  { %80 = vsyncpa [#allocation4], 0 }
  0x3c   :  { %81 = vsyncpa [#allocation6], 0 }
  0x3d   :  { %82 = vsyncpa [#allocation9], 0 }
  0x3e   :  { %83 = vsyncpa [#allocation12], 0 }
  0x3f   :  { %84 = vsyncpa [#allocation15], 0 }
  0x40   :  { %85 = vsyncpa [#allocation18], 0 }
  0x41   :  { %86 = vsyncpa [#allocation21], 0 }
  0x42   :  { %87 = vsyncpa [#allocation24], 0 }
  0x43   :  { %88 = vsyncpa [#allocation27], 0 }
  0x44   :  { %89 = vsyncpa [#allocation30], 0 }
  0x45   :  { %90 = vsyncpa [#allocation33], 0 }
  0x46   :  { %91 = vsyncpa [#allocation36], 0 }
  0x47   :  { %92 = vsyncpa [#allocation39], 0  ;;  %s112_s0 = sshll.u32 %s8796_s13, 4  ;;  %s8731_s30 = smov [#allocation5]   ;;  %s113_s0 = int_to_ptr.hbm [resolvable:$true] %s112_s0 }
  0x48   :  { %s114_s28 = sshll.u32 %s8731_s30, 4  ;;  %s145_s1 = sshll.u32 %s8826_s8, 4  ;;  %s115_s28 = int_to_ptr.vmem [resolvable:$true] %s114_s28  ;;  %s146_s1 = int_to_ptr.hbm [resolvable:$true] %s145_s1 }
  0x49   :  { %s8069_s2 = sshra.s32 %s113_s0, 4  ;;  %s8073_s7 = scalar_lea.hbm %s8796_s13, 64  ;;  %s8070_s2 = int_to_ptr.hbm [resolvable:$true] %s8069_s2 }
  0x4a   :  { %s8071_s10 = scalar_lea.hbm %s8070_s2, 64  ;;  %p8074_p1 = scmp.lt.s32.totalorder %s8070_s2, %s8796_s13 }
  0x4b   :  { %p8072_p0 = scmp.ne.s32.totalorder %s8070_s2, %s8071_s10  ;;  %p8075_p2 = scmp.lt.s32.totalorder %s8073_s7, %s8071_s10 }
  0x4d   :  { %p8076_p3 = por %p8075_p2, %p8074_p1 }
  0x4f   :  { %p8077_p4 = pnand %p8076_p3, %p8072_p0 }
  0x51   :  { %8080 = shalt.err (!%p8077_p4)
}
  0x52   :  { %s8732_s11 = smov 128   ;;  %s8733_s16 = smov 8  }
  0x53   :  { %120 = dma.hbm_to_vmem [thread:$0]  %s113_s0, 1024, %s115_s28, [#allocation6], %s8732_s11, %s8732_s11, %s8733_s16  }
  0x54   :  { %s8734_s15 = smov [#allocation8]   ;;  %s170_s23 = sshll.u32 %s8841_s24, 4  ;;  %s8974_s23 = int_to_ptr.hbm [resolvable:$true] %s170_s23 }
  0x55   :  { %s147_s18 = sshll.u32 %s8734_s15, 4  ;;  %s8093_s13 = sshra.s32 %s146_s1, 4  ;;  %s148_s18 = int_to_ptr.vmem [resolvable:$true] %s147_s18  ;;  %s8094_s13 = int_to_ptr.hbm [resolvable:$true] %s8093_s13 }
  0x56   :  { %s8095_s22 = scalar_lea.hbm %s8094_s13, 1  ;;  %s8097_s26 = scalar_lea.hbm %s8826_s8, 1 }
  0x57   :  { %p8096_p5 = scmp.ne.s32.totalorder %s8094_s13, %s8095_s22  ;;  %p8098_p6 = scmp.lt.s32.totalorder %s8094_s13, %s8826_s8 }
  0x58   :  { %p8099_p7 = scmp.lt.s32.totalorder %s8097_s26, %s8095_s22 }
  0x5a   :  { %p8100_p8 = por %p8099_p7, %p8098_p6 }
  0x5c   :  { %p8101_p9 = pnand %p8100_p8, %p8096_p5 }
  0x5e   :  { %8104 = shalt.err (!%p8101_p9)
}
  0x5f   :  { %150 = dma.hbm_to_vmem [thread:$0]  %s146_s1, 16, %s148_s18, [#allocation9]  }
  0x60   :  { %s8735_s0 = smov [#allocation11]   ;;  %s196_s28 = sshll.u32 %s8851_s6, 4  ;;  %s197_s28 = int_to_ptr.hbm [resolvable:$true] %s196_s28 }
  0x61   :  { %s172_s30 = sshll.u32 %s8735_s0, 4  ;;  %s8117_s2 = sshra.s32 %s8974_s23, 4  ;;  %s173_s30 = int_to_ptr.vmem [resolvable:$true] %s172_s30  ;;  %s8118_s2 = int_to_ptr.hbm [resolvable:$true] %s8117_s2 }
  0x62   :  { %s8119_s10 = scalar_lea.hbm %s8118_s2, 192  ;;  %s8121_s7 = scalar_lea.hbm %s8841_s24, 192 }
  0x63   :  { %p8120_p10 = scmp.ne.s32.totalorder %s8118_s2, %s8119_s10  ;;  %p8122_p11 = scmp.lt.s32.totalorder %s8118_s2, %s8841_s24 }
  0x64   :  { %p8123_p12 = scmp.lt.s32.totalorder %s8121_s7, %s8119_s10 }
  0x66   :  { %p8124_p13 = por %p8123_p12, %p8122_p11 }
  0x68   :  { %p8125_p0 = pnand %p8124_p13, %p8120_p10 }
  0x6a   :  { %8128 = shalt.err (!%p8125_p0)
}
  0x6b   :  { %s8736_s8 = smov 64   ;;  %s8737_s1 = smov 4  }
  0x6c   :  { %178 = dma.hbm_to_vmem [thread:$0]  %s8974_s23, 3072, %s173_s30, [#allocation12], %s8736_s8, %s8736_s8, %s8737_s1  }
  0x6d   :  { %s8738_s15 = smov [#allocation14]   ;;  %s222_s13 = sshll.u32 %s8861_s20, 4  ;;  %s8987_s13 = int_to_ptr.hbm [resolvable:$true] %s222_s13 }
  0x6e   :  { %s198_s18 = sshll.u32 %s8738_s15, 4  ;;  %s8141_s24 = sshra.s32 %s197_s28, 4  ;;  %s199_s18 = int_to_ptr.vmem [resolvable:$true] %s198_s18  ;;  %s8142_s24 = int_to_ptr.hbm [resolvable:$true] %s8141_s24 }
  0x6f   :  { %s8143_s22 = scalar_lea.hbm %s8142_s24, 12  ;;  %s8145_s26 = scalar_lea.hbm %s8851_s6, 12 }
  0x70   :  { %p8144_p1 = scmp.ne.s32.totalorder %s8142_s24, %s8143_s22  ;;  %p8146_p2 = scmp.lt.s32.totalorder %s8142_s24, %s8851_s6 }
  0x71   :  { %p8147_p3 = scmp.lt.s32.totalorder %s8145_s26, %s8143_s22 }
  0x73   :  { %p8148_p4 = por %p8147_p3, %p8146_p2 }
  0x75   :  { %p8149_p5 = pnand %p8148_p4, %p8144_p1 }
  0x77   :  { %8152 = shalt.err (!%p8149_p5)
}
  0x78   :  { %204 = dma.hbm_to_vmem [thread:$0]  %s197_s28, 192, %s199_s18, [#allocation15], %s8736_s8, %s8736_s8, %s8737_s1  }
  0x79   :  { %s248_s23 = sshll.u32 %s8871_s4, 4  ;;  %s8739_s0 = smov [#allocation17]   ;;  %s8995_s23 = int_to_ptr.hbm [resolvable:$true] %s248_s23 }
  0x7a   :  { %s224_s30 = sshll.u32 %s8739_s0, 4  ;;  %s8165_s2 = sshra.s32 %s8987_s13, 4  ;;  %s225_s30 = int_to_ptr.vmem [resolvable:$true] %s224_s30  ;;  %s8166_s2 = int_to_ptr.hbm [resolvable:$true] %s8165_s2 }
  0x7b   :  { %s8167_s6 = scalar_lea.hbm %s8166_s2, 96  ;;  %s8169_s10 = scalar_lea.hbm %s8861_s20, 96 }
  0x7c   :  { %p8168_p6 = scmp.ne.s32.totalorder %s8166_s2, %s8167_s6  ;;  %p8170_p7 = scmp.lt.s32.totalorder %s8166_s2, %s8861_s20 }
  0x7d   :  { %p8171_p8 = scmp.lt.s32.totalorder %s8169_s10, %s8167_s6 }
  0x7f   :  { %p8172_p9 = por %p8171_p8, %p8170_p7 }
  0x81   :  { %p8173_p10 = pnand %p8172_p9, %p8168_p6 }
  0x83   :  { %8176 = shalt.err (!%p8173_p10)
}
  0x84   :  { %230 = dma.hbm_to_vmem [thread:$0]  %s8987_s13, 1536, %s225_s30, [#allocation18], %s8736_s8, %s8736_s8, %s8737_s1  }
  0x85   :  { %s8740_s28 = smov [#allocation20]   ;;  %s8189_s15 = sshra.s32 %s8995_s23, 4  ;;  %s8190_s15 = int_to_ptr.hbm [resolvable:$true] %s8189_s15 }
  0x86   :  { %s250_s7 = sshll.u32 %s8740_s28, 4  ;;  %s8191_s18 = scalar_lea.hbm %s8190_s15, 96  ;;  %s251_s7 = int_to_ptr.vmem [resolvable:$true] %s250_s7 }
  0x87   :  { %p8192_p11 = scmp.ne.s32.totalorder %s8190_s15, %s8191_s18  ;;  %s8193_s20 = scalar_lea.hbm %s8871_s4, 96 }
  0x88   :  { %p8194_p12 = scmp.lt.s32.totalorder %s8190_s15, %s8871_s4  ;;  %p8195_p13 = scmp.lt.s32.totalorder %s8193_s20, %s8191_s18 }
  0x8a   :  { %p8196_p0 = por %p8195_p13, %p8194_p12 }
  0x8c   :  { %p8197_p1 = pnand %p8196_p0, %p8192_p11 }
  0x8e   :  { %8200 = shalt.err (!%p8197_p1)
}
  0x8f   :  { %256 = dma.hbm_to_vmem [thread:$0]  %s8995_s23, 1536, %s251_s7, [#allocation21], %s8736_s8, %s8736_s8, %s8737_s1  }
  0x90   :  { %s274_s13 = sshll.u32 %s8881_s17, 4  ;;  %s8741_s24 = smov [#allocation23]   ;;  %s275_s13 = int_to_ptr.hbm [resolvable:$true] %s274_s13 }
  0x91   :  { %s276_s22 = sshll.u32 %s8741_s24, 4  ;;  %s300_s26 = sshll.u32 %s8891_s3, 4  ;;  %s277_s22 = int_to_ptr.vmem [resolvable:$true] %s276_s22  ;;  %s301_s26 = int_to_ptr.hbm [resolvable:$true] %s300_s26 }
  0x92   :  { %s8213_s4 = sshra.s32 %s275_s13, 4  ;;  %s8217_s30 = scalar_lea.hbm %s8881_s17, 6  ;;  %s8214_s4 = int_to_ptr.hbm [resolvable:$true] %s8213_s4 }
  0x93   :  { %s8215_s0 = scalar_lea.hbm %s8214_s4, 6  ;;  %p8218_p3 = scmp.lt.s32.totalorder %s8214_s4, %s8881_s17 }
  0x94   :  { %p8216_p2 = scmp.ne.s32.totalorder %s8214_s4, %s8215_s0  ;;  %p8219_p4 = scmp.lt.s32.totalorder %s8217_s30, %s8215_s0 }
  0x96   :  { %p8220_p5 = por %p8219_p4, %p8218_p3 }
  0x98   :  { %p8221_p6 = pnand %p8220_p5, %p8216_p2 }
  0x9a   :  { %8224 = shalt.err (!%p8221_p6)
}
  0x9b   :  { %s8742_s2 = smov 16   ;;  %s8743_s23 = smov 1  }
  0x9c   :  { %282 = dma.hbm_to_vmem [thread:$0]  %s275_s13, 96, %s277_s22, [#allocation24], %s8742_s2, %s8742_s2, %s8743_s23  }
  0x9d   :  { %s8744_s6 = smov [#allocation26]   ;;  %s329_s28 = sshll.u32 %s8906_s14, 4  ;;  %s330_s28 = int_to_ptr.hbm [resolvable:$true] %s329_s28 }
  0x9e   :  { %s302_s10 = sshll.u32 %s8744_s6, 4  ;;  %s8237_s17 = sshra.s32 %s301_s26, 4  ;;  %s303_s10 = int_to_ptr.vmem [resolvable:$true] %s302_s10  ;;  %s8238_s17 = int_to_ptr.hbm [resolvable:$true] %s8237_s17 }
  0x9f   :  { %s8239_s7 = scalar_lea.hbm %s8238_s17, 3  ;;  %s8241_s15 = scalar_lea.hbm %s8891_s3, 3 }
  0xa0   :  { %p8240_p7 = scmp.ne.s32.totalorder %s8238_s17, %s8239_s7  ;;  %p8242_p8 = scmp.lt.s32.totalorder %s8238_s17, %s8891_s3 }
  0xa1   :  { %p8243_p9 = scmp.lt.s32.totalorder %s8241_s15, %s8239_s7 }
  0xa3   :  { %p8244_p10 = por %p8243_p9, %p8242_p8 }
  0xa5   :  { %p8245_p11 = pnand %p8244_p10, %p8240_p7 }
  0xa7   :  { %8248 = shalt.err (!%p8245_p11)
}
  0xa8   :  { %308 = dma.hbm_to_vmem [thread:$0]  %s301_s26, 48, %s303_s10, [#allocation27], %s8742_s2, %s8742_s2, %s8743_s23  }
  0xa9   :  { %s355_s18 = sshll.u32 %s8921_s25, 4  ;;  %s8745_s20 = smov [#allocation29]   ;;  %s356_s18 = int_to_ptr.hbm [resolvable:$true] %s355_s18 }
  0xaa   :  { %s331_s13 = sshll.u32 %s8745_s20, 4  ;;  %s8261_s24 = sshra.s32 %s330_s28, 4  ;;  %s332_s13 = int_to_ptr.vmem [resolvable:$true] %s331_s13  ;;  %s8262_s24 = int_to_ptr.hbm [resolvable:$true] %s8261_s24 }
  0xab   :  { %s8263_s22 = scalar_lea.hbm %s8262_s24, 4  ;;  %s8265_s3 = scalar_lea.hbm %s8906_s14, 4 }
  0xac   :  { %p8264_p12 = scmp.ne.s32.totalorder %s8262_s24, %s8263_s22  ;;  %p8266_p13 = scmp.lt.s32.totalorder %s8262_s24, %s8906_s14 }
  0xad   :  { %p8267_p0 = scmp.lt.s32.totalorder %s8265_s3, %s8263_s22 }
  0xaf   :  { %p8268_p1 = por %p8267_p0, %p8266_p13 }
  0xb1   :  { %p8269_p2 = pnand %p8268_p1, %p8264_p12 }
  0xb3   :  { %8272 = shalt.err (!%p8269_p2)
}
  0xb4   :  { %334 = dma.hbm_to_vmem [thread:$0]  %s330_s28, 64, %s332_s13, [#allocation30]  }
  0xb5   :  { %s8746_s26 = smov [#allocation32]   ;;  %s379_s0 = sshll.u32 %s8931_s21, 4  ;;  %s380_s0 = int_to_ptr.hbm [resolvable:$true] %s379_s0 }
  0xb6   :  { %s357_s4 = sshll.u32 %s8746_s26, 4  ;;  %s8285_s30 = sshra.s32 %s356_s18, 4  ;;  %s358_s4 = int_to_ptr.vmem [resolvable:$true] %s357_s4  ;;  %s8286_s30 = int_to_ptr.hbm [resolvable:$true] %s8285_s30 }
  0xb7   :  { %s8287_s6 = scalar_lea.hbm %s8286_s30, 1  ;;  %s8289_s10 = scalar_lea.hbm %s8921_s25, 1 }
  0xb8   :  { %p8288_p3 = scmp.ne.s32.totalorder %s8286_s30, %s8287_s6  ;;  %p8290_p4 = scmp.lt.s32.totalorder %s8286_s30, %s8921_s25 }
  0xb9   :  { %p8291_p5 = scmp.lt.s32.totalorder %s8289_s10, %s8287_s6 }
  0xbb   :  { %p8292_p6 = por %p8291_p5, %p8290_p4 }
  0xbd   :  { %p8293_p7 = pnand %p8292_p6, %p8288_p3 }
  0xbf   :  { %8296 = shalt.err (!%p8293_p7)
}
  0xc0   :  { %360 = dma.hbm_to_vmem [thread:$0]  %s356_s18, 16, %s358_s4, [#allocation33]  }
  0xc1   :  { %s403_s14 = sshll.u32 %s8941_s12, 4  ;;  %s8747_s28 = smov [#allocation35]   ;;  %s404_s14 = int_to_ptr.hbm [resolvable:$true] %s403_s14 }
  0xc2   :  { %s381_s17 = sshll.u32 %s8747_s28, 4  ;;  %s8309_s7 = sshra.s32 %s380_s0, 4  ;;  %s382_s17 = int_to_ptr.vmem [resolvable:$true] %s381_s17  ;;  %s8310_s7 = int_to_ptr.hbm [resolvable:$true] %s8309_s7 }
  0xc3   :  { %s8311_s15 = scalar_lea.hbm %s8310_s7, 1  ;;  %s8313_s20 = scalar_lea.hbm %s8931_s21, 1 }
  0xc4   :  { %p8312_p8 = scmp.ne.s32.totalorder %s8310_s7, %s8311_s15  ;;  %p8314_p9 = scmp.lt.s32.totalorder %s8310_s7, %s8931_s21 }
  0xc5   :  { %p8315_p10 = scmp.lt.s32.totalorder %s8313_s20, %s8311_s15 }
  0xc7   :  { %p8316_p11 = por %p8315_p10, %p8314_p9 }
  0xc9   :  { %p8317_p12 = pnand %p8316_p11, %p8312_p8 }
  0xcb   :  { %8320 = shalt.err (!%p8317_p12)
}
  0xcc   :  { %384 = dma.hbm_to_vmem [thread:$0]  %s380_s0, 16, %s382_s17, [#allocation36]  }
  0xcd   :  { %s8748_s25 = smov [#allocation38]   ;;  %s99_s13 = sshll.u32 %s8791_s9, 4  ;;  %s9034_s13 = int_to_ptr.hbm [resolvable:$true] %s99_s13 }
  0xce   :  { %s405_s18 = sshll.u32 %s8748_s25, 4  ;;  %s8333_s24 = sshra.s32 %s404_s14, 4  ;;  %s406_s18 = int_to_ptr.vmem [resolvable:$true] %s405_s18  ;;  %s8334_s24 = int_to_ptr.hbm [resolvable:$true] %s8333_s24 }
  0xcf   :  { %s8335_s22 = scalar_lea.hbm %s8334_s24, 1  ;;  %s8337_s3 = scalar_lea.hbm %s8941_s12, 1 }
  0xd0   :  { %p8336_p13 = scmp.ne.s32.totalorder %s8334_s24, %s8335_s22  ;;  %p8338_p0 = scmp.lt.s32.totalorder %s8334_s24, %s8941_s12 }
  0xd1   :  { %p8339_p1 = scmp.lt.s32.totalorder %s8337_s3, %s8335_s22 }
  0xd3   :  { %p8340_p2 = por %p8339_p1, %p8338_p0 }
  0xd5   :  { %p8341_p3 = pnand %p8340_p2, %p8336_p13 }
  0xd7   :  { %8344 = shalt.err (!%p8341_p3)
}
  0xd8   :  { %408 = dma.hbm_to_vmem [thread:$0]  %s404_s14, 16, %s406_s18, [#allocation39]  }
  0xd9   :  { %s132_s21 = sshll.u32 %s8816_s29, 4  ;;  %s8749_s26 = smov [#allocation3]   ;;  %s133_s21 = int_to_ptr.hbm [resolvable:$true] %s132_s21 }
  0xda   :  { %s101_s4 = sshll.u32 %s8749_s26, 4  ;;  %s8357_s0 = sshra.s32 %s9034_s13, 4  ;;  %s102_s4 = int_to_ptr.vmem [resolvable:$true] %s101_s4  ;;  %s8358_s0 = int_to_ptr.hbm [resolvable:$true] %s8357_s0 }
  0xdb   :  { %s8359_s30 = scalar_lea.hbm %s8358_s0, 64  ;;  %s8361_s6 = scalar_lea.hbm %s8791_s9, 64 }
  0xdc   :  { %p8360_p4 = scmp.ne.s32.totalorder %s8358_s0, %s8359_s30  ;;  %p8362_p5 = scmp.lt.s32.totalorder %s8358_s0, %s8791_s9 }
  0xdd   :  { %p8363_p6 = scmp.lt.s32.totalorder %s8361_s6, %s8359_s30 }
  0xdf   :  { %p8364_p7 = por %p8363_p6, %p8362_p5 }
  0xe1   :  { %p8365_p8 = pnand %p8364_p7, %p8360_p4 }
  0xe3   :  { %8368 = shalt.err (!%p8365_p8)
}
  0xe4   :  { %s11270_s12 = sld [smem:[#allocation60_spill]]  ;;  %s8750_s10 = smov [#allocation7]  }
  0xe5   :  { %107 = dma.hbm_to_vmem [thread:$0]  %s9034_s13, 1024, %s102_s4, [#allocation4], %s8732_s11, %s8732_s11, %s8733_s16  }
  0xe6   :  { %s134_s14 = sshll.u32 %s8750_s10, 4  ;;  %s8381_s17 = sshra.s32 %s133_s21, 4  ;;  %s135_s14 = int_to_ptr.vmem [resolvable:$true] %s134_s14  ;;  %s8382_s17 = int_to_ptr.hbm [resolvable:$true] %s8381_s17 }
  0xe7   :  { %s8383_s9 = scalar_lea.hbm %s8382_s17, 1  ;;  %s8385_s7 = scalar_lea.hbm %s8816_s29, 1 }
  0xe8   :  { %p8384_p9 = scmp.ne.s32.totalorder %s8382_s17, %s8383_s9  ;;  %p8386_p10 = scmp.lt.s32.totalorder %s8382_s17, %s8816_s29 }
  0xe9   :  { %p8387_p11 = scmp.lt.s32.totalorder %s8385_s7, %s8383_s9 }
  0xea   :  { %s157_s28 = sshll.u32 %s11270_s12, 4  ;;  %s9047_s28 = int_to_ptr.hbm [resolvable:$true] %s157_s28 }
  0xeb   :  { %p8388_p12 = por %p8387_p11, %p8386_p10 }
  0xed   :  { %p8389_p13 = pnand %p8388_p12, %p8384_p9 }
  0xef   :  { %8392 = shalt.err (!%p8389_p13)
}
  0xf0   :  { %137 = dma.hbm_to_vmem [thread:$0]  %s133_s21, 16, %s135_s14, [#allocation6]  }
  0xf1   :  { %s11271_s15 = sld [smem:[#allocation61_spill]]  ;;  %s8751_s11 = smov [#allocation10]  }
  0xf2   :  { %s159_s16 = sshll.u32 %s8751_s11, 4  ;;  %s8405_s25 = sshra.s32 %s9047_s28, 4  ;;  %s160_s16 = int_to_ptr.vmem [resolvable:$true] %s159_s16  ;;  %s8406_s25 = int_to_ptr.hbm [resolvable:$true] %s8405_s25 }
  0xf3   :  { %s8407_s18 = scalar_lea.hbm %s8406_s25, 48  ;;  %s8409_s13 = scalar_lea.hbm %s11270_s12, 48 }
  0xf4   :  { %p8408_p0 = scmp.ne.s32.totalorder %s8406_s25, %s8407_s18  ;;  %p8410_p1 = scmp.lt.s32.totalorder %s8406_s25, %s11270_s12 }
  0xf5   :  { %p8411_p2 = scmp.lt.s32.totalorder %s8409_s13, %s8407_s18 }
  0xf7   :  { %s183_s20 = sshll.u32 %s11271_s15, 4  ;;  %p8412_p3 = por %p8411_p2, %p8410_p1  ;;  %s184_s20 = int_to_ptr.hbm [resolvable:$true] %s183_s20 }
  0xf9   :  { %p8413_p4 = pnand %p8412_p3, %p8408_p0 }
  0xfb   :  { %8416 = shalt.err (!%p8413_p4)
}
  0xfc   :  { %s8752_s29 = smov 192   ;;  %s11272_s24 = sld [smem:[#allocation62_spill]] }
  0xfd   :  { %s8753_s22 = smov 12   ;;  %s8754_s3 = smov [#allocation13]  }
  0xfe   :  { %165 = dma.hbm_to_vmem [thread:$0]  %s9047_s28, 768, %s160_s16, [#allocation9], %s8752_s29, %s8752_s29, %s8753_s22  }
  0xff   :  { %s185_s21 = sshll.u32 %s8754_s3, 4  ;;  %s8429_s4 = sshra.s32 %s184_s20, 4  ;;  %s186_s21 = int_to_ptr.vmem [resolvable:$true] %s185_s21  ;;  %s8430_s4 = int_to_ptr.hbm [resolvable:$true] %s8429_s4 }
 0x100   :  { %s8431_s0 = scalar_lea.hbm %s8430_s4, 2  ;;  %s8433_s30 = scalar_lea.hbm %s11271_s15, 2 }
 0x101   :  { %p8432_p5 = scmp.ne.s32.totalorder %s8430_s4, %s8431_s0  ;;  %p8434_p6 = scmp.lt.s32.totalorder %s8430_s4, %s11271_s15 }
 0x102   :  { %s209_s26 = sshll.u32 %s11272_s24, 4  ;;  %p8435_p7 = scmp.lt.s32.totalorder %s8433_s30, %s8431_s0  ;;  %s9057_s26 = int_to_ptr.hbm [resolvable:$true] %s209_s26 }
 0x104   :  { %p8436_p8 = por %p8435_p7, %p8434_p6 }
 0x106   :  { %p8437_p9 = pnand %p8436_p8, %p8432_p5 }
 0x108   :  { %8440 = shalt.err (!%p8437_p9)
}
 0x109   :  { %s11273_s6 = sld [smem:[#allocation63_spill]]  ;;  %s8755_s10 = smov [#allocation16]  }
 0x10a   :  { %191 = dma.hbm_to_vmem [thread:$0]  %s184_s20, 32, %s186_s21, [#allocation12], %s8742_s2, %s8742_s2, %s8743_s23  }
 0x10b   :  { %s211_s14 = sshll.u32 %s8755_s10, 4  ;;  %s8453_s28 = sshra.s32 %s9057_s26, 4  ;;  %s212_s14 = int_to_ptr.vmem [resolvable:$true] %s211_s14  ;;  %s8454_s28 = int_to_ptr.hbm [resolvable:$true] %s8453_s28 }
 0x10c   :  { %s8455_s17 = scalar_lea.hbm %s8454_s28, 96  ;;  %s8457_s9 = scalar_lea.hbm %s11272_s24, 96 }
 0x10d   :  { %p8456_p10 = scmp.ne.s32.totalorder %s8454_s28, %s8455_s17  ;;  %p8458_p11 = scmp.lt.s32.totalorder %s8454_s28, %s11272_s24 }
 0x10e   :  { %p8459_p12 = scmp.lt.s32.totalorder %s8457_s9, %s8455_s17 }
 0x10f   :  { %s235_s12 = sshll.u32 %s11273_s6, 4  ;;  %s9065_s12 = int_to_ptr.hbm [resolvable:$true] %s235_s12 }
 0x110   :  { %p8460_p13 = por %p8459_p12, %p8458_p11 }
 0x112   :  { %p8461_p0 = pnand %p8460_p13, %p8456_p10 }
 0x114   :  { %8464 = shalt.err (!%p8461_p0)
}
 0x115   :  { %s11274_s7 = sld [smem:[#allocation64_spill]]  ;;  %s8756_s15 = smov [#allocation19]  }
 0x116   :  { %217 = dma.hbm_to_vmem [thread:$0]  %s9057_s26, 1536, %s212_s14, [#allocation15], %s8736_s8, %s8736_s8, %s8737_s1  }
 0x117   :  { %s237_s11 = sshll.u32 %s8756_s15, 4  ;;  %s8477_s20 = sshra.s32 %s9065_s12, 4  ;;  %s238_s11 = int_to_ptr.vmem [resolvable:$true] %s237_s11  ;;  %s8478_s20 = int_to_ptr.hbm [resolvable:$true] %s8477_s20 }
 0x118   :  { %s8479_s25 = scalar_lea.hbm %s8478_s20, 96  ;;  %s8481_s18 = scalar_lea.hbm %s11273_s6, 96 }
 0x119   :  { %p8480_p1 = scmp.ne.s32.totalorder %s8478_s20, %s8479_s25  ;;  %p8482_p2 = scmp.lt.s32.totalorder %s8478_s20, %s11273_s6 }
 0x11a   :  { %p8483_p3 = scmp.lt.s32.totalorder %s8481_s18, %s8479_s25 }
 0x11b   :  { %s261_s16 = sshll.u32 %s11274_s7, 4  ;;  %s9075_s16 = int_to_ptr.hbm [resolvable:$true] %s261_s16 }
 0x11c   :  { %p8484_p4 = por %p8483_p3, %p8482_p2 }
 0x11e   :  { %p8485_p5 = pnand %p8484_p4, %p8480_p1 }
 0x120   :  { %8488 = shalt.err (!%p8485_p5)
}
 0x121   :  { %s11275_s13 = sld [smem:[#allocation65_spill]]  ;;  %s8757_s24 = smov [#allocation22]  }
 0x122   :  { %243 = dma.hbm_to_vmem [thread:$0]  %s9065_s12, 1536, %s238_s11, [#allocation18], %s8736_s8, %s8736_s8, %s8737_s1  }
 0x123   :  { %s263_s22 = sshll.u32 %s8757_s24, 4  ;;  %s8501_s3 = sshra.s32 %s9075_s16, 4  ;;  %s264_s22 = int_to_ptr.vmem [resolvable:$true] %s263_s22  ;;  %s8502_s3 = int_to_ptr.hbm [resolvable:$true] %s8501_s3 }
 0x124   :  { %s8503_s21 = scalar_lea.hbm %s8502_s3, 6  ;;  %s8505_s26 = scalar_lea.hbm %s11274_s7, 6 }
 0x125   :  { %p8504_p6 = scmp.ne.s32.totalorder %s8502_s3, %s8503_s21  ;;  %p8506_p7 = scmp.lt.s32.totalorder %s8502_s3, %s11274_s7 }
 0x126   :  { %p8507_p8 = scmp.lt.s32.totalorder %s8505_s26, %s8503_s21 }
 0x127   :  { %s287_s29 = sshll.u32 %s11275_s13, 4  ;;  %s9085_s29 = int_to_ptr.hbm [resolvable:$true] %s287_s29 }
 0x128   :  { %p8508_p9 = por %p8507_p8, %p8506_p7 }
 0x12a   :  { %p8509_p10 = pnand %p8508_p9, %p8504_p6 }
 0x12c   :  { %8512 = shalt.err (!%p8509_p10)
}
 0x12d   :  { %s11276_s4 = sld [smem:[#allocation67_spill]]  ;;  %s8758_s0 = smov [#allocation25]  }
 0x12e   :  { %269 = dma.hbm_to_vmem [thread:$0]  %s9075_s16, 96, %s264_s22, [#allocation21], %s8742_s2, %s8742_s2, %s8743_s23  }
 0x12f   :  { %s289_s30 = sshll.u32 %s8758_s0, 4  ;;  %s8525_s12 = sshra.s32 %s9085_s29, 4  ;;  %s290_s30 = int_to_ptr.vmem [resolvable:$true] %s289_s30  ;;  %s8526_s12 = int_to_ptr.hbm [resolvable:$true] %s8525_s12 }
 0x130   :  { %s8527_s10 = scalar_lea.hbm %s8526_s12, 48  ;;  %s8529_s14 = scalar_lea.hbm %s11275_s13, 48 }
 0x131   :  { %p8528_p11 = scmp.ne.s32.totalorder %s8526_s12, %s8527_s10  ;;  %p8530_p12 = scmp.lt.s32.totalorder %s8526_s12, %s11275_s13 }
 0x132   :  { %p8531_p13 = scmp.lt.s32.totalorder %s8529_s14, %s8527_s10 }
 0x133   :  { %s315_s6 = sshll.u32 %s11276_s4, 4  ;;  %s9095_s6 = int_to_ptr.hbm [resolvable:$true] %s315_s6 }
 0x134   :  { %p8532_p0 = por %p8531_p13, %p8530_p12 }
 0x136   :  { %p8533_p1 = pnand %p8532_p0, %p8528_p11 }
 0x138   :  { %8536 = shalt.err (!%p8533_p1)
}
 0x139   :  { %s11277_s28 = sld [smem:[#allocation69_spill]]  ;;  %s8759_s9 = smov [#allocation28]  }
 0x13a   :  { %295 = dma.hbm_to_vmem [thread:$0]  %s9085_s29, 768, %s290_s30, [#allocation24], %s8736_s8, %s8736_s8, %s8737_s1  }
 0x13b   :  { %s317_s7 = sshll.u32 %s8759_s9, 4  ;;  %s8549_s15 = sshra.s32 %s9095_s6, 4  ;;  %s318_s7 = int_to_ptr.vmem [resolvable:$true] %s317_s7  ;;  %s8550_s15 = int_to_ptr.hbm [resolvable:$true] %s8549_s15 }
 0x13c   :  { %s8551_s11 = scalar_lea.hbm %s8550_s15, 3  ;;  %s8553_s16 = scalar_lea.hbm %s11276_s4, 3 }
 0x13d   :  { %p8552_p2 = scmp.ne.s32.totalorder %s8550_s15, %s8551_s11  ;;  %p8554_p3 = scmp.lt.s32.totalorder %s8550_s15, %s11276_s4 }
 0x13e   :  { %p8555_p4 = scmp.lt.s32.totalorder %s8553_s16, %s8551_s11 }
 0x13f   :  { %s341_s17 = sshll.u32 %s11277_s28, 4  ;;  %s9105_s17 = int_to_ptr.hbm [resolvable:$true] %s341_s17 }
 0x140   :  { %p8556_p5 = por %p8555_p4, %p8554_p3 }
 0x142   :  { %p8557_p6 = pnand %p8556_p5, %p8552_p2 }
 0x144   :  { %8560 = shalt.err (!%p8557_p6)
}
 0x145   :  { %s11278_s20 = sld [smem:[#allocation70_spill]]  ;;  %s8760_s25 = smov [#allocation31]  }
 0x146   :  { %323 = dma.hbm_to_vmem [thread:$0]  %s9095_s6, 48, %s318_s7, [#allocation27], %s8742_s2, %s8742_s2, %s8743_s23  }
 0x147   :  { %s343_s18 = sshll.u32 %s8760_s25, 4  ;;  %s8573_s29 = sshra.s32 %s9105_s17, 4  ;;  %s344_s18 = int_to_ptr.vmem [resolvable:$true] %s343_s18  ;;  %s8574_s29 = int_to_ptr.hbm [resolvable:$true] %s8573_s29 }
 0x148   :  { %s8575_s24 = scalar_lea.hbm %s8574_s29, 128  ;;  %s8577_s22 = scalar_lea.hbm %s11277_s28, 128 }
 0x149   :  { %p8576_p7 = scmp.ne.s32.totalorder %s8574_s29, %s8575_s24  ;;  %p8578_p8 = scmp.lt.s32.totalorder %s8574_s29, %s11277_s28 }
 0x14a   :  { %p8579_p9 = scmp.lt.s32.totalorder %s8577_s22, %s8575_s24 }
 0x14b   :  { %s365_s13 = sshll.u32 %s11278_s20, 4  ;;  %s9115_s13 = int_to_ptr.hbm [resolvable:$true] %s365_s13 }
 0x14c   :  { %p8580_p10 = por %p8579_p9, %p8578_p8 }
 0x14e   :  { %p8581_p11 = pnand %p8580_p10, %p8576_p7 }
 0x150   :  { %8584 = shalt.err (!%p8581_p11)
}
 0x151   :  { %s11279_s2 = sld [smem:[#allocation71_spill]]  ;;  %s8761_s21 = smov [#allocation34]  }
 0x152   :  { %349 = dma.hbm_to_vmem [thread:$0]  %s9105_s17, 2048, %s344_s18, [#allocation30], %s8736_s8, %s8736_s8, %s8737_s1  }
 0x153   :  { %s367_s26 = sshll.u32 %s8761_s21, 4  ;;  %s8597_s4 = sshra.s32 %s9115_s13, 4  ;;  %s368_s26 = int_to_ptr.vmem [resolvable:$true] %s367_s26  ;;  %s8598_s4 = int_to_ptr.hbm [resolvable:$true] %s8597_s4 }
 0x154   :  { %s8599_s0 = scalar_lea.hbm %s8598_s4, 16  ;;  %s8601_s30 = scalar_lea.hbm %s11278_s20, 16 }
 0x155   :  { %p8600_p12 = scmp.ne.s32.totalorder %s8598_s4, %s8599_s0  ;;  %p8602_p13 = scmp.lt.s32.totalorder %s8598_s4, %s11278_s20 }
 0x156   :  { %p8603_p0 = scmp.lt.s32.totalorder %s8601_s30, %s8599_s0 }
 0x157   :  { %s389_s3 = sshll.u32 %s11279_s2, 4  ;;  %s9125_s3 = int_to_ptr.hbm [resolvable:$true] %s389_s3 }
 0x158   :  { %p8604_p1 = por %p8603_p0, %p8602_p13 }
 0x15a   :  { %p8605_p2 = pnand %p8604_p1, %p8600_p12 }
 0x15c   :  { %8608 = shalt.err (!%p8605_p2)
}
 0x15d   :  { %373 = dma.hbm_to_vmem [thread:$0]  %s9115_s13, 256, %s368_s26, [#allocation33], %s8736_s8, %s8736_s8, %s8737_s1  }
 0x15e   :  { %s8762_s6 = smov [#allocation37]   ;;  %s420_s10 = sshll.u32 %s8959_s19, 4  ;;  %s421_s10 = int_to_ptr.hbm [resolvable:$true] %s420_s10 }
 0x15f   :  { %s391_s12 = sshll.u32 %s8762_s6, 4  ;;  %s8621_s14 = sshra.s32 %s9125_s3, 4  ;;  %s392_s12 = int_to_ptr.vmem [resolvable:$true] %s391_s12  ;;  %s8622_s14 = int_to_ptr.hbm [resolvable:$true] %s8621_s14 }
 0x160   :  { %s8623_s28 = scalar_lea.hbm %s8622_s14, 16  ;;  %s8625_s17 = scalar_lea.hbm %s11279_s2, 16 }
 0x161   :  { %p8624_p3 = scmp.ne.s32.totalorder %s8622_s14, %s8623_s28  ;;  %p8626_p4 = scmp.lt.s32.totalorder %s8622_s14, %s11279_s2 }
 0x162   :  { %p8627_p5 = scmp.lt.s32.totalorder %s8625_s17, %s8623_s28 }
 0x164   :  { %p8628_p6 = por %p8627_p5, %p8626_p4 }
 0x166   :  { %p8629_p7 = pnand %p8628_p6, %p8624_p3 }
 0x168   :  { %8632 = shalt.err (!%p8629_p7)
}
 0x169   :  { %397 = dma.hbm_to_vmem [thread:$0]  %s9125_s3, 256, %s392_s12, [#allocation36], %s8736_s8, %s8736_s8, %s8737_s1  }
 0x16a   :  { %s8763_s9 = smov [#allocation40]   ;;  %s8645_s15 = sshra.s32 %s421_s10, 4  ;;  %s8646_s15 = int_to_ptr.hbm [resolvable:$true] %s8645_s15 }
 0x16b   :  { %s422_s7 = sshll.u32 %s8763_s9, 4  ;;  %s8647_s11 = scalar_lea.hbm %s8646_s15, 1  ;;  %s423_s7 = int_to_ptr.vmem [resolvable:$true] %s422_s7 }
 0x16c   :  { %p8648_p8 = scmp.ne.s32.totalorder %s8646_s15, %s8647_s11  ;;  %s8649_s16 = scalar_lea.hbm %s8959_s19, 1 }
 0x16d   :  { %p8650_p9 = scmp.lt.s32.totalorder %s8646_s15, %s8959_s19  ;;  %p8651_p10 = scmp.lt.s32.totalorder %s8649_s16, %s8647_s11 }
 0x16f   :  { %p8652_p11 = por %p8651_p10, %p8650_p9 }
 0x171   :  { %p8653_p12 = pnand %p8652_p11, %p8648_p8 }
 0x173   :  { %8656 = shalt.err (!%p8653_p12)
}
 0x174   :  { %425 = dma.hbm_to_vmem [thread:$0]  %s421_s10, 16, %s423_s7, [#allocation39]  }
 0x175   :  { %8669 = dma.done.wait [#allocation4], 1024  }
 0x176   :  { %8670 = vsyncadd [#allocation4], 4294966272 }
 0x177   :  { %8671 = dma.done.wait [#allocation6], 1040  }
 0x178   :  { %8672 = vsyncadd [#allocation6], 4294966256 }
 0x179   :  { %8673 = dma.done.wait [#allocation9], 784  }
 0x17a   :  { %8674 = vsyncadd [#allocation9], 4294966512 }
 0x17b   :  { %8675 = dma.done.wait [#allocation12], 3104  }
 0x17c   :  { %8676 = vsyncadd [#allocation12], 4294964192 }
 0x17d   :  { %8677 = dma.done.wait [#allocation15], 1728  }
 0x17e   :  { %8678 = vsyncadd [#allocation15], 4294965568 }
 0x17f   :  { %8679 = dma.done.wait [#allocation18], 3072  }
 0x180   :  { %8680 = vsyncadd [#allocation18], 4294964224 }
 0x181   :  { %8681 = dma.done.wait [#allocation21], 1632  }
 0x182   :  { %8682 = vsyncadd [#allocation21], 4294965664 }
 0x183   :  { %8683 = dma.done.wait [#allocation24], 864  }
 0x184   :  { %8684 = vsyncadd [#allocation24], 4294966432 }
 0x185   :  { %8685 = dma.done.wait [#allocation27], 96  }
 0x186   :  { %8686 = vsyncadd [#allocation27], 4294967200 }
 0x187   :  { %8687 = dma.done.wait [#allocation30], 2112  }
 0x188   :  { %8688 = vsyncadd [#allocation30], 4294965184 }
 0x189   :  { %8689 = dma.done.wait [#allocation33], 272  }
 0x18a   :  { %8690 = vsyncadd [#allocation33], 4294967024 }
 0x18b   :  { %8691 = dma.done.wait [#allocation36], 272  }
 0x18c   :  { %8692 = vsyncadd [#allocation36], 4294967024 }
 0x18d   :  { %8693 = dma.done.wait [#allocation39], 32  }
 0x18e   :  { %8694 = vsyncadd [#allocation39], 4294967264  ;;  %s11280_s19 = sld [smem:[#allocation57_spill]]  ;;  %vm881_vm0 = vcmask 1045504   ;;  %vm877_vm1 = vcmask 97280   ;;  %vm922_vm2 = vcmask 261120  }
 0x18f   :  { %s11281_s1 = sld [smem:[#allocation54_spill]]  ;;  %v7825_v11 = vld [vmem:[#allocation7] ss:$0 sm:$0xff]  ;;  %v7826_v18 = vld [vmem:[#allocation8] ss:$0 sm:$0xff]  ;;  %v8764_v27 = vmov 32.0  }
 0x190   :  { %s11282_s20 = sld [smem:[#allocation58_spill]]  ;;  %v6721_v44 = vld [vmem:[#allocation10 + $0x18] sm:$0xf]  ;;  %v7427_v45 = vld [vmem:[#allocation10 + $0x20] sm:$0xf0]  ;;  %s8765_s18 = smov 96  }
 0x191   :  { %v7426_v46 = vld [vmem:[#allocation10 + $0x1c] sm:$0xf]  ;;  %v6722_v47 = vor.u32 %v7427_v45, %v6721_v44  ;;  %s11284_s25 = sld [smem:[#allocation59_spill]]  ;;  %v6723_v48 = vld [vmem:[#allocation10 + $0x24] sm:$0xf0]  ;;  %s8767_s13 = smov 32  }
 0x192   :  { %v6726_v49 = vor.u32 %v7426_v46, %v6723_v48  ;;  %v6709_v50 = vld [vmem:[#allocation10] sm:$0xf]  ;;  %v7424_v51 = vld [vmem:[#allocation10 + $0x8] sm:$0xf0]  ;;  %v7423_v52 = vld [vmem:[#allocation10 + $0x4] sm:$0xf] }
 0x193   :  { %992 = vmatpush.bf16.msra.mxu2 %v6722_v47  ;;  %v6710_v53 = vor.u32 %v7424_v51, %v6709_v50  ;;  %v6711_v54 = vld [vmem:[#allocation10 + $0xc] sm:$0xf0]  ;;  %v9175_v56 = vld [vmem:[#allocation29] sm:$0xf]  ;;  %s11286_s29 = sld [smem:[#allocation55_spill]]  ;;  %s8777_s3 = smov 33  }
 0x194   :  { %v6695_v1 = vld [vmem:[%s11280_s19] sm:$0xf]  ;;  %v7420_v2 = vld [vmem:[%s11280_s19] sm:$0x30]  ;;  %1005 = vmatpush.bf16.msra.mxu3 %v6726_v49  ;;  %v6714_v55 = vor.u32 %v7423_v52, %v6711_v54  ;;  %s11287_s24 = sld [smem:[#allocation56_spill]] }
 0x195   :  { %v863_v3 = vld [vmem:[%s11281_s1] sm:$0xff]  ;;  %v6696_v4 = vor.u32 %v7420_v2, %v6695_v1  ;;  %v864_v5 = vld [vmem:[%s11281_s1 + $0x8] sm:$0xff]  ;;  %s11384_s22 = sld [smem:[#allocation66_spill]] }
 0x196   :  { %v867_v7 = vpack.c.bf16 %v864_v5, %v863_v3  ;;  %v7422_v8 = vld [vmem:[%s11282_s20 + $0x8] sm:$0xff]  ;;  %v7421_v9 = vld [vmem:[%s11282_s20] sm:$0xff]  ;;  %s11502_s2 = sld [smem:[#allocation72_spill]] }
 0x197   :  { %v883_v6 = vsel %vm881_vm0, %v6696_v4, 0  ;;  %932 = vmatpush.bf16.msra.mxu1 %v7422_v8  ;;  %993 = vmatpush.bf16.msra.mxu2 %v6710_v53  ;;  %v6748_v57 = vld [vmem:[%s11284_s25 + $0x18] sm:$0xf]  ;;  %v7433_v58 = vld [vmem:[%s11284_s25 + $0x20] sm:$0xf0] }
 0x198   :  { %892 = vmatpush.bf16.msra.mxu0 %v883_v6  ;;  %1006 = vmatpush.bf16.msra.mxu3 %v6714_v55  ;;  %v7432_v59 = vld [vmem:[%s11284_s25 + $0x1c] sm:$0xf]  ;;  %v6749_v60 = vor.u32 %v7433_v58, %v6748_v57  ;;  %v6750_v61 = vld [vmem:[%s11284_s25 + $0x24] sm:$0xf0]  ;;  %v6756_v62 = vld [vmem:[%s11284_s25 + $0x20] sm:$0xf] }
 0x199   :  { %v7434_v63 = vld [vmem:[%s11284_s25 + $0x28] sm:$0xf0]  ;;  %v6753_v0 = vor.u32 %v7432_v59, %v6750_v61  ;;  %v6736_v2 = vld [vmem:[%s11284_s25] sm:$0xf]  ;;  %v7429_v4 = vld [vmem:[%s11284_s25 + $0x4] sm:$0xf] }
 0x19a   :  { %6731 = vmatmul.msk.bf16.vlgmr.msra.gmra.mxu2 %vm922_vm2, %v9175_v56  ;;  %v6757_v1 = vor.u32 %v7434_v63, %v6756_v62  ;;  %v7430_v3 = vld [vmem:[%s11284_s25 + $0x8] sm:$0xf0]  ;;  %v6744_v8 = vld [vmem:[%s11284_s25 + $0x8] sm:$0xf]  ;;  %v7428_v53 = vld [vmem:[#allocation10 + $0x28] sm:$0xf0] }
 0x19b   :  { %6697 = vmatmul.msk.bf16.vlgmr.msra.gmra.mxu0 %vm877_vm1, %v867_v7  ;;  %933 = vmatpush.bf16.msra.mxu1 %v7421_v9  ;;  %v6737_v6 = vor.u32 %v7430_v3, %v6736_v2  ;;  %v6738_v7 = vld [vmem:[%s11284_s25 + $0xc] sm:$0xf0]  ;;  %v7431_v9 = vld [vmem:[%s11284_s25 + $0x10] sm:$0xf0]  ;;  %v6729_v52 = vld [vmem:[#allocation10 + $0x20] sm:$0xf] }
 0x19c   :  { %6732 = vmatmul.msk.bf16.vlgmr.msra.gmra.mxu3 %vm922_vm2, %v9175_v56  ;;  %1149 = vmatpush.bf16.msrb.mxu2 %v6753_v0  ;;  %v6730_v54 = vor.u32 %v7428_v53, %v6729_v52  ;;  %v6717_v55 = vld [vmem:[#allocation10 + $0x8] sm:$0xf]  ;;  %v7425_v57 = vld [vmem:[#allocation10 + $0x10] sm:$0xf0]  ;;  %v11103_v59 = vmov 0  }
 0x19d   :  { %1163 = vmatpush.bf16.msrb.mxu3 %v6757_v1  ;;  %v6718_v58 = vor.u32 %v7425_v57, %v6717_v55  ;;  %7645 = vset.pattern.permute.xlu1 %v11103_v59  ;;  %v7827_v61 = vld [vmem:[#allocation13] ss:$0 sm:$0xff]  ;;  %v7828_v62 = vld [vmem:[#allocation13 + $0x1] ss:$0 sm:$0xff] }
 0x19e   :  { %1018 = vmatpush.bf16.msrb.mxu0 %v6730_v54  ;;  %7646 = vset.pattern.permute.xlu0 %v11103_v59 }
 0x19f   :  { %1135 = vmatpush.bf16.msrb.mxu1 %v6749_v60  ;;  %7644 = vset.pattern.permute.xlu2 %v11103_v59 }
 0x1a2   :  { %1019 = vmatpush.bf16.msrb.mxu0 %v6718_v58 }
 0x1a3   :  { %1136 = vmatpush.bf16.msrb.mxu1 %v6737_v6 }
 0x1ab   :  { %6733 = vmatmul.msk.bf16.vlgmr.msrb.gmra.mxu0 %vm922_vm2, %v9175_v56 }
 0x218   :  { %v894_v10 = vpop.f32.mrf.mxu0 }
 0x219   :  { %v895_v12 = vadd.f32 %v7825_v11, %v894_v10 }
 0x21b   :  { %7854 = vtanh.f32 %v895_v12  ;;  %v6745_v12 = vor.u32 %v7431_v9, %v6744_v8 }
 0x21d   :  { %1164 = vmatpush.bf16.msrb.mxu3 %v6745_v12 }
 0x21f   :  { %v9200_v47 = vpop.f32.mrf.mxu3 }
 0x220   :  { %v896_v13 = vpop.f32.mrf.mxu0 }
 0x221   :  { %v897_v14 = vadd.f32 %v7825_v11, %v896_v13  ;;  %v7855_v15 = vpop.eup %7854  ;;  %v6741_v11 = vor.u32 %v7429_v4, %v6738_v7 }
 0x223   :  { %7856 = vtanh.f32 %v897_v14  ;;  %1150 = vmatpush.bf16.msrb.mxu2 %v6741_v11 }
 0x227   :  { %v1010_v51 = vpop.f32.mrf.mxu3 }
 0x229   :  { %v7857_v16 = vpop.eup %7856 }
 0x22a   :  { %v905_v17 = vpack.c.bf16 %v7857_v16, %v7855_v15 }
 0x22c   :  { %6706 = vmatmul.msk.bf16.vlgmr.msra.gmra.mxu1 %vm922_vm2, %v905_v17 }
 0x2a9   :  { %v935_v19 = vpop.f32.mrf.mxu1 }
 0x2aa   :  { %v936_v20 = vadd.f32 %v7826_v18, %v935_v19 }
 0x2ac   :  { %7858 = vtanh.f32 %v936_v20 }
 0x2b1   :  { %v937_v21 = vpop.f32.mrf.mxu1 }
 0x2b2   :  { %v9151_v22 = vpop.eup %7858  ;;  %v938_v23 = vadd.f32 %v7826_v18, %v937_v21 }
 0x2b3   :  { %v1028_v24 = vsel %vm922_vm2, %v9151_v22, 0.0 }
 0x2b4   :  { %7860 = vtanh.f32 %v938_v23  ;;  %1029 = vadd.xlane.f32.xlu0 %v1028_v24 }
 0x2b5   :  { %7862 = vrcp.f32 %v8764_v27 }
 0x2ba   :  { %v9155_v25 = vpop.eup %7860 }
 0x2bb   :  { %v1031_v26 = vsel %vm922_vm2, %v9155_v25, 0.0  ;;  %v7863_v28 = vpop.eup %7862 }
 0x2bc   :  { %1032 = vadd.xlane.f32.xlu0 %v1031_v26  ;;  %v1035_v29 = vmul.f32 32.0, %v7863_v28  ;;  %vm1039_vm3 = vweird.f32 %v7863_v28 }
 0x2be   :  { %v1036_v30 = vsub.f32 1.0, %v1035_v29 }
 0x2c0   :  { %v1037_v31 = vmul.f32 %v7863_v28, %v1036_v30  ;;  %v1027_v30 = vld [vmem:[#allocation14] sm:$0xf] }
 0x2c2   :  { %v1038_v32 = vadd.f32 %v7863_v28, %v1037_v31 }
 0x2c4   :  { %v9159_v33 = vsel %vm1039_vm3, %v7863_v28, %v1038_v32 }
 0x2c5   :  { %11283 = vst [vmem:[#allocation73_spill] sm:$0xff] %v9159_v33 }
 0x327   :  { %v1030_v34 = vpop.xlane.xlu0 %1029 }
 0x328   :  { %v1041_v35 = vmul.f32 %v9159_v33, %v1030_v34  ;;  %v1079_v34 = vperm.slane %v1027_v30, 0 }
 0x32a   :  { %v9163_v36 = vsub.f32 %v9151_v22, %v1041_v35 }
 0x32c   :  { %v1045_v37 = vmul.f32 %v9163_v36, %v9163_v36 }
 0x32e   :  { %v1047_v38 = vsel %vm922_vm2, %v1045_v37, 0.0 }
 0x32f   :  { %1048 = vadd.xlane.f32.xlu1 %v1047_v38  ;;  %v1033_v39 = vpop.xlane.xlu0 %1032 }
 0x330   :  { %v1042_v40 = vmul.f32 %v9159_v33, %v1033_v39 }
 0x332   :  { %v9170_v41 = vsub.f32 %v9155_v25, %v1042_v40  ;;  %v1082_v40 = vperm.slane %v1027_v30, 1 }
 0x334   :  { %v1046_v42 = vmul.f32 %v9170_v41, %v9170_v41 }
 0x336   :  { %v1050_v43 = vsel %vm922_vm2, %v1046_v42, 0.0 }
 0x337   :  { %1051 = vadd.xlane.f32.xlu1 %v1050_v43 }
 0x3a2   :  { %v1049_v5 = vpop.xlane.xlu1 %1048 }
 0x3a3   :  { %v1053_v10 = vmul.f32 %v1049_v5, %v9159_v33 }
 0x3a5   :  { %v1055_v13 = vadd.f32 1e-05, %v1053_v10 }
 0x3a7   :  { %7864 = vrsqrt.f32 %v1055_v13  ;;  %vm1063_vm5 = vweird.f32 %v1055_v13 }
 0x3aa   :  { %v1052_v14 = vpop.xlane.xlu1 %1051 }
 0x3ab   :  { %v1054_v15 = vmul.f32 %v1052_v14, %v9159_v33 }
 0x3ad   :  { %v7865_v16 = vpop.eup %7864  ;;  %v1056_v17 = vadd.f32 1e-05, %v1054_v15 }
 0x3ae   :  { %v1058_v18 = vmul.f32 %v7865_v16, %v1055_v13  ;;  %vm1064_vm4 = vweird.f32 %v7865_v16 }
 0x3af   :  { %7866 = vrsqrt.f32 %v1056_v17  ;;  %vm1065_vm6 = vmor %vm1063_vm5, %vm1064_vm4  ;;  %vm1073_vm8 = vweird.f32 %v1056_v17 }
 0x3b0   :  { %v1059_v19 = vmul.f32 %v7865_v16, %v1058_v18 }
 0x3b2   :  { %v1060_v20 = vmul.f32 0.5, %v1059_v19 }
 0x3b4   :  { %v1061_v21 = vsub.f32 1.5, %v1060_v20 }
 0x3b5   :  { %v7867_v23 = vpop.eup %7866 }
 0x3b6   :  { %v1062_v24 = vmul.f32 %v7865_v16, %v1061_v21  ;;  %v1068_v26 = vmul.f32 %v7867_v23, %v1056_v17  ;;  %vm1074_vm7 = vweird.f32 %v7867_v23  ;;  %v590_v21 = vld [vmem:[#allocation3 + $0x18] sm:$0xff] }
 0x3b7   :  { %vm1075_vm9 = vmor %vm1073_vm8, %vm1074_vm7 }
 0x3b8   :  { %v1069_v27 = vmul.f32 %v7867_v23, %v1068_v26  ;;  %v1066_v28 = vsel %vm1065_vm6, %v7865_v16, %v1062_v24  ;;  %v527_v24 = vld [vmem:[#allocation5] sm:$0xff] }
 0x3b9   :  { %v1077_v32 = vmul.f32 %v1066_v28, %v9163_v36  ;;  %v995_v36 = vpop.f32.mrf.mxu2  ;;  %v594_v28 = vld [vmem:[#allocation3 + $0x38] sm:$0xff] }
 0x3ba   :  { %v1070_v29 = vmul.f32 0.5, %v1069_v27  ;;  %v1175_v46 = vpack.c.bf16 %v995_v36, %v995_v36  ;;  %v589_v27 = vld [vmem:[#allocation3 + $0x10] sm:$0xff] }
 0x3bb   :  { %v1080_v39 = vmul.f32 %v1079_v34, %v1077_v32  ;;  %v533_v36 = vld [vmem:[#allocation5 + $0x30] sm:$0xff] }
 0x3bc   :  { %v1071_v31 = vsub.f32 1.5, %v1070_v29  ;;  %v1245_v48 = vsel %vm922_vm2, %v1175_v46, 0  ;;  %v1288_v49 = vunpack.c.l.b16 %v1175_v46  ;;  %v530_v29 = vld [vmem:[#allocation5 + $0x18] sm:$0xff] }
 0x3bd   :  { %v1083_v43 = vadd.f32 %v1082_v40, %v1080_v39  ;;  %1254 = vmatpush.bf16.xpose.msra.mxu1 %v1245_v48  ;;  %v9228_v48 = vpop.f32.mrf.mxu0 }
 0x3be   :  { %v1072_v35 = vmul.f32 %v7867_v23, %v1071_v31  ;;  %11285 = vst [vmem:[#allocation74_spill] sm:$0xff] %v9228_v48 }
 0x3c0   :  { %v1076_v37 = vsel %vm1075_vm9, %v7867_v23, %v1072_v35  ;;  %v529_v23 = vld [vmem:[#allocation5 + $0x10] sm:$0xff] }
 0x3c1   :  { %v1078_v38 = vmul.f32 %v1076_v37, %v9170_v41  ;;  %v1289_v41 = vpack.c.b16 %v1288_v49, %v1288_v49  ;;  %v997_v50 = vpop.f32.mrf.mxu2  ;;  %v11093_v49 = vmov 2  }
 0x3c3   :  { %v1081_v42 = vmul.f32 %v1079_v34, %v1078_v38  ;;  %1290 = vrot.lane.b32.xlu2 %v1289_v41, %s8765_s18 }
 0x3c5   :  { %v1084_v44 = vadd.f32 %v1082_v40, %v1081_v42  ;;  %v587_v40 = vld [vmem:[#allocation3] sm:$0xff]  ;;  %v528_v42 = vld [vmem:[#allocation5 + $0x8] sm:$0xff]  ;;  %v1023_v51 = vpop.f32.mrf.mxu0 }
 0x3c7   :  { %v1093_v45 = vpack.c.bf16 %v1084_v44, %v1083_v43  ;;  %v593_v43 = vld [vmem:[#allocation3 + $0x30] sm:$0xff]  ;;  %v588_v44 = vld [vmem:[#allocation3 + $0x8] sm:$0xff] }
 0x3c9   :  { %6758 = vmatmul.msk.bf16.vlgmr.msrb.gmra.mxu1 %vm922_vm2, %v1093_v45  ;;  %6759 = vmatmul.msk.bf16.vlgmr.msrb.gmra.mxu2 %vm922_vm2, %v1093_v45 }
 0x3ca   :  { %6760 = vmatmul.msk.bf16.vlgmr.msrb.gmra.mxu3 %vm922_vm2, %v1093_v45  ;;  %v534_v45 = vld [vmem:[#allocation5 + $0x38] sm:$0xff] }
 0x41d   :  { %v1291_v37 = vpop.permute.xlu2 %1290 }
 0x41e   :  { %v1296_v38 = vsel %vm922_vm2, %v1291_v37, 0  ;;  %v532_v37 = vld [vmem:[#allocation5 + $0x28] sm:$0xff] }
 0x41f   :  { %1305 = vmatpush.bf16.xpose.msra.mxu3 %v1296_v38 }
 0x446   :  { %v1138_v60 = vpop.f32.mrf.mxu1 }
 0x447   :  { %v1179_v63 = vadd.f32 %v7827_v61, %v1138_v60  ;;  %v1186_v0 = vadd.f32 %v7828_v62, %v1138_v60 }
 0x449   :  { %v1181_v2 = vpack.c.bf16 %v1179_v63, %v1179_v63  ;;  %v1188_v4 = vpack.c.bf16 %v1186_v0, %v1186_v0 }
 0x44b   :  { %v1208_v8 = vunpack.c.l.b16 %v1181_v2  ;;  %v1238_v9 = vunpack.c.l.b16 %v1188_v4  ;;  %v11097_v4 = vmov 6  }
 0x44c   :  { %v1152_v1 = vpop.f32.mrf.mxu2 }
 0x44d   :  { %v1171_v10 = vpack.c.bf16 %v1152_v1, %v1152_v1  ;;  %v1166_v26 = vpop.f32.mrf.mxu3  ;;  %v11095_v1 = vmov 3  }
 0x44e   :  { %v1140_v3 = vpop.f32.mrf.mxu1  ;;  %v1173_v32 = vpack.c.bf16 %v1166_v26, %v1166_v26  ;;  %v592_v26 = vld [vmem:[#allocation3 + $0x28] sm:$0xff] }
 0x44f   :  { %v1180_v5 = vadd.f32 %v7827_v61, %v1140_v3  ;;  %v1187_v6 = vadd.f32 %v7828_v62, %v1140_v3  ;;  %v1213_v17 = vunpack.c.l.b16 %v1171_v10  ;;  %v11087_v3 = vmov 5  }
 0x450   :  { %v1920_v35 = vunpack.c.l.b16 %v1173_v32  ;;  %v591_v32 = vld [vmem:[#allocation3 + $0x20] sm:$0xff] }
 0x451   :  { %v1182_v7 = vpack.c.bf16 %v1180_v5, %v1180_v5  ;;  %v1189_v56 = vpack.c.bf16 %v1187_v6, %v1187_v6 }
 0x453   :  { %v1209_v11 = vunpack.c.l.b16 %v1182_v7  ;;  %v1239_v12 = vunpack.c.l.b16 %v1189_v56  ;;  %v11091_v7 = vmov 7  }
 0x454   :  { %v1154_v13 = vpop.f32.mrf.mxu2 }
 0x455   :  { %v1210_v14 = vpack.c.b16 %v1209_v11, %v1208_v8  ;;  %v1240_v15 = vpack.c.b16 %v1239_v12, %v1238_v9  ;;  %v1172_v16 = vpack.c.bf16 %v1154_v13, %v1154_v13  ;;  %v1168_v30 = vpop.f32.mrf.mxu3 }
 0x456   :  { %v1174_v31 = vpack.c.bf16 %v1168_v30, %v1168_v30 }
 0x457   :  { %v1214_v18 = vunpack.c.l.b16 %v1172_v16  ;;  %1285 = vrot.lane.b32.xlu2 %v1240_v15, %s8765_s18  ;;  %6762 = vmatmul.msk.bf16.vlgmr.msra.gmra.mxu1 %vm922_vm2, %v1240_v15 }
 0x458   :  { %1261 = vrot.lane.b32.xlu1 %v1210_v14, %s8765_s18  ;;  %v1921_v34 = vunpack.c.l.b16 %v1174_v31  ;;  %v531_v31 = vld [vmem:[#allocation5 + $0x20] sm:$0xff] }
 0x459   :  { %v1215_v19 = vpack.c.b16 %v1214_v18, %v1213_v17 }
 0x45a   :  { %v9223_v39 = vpack.c.b16 %v1921_v34, %v1920_v35 }
 0x45b   :  { %1263 = vrot.lane.b32.xlu0 %v1215_v19, %s8765_s18  ;;  %v1220_v20 = vsel %vm922_vm2, %v1215_v19, 0 }
 0x45c   :  { %1229 = vmatpush.bf16.xpose.msra.mxu0 %v1220_v20 }
 0x45f   :  { %1386 = vrot.lane.b32.xlu2 %v1289_v41, %s8767_s13 }
 0x460   :  { %613 = vperm.xlu1 %7645, %v590_v21  }
 0x463   :  { %1336 = vrot.lane.b32.xlu0 %v1240_v15, %s8736_s8  ;;  %6761 = vmatmul.msk.bf16.vlgmr.msra.gmra.mxu0 %vm922_vm2, %v1210_v14 }
 0x467   :  { %1384 = vrot.lane.b32.xlu2 %v1240_v15, %s8767_s13  ;;  %v11089_v15 = vmov 4  }
 0x468   :  { %1360 = vrot.lane.b32.xlu1 %v1210_v14, %s8767_s13 }
 0x46b   :  { %548 = vperm.xlu0 %7646, %v529_v23  }
 0x46f   :  { %1338 = vrot.lane.b32.xlu2 %v1289_v41, %s8736_s8  ;;  %v11099_v41 = vmov 1  }
 0x470   :  { %603 = vperm.xlu1 %7645, %v588_v44  }
 0x473   :  { %538 = vperm.xlu0 %7646, %v527_v24  }
 0x477   :  { %608 = vperm.xlu2 %7644, %v589_v27  }
 0x478   :  { %568 = vperm.xlu1 %7645, %v533_v36  }
 0x47b   :  { %633 = vperm.xlu0 %7646, %v594_v28  }
 0x47f   :  { %553 = vperm.xlu2 %7644, %v530_v29  }
 0x483   :  { %1314 = vrot.lane.b32.xlu0 %v1215_v19, %s8736_s8 }
 0x484   :  { %7647 = vset.pattern.permute.xlu0 %v11099_v41 }
 0x487   :  { %1312 = vrot.lane.b32.xlu2 %v1210_v14, %s8736_s8 }
 0x48b   :  { %1947 = vrot.lane.b32.xlu0 %v9223_v39, %s8765_s18 }
 0x48f   :  { %598 = vperm.xlu2 %7644, %v587_v40  }
 0x497   :  { %543 = vperm.xlu2 %7644, %v528_v42  }
 0x49f   :  { %628 = vperm.xlu2 %7644, %v593_v43  }
 0x4a7   :  { %573 = vperm.xlu2 %7644, %v534_v45  }
 0x4af   :  { %1362 = vrot.lane.b32.xlu2 %v1215_v19, %s8767_s13 }
 0x4b0   :  { %7648 = vset.pattern.permute.xlu2 %v11093_v49 }
 0x4b1   :  { %v1286_v46 = vpop.permute.xlu2 %1285 }
 0x4b2   :  { %6764 = vmatmul.msk.bf16.vlgmr.msra.gmra.mxu3 %vm922_vm2, %v1286_v46 }
 0x4b9   :  { %v1387_v50 = vpop.permute.xlu2 %1386 }
 0x4ba   :  { %v1392_v52 = vsel %vm922_vm2, %v1387_v50, 0 }
 0x4bb   :  { %1401 = vmatpush.bf16.xpose.msrb.mxu3 %v1392_v52 }
 0x4c1   :  { %v1385_v53 = vpop.permute.xlu2 %1384 }
 0x4c2   :  { %6768 = vmatmul.msk.bf16.vlgmr.msrb.gmra.mxu3 %vm922_vm2, %v1385_v53 }
 0x4c9   :  { %v1339_v54 = vpop.permute.xlu2 %1338 }
 0x4ca   :  { %v1344_v55 = vsel %vm922_vm2, %v1339_v54, 0  ;;  %v1262_v62 = vpop.permute.xlu1 %1261  ;;  %v9371_v54 = vld [vmem:[%s11286_s29] ss:$0 sm:$0xff] }
 0x4cb   :  { %1353 = vmatpush.bf16.xpose.msrb.mxu1 %v1344_v55 }
 0x4cd   :  { %v1264_v57 = vpop.permute.xlu0 %1263 }
 0x4ce   :  { %v1269_v58 = vsel %vm922_vm2, %v1264_v57, 0 }
 0x4cf   :  { %1278 = vmatpush.bf16.xpose.msra.mxu2 %v1269_v58  ;;  %v9376_v58 = vld [vmem:[%s11287_s24] ss:$0 sm:$0xff] }
 0x4d1   :  { %v9237_v60 = vpop.permute.xlu2 %608 }
 0x4d2   :  { %v9288_v17 = vpop.permute.xlu1 %613  ;;  %v641_v55 = vsub.f32 %v9237_v60, %v9371_v54  ;;  %v11111_v60 = vmov 0.0  }
 0x4d4   :  { %v9239_v61 = vpop.f32.mrf.mxu1  ;;  %vm673_vm11 = vcmp.eq.f32.partialorder %v641_v55, 0.0  ;;  %vm697_vm12 = vcmp.eq.f32.partialorder %v641_v55, 1.0  ;;  %vm721_vm15 = vcmp.eq.f32.partialorder %v641_v55, 2.0  ;;  %vm745_vm0 = vcmp.eq.f32.partialorder %v641_v55, 3.0 }
 0x4d5   :  { %v1337_v63 = vpop.permute.xlu0 %1336  ;;  %1410 = vperm.xlu1 %7645, %v9239_v61   ;;  %1513 = vperm.xlu2 %7648, %v9239_v61   ;;  %vm769_vm3 = vcmp.eq.f32.partialorder %v641_v55, 4.0  ;;  %vm793_vm5 = vcmp.eq.f32.partialorder %v641_v55, 5.0  ;;  %vm817_vm7 = vcmp.eq.f32.partialorder %v641_v55, 6.0  ;;  %vm841_vm9 = vcmp.eq.f32.partialorder %v641_v55, 7.0 }
 0x4d6   :  { %1465 = vperm.xlu0 %7647, %v9239_v61   ;;  %6763 = vmatmul.msk.bf16.vlgmr.msra.gmra.mxu2 %vm922_vm2, %v1262_v62 }
 0x4d7   :  { %6766 = vmatmul.msk.bf16.vlgmr.msrb.gmra.mxu1 %vm922_vm2, %v1337_v63 }
 0x4d9   :  { %v9246_v0 = vpop.permute.xlu2 %553 }
 0x4da   :  { %v1361_v20 = vpop.permute.xlu1 %1360 }
 0x4dc   :  { %v9265_v9 = vpop.f32.mrf.mxu1 }
 0x4dd   :  { %7649 = vset.pattern.permute.xlu1 %v11095_v1  ;;  %v9249_v2 = vpop.permute.xlu0 %548  ;;  %7650 = vset.pattern.permute.xlu2 %v11087_v3 }
 0x4de   :  { %1561 = vperm.xlu1 %7649, %v9239_v61   ;;  %1657 = vperm.xlu2 %7650, %v9239_v61   ;;  %vm9380_vm10 = vcmp.eq.f32.partialorder %v9249_v2, %v9376_v58 }
 0x4df   :  { %7666 = vset.pattern.permute.xlu0 %v11097_v4  ;;  %vm681_vm13 = vmand %vm9380_vm10, %vm673_vm11 }
 0x4e0   :  { %vm705_vm14 = vmand %vm9380_vm10, %vm697_vm12  ;;  %v9393_v2 = vsel %vm681_vm13, 1.0, %v11111_v60  ;;  %vm649_vm13 = vcmp.ge.f32.partialorder %v641_v55, 0.0 }
 0x4e1   :  { %v1313_v5 = vpop.permute.xlu2 %1312  ;;  %11290 = vst [vmem:[#allocation75_spill] sm:$0xff] %v9393_v2  ;;  %vm729_vm1 = vmand %vm9380_vm10, %vm721_vm15  ;;  %vm1816_vm15 = vcmask 130048  }
 0x4e2   :  { %v9302_v24 = vpop.permute.xlu1 %603  ;;  %vm753_vm4 = vmand %vm9380_vm10, %vm745_vm0 }
 0x4e3   :  { %vm777_vm6 = vmand %vm9380_vm10, %vm769_vm3 }
 0x4e4   :  { %vm801_vm8 = vmand %vm9380_vm10, %vm793_vm5 }
 0x4e5   :  { %v9255_v6 = vpop.permute.xlu0 %538  ;;  %vm825_vm11 = vmand %vm9380_vm10, %vm817_vm7 }
 0x4e6   :  { %7651 = vset.pattern.permute.xlu1 %v11097_v4  ;;  %7652 = vset.pattern.permute.xlu2 %v11091_v7  ;;  %vm849_vm12 = vmand %vm9380_vm10, %vm841_vm9 }
 0x4e7   :  { %1705 = vperm.xlu1 %7651, %v9239_v61   ;;  %1753 = vperm.xlu2 %7652, %v9239_v61  }
 0x4e9   :  { %v9261_v56 = vpop.permute.xlu2 %598 }
 0x4ea   :  { %v9307_v27 = vpop.permute.xlu1 %568 }
 0x4ed   :  { %v9263_v8 = vpop.permute.xlu0 %633 }
 0x4ef   :  { %7654 = vset.pattern.permute.xlu1 %v11099_v41  ;;  %7653 = vset.pattern.permute.xlu2 %v11103_v59 }
 0x4f0   :  { %1469 = vperm.xlu1 %7654, %v9265_v9   ;;  %1415 = vperm.xlu2 %7653, %v9265_v9  }
 0x4f1   :  { %v9271_v10 = vpop.permute.xlu2 %543 }
 0x4f5   :  { %v1315_v11 = vpop.permute.xlu0 %1314 }
 0x4f6   :  { %v1320_v12 = vsel %vm922_vm2, %v1315_v11, 0 }
 0x4f7   :  { %1329 = vmatpush.bf16.xpose.msrb.mxu0 %v1320_v12  ;;  %v9397_v12 = vsel %vm705_vm14, 1.0, %v11111_v60  ;;  %vm657_vm14 = vmand %vm9380_vm10, %vm649_vm13  ;;  %vm9457_vm10 = vcmp.eq.f32.partialorder %v9246_v0, %v9376_v58 }
 0x4f8   :  { %7655 = vset.pattern.permute.xlu1 %v11093_v49  ;;  %7656 = vset.pattern.permute.xlu2 %v11095_v1  ;;  %11291 = vst [vmem:[#allocation76_spill] sm:$0xff] %v9397_v12 }
 0x4f9   :  { %1517 = vperm.xlu1 %7655, %v9265_v9   ;;  %v9278_v13 = vpop.permute.xlu2 %628  ;;  %1565 = vperm.xlu2 %7656, %v9265_v9  }
 0x4fd   :  { %v1948_v14 = vpop.permute.xlu0 %1947 }
 0x4fe   :  { %6765 = vmatmul.msk.bf16.vlgmr.msrb.gmra.mxu0 %vm922_vm2, %v1313_v5  ;;  %1960 = vmatpush.bf16.msra.mxu1 %v1948_v14 }
 0x4ff   :  { %1934 = vmatpush.bf16.msra.mxu0 %v9223_v39 }
 0x501   :  { %7657 = vset.pattern.permute.xlu1 %v11089_v15  ;;  %v9283_v16 = vpop.permute.xlu2 %573  ;;  %7658 = vset.pattern.permute.xlu2 %v11097_v4 }
 0x502   :  { %1613 = vperm.xlu1 %7657, %v9265_v9   ;;  %1709 = vperm.xlu2 %7658, %v9265_v9  }
 0x509   :  { %v1363_v18 = vpop.permute.xlu2 %1362 }
 0x50a   :  { %v1368_v19 = vsel %vm922_vm2, %v1363_v18, 0  ;;  %7659 = vset.pattern.permute.xlu1 %v11091_v7  ;;  %7662 = vset.pattern.permute.xlu2 %v11093_v49 }
 0x50b   :  { %1757 = vperm.xlu1 %7659, %v9265_v9   ;;  %1377 = vmatpush.bf16.xpose.msrb.mxu2 %v1368_v19 }
 0x512   :  { %6767 = vmatmul.msk.bf16.vlgmr.msrb.gmra.mxu2 %vm922_vm2, %v1361_v20 }
 0x513   :  { %7660 = vset.pattern.permute.xlu1 %v11103_v59 }
 0x52f   :  { %v9320_v30 = vpop.permute.xlu2 %1513 }
 0x535   :  { %v1307_v21 = vpop.f32.mrf.mxu3 }
 0x536   :  { %1420 = vperm.xlu1 %7660, %v1307_v21   ;;  %1521 = vperm.xlu2 %7662, %v1307_v21  }
 0x537   :  { %1713 = vperm.xlu0 %7666, %v1307_v21  }
 0x538   :  { %v9327_v35 = vpop.permute.xlu2 %1657 }
 0x53d   :  { %v1309_v23 = vpop.f32.mrf.mxu3 }
 0x53e   :  { %7661 = vset.pattern.permute.xlu1 %v11099_v41  ;;  %7664 = vset.pattern.permute.xlu2 %v11089_v15 }
 0x53f   :  { %7669 = vset.pattern.permute.xlu0 %v11099_v41  ;;  %1473 = vperm.xlu1 %7661, %v1307_v21  }
 0x540   :  { %1617 = vperm.xlu2 %7664, %v1307_v21   ;;  %1477 = vperm.xlu0 %7669, %v1309_v23  }
 0x541   :  { %v9332_v40 = vpop.permute.xlu2 %1753 }
 0x545   :  { %v9313_v28 = vpop.f32.mrf.mxu3 }
 0x547   :  { %7663 = vset.pattern.permute.xlu1 %v11095_v1  ;;  %v9315_v29 = vpop.permute.xlu1 %1410 }
 0x548   :  { %7665 = vset.pattern.permute.xlu2 %v11087_v3  ;;  %7671 = vset.pattern.permute.xlu0 %v11095_v1  ;;  %v9404_v20 = vpop.permute.xlu0 %1465 }
 0x549   :  { %1569 = vperm.xlu1 %7663, %v1307_v21   ;;  %1665 = vperm.xlu2 %7665, %v1307_v21  }
 0x54a   :  { %1573 = vperm.xlu0 %7671, %v1309_v23   ;;  %v9339_v43 = vpop.permute.xlu2 %1415 }
 0x54d   :  { %v9341_v44 = vpop.f32.mrf.mxu3 }
 0x550   :  { %v9324_v34 = vpop.permute.xlu1 %1561 }
 0x551   :  { %7670 = vset.pattern.permute.xlu1 %v11093_v49  ;;  %7667 = vset.pattern.permute.xlu2 %v11091_v7 }
 0x552   :  { %7676 = vset.pattern.permute.xlu0 %v11103_v59  ;;  %1525 = vperm.xlu1 %7670, %v1309_v23  }
 0x553   :  { %1761 = vperm.xlu2 %7667, %v1307_v21   ;;  %623 = vperm.xlu0 %7676, %v592_v26   ;;  %v9350_v36 = vpop.permute.xlu2 %1565  ;;  %v9409_v26 = vsel %vm729_vm1, 1.0, %v11111_v60 }
 0x554   :  { %v9357_v50 = vpop.f32.mrf.mxu1  ;;  %11292 = vst [vmem:[#allocation77_spill] sm:$0xff] %v9409_v26 }
 0x559   :  { %v9330_v38 = vpop.permute.xlu1 %1705  ;;  %v1280_v18 = vpop.f32.mrf.mxu2 }
 0x55a   :  { %7672 = vset.pattern.permute.xlu1 %v11089_v15 }
 0x55b   :  { %7668 = vset.pattern.permute.xlu2 %v11103_v59  ;;  %7677 = vset.pattern.permute.xlu0 %v11089_v15 }
 0x55c   :  { %1621 = vperm.xlu1 %7672, %v1309_v23   ;;  %1425 = vperm.xlu2 %7668, %v1309_v23   ;;  %v9362_v51 = vpop.permute.xlu2 %1709  ;;  %v9384_v62 = vpop.f32.mrf.mxu1 }
 0x55d   :  { %1609 = vperm.xlu0 %7677, %v9239_v61  }
 0x561   :  { %v1282_v0 = vpop.f32.mrf.mxu2 }
 0x562   :  { %v9337_v42 = vpop.permute.xlu1 %1469 }
 0x564   :  { %7673 = vset.pattern.permute.xlu1 %v11087_v3  ;;  %7674 = vset.pattern.permute.xlu2 %v11097_v4 }
 0x565   :  { %1633 = vperm.xlu0 %7677, %v9313_v28   ;;  %1669 = vperm.xlu1 %7673, %v1309_v23  }
 0x566   :  { %1717 = vperm.xlu2 %7674, %v1309_v23  }
 0x56b   :  { %v9347_v45 = vpop.permute.xlu1 %1517 }
 0x56d   :  { %7678 = vset.pattern.permute.xlu1 %v11103_v59  ;;  %7686 = vset.pattern.permute.xlu0 %v11087_v3 }
 0x56e   :  { %7675 = vset.pattern.permute.xlu2 %v11103_v59  ;;  %558 = vperm.xlu1 %7678, %v531_v31  }
 0x56f   :  { %618 = vperm.xlu2 %7675, %v591_v32  }
 0x574   :  { %v9355_v46 = vpop.permute.xlu1 %1613 }
 0x576   :  { %7679 = vset.pattern.permute.xlu1 %v11091_v7 }
 0x577   :  { %563 = vperm.xlu2 %7675, %v532_v37   ;;  %1765 = vperm.xlu1 %7679, %v1309_v23   ;;  %v9415_v37 = vsel %vm753_vm4, 1.0, %v11111_v60 }
 0x578   :  { %11293 = vst [vmem:[#allocation78_spill] sm:$0xff] %v9415_v37 }
 0x57d   :  { %v9365_v52 = vpop.permute.xlu1 %1757 }
 0x57f   :  { %1440 = vperm.xlu2 %7675, %v9313_v28   ;;  %7680 = vset.pattern.permute.xlu1 %v11099_v41 }
 0x580   :  { %1489 = vperm.xlu1 %7680, %v9313_v28  }
 0x587   :  { %7683 = vset.pattern.permute.xlu2 %v11099_v41 }
 0x588   :  { %1493 = vperm.xlu2 %7683, %v9341_v44   ;;  %7681 = vset.pattern.permute.xlu1 %v11095_v1 }
 0x589   :  { %1585 = vperm.xlu1 %7681, %v9313_v28  }
 0x590   :  { %7685 = vset.pattern.permute.xlu2 %v11095_v1  ;;  %v1522_v53 = vpop.permute.xlu2 %1521 }
 0x591   :  { %1589 = vperm.xlu2 %7685, %v9341_v44   ;;  %7682 = vset.pattern.permute.xlu1 %v11103_v59  ;;  %v1546_v31 = vmul.f32 %v1522_v53, %v9409_v26 }
 0x592   :  { %1445 = vperm.xlu1 %7682, %v9341_v44  }
 0x599   :  { %7688 = vset.pattern.permute.xlu2 %v11103_v59 }
 0x59a   :  { %1430 = vperm.xlu2 %7688, %v9357_v50   ;;  %7684 = vset.pattern.permute.xlu1 %v11093_v49  ;;  %v1618_v63 = vpop.permute.xlu2 %1617 }
 0x59b   :  { %1541 = vperm.xlu1 %7684, %v9341_v44  }
 0x5a2   :  { %7690 = vset.pattern.permute.xlu2 %v11087_v3 }
 0x5a3   :  { %1681 = vperm.xlu2 %7690, %v9313_v28   ;;  %7687 = vset.pattern.permute.xlu1 %v11089_v15  ;;  %v1666_v21 = vpop.permute.xlu2 %1665 }
 0x5a8   :  { %v1421_v57 = vpop.permute.xlu1 %1420 }
 0x5a9   :  { %v1450_v11 = vmul.f32 %v1421_v57, %v9393_v2  ;;  %v9675_v2 = vsub.f32 %v9263_v8, %v9371_v54 }
 0x5ab   :  { %7693 = vset.pattern.permute.xlu2 %v11099_v41  ;;  %v1458_v19 = vadd.f32 %v1450_v11, %v1280_v18  ;;  %v9421_v11 = vsel %vm777_vm6, 1.0, %v11111_v60  ;;  %v9429_v18 = vsel %vm801_vm8, 1.0, %v11111_v60 }
 0x5ac   :  { %1485 = vperm.xlu2 %7693, %v9384_v62   ;;  %11294 = vst [vmem:[#allocation79_spill] sm:$0xff] %v9421_v11  ;;  %v1642_v53 = vmul.f32 %v1618_v63, %v9421_v11 }
 0x5ad   :  { %11295 = vst [vmem:[#allocation80_spill] sm:$0xff] %v9429_v18  ;;  %v1762_v63 = vpop.permute.xlu2 %1761 }
 0x5b1   :  { %v1474_v5 = vpop.permute.xlu1 %1473 }
 0x5b2   :  { %v1498_v14 = vmul.f32 %v1474_v5, %v9397_v12 }
 0x5b4   :  { %7695 = vset.pattern.permute.xlu2 %v11097_v4  ;;  %v1506_v23 = vadd.f32 %v1498_v14, %v1458_v19  ;;  %v1714_v19 = vpop.permute.xlu0 %1713 }
 0x5b5   :  { %1733 = vperm.xlu2 %7695, %v9341_v44  }
 0x5b6   :  { %v1554_v57 = vadd.f32 %v1546_v31, %v1506_v23  ;;  %v1690_v23 = vmul.f32 %v1666_v21, %v9429_v18 }
 0x5bb   :  { %v1570_v32 = vpop.permute.xlu1 %1569 }
 0x5bc   :  { %v1594_v5 = vmul.f32 %v1570_v32, %v9415_v37  ;;  %v9435_v32 = vsel %vm825_vm11, 1.0, %v11111_v60  ;;  %v1478_v61 = vpop.permute.xlu0 %1477 }
 0x5bd   :  { %7697 = vset.pattern.permute.xlu2 %v11091_v7  ;;  %11296 = vst [vmem:[#allocation81_spill] sm:$0xff] %v9435_v32  ;;  %v1738_v3 = vmul.f32 %v1714_v19, %v9435_v32  ;;  %v11101_v19 = vmov -1e+30  }
 0x5be   :  { %v1602_v14 = vadd.f32 %v1594_v5, %v1554_v57  ;;  %1777 = vperm.xlu2 %7697, %v9313_v28   ;;  %v9439_v57 = vsel %vm849_vm12, 1.0, %v11111_v60 }
 0x5bf   :  { %11297 = vst [vmem:[#allocation82_spill] sm:$0xff] %v9439_v57  ;;  %v1786_v5 = vmul.f32 %v1762_v63, %v9439_v57 }
 0x5c0   :  { %v1650_v31 = vadd.f32 %v1642_v53, %v1602_v14  ;;  %v642_v14 = vsub.f32 %v9288_v17, %v9371_v54  ;;  %v1426_v17 = vpop.permute.xlu2 %1425 }
 0x5c2   :  { %v1698_v15 = vadd.f32 %v1690_v23, %v1650_v31  ;;  %v9448_v23 = vsel %vm657_vm14, 0.0, %v11101_v19  ;;  %vm674_vm0 = vcmp.eq.f32.partialorder %v642_v14, 0.0  ;;  %vm698_vm3 = vcmp.eq.f32.partialorder %v642_v14, 1.0 }
 0x5c3   :  { %11298 = vst [vmem:[#allocation83_spill] sm:$0xff] %v9448_v23  ;;  %vm682_vm1 = vmand %vm9457_vm10, %vm674_vm0  ;;  %vm722_vm4 = vcmp.eq.f32.partialorder %v642_v14, 2.0  ;;  %vm746_vm7 = vcmp.eq.f32.partialorder %v642_v14, 3.0  ;;  %vm770_vm8 = vcmp.eq.f32.partialorder %v642_v14, 4.0  ;;  %vm794_vm11 = vcmp.eq.f32.partialorder %v642_v14, 5.0 }
 0x5c4   :  { %v1526_v7 = vpop.permute.xlu1 %1525  ;;  %v1746_v49 = vadd.f32 %v1738_v3, %v1698_v15  ;;  %v9464_v31 = vsel %vm682_vm1, 1.0, %v11111_v60  ;;  %vm706_vm5 = vmand %vm9457_vm10, %vm698_vm3  ;;  %vm818_vm14 = vcmp.eq.f32.partialorder %v642_v14, 6.0  ;;  %vm842_vm0 = vcmp.eq.f32.partialorder %v642_v14, 7.0 }
 0x5c5   :  { %11301 = vst [vmem:[#allocation84_spill] sm:$0xff] %v9464_v31  ;;  %v1451_v63 = vmul.f32 %v1426_v17, %v9464_v31  ;;  %vm730_vm6 = vmand %vm9457_vm10, %vm722_vm4  ;;  %vm650_vm4 = vcmp.ge.f32.partialorder %v642_v14, 0.0  ;;  %v11312_v14 = vmov 1  }
 0x5c6   :  { %v1794_v21 = vadd.f32 %v1786_v5, %v1746_v49  ;;  %7699 = vset.pattern.permute.xlu2 %v11095_v1  ;;  %vm754_vm9 = vmand %vm9457_vm10, %vm746_vm7  ;;  %v11314_v49 = vmov 2  }
 0x5c7   :  { %vm778_vm12 = vmand %vm9457_vm10, %vm770_vm8  ;;  %v9486_v41 = vsel %vm754_vm9, 1.0, %v11111_v60 }
 0x5c8   :  { %v1802_v53 = vmul.f32 0.17677669, %v1794_v21  ;;  %v1459_v21 = vadd.f32 %v1451_v63, %v1282_v0  ;;  %v1574_v63 = vpop.permute.xlu0 %1573  ;;  %vm802_vm13 = vmand %vm9457_vm10, %vm794_vm11  ;;  %11304 = vst [vmem:[#allocation87_spill] sm:$0xff] %v9486_v41  ;;  %v1718_v48 = vpop.permute.xlu2 %1717 }
 0x5c9   :  { %vm826_vm1 = vmand %vm9457_vm10, %vm818_vm14 }
 0x5ca   :  { %v9451_v55 = vadd.f32 %v1802_v53, %v9448_v23  ;;  %v9472_v53 = vsel %vm706_vm5, 1.0, %v11111_v60  ;;  %vm850_vm3 = vmand %vm9457_vm10, %vm842_vm0 }
 0x5cb   :  { %11302 = vst [vmem:[#allocation85_spill] sm:$0xff] %v9472_v53  ;;  %v1499_v1 = vmul.f32 %v1478_v61, %v9472_v53  ;;  %v9489_v61 = vsel %vm778_vm12, 1.0, %v11111_v60  ;;  %vm658_vm5 = vmand %vm9457_vm10, %vm650_vm4  ;;  %vm9573_vm10 = vcmp.eq.f32.partialorder %v9271_v10, %v9376_v58  ;;  %v11320_v10 = vmov 0.0  }
 0x5cc   :  { %v1823_v3 = vsel %vm1816_vm15, %v9451_v55, -inf  ;;  %11305 = vst [vmem:[#allocation88_spill] sm:$0xff] %v9489_v61 }
 0x5cd   :  { %1824 = vmax.xlane.f32.xlu1 %v1823_v3  ;;  %v9475_v3 = vsel %vm730_vm6, 1.0, %v11111_v60  ;;  %v1507_v4 = vadd.f32 %v1499_v1, %v1459_v21  ;;  %v9496_v1 = vsel %vm802_vm13, 1.0, %v11111_v60 }
 0x5ce   :  { %v1622_v15 = vpop.permute.xlu1 %1621  ;;  %11303 = vst [vmem:[#allocation86_spill] sm:$0xff] %v9475_v3  ;;  %v1547_v17 = vmul.f32 %v1526_v7, %v9475_v3  ;;  %v1595_v7 = vmul.f32 %v1574_v63, %v9486_v41 }
 0x5cf   :  { %v1643_v19 = vmul.f32 %v1622_v15, %v9489_v61  ;;  %11306 = vst [vmem:[#allocation89_spill] sm:$0xff] %v9496_v1  ;;  %v9505_v15 = vsel %vm826_vm1, 1.0, %v11111_v60 }
 0x5d0   :  { %v1555_v0 = vadd.f32 %v1547_v17, %v1507_v4  ;;  %11307 = vst [vmem:[#allocation90_spill] sm:$0xff] %v9505_v15  ;;  %v1739_v63 = vmul.f32 %v1718_v48, %v9505_v15  ;;  %v9553_v15 = vpop.permute.xlu2 %618 }
 0x5d2   :  { %v1603_v4 = vadd.f32 %v1595_v7, %v1555_v0 }
 0x5d4   :  { %v1651_v17 = vadd.f32 %v1643_v19, %v1603_v4 }
 0x5d7   :  { %v1670_v5 = vpop.permute.xlu1 %1669 }
 0x5d8   :  { %v1691_v21 = vmul.f32 %v1670_v5, %v9496_v1  ;;  %v9509_v5 = vsel %vm850_vm3, 1.0, %v11111_v60  ;;  %v11310_v1 = vmov -1e+30   ;;  %v9559_v31 = vpop.permute.xlu2 %563 }
 0x5d9   :  { %11308 = vst [vmem:[#allocation91_spill] sm:$0xff] %v9509_v5  ;;  %v9517_v61 = vsel %vm658_vm5, 0.0, %v11310_v1 }
 0x5da   :  { %v1699_v3 = vadd.f32 %v1691_v21, %v1651_v17  ;;  %v11309_v17 = vmov 0   ;;  %11311 = vst [vmem:[#allocation92_spill] sm:$0xff] %v9517_v61 }
 0x5dc   :  { %v1747_v7 = vadd.f32 %v1739_v63, %v1699_v3  ;;  %v11313_v3 = vmov 6   ;;  %v11315_v63 = vmov 7  }
 0x5e0   :  { %v9493_v59 = vpop.permute.xlu1 %558  ;;  %v9563_v57 = vpop.permute.xlu2 %1440 }
 0x5e6   :  { %1637 = vperm.xlu1 %7687, %v9341_v44  }
 0x5e9   :  { %v1766_v0 = vpop.permute.xlu1 %1765 }
 0x5ea   :  { %v1787_v19 = vmul.f32 %v1766_v0, %v9509_v5  ;;  %v11316_v0 = vmov 4  }
 0x5ec   :  { %v1795_v4 = vadd.f32 %v1787_v19, %v1747_v7  ;;  %v11317_v7 = vmov 3  }
 0x5ee   :  { %v1803_v21 = vmul.f32 0.17677669, %v1795_v4  ;;  %7689 = vset.pattern.permute.xlu1 %v11309_v17 }
 0x5ef   :  { %1435 = vperm.xlu1 %7689, %v9384_v62  }
 0x5f0   :  { %v1811_v48 = vadd.f32 %v1803_v21, %v9517_v61  ;;  %v9549_v61 = vpop.permute.xlu0 %623 }
 0x5f2   :  { %v1826_v60 = vsel %vm1816_vm15, %v1811_v48, -inf }
 0x5f3   :  { %1827 = vmax.xlane.f32.xlu0 %v1826_v60  ;;  %v9533_v60 = vpop.permute.xlu1 %1489 }
 0x5f7   :  { %7692 = vset.pattern.permute.xlu1 %v11312_v14 }
 0x5f8   :  { %1481 = vperm.xlu1 %7692, %v9357_v50   ;;  %v9557_v53 = vpop.permute.xlu0 %1609 }
 0x600   :  { %7694 = vset.pattern.permute.xlu1 %v11313_v3  ;;  %v9561_v23 = vpop.permute.xlu0 %1633 }
 0x601   :  { %1729 = vperm.xlu1 %7694, %v9313_v28  }
 0x607   :  { %1661 = vperm.xlu0 %7686, %v9265_v9   ;;  %v9537_v9 = vpop.permute.xlu1 %1585 }
 0x609   :  { %7696 = vset.pattern.permute.xlu1 %v11314_v49 }
 0x60a   :  { %1533 = vperm.xlu1 %7696, %v9384_v62  }
 0x60f   :  { %1685 = vperm.xlu0 %7686, %v9341_v44   ;;  %v9541_v19 = vpop.permute.xlu1 %1445 }
 0x612   :  { %7698 = vset.pattern.permute.xlu1 %v11315_v63 }
 0x613   :  { %1781 = vperm.xlu1 %7698, %v9341_v44  }
 0x617   :  { %7691 = vset.pattern.permute.xlu0 %v11314_v49  ;;  %v9545_v44 = vpop.permute.xlu1 %1541 }
 0x618   :  { %1537 = vperm.xlu0 %7691, %v9313_v28  }
 0x61b   :  { %7701 = vset.pattern.permute.xlu1 %v11316_v0 }
 0x620   :  { %1529 = vperm.xlu0 %7691, %v9357_v50  }
 0x628   :  { %7700 = vset.pattern.permute.xlu0 %v11317_v7 }
 0x629   :  { %1581 = vperm.xlu0 %7700, %v9384_v62  }
 0x631   :  { %7705 = vset.pattern.permute.xlu0 %v11313_v3 }
 0x632   :  { %1721 = vperm.xlu0 %7705, %v9357_v50  }
 0x63a   :  { %7709 = vset.pattern.permute.xlu0 %v11309_v17 }
 0x640   :  { %v1825_v28 = vpop.xlane.xlu1 %1824 }
 0x641   :  { %v1843_v4 = vsub.f32 %v9451_v55, %v1825_v28  ;;  %v9567_v55 = vsub.f32 %v9302_v24, %v9371_v54  ;;  %v9569_v28 = vpop.f32.mrf.mxu0  ;;  %v9583_v24 = vpop.permute.xlu2 %1493 }
 0x643   :  { %v1853_v21 = vmul.f32 1.442695, %v1843_v4  ;;  %vm672_vm6 = vcmp.eq.f32.partialorder %v9567_v55, 0.0  ;;  %vm696_vm7 = vcmp.eq.f32.partialorder %v9567_v55, 1.0  ;;  %vm720_vm9 = vcmp.eq.f32.partialorder %v9567_v55, 2.0 }
 0x644   :  { %vm680_vm8 = vmand %vm9573_vm10, %vm672_vm6  ;;  %vm744_vm13 = vcmp.eq.f32.partialorder %v9567_v55, 3.0  ;;  %vm768_vm14 = vcmp.eq.f32.partialorder %v9567_v55, 4.0  ;;  %vm792_vm3 = vcmp.eq.f32.partialorder %v9567_v55, 5.0  ;;  %vm816_vm4 = vcmp.eq.f32.partialorder %v9567_v55, 6.0 }
 0x645   :  { %7868 = vpow2.f32 %v1853_v21  ;;  %vm704_vm11 = vmand %vm9573_vm10, %vm696_vm7  ;;  %v9588_v18 = vsel %vm680_vm8, 1.0, %v11320_v10  ;;  %vm840_vm6 = vcmp.eq.f32.partialorder %v9567_v55, 7.0 }
 0x646   :  { %11321 = vst [vmem:[#allocation93_spill] sm:$0xff] %v9588_v18  ;;  %vm728_vm12 = vmand %vm9573_vm10, %vm720_vm9 }
 0x647   :  { %vm752_vm0 = vmand %vm9573_vm10, %vm744_vm13  ;;  %vm648_vm13 = vcmp.ge.f32.partialorder %v9567_v55, 0.0 }
 0x648   :  { %vm776_vm1 = vmand %vm9573_vm10, %vm768_vm14 }
 0x649   :  { %v1233_v37 = vpop.f32.mrf.mxu0  ;;  %vm800_vm5 = vmand %vm9573_vm10, %vm792_vm3 }
 0x64a   :  { %vm824_vm7 = vmand %vm9573_vm10, %vm816_vm4 }
 0x64b   :  { %v9551_v5 = vpop.eup %7868  ;;  %vm848_vm9 = vmand %vm9573_vm10, %vm840_vm6  ;;  %vm678_vm6 = vcmp.eq.f32.partialorder %v9675_v2, 0.0 }
 0x64c   :  { %v1871_v41 = vsel %vm1816_vm15, %v9551_v5, 0.0 }
 0x64d   :  { %1872 = vadd.xlane.f32.xlu2 %v1871_v41 }
 0x658   :  { %v9590_v11 = vpop.permute.xlu1 %1637 }
 0x665   :  { %1577 = vperm.xlu2 %7699, %v9357_v50  }
 0x666   :  { %v1828_v41 = vpop.xlane.xlu0 %1827 }
 0x667   :  { %v1844_v21 = vsub.f32 %v1811_v48, %v1828_v41  ;;  %v1449_v48 = vmul.f32 %v9339_v43, %v9588_v18  ;;  %v9597_v41 = vsel %vm704_vm11, 1.0, %v11320_v10  ;;  %vm9654_vm11 = vcmp.eq.f32.partialorder %v9255_v6, %v9376_v58 }
 0x668   :  { %11322 = vst [vmem:[#allocation94_spill] sm:$0xff] %v9597_v41 }
 0x669   :  { %v1855_v32 = vmul.f32 1.442695, %v1844_v21  ;;  %v1497_v21 = vmul.f32 %v9337_v42, %v9597_v41  ;;  %v1457_v43 = vadd.f32 %v1449_v48, %v1233_v37  ;;  %v9618_v41 = vpop.permute.xlu2 %1589  ;;  %v9626_v48 = vsel %vm776_vm1, 1.0, %v11320_v10 }
 0x66a   :  { %11325 = vst [vmem:[#allocation97_spill] sm:$0xff] %v9626_v48 }
 0x66b   :  { %7870 = vpow2.f32 %v1855_v32  ;;  %v9605_v32 = vsel %vm728_vm12, 1.0, %v11320_v10  ;;  %v1505_v12 = vadd.f32 %v1497_v21, %v1457_v43  ;;  %v9628_v21 = vpop.permute.xlu1 %1435 }
 0x66c   :  { %11323 = vst [vmem:[#allocation95_spill] sm:$0xff] %v9605_v32  ;;  %v1545_v18 = vmul.f32 %v9347_v45, %v9605_v32  ;;  %v9622_v45 = vsel %vm752_vm0, 1.0, %v11320_v10  ;;  %v1641_v32 = vmul.f32 %v9355_v46, %v9626_v48  ;;  %v9647_v46 = vsel %vm800_vm5, 1.0, %v11320_v10  ;;  %vm656_vm0 = vmand %vm9573_vm10, %vm648_vm13 }
 0x66d   :  { %7702 = vset.pattern.permute.xlu2 %v11316_v0  ;;  %11324 = vst [vmem:[#allocation96_spill] sm:$0xff] %v9622_v45  ;;  %v1593_v43 = vmul.f32 %v9350_v36, %v9622_v45  ;;  %vm9695_vm5 = vcmp.eq.f32.partialorder %v9283_v16, %v9376_v58  ;;  %v9703_v4 = vsel %vm656_vm0, 0.0, %v11310_v1  ;;  %vm726_vm0 = vcmp.eq.f32.partialorder %v9675_v2, 2.0 }
 0x66e   :  { %1629 = vperm.xlu2 %7702, %v9384_v62   ;;  %v1553_v37 = vadd.f32 %v1545_v18, %v1505_v12  ;;  %v9639_v12 = vsub.f32 %v9261_v56, %v9371_v54  ;;  %11327 = vst [vmem:[#allocation98_spill] sm:$0xff] %v9647_v46 }
 0x66f   :  { %11333 = vst [vmem:[#allocation100_spill] sm:$0xff] %v9703_v4 }
 0x670   :  { %v1601_v36 = vadd.f32 %v1593_v43, %v1553_v37  ;;  %vm671_vm8 = vcmp.eq.f32.partialorder %v9639_v12, 0.0  ;;  %v9659_v37 = vsel %vm824_vm7, 1.0, %v11320_v10  ;;  %vm695_vm14 = vcmp.eq.f32.partialorder %v9639_v12, 1.0 }
 0x671   :  { %v9610_v26 = vpop.eup %7870  ;;  %vm679_vm12 = vmand %vm9654_vm11, %vm671_vm8  ;;  %vm719_vm1 = vcmp.eq.f32.partialorder %v9639_v12, 2.0  ;;  %vm743_vm4 = vcmp.eq.f32.partialorder %v9639_v12, 3.0  ;;  %vm767_vm8 = vcmp.eq.f32.partialorder %v9639_v12, 4.0 }
 0x672   :  { %v1874_v42 = vsel %vm1816_vm15, %v9610_v26, 0.0  ;;  %v1649_v48 = vadd.f32 %v1641_v32, %v1601_v36  ;;  %v1737_v32 = vmul.f32 %v9362_v51, %v9659_v37  ;;  %v9666_v36 = vsel %vm848_vm9, 1.0, %v11320_v10  ;;  %vm703_vm3 = vmand %vm9654_vm11, %vm695_vm14 }
 0x673   :  { %1875 = vadd.xlane.f32.xlu1 %v1874_v42  ;;  %v11326_v42 = vmov 5   ;;  %11330 = vst [vmem:[#allocation99_spill] sm:$0xff] %v9666_v36  ;;  %v1785_v6 = vmul.f32 %v9365_v52, %v9666_v36  ;;  %v9678_v17 = vsel %vm679_vm12, 1.0, %v11320_v10  ;;  %v9681_v51 = vpop.permute.xlu1 %1481  ;;  %vm727_vm10 = vmand %vm9654_vm11, %vm719_vm1  ;;  %v9712_v16 = vsel %vm703_vm3, 1.0, %v11320_v10 }
 0x674   :  { %v1448_v55 = vmul.f32 %v9315_v29, %v9678_v17  ;;  %v9699_v29 = vpop.f32.mrf.mxu2  ;;  %11334 = vst [vmem:[#allocation101_spill] sm:$0xff] %v9712_v16  ;;  %vm751_vm7 = vmand %vm9654_vm11, %vm743_vm4  ;;  %vm791_vm12 = vcmp.eq.f32.partialorder %v9639_v12, 5.0  ;;  %vm702_vm14 = vcmp.eq.f32.partialorder %v9675_v2, 1.0 }
 0x675   :  { %vm686_vm9 = vmand %vm9695_vm5, %vm678_vm6  ;;  %vm815_vm6 = vcmp.eq.f32.partialorder %v9639_v12, 6.0 }
 0x676   :  { %7704 = vset.pattern.permute.xlu2 %v11326_v42  ;;  %vm775_vm13 = vmand %vm9654_vm11, %vm767_vm8  ;;  %vm839_vm8 = vcmp.eq.f32.partialorder %v9639_v12, 7.0 }
 0x677   :  { %1677 = vperm.xlu2 %7704, %v9384_v62   ;;  %vm799_vm1 = vmand %vm9654_vm11, %vm791_vm12 }
 0x678   :  { %vm710_vm3 = vmand %vm9695_vm5, %vm702_vm14 }
 0x679   :  { %v1662_v18 = vpop.permute.xlu0 %1661  ;;  %vm734_vm4 = vmand %vm9695_vm5, %vm726_vm0 }
 0x67a   :  { %v1689_v56 = vmul.f32 %v1662_v18, %v9647_v46  ;;  %v9668_v18 = vpop.permute.xlu2 %1430  ;;  %vm847_vm0 = vmand %vm9654_vm11, %vm839_vm8 }
 0x67c   :  { %v1697_v43 = vadd.f32 %v1689_v56, %v1649_v48 }
 0x67e   :  { %v1745_v46 = vadd.f32 %v1737_v32, %v1697_v43  ;;  %v1496_v32 = vmul.f32 %v9404_v20, %v9712_v16  ;;  %v9724_v43 = vsel %vm727_vm10, 1.0, %v11320_v10  ;;  %v9734_v20 = vsel %vm751_vm7, 1.0, %v11320_v10 }
 0x67f   :  { %7707 = vset.pattern.permute.xlu2 %v11315_v63  ;;  %11335 = vst [vmem:[#allocation102_spill] sm:$0xff] %v9734_v20  ;;  %vm750_vm10 = vcmp.eq.f32.partialorder %v9675_v2, 3.0  ;;  %vm774_vm7 = vcmp.eq.f32.partialorder %v9675_v2, 4.0 }
 0x680   :  { %1769 = vperm.xlu2 %7707, %v9357_v50   ;;  %v1793_v52 = vadd.f32 %v1785_v6, %v1745_v46  ;;  %v1456_v46 = vadd.f32 %v1448_v55, %v9569_v28  ;;  %vm758_vm12 = vmand %vm9695_vm5, %vm750_vm10 }
 0x681   :  { %vm782_vm14 = vmand %vm9695_vm5, %vm774_vm7  ;;  %vm647_vm7 = vcmp.ge.f32.partialorder %v9639_v12, 0.0 }
 0x682   :  { %v1801_v8 = vmul.f32 0.17677669, %v1793_v52  ;;  %v9727_v6 = vpop.permute.xlu2 %1681  ;;  %v1504_v55 = vadd.f32 %v1496_v32, %v1456_v46  ;;  %v9737_v52 = vsel %vm686_vm9, 1.0, %v11320_v10  ;;  %v1544_v46 = vmul.f32 %v9320_v30, %v9724_v43  ;;  %v1381_v30 = vpop.f32.mrf.mxu2  ;;  %vm9775_vm9 = vmand %vm9654_vm11, %vm815_vm6 }
 0x683   :  { %11336 = vst [vmem:[#allocation103_spill] sm:$0xff] %v9737_v52  ;;  %v1592_v32 = vmul.f32 %v9324_v34, %v9734_v20  ;;  %vm655_vm8 = vmand %vm9654_vm11, %vm647_vm7 }
 0x684   :  { %v9709_v56 = vadd.f32 %v1801_v8, %v9703_v4  ;;  %v9740_v8 = vpop.permute.xlu1 %1729  ;;  %v9751_v4 = vsel %vm775_vm13, 1.0, %v11320_v10  ;;  %v1552_v16 = vadd.f32 %v1544_v46, %v1504_v55  ;;  %v9766_v55 = vsel %vm710_vm3, 1.0, %v11320_v10 }
 0x685   :  { %11337 = vst [vmem:[#allocation104_spill] sm:$0xff] %v9751_v4  ;;  %v1640_v36 = vmul.f32 %v9557_v53, %v9751_v4  ;;  %v9769_v53 = vsel %vm734_vm4, 1.0, %v11320_v10  ;;  %vm798_vm13 = vcmp.eq.f32.partialorder %v9675_v2, 5.0  ;;  %vm822_vm3 = vcmp.eq.f32.partialorder %v9675_v2, 6.0 }
 0x686   :  { %v1820_v28 = vsel %vm1816_vm15, %v9709_v56, -inf  ;;  %v1600_v34 = vadd.f32 %v1592_v32, %v1552_v16  ;;  %11338 = vst [vmem:[#allocation105_spill] sm:$0xff] %v9766_v55  ;;  %v1503_v32 = vmul.f32 %v9583_v24, %v9766_v55  ;;  %vm846_vm4 = vcmp.eq.f32.partialorder %v9675_v2, 7.0  ;;  %vm830_vm6 = vmand %vm9695_vm5, %vm822_vm3 }
 0x687   :  { %1821 = vmax.xlane.f32.xlu0 %v1820_v28  ;;  %v1455_v28 = vmul.f32 %v9541_v19, %v9737_v52  ;;  %v9763_v52 = vsel %vm799_vm1, 1.0, %v11320_v10  ;;  %11339 = vst [vmem:[#allocation106_spill] sm:$0xff] %v9769_v53  ;;  %vm806_vm1 = vmand %vm9695_vm5, %vm798_vm13  ;;  %v9858_v12 = vsel %vm655_vm8, 0.0, %v11310_v1 }
 0x688   :  { %7710 = vset.pattern.permute.xlu2 %v11312_v14  ;;  %v1648_v46 = vadd.f32 %v1640_v36, %v1600_v34  ;;  %v1688_v4 = vmul.f32 %v9327_v35, %v9763_v52  ;;  %v9802_v35 = vsel %vm9775_vm9, 1.0, %v11320_v10  ;;  %v9805_v34 = vsel %vm758_vm12, 1.0, %v11320_v10  ;;  %vm854_vm10 = vmand %vm9695_vm5, %vm846_vm4  ;;  %11349 = vst [vmem:[#allocation112_spill] sm:$0xff] %v9858_v12 }
 0x689   :  { %v1463_v19 = vadd.f32 %v1455_v28, %v1381_v30  ;;  %v1551_v28 = vmul.f32 %v9545_v44, %v9769_v53  ;;  %11342 = vst [vmem:[#allocation107_spill] sm:$0xff] %v9805_v34  ;;  %vm9851_vm9 = vcmp.eq.f32.partialorder %v9307_v27, %v9376_v58 }
 0x68a   :  { %v9785_v30 = vpop.permute.xlu2 %1485  ;;  %v1696_v44 = vadd.f32 %v1688_v4, %v1648_v46  ;;  %v1736_v4 = vmul.f32 %v9330_v38, %v9802_v35  ;;  %v9818_v46 = vsel %vm847_vm0, 1.0, %v11320_v10  ;;  %vm654_vm0 = vcmp.ge.f32.partialorder %v9675_v2, 0.0 }
 0x68b   :  { %v1511_v20 = vadd.f32 %v1503_v32, %v1463_v19  ;;  %v9808_v19 = vsel %vm782_vm14, 1.0, %v11320_v10  ;;  %v1686_v32 = vpop.permute.xlu0 %1685  ;;  %v1784_v38 = vmul.f32 %v9332_v40, %v9818_v46  ;;  %vm662_vm4 = vmand %vm9695_vm5, %vm654_vm0 }
 0x68c   :  { %1625 = vperm.xlu1 %7701, %v9357_v50   ;;  %v9794_v24 = vpop.permute.xlu1 %1533  ;;  %11343 = vst [vmem:[#allocation108_spill] sm:$0xff] %v9808_v19  ;;  %v1647_v16 = vmul.f32 %v9590_v11, %v9808_v19  ;;  %v1744_v55 = vadd.f32 %v1736_v4, %v1696_v44  ;;  %v9837_v44 = vsel %vm830_vm6, 1.0, %v11320_v10 }
 0x68d   :  { %v1559_v36 = vadd.f32 %v1551_v28, %v1511_v20  ;;  %v1599_v20 = vmul.f32 %v9618_v41, %v9805_v34  ;;  %v9822_v28 = vsel %vm806_vm1, 1.0, %v11320_v10  ;;  %11345 = vst [vmem:[#allocation110_spill] sm:$0xff] %v9837_v44 }
 0x68e   :  { %11344 = vst [vmem:[#allocation109_spill] sm:$0xff] %v9822_v28  ;;  %v1792_v34 = vadd.f32 %v1784_v38, %v1744_v55 }
 0x68f   :  { %v1607_v53 = vadd.f32 %v1599_v20, %v1559_v36  ;;  %v9834_v36 = vsub.f32 %v9278_v13, %v9371_v54 }
 0x690   :  { %v1800_v13 = vmul.f32 0.17677669, %v1792_v34 }
 0x691   :  { %v1655_v11 = vadd.f32 %v1647_v16, %v1607_v53  ;;  %v9844_v53 = vsel %vm854_vm10, 1.0, %v11320_v10  ;;  %vm677_vm12 = vcmp.eq.f32.partialorder %v9834_v36, 0.0  ;;  %vm701_vm13 = vcmp.eq.f32.partialorder %v9834_v36, 1.0 }
 0x692   :  { %v1734_v41 = vpop.permute.xlu2 %1733  ;;  %11346 = vst [vmem:[#allocation111_spill] sm:$0xff] %v9844_v53  ;;  %vm685_vm14 = vmand %vm9851_vm9, %vm677_vm12  ;;  %vm725_vm11 = vcmp.eq.f32.partialorder %v9834_v36, 2.0  ;;  %v9864_v45 = vadd.f32 %v1800_v13, %v9858_v12  ;;  %vm749_vm6 = vcmp.eq.f32.partialorder %v9834_v36, 3.0  ;;  %vm773_vm10 = vcmp.eq.f32.partialorder %v9834_v36, 4.0  ;;  %v11405_v12 = vld [vmem:[#allocation90_spill] sm:$0xff] }
 0x693   :  { %v1743_v40 = vmul.f32 %v1734_v41, %v9837_v44  ;;  %vm709_vm1 = vmand %vm9851_vm9, %vm701_vm13  ;;  %v9871_v27 = vsel %vm685_vm14, 1.0, %v11320_v10  ;;  %v1538_v38 = vpop.permute.xlu0 %1537  ;;  %vm797_vm8 = vcmp.eq.f32.partialorder %v9834_v36, 5.0  ;;  %vm821_vm13 = vcmp.eq.f32.partialorder %v9834_v36, 6.0 }
 0x694   :  { %7703 = vset.pattern.permute.xlu1 %v11326_v42  ;;  %11350 = vst [vmem:[#allocation113_spill] sm:$0xff] %v9871_v27  ;;  %vm733_vm3 = vmand %vm9851_vm9, %vm725_vm11  ;;  %v1454_v34 = vmul.f32 %v9563_v57, %v9871_v27  ;;  %v1817_v2 = vsel %vm1816_vm15, %v9864_v45, -inf  ;;  %v9892_v57 = vsel %vm662_vm4, 0.0, %v11310_v1  ;;  %vm845_vm11 = vcmp.eq.f32.partialorder %v9834_v36, 7.0 }
 0x695   :  { %1673 = vperm.xlu1 %7703, %v9357_v50   ;;  %v1695_v50 = vmul.f32 %v1686_v32, %v9822_v28  ;;  %v1782_v32 = vpop.permute.xlu1 %1781  ;;  %11353 = vst [vmem:[#allocation116_spill] sm:$0xff] %v9892_v57  ;;  %vm757_vm5 = vmand %vm9851_vm9, %vm749_vm6 }
 0x696   :  { %v1791_v4 = vmul.f32 %v1782_v32, %v9844_v53  ;;  %v1462_v41 = vadd.f32 %v1454_v34, %v9699_v29  ;;  %vm781_vm7 = vmand %vm9851_vm9, %vm773_vm10 }
 0x697   :  { %v1703_v19 = vadd.f32 %v1695_v50, %v1655_v11  ;;  %v9883_v50 = vsel %vm709_vm1, 1.0, %v11320_v10  ;;  %vm805_vm12 = vmand %vm9851_vm9, %vm797_vm8  ;;  %vm653_vm1 = vcmp.ge.f32.partialorder %v9834_v36, 0.0 }
 0x698   :  { %11351 = vst [vmem:[#allocation114_spill] sm:$0xff] %v9883_v50  ;;  %v1502_v11 = vmul.f32 %v9533_v60, %v9883_v50  ;;  %vm829_vm14 = vmand %vm9851_vm9, %vm821_vm13  ;;  %v11396_v50 = vld [vmem:[#allocation81_spill] sm:$0xff] }
 0x699   :  { %v1751_v55 = vadd.f32 %v1743_v40, %v1703_v19  ;;  %vm853_vm0 = vmand %vm9851_vm9, %vm845_vm11 }
 0x69a   :  { %v1510_v40 = vadd.f32 %v1502_v11, %v1462_v41  ;;  %v1778_v41 = vpop.permute.xlu2 %1777 }
 0x69b   :  { %v1799_v19 = vadd.f32 %v1791_v4, %v1751_v55  ;;  %v9906_v4 = vsel %vm757_vm5, 1.0, %v11320_v10 }
 0x69c   :  { %11354 = vst [vmem:[#allocation117_spill] sm:$0xff] %v9906_v4  ;;  %v1598_v29 = vmul.f32 %v9537_v9, %v9906_v4 }
 0x69d   :  { %7706 = vset.pattern.permute.xlu1 %v11313_v3  ;;  %v1807_v16 = vmul.f32 0.17677669, %v1799_v19  ;;  %v9914_v19 = vsel %vm781_vm7, 1.0, %v11320_v10 }
 0x69e   :  { %1725 = vperm.xlu1 %7706, %v9384_v62   ;;  %11355 = vst [vmem:[#allocation118_spill] sm:$0xff] %v9914_v19  ;;  %v1646_v34 = vmul.f32 %v9561_v23, %v9914_v19  ;;  %v9930_v23 = vsel %vm829_vm14, 1.0, %v11320_v10  ;;  %v11394_v19 = vld [vmem:[#allocation79_spill] sm:$0xff] }
 0x69f   :  { %v9897_v32 = vadd.f32 %v1807_v16, %v9892_v57  ;;  %11357 = vst [vmem:[#allocation120_spill] sm:$0xff] %v9930_v23  ;;  %v1742_v11 = vmul.f32 %v9740_v8, %v9930_v23 }
 0x6a1   :  { %v1838_v55 = vsel %vm1816_vm15, %v9897_v32, -inf }
 0x6a6   :  { %7708 = vset.pattern.permute.xlu1 %v11315_v63 }
 0x6a7   :  { %1773 = vperm.xlu1 %7708, %v9384_v62   ;;  %v9889_v62 = vsel %vm733_vm3, 1.0, %v11320_v10  ;;  %vm661_vm3 = vmand %vm9851_vm9, %vm653_vm1  ;;  %vm9959_vm9 = vcmp.eq.f32.partialorder %v9493_v59, %v9376_v58 }
 0x6a8   :  { %11352 = vst [vmem:[#allocation115_spill] sm:$0xff] %v9889_v62  ;;  %v1550_v48 = vmul.f32 %v1538_v38, %v9889_v62 }
 0x6a9   :  { %1818 = vmax.xlane.f32.xlu2 %v1817_v2  ;;  %v9922_v2 = vsel %vm805_vm12, 1.0, %v11320_v10 }
 0x6aa   :  { %v1558_v60 = vadd.f32 %v1550_v48, %v1510_v40  ;;  %11356 = vst [vmem:[#allocation119_spill] sm:$0xff] %v9922_v2  ;;  %v1694_v9 = vmul.f32 %v9727_v6, %v9922_v2  ;;  %v9937_v40 = vsel %vm853_vm0, 1.0, %v11320_v10 }
 0x6ab   :  { %11358 = vst [vmem:[#allocation121_spill] sm:$0xff] %v9937_v40  ;;  %v1790_v6 = vmul.f32 %v1778_v41, %v9937_v40 }
 0x6ac   :  { %v1606_v13 = vadd.f32 %v1598_v29, %v1558_v60  ;;  %v9944_v29 = vsel %vm661_vm3, 0.0, %v11310_v1  ;;  %vm10011_vm3 = vcmp.eq.f32.partialorder %v9559_v31, %v9376_v58 }
 0x6ad   :  { %11359 = vst [vmem:[#allocation122_spill] sm:$0xff] %v9944_v29 }
 0x6ae   :  { %v1654_v16 = vadd.f32 %v1646_v34, %v1606_v13 }
 0x6af   :  { %7713 = vset.pattern.permute.xlu1 %v11316_v0 }
 0x6b0   :  { %v1702_v38 = vadd.f32 %v1694_v9, %v1654_v16 }
 0x6b1   :  { %1839 = vmax.xlane.f32.xlu2 %v1838_v55 }
 0x6b2   :  { %v1750_v48 = vadd.f32 %v1742_v11, %v1702_v38  ;;  %v1530_v38 = vpop.permute.xlu0 %1529 }
 0x6b4   :  { %v1798_v60 = vadd.f32 %v1790_v6, %v1750_v48 }
 0x6b6   :  { %v1806_v55 = vmul.f32 0.17677669, %v1798_v60  ;;  %v9955_v60 = vsub.f32 %v9553_v15, %v9371_v54 }
 0x6b8   :  { %v9947_v13 = vadd.f32 %v1806_v55, %v9944_v29  ;;  %vm675_vm4 = vcmp.eq.f32.partialorder %v9955_v60, 0.0  ;;  %vm699_vm6 = vcmp.eq.f32.partialorder %v9955_v60, 1.0  ;;  %vm723_vm10 = vcmp.eq.f32.partialorder %v9955_v60, 2.0 }
 0x6b9   :  { %vm683_vm5 = vmand %vm9959_vm9, %vm675_vm4  ;;  %vm747_vm8 = vcmp.eq.f32.partialorder %v9955_v60, 3.0  ;;  %vm771_vm13 = vcmp.eq.f32.partialorder %v9955_v60, 4.0  ;;  %vm795_vm0 = vcmp.eq.f32.partialorder %v9955_v60, 5.0  ;;  %vm819_vm4 = vcmp.eq.f32.partialorder %v9955_v60, 6.0 }
 0x6ba   :  { %v1835_v8 = vsel %vm1816_vm15, %v9947_v13, -inf  ;;  %vm707_vm7 = vmand %vm9959_vm9, %vm699_vm6  ;;  %v9976_v59 = vsel %vm683_vm5, 1.0, %v11320_v10 }
 0x6bb   :  { %11362 = vst [vmem:[#allocation123_spill] sm:$0xff] %v9976_v59  ;;  %vm731_vm12 = vmand %vm9959_vm9, %vm723_vm10  ;;  %v9984_v15 = vsel %vm707_vm7, 1.0, %v11320_v10  ;;  %vm843_vm10 = vcmp.eq.f32.partialorder %v9955_v60, 7.0 }
 0x6bc   :  { %11363 = vst [vmem:[#allocation124_spill] sm:$0xff] %v9984_v15  ;;  %vm755_vm14 = vmand %vm9959_vm9, %vm747_vm8 }
 0x6bd   :  { %vm779_vm11 = vmand %vm9959_vm9, %vm771_vm13 }
 0x6be   :  { %vm803_vm6 = vmand %vm9959_vm9, %vm795_vm0 }
 0x6bf   :  { %vm827_vm8 = vmand %vm9959_vm9, %vm819_vm4 }
 0x6c0   :  { %v1873_v34 = vpop.xlane.xlu2 %1872  ;;  %vm10034_vm13 = vmand %vm9959_vm9, %vm843_vm10 }
 0x6c1   :  { %7872 = vrcp.f32 %v1873_v34 }
 0x6c7   :  { %v7873_v9 = vpop.eup %7872 }
 0x6c8   :  { %v1899_v36 = vmul.f32 %v7873_v9, %v9551_v5  ;;  %v1578_v20 = vpop.permute.xlu2 %1577 }
 0x6ca   :  { %v1907_v41 = vpack.c.bf16 %v1899_v36, %v1899_v36  ;;  %v1331_v36 = vpop.f32.mrf.mxu0 }
 0x6cc   :  { %v1944_v55 = vunpack.c.l.b16 %v1907_v41 }
 0x6d0   :  { %v9964_v5 = vpop.permute.xlu2 %1629 }
 0x6d1   :  { %1836 = vmax.xlane.f32.xlu1 %v1835_v8 }
 0x6d8   :  { %v9998_v41 = vpop.permute.xlu2 %1677 }
 0x6e0   :  { %v1770_v53 = vpop.permute.xlu2 %1769 }
 0x6e6   :  { %v1876_v16 = vpop.xlane.xlu1 %1875 }
 0x6e7   :  { %7874 = vrcp.f32 %v1876_v16  ;;  %v9966_v16 = vpop.permute.xlu0 %1581 }
 0x6ed   :  { %v7875_v11 = vpop.eup %7874 }
 0x6ee   :  { %v1900_v48 = vmul.f32 %v7875_v11, %v9610_v26  ;;  %v1452_v26 = vmul.f32 %v9668_v18, %v9976_v59  ;;  %v9993_v11 = vsub.f32 %v9549_v61, %v9371_v54  ;;  %v9996_v18 = vsel %vm731_vm12, 1.0, %v11320_v10  ;;  %v11393_v59 = vld [vmem:[#allocation78_spill] sm:$0xff] }
 0x6ef   :  { %11364 = vst [vmem:[#allocation125_spill] sm:$0xff] %v9996_v18 }
 0x6f0   :  { %v1908_v6 = vpack.c.bf16 %v1900_v48, %v1900_v48  ;;  %v1460_v48 = vadd.f32 %v1452_v26, %v1331_v36  ;;  %vm676_vm1 = vcmp.eq.f32.partialorder %v9993_v11, 0.0  ;;  %vm700_vm7 = vcmp.eq.f32.partialorder %v9993_v11, 1.0 }
 0x6f1   :  { %vm684_vm5 = vmand %vm10011_vm3, %vm676_vm1  ;;  %vm724_vm12 = vcmp.eq.f32.partialorder %v9993_v11, 2.0  ;;  %v10039_v36 = vsel %vm803_vm6, 1.0, %v11320_v10  ;;  %vm651_vm1 = vcmp.ge.f32.partialorder %v9955_v60, 0.0  ;;  %vm772_vm4 = vcmp.eq.f32.partialorder %v9993_v11, 4.0 }
 0x6f2   :  { %v1945_v8 = vunpack.c.l.b16 %v1908_v6  ;;  %v1548_v6 = vmul.f32 %v1530_v38, %v9996_v18  ;;  %v10017_v38 = vsel %vm779_vm11, 1.0, %v11320_v10  ;;  %v10029_v31 = vsel %vm684_vm5, 1.0, %v11320_v10  ;;  %11372 = vst [vmem:[#allocation129_spill] sm:$0xff] %v10039_v36  ;;  %vm732_vm0 = vmand %vm10011_vm3, %vm724_vm12 }
 0x6f3   :  { %11368 = vst [vmem:[#allocation127_spill] sm:$0xff] %v10017_v38  ;;  %vm748_vm11 = vcmp.eq.f32.partialorder %v9993_v11, 3.0  ;;  %vm796_vm5 = vcmp.eq.f32.partialorder %v9993_v11, 5.0  ;;  %vm659_vm10 = vmand %vm9959_vm9, %vm651_vm1 }
 0x6f4   :  { %v1946_v57 = vpack.c.b16 %v1945_v8, %v1944_v55  ;;  %v1722_v55 = vpop.permute.xlu0 %1721  ;;  %11369 = vst [vmem:[#allocation128_spill] sm:$0xff] %v10029_v31  ;;  %vm756_vm6 = vmand %vm10011_vm3, %vm748_vm11  ;;  %vm652_vm11 = vcmp.ge.f32.partialorder %v9993_v11, 0.0 }
 0x6f5   :  { %vm804_vm9 = vmand %vm10011_vm3, %vm796_vm5 }
 0x6f6   :  { %6770 = vmatmul.msk.bf16.vlgmr.msra.gmra.mxu1 %vm1816_vm15, %v1946_v57  ;;  %v1500_v57 = vmul.f32 %v9681_v51, %v9984_v15  ;;  %v10006_v51 = vsel %vm755_vm14, 1.0, %v11320_v10  ;;  %vm708_vm14 = vmand %vm10011_vm3, %vm700_vm7 }
 0x6f7   :  { %11365 = vst [vmem:[#allocation126_spill] sm:$0xff] %v10006_v51  ;;  %v1596_v61 = vmul.f32 %v1578_v20, %v10006_v51  ;;  %vm780_vm7 = vmand %vm10011_vm3, %vm772_vm4  ;;  %v11392_v51 = vld [vmem:[#allocation77_spill] sm:$0xff] }
 0x6f8   :  { %v1508_v54 = vadd.f32 %v1500_v57, %v1460_v48  ;;  %v1453_v48 = vmul.f32 %v9628_v21, %v10029_v31  ;;  %v10055_v21 = vsel %vm708_vm14, 1.0, %v11320_v10 }
 0x6f9   :  { %11374 = vst [vmem:[#allocation131_spill] sm:$0xff] %v10055_v21  ;;  %v1501_v57 = vmul.f32 %v9785_v30, %v10055_v21 }
 0x6fa   :  { %v1556_v26 = vadd.f32 %v1548_v6, %v1508_v54 }
 0x6fc   :  { %v1604_v58 = vadd.f32 %v1596_v61, %v1556_v26  ;;  %v1822_v6 = vpop.xlane.xlu0 %1821  ;;  %v10048_v26 = vsel %vm827_vm8, 1.0, %v11320_v10  ;;  %vm820_vm8 = vcmp.eq.f32.partialorder %v9993_v11, 6.0 }
 0x6fd   :  { %11373 = vst [vmem:[#allocation130_spill] sm:$0xff] %v10048_v26  ;;  %v1740_v44 = vmul.f32 %v1722_v55, %v10048_v26  ;;  %vm828_vm12 = vmand %vm10011_vm3, %vm820_vm8 }
 0x6fe   :  { %v1626_v9 = vpop.permute.xlu1 %1625 }
 0x6ff   :  { %v1644_v20 = vmul.f32 %v1626_v9, %v10017_v38  ;;  %v1333_v38 = vpop.f32.mrf.mxu0 }
 0x701   :  { %v1652_v54 = vadd.f32 %v1644_v20, %v1604_v58  ;;  %v10061_v20 = vsel %vm10034_vm13, 1.0, %v11320_v10  ;;  %v1842_v58 = vsub.f32 %v9709_v56, %v1822_v6  ;;  %v10091_v6 = vsel %vm659_vm10, 0.0, %v11310_v1 }
 0x702   :  { %11375 = vst [vmem:[#allocation132_spill] sm:$0xff] %v10061_v20  ;;  %v1788_v55 = vmul.f32 %v1770_v53, %v10061_v20  ;;  %vm844_vm13 = vcmp.eq.f32.partialorder %v9993_v11, 7.0 }
 0x703   :  { %11379 = vst [vmem:[#allocation136_spill] sm:$0xff] %v10091_v6  ;;  %vm852_vm14 = vmand %vm10011_vm3, %vm844_vm13 }
 0x707   :  { %v1674_v9 = vpop.permute.xlu1 %1673 }
 0x708   :  { %v1692_v61 = vmul.f32 %v1674_v9, %v10039_v36  ;;  %v1461_v9 = vadd.f32 %v1453_v48, %v1333_v38 }
 0x70a   :  { %v1700_v28 = vadd.f32 %v1692_v61, %v1652_v54  ;;  %v10068_v54 = vsel %vm732_vm0, 1.0, %v11320_v10  ;;  %v1509_v53 = vadd.f32 %v1501_v57, %v1461_v9  ;;  %v10099_v9 = vsel %vm804_vm9, 1.0, %v11320_v10  ;;  %vm660_vm0 = vmand %vm10011_vm3, %vm652_vm11 }
 0x70b   :  { %11376 = vst [vmem:[#allocation133_spill] sm:$0xff] %v10068_v54  ;;  %v1549_v56 = vmul.f32 %v9794_v24, %v10068_v54  ;;  %v10088_v24 = vsel %vm780_vm7, 1.0, %v11320_v10 }
 0x70c   :  { %v1748_v60 = vadd.f32 %v1740_v44, %v1700_v28  ;;  %v10080_v28 = vsel %vm756_vm6, 1.0, %v11320_v10  ;;  %v1851_v44 = vmul.f32 1.442695, %v1842_v58  ;;  %11378 = vst [vmem:[#allocation135_spill] sm:$0xff] %v10088_v24  ;;  %v1645_v58 = vmul.f32 %v9964_v5, %v10088_v24 }
 0x70d   :  { %11377 = vst [vmem:[#allocation134_spill] sm:$0xff] %v10080_v28  ;;  %v1597_v34 = vmul.f32 %v9966_v16, %v10080_v28  ;;  %v1557_v61 = vadd.f32 %v1549_v56, %v1509_v53  ;;  %v10106_v56 = vsel %vm828_vm12, 1.0, %v11320_v10 }
 0x70e   :  { %v1796_v38 = vadd.f32 %v1788_v55, %v1748_v60  ;;  %11380 = vst [vmem:[#allocation137_spill] sm:$0xff] %v10099_v9  ;;  %7876 = vpow2.f32 %v1851_v44  ;;  %v1693_v60 = vmul.f32 %v9998_v41, %v10099_v9 }
 0x70f   :  { %v1605_v55 = vadd.f32 %v1597_v34, %v1557_v61  ;;  %11381 = vst [vmem:[#allocation138_spill] sm:$0xff] %v10106_v56 }
 0x710   :  { %v1726_v30 = vpop.permute.xlu1 %1725  ;;  %v1804_v48 = vmul.f32 0.17677669, %v1796_v38 }
 0x711   :  { %v1653_v5 = vadd.f32 %v1645_v58, %v1605_v55  ;;  %v1741_v38 = vmul.f32 %v1726_v30, %v10106_v56 }
 0x712   :  { %v1812_v16 = vadd.f32 %v1804_v48, %v10091_v6  ;;  %v10112_v48 = vsel %vm852_vm14, 1.0, %v11320_v10  ;;  %v10121_v10 = vsel %vm660_vm0, 0.0, %v11310_v1 }
 0x713   :  { %v1701_v53 = vadd.f32 %v1693_v60, %v1653_v5  ;;  %11382 = vst [vmem:[#allocation139_spill] sm:$0xff] %v10112_v48 }
 0x714   :  { %v1829_v57 = vsel %vm1816_vm15, %v1812_v16, -inf  ;;  %v7877_v44 = vpop.eup %7876  ;;  %11383 = vst [vmem:[#allocation140_spill] sm:$0xff] %v10121_v10 }
 0x715   :  { %1830 = vmax.xlane.f32.xlu0 %v1829_v57  ;;  %v1749_v41 = vadd.f32 %v1741_v38, %v1701_v53  ;;  %v1868_v58 = vsel %vm1816_vm15, %v7877_v44, 0.0 }
 0x719   :  { %v1774_v34 = vpop.permute.xlu1 %1773 }
 0x71a   :  { %v1789_v61 = vmul.f32 %v1774_v34, %v10112_v48  ;;  %v11391_v48 = vld [vmem:[#allocation76_spill] sm:$0xff] }
 0x71c   :  { %v1797_v6 = vadd.f32 %v1789_v61, %v1749_v41  ;;  %v1819_v20 = vpop.xlane.xlu2 %1818 }
 0x71d   :  { %v1841_v30 = vsub.f32 %v9864_v45, %v1819_v20  ;;  %1869 = vadd.xlane.f32.xlu0 %v1868_v58  ;;  %v7438_v58 = vld [vmem:[#allocation11 + $0x18] sm:$0xff] }
 0x71e   :  { %v1805_v55 = vmul.f32 0.17677669, %v1797_v6  ;;  %1989 = vmatpush.bf16.msra.mxu2 %v7438_v58 }
 0x71f   :  { %v1849_v60 = vmul.f32 1.442695, %v1841_v30  ;;  %v7437_v30 = vld [vmem:[#allocation11 + $0x10] sm:$0xff] }
 0x720   :  { %v1813_v11 = vadd.f32 %v1805_v55, %v10121_v10 }
 0x721   :  { %7878 = vpow2.f32 %v1849_v60 }
 0x722   :  { %v1832_v57 = vsel %vm1816_vm15, %v1813_v11, -inf  ;;  %1990 = vmatpush.bf16.msra.mxu2 %v7437_v30 }
 0x723   :  { %1833 = vmax.xlane.f32.xlu1 %v1832_v57 }
 0x724   :  { %v1840_v5 = vpop.xlane.xlu2 %1839 }
 0x725   :  { %v1848_v38 = vsub.f32 %v9897_v32, %v1840_v5 }
 0x727   :  { %v7879_v53 = vpop.eup %7878  ;;  %v1863_v8 = vmul.f32 1.442695, %v1848_v38 }
 0x728   :  { %v1865_v34 = vsel %vm1816_vm15, %v7879_v53, 0.0 }
 0x729   :  { %7880 = vpow2.f32 %v1863_v8  ;;  %1866 = vadd.xlane.f32.xlu2 %v1865_v34 }
 0x72f   :  { %v7881_v45 = vpop.eup %7880 }
 0x730   :  { %v1886_v20 = vsel %vm1816_vm15, %v7881_v45, 0.0 }
 0x731   :  { %1887 = vadd.xlane.f32.xlu2 %v1886_v20 }
 0x744   :  { %v1837_v1 = vpop.xlane.xlu1 %1836 }
 0x745   :  { %v1847_v6 = vsub.f32 %v9947_v13, %v1837_v1 }
 0x747   :  { %v1861_v41 = vmul.f32 1.442695, %v1847_v6 }
 0x749   :  { %7882 = vpow2.f32 %v1861_v41  ;;  %2088 = vrot.lane.b32.xlu2 %v9223_v39, %s8767_s13 }
 0x74f   :  { %v7883_v61 = vpop.eup %7882 }
 0x750   :  { %v1883_v32 = vsel %vm1816_vm15, %v7883_v61, 0.0 }
 0x751   :  { %1884 = vadd.xlane.f32.xlu1 %v1883_v32 }
 0x773   :  { %v1962_v55 = vpop.f32.mrf.mxu1 }
 0x77b   :  { %v1964_v60 = vpop.f32.mrf.mxu1 }
 0x77c   :  { %v1967_v57 = vpack.c.bf16 %v1964_v60, %v1962_v55 }
 0x77e   :  { %6779 = vmatmul.msk.bf16.vlgmr.msra.gmra.mxu2 %vm922_vm2, %v1967_v57 }
 0x788   :  { %v1831_v5 = vpop.xlane.xlu0 %1830 }
 0x789   :  { %v1845_v13 = vsub.f32 %v1812_v16, %v1831_v5 }
 0x78b   :  { %v1857_v38 = vmul.f32 1.442695, %v1845_v13 }
 0x78d   :  { %7884 = vpow2.f32 %v1857_v38 }
 0x790   :  { %v1870_v34 = vpop.xlane.xlu0 %1869 }
 0x791   :  { %7886 = vrcp.f32 %v1870_v34 }
 0x793   :  { %v7885_v8 = vpop.eup %7884 }
 0x794   :  { %v1877_v20 = vsel %vm1816_vm15, %v7885_v8, 0.0 }
 0x795   :  { %1878 = vadd.xlane.f32.xlu0 %v1877_v20 }
 0x796   :  { %v1834_v1 = vpop.xlane.xlu1 %1833 }
 0x797   :  { %v1846_v6 = vsub.f32 %v1813_v11, %v1834_v1  ;;  %v7887_v58 = vpop.eup %7886 }
 0x798   :  { %v1898_v30 = vmul.f32 %v7887_v58, %v7877_v44 }
 0x799   :  { %v1859_v41 = vmul.f32 1.442695, %v1846_v6 }
 0x79a   :  { %v1906_v57 = vpack.c.bf16 %v1898_v30, %v1898_v30 }
 0x79b   :  { %7888 = vpow2.f32 %v1859_v41 }
 0x79c   :  { %v1867_v32 = vpop.xlane.xlu2 %1866  ;;  %v1916_v10 = vunpack.c.l.b16 %v1906_v57  ;;  %v7435_v57 = vld [vmem:[#allocation11] sm:$0xff] }
 0x79d   :  { %7890 = vrcp.f32 %v1867_v32 }
 0x7a1   :  { %v7889_v55 = vpop.eup %7888 }
 0x7a2   :  { %v1880_v60 = vsel %vm1816_vm15, %v7889_v55, 0.0 }
 0x7a3   :  { %v7891_v16 = vpop.eup %7890  ;;  %1881 = vadd.xlane.f32.xlu1 %v1880_v60 }
 0x7a4   :  { %v1897_v5 = vmul.f32 %v7891_v16, %v7879_v53  ;;  %v1888_v13 = vpop.xlane.xlu2 %1887 }
 0x7a5   :  { %7892 = vrcp.f32 %v1888_v13 }
 0x7a6   :  { %v1905_v38 = vpack.c.bf16 %v1897_v5, %v1897_v5 }
 0x7a8   :  { %v1915_v20 = vunpack.c.l.b16 %v1905_v38  ;;  %v7452_v38 = vld [vmem:[#allocation19 + $0x8] sm:$0xff] }
 0x7a9   :  { %2031 = vrot.lane.b32.xlu0 %v9223_v39, %s8736_s8  ;;  %v7436_v39 = vld [vmem:[#allocation11 + $0x8] sm:$0xff] }
 0x7aa   :  { %v1917_v11 = vpack.c.b16 %v1916_v10, %v1915_v20  ;;  %2018 = vmatpush.bf16.msra.mxu3 %v7436_v39 }
 0x7ab   :  { %v7893_v1 = vpop.eup %7892 }
 0x7ac   :  { %v2089_v34 = vpop.permute.xlu2 %2088  ;;  %6769 = vmatmul.msk.bf16.vlgmr.msra.gmra.mxu0 %vm1816_vm15, %v1917_v11  ;;  %v1904_v6 = vmul.f32 %v7893_v1, %v7881_v45  ;;  %v7451_v11 = vld [vmem:[#allocation19] sm:$0xff] }
 0x7ad   :  { %2101 = vmatpush.bf16.msrb.mxu2 %v2089_v34 }
 0x7ae   :  { %v1912_v32 = vpack.c.bf16 %v1904_v6, %v1904_v6  ;;  %2019 = vmatpush.bf16.msra.mxu3 %v7435_v57 }
 0x7b0   :  { %v2086_v30 = vunpack.c.l.b16 %v1912_v32 }
 0x7c4   :  { %v1885_v44 = vpop.xlane.xlu1 %1884 }
 0x7c5   :  { %7894 = vrcp.f32 %v1885_v44 }
 0x7cb   :  { %v7895_v41 = vpop.eup %7894 }
 0x7cc   :  { %v1903_v53 = vmul.f32 %v7895_v41, %v7883_v61 }
 0x7ce   :  { %v1911_v58 = vpack.c.bf16 %v1903_v53, %v1903_v53 }
 0x7d0   :  { %v2085_v60 = vunpack.c.l.b16 %v1911_v58 }
 0x7d2   :  { %v2087_v16 = vpack.c.b16 %v2086_v30, %v2085_v60  ;;  %v7442_v60 = vld [vmem:[#allocation11 + $0x38] sm:$0xff] }
 0x7d3   :  { %2130 = vmatpush.bf16.msrb.mxu3 %v7442_v60 }
 0x7d4   :  { %6799 = vmatmul.msk.bf16.vlgmr.msrb.gmra.mxu2 %vm1816_vm15, %v2087_v16 }
 0x801   :  { %v1992_v16 = vpop.f32.mrf.mxu2 }
 0x808   :  { %v1879_v10 = vpop.xlane.xlu0 %1878 }
 0x809   :  { %7896 = vrcp.f32 %v1879_v10  ;;  %v1994_v39 = vpop.f32.mrf.mxu2 }
 0x80f   :  { %v7897_v13 = vpop.eup %7896 }
 0x810   :  { %v1901_v45 = vmul.f32 %v7897_v13, %v7885_v8  ;;  %v2176_v8 = vpack.c.bf16 %v9155_v25, %v9151_v22  ;;  %v7440_v13 = vld [vmem:[#allocation11 + $0x28] sm:$0xff] }
 0x811   :  { %2073 = vmatpush.bf16.msrb.mxu1 %v7440_v13 }
 0x812   :  { %v1909_v34 = vpack.c.bf16 %v1901_v45, %v1901_v45 }
 0x814   :  { %v2028_v6 = vunpack.c.l.b16 %v1909_v34  ;;  %v7448_v34 = vld [vmem:[#allocation17 + $0x8] sm:$0xff] }
 0x816   :  { %v1882_v5 = vpop.xlane.xlu1 %1881 }
 0x817   :  { %7898 = vrcp.f32 %v1882_v5 }
 0x81b   :  { %v2032_v20 = vpop.permute.xlu0 %2031 }
 0x81c   :  { %2044 = vmatpush.bf16.msrb.mxu0 %v2032_v20 }
 0x81d   :  { %v7899_v61 = vpop.eup %7898 }
 0x81e   :  { %v1902_v44 = vmul.f32 %v7899_v61, %v7889_v55  ;;  %v7441_v55 = vld [vmem:[#allocation11 + $0x30] sm:$0xff] }
 0x81f   :  { %2131 = vmatpush.bf16.msrb.mxu3 %v7441_v55 }
 0x820   :  { %2199 = vmatpush.bf16.msra.mxu0 %v7452_v38  ;;  %v1910_v1 = vpack.c.bf16 %v1902_v44, %v1902_v44  ;;  %v7439_v38 = vld [vmem:[#allocation11 + $0x20] sm:$0xff] }
 0x821   :  { %2074 = vmatpush.bf16.msrb.mxu1 %v7439_v38 }
 0x822   :  { %v2029_v41 = vunpack.c.l.b16 %v1910_v1  ;;  %v7443_v1 = vld [vmem:[#allocation16] sm:$0xff] }
 0x824   :  { %2200 = vmatpush.bf16.msra.mxu0 %v7451_v11  ;;  %v2030_v32 = vpack.c.b16 %v2029_v41, %v2028_v6  ;;  %v7444_v11 = vld [vmem:[#allocation16 + $0x8] sm:$0xff]  ;;  %v7447_v6 = vld [vmem:[#allocation17] sm:$0xff] }
 0x825   :  { %2228 = vmatpush.bf16.msra.mxu1 %v7444_v11 }
 0x826   :  { %6789 = vmatmul.msk.bf16.vlgmr.msrb.gmra.mxu0 %vm1816_vm15, %v2030_v32 }
 0x829   :  { %v1936_v53 = vpop.f32.mrf.mxu0  ;;  %2229 = vmatpush.bf16.msra.mxu1 %v7443_v1 }
 0x831   :  { %v1938_v58 = vpop.f32.mrf.mxu0 }
 0x832   :  { %v1941_v30 = vpack.c.bf16 %v1938_v58, %v1936_v53 }
 0x834   :  { %6788 = vmatmul.msk.bf16.vlgmr.msra.gmra.mxu3 %vm922_vm2, %v1941_v30 }
 0x835   :  { %2329 = vmatpush.bf16.msra.mxu3 %v7448_v34  ;;  %v7456_v34 = vld [vmem:[#allocation20 + $0x8] sm:$0xff] }
 0x836   :  { %6817 = vmatmul.msk.bf16.vlgmr.msra.gmra.mxu0 %vm922_vm2, %v2176_v8  ;;  %2303 = vmatpush.bf16.msra.mxu2 %v7456_v34 }
 0x839   :  { %2330 = vmatpush.bf16.msra.mxu3 %v7447_v6 }
 0x857   :  { %v2103_v10 = vpop.f32.mrf.mxu2 }
 0x85f   :  { %v2105_v57 = vpop.f32.mrf.mxu2 }
 0x860   :  { %v2108_v5 = vpack.c.bf16 %v2105_v57, %v2103_v10 }
 0x862   :  { %6808 = vmatmul.msk.bf16.vlgmr.msrb.gmra.mxu3 %vm922_vm2, %v2108_v5 }
 0x8a3   :  { %v2046_v45 = vpop.f32.mrf.mxu0 }
 0x8ab   :  { %v2048_v20 = vpop.f32.mrf.mxu0 }
 0x8ac   :  { %v2051_v61 = vpack.c.bf16 %v2048_v20, %v2046_v45  ;;  %v7831_v45 = vld [vmem:[#allocation22] ss:$0 sm:$0xff] }
 0x8ae   :  { %6798 = vmatmul.msk.bf16.vlgmr.msrb.gmra.mxu1 %vm922_vm2, %v2051_v61 }
 0x8b3   :  { %v2202_v38 = vpop.f32.mrf.mxu0 }
 0x8b7   :  { %v2021_v44 = vpop.f32.mrf.mxu3 }
 0x8b8   :  { %v2022_v58 = vadd.f32 %v2021_v44, %v1992_v16  ;;  %v7455_v16 = vld [vmem:[#allocation20] sm:$0xff] }
 0x8b9   :  { %2304 = vmatpush.bf16.msra.mxu2 %v7455_v16 }
 0x8bf   :  { %v2023_v41 = vpop.f32.mrf.mxu3 }
 0x8c0   :  { %v2024_v30 = vadd.f32 %v2023_v41, %v1994_v39  ;;  %v2204_v39 = vpop.f32.mrf.mxu0 }
 0x8e5   :  { %v2133_v32 = vpop.f32.mrf.mxu3 }
 0x8ed   :  { %v2135_v10 = vpop.f32.mrf.mxu3 }
 0x92b   :  { %v2076_v53 = vpop.f32.mrf.mxu1 }
 0x92c   :  { %v2081_v8 = vadd.f32 %v2076_v53, %v2022_v58 }
 0x92e   :  { %v2138_v57 = vadd.f32 %v2133_v32, %v2081_v8 }
 0x933   :  { %v2078_v60 = vpop.f32.mrf.mxu1 }
 0x934   :  { %v2082_v55 = vadd.f32 %v2078_v60, %v2024_v30 }
 0x936   :  { %v2139_v5 = vadd.f32 %v2135_v10, %v2082_v55 }
 0x938   :  { %v2177_v13 = vpack.c.bf16 %v2139_v5, %v2138_v57 }
 0x93a   :  { %6826 = vmatmul.msk.bf16.vlgmr.msra.gmra.mxu1 %vm922_vm2, %v2177_v13  ;;  %6846 = vmatmul.msk.bf16.vlgmr.msra.gmra.mxu3 %vm922_vm2, %v2177_v13 }
 0x9b7   :  { %v2231_v20 = vpop.f32.mrf.mxu1 }
 0x9b8   :  { %v2232_v61 = vadd.f32 %v2231_v20, %v2202_v38 }
 0x9ba   :  { %v2239_v11 = vadd.f32 %v7831_v45, %v2232_v61 }
 0x9bc   :  { %v6827_v1 = vmul.f32 -1.442695, %v2239_v11 }
 0x9be   :  { %7900 = vpow2.f32 %v6827_v1 }
 0x9bf   :  { %v2233_v44 = vpop.f32.mrf.mxu1 }
 0x9c0   :  { %v2234_v6 = vadd.f32 %v2233_v44, %v2204_v39 }
 0x9c2   :  { %v2240_v41 = vadd.f32 %v7831_v45, %v2234_v6 }
 0x9c4   :  { %v7901_v32 = vpop.eup %7900  ;;  %v6828_v53 = vmul.f32 -1.442695, %v2240_v41 }
 0x9c5   :  { %v2247_v58 = vadd.f32 1.0, %v7901_v32 }
 0x9c6   :  { %7902 = vpow2.f32 %v6828_v53 }
 0x9c7   :  { %7904 = vrcp.f32 %v2247_v58  ;;  %v2260_v20 = vand.u32 2147483648, %v2247_v58  ;;  %vm2254_vm1 = vweird.f32 %v2247_v58  ;;  %v2258_v45 = vand.u32 2147483647, %v2247_v58 }
 0x9c9   :  { %v2261_v39 = vor.u32 1.1754944e-38, %v2260_v20  ;;  %vm2259_vm10 = vcmp.eq.f32.partialorder %v2258_v45, 8.507059e+37 }
 0x9cc   :  { %v7903_v30 = vpop.eup %7902 }
 0x9cd   :  { %v7905_v8 = vpop.eup %7904  ;;  %v2248_v60 = vadd.f32 1.0, %v7903_v30 }
 0x9ce   :  { %v2250_v55 = vmul.f32 %v7905_v8, %v2247_v58  ;;  %vm2255_vm3 = vweird.f32 %v7905_v8 }
 0x9cf   :  { %7906 = vrcp.f32 %v2248_v60  ;;  %vm2256_vm4 = vmor %vm2254_vm1, %vm2255_vm3  ;;  %v2275_v11 = vand.u32 2147483648, %v2248_v60  ;;  %v2273_v16 = vand.u32 2147483647, %v2248_v60  ;;  %vm2269_vm5 = vweird.f32 %v2248_v60 }
 0x9d0   :  { %v2251_v10 = vsub.f32 1.0, %v2250_v55  ;;  %vm2493_vm3 = vcmask 523264  }
 0x9d1   :  { %v2276_v41 = vor.u32 1.1754944e-38, %v2275_v11  ;;  %vm2274_vm8 = vcmp.eq.f32.partialorder %v2273_v16, 8.507059e+37 }
 0x9d2   :  { %v2252_v57 = vmul.f32 %v7905_v8, %v2251_v10  ;;  %v7832_v10 = vld [vmem:[#allocation23] ss:$0 sm:$0xff] }
 0x9d4   :  { %v2253_v38 = vadd.f32 %v7905_v8, %v2252_v57 }
 0x9d5   :  { %v7907_v5 = vpop.eup %7906 }
 0x9d6   :  { %v2265_v13 = vmul.f32 %v7907_v5, %v2248_v60  ;;  %v2257_v1 = vsel %vm2256_vm4, %v7905_v8, %v2253_v38  ;;  %vm2270_vm6 = vweird.f32 %v7907_v5  ;;  %v2332_v8 = vpop.f32.mrf.mxu3 }
 0x9d7   :  { %v2262_v6 = vsel %vm2259_vm10, %v2261_v39, %v2257_v1  ;;  %vm2271_vm7 = vmor %vm2269_vm5, %vm2270_vm6 }
 0x9d8   :  { %v2266_v61 = vsub.f32 1.0, %v2265_v13  ;;  %v2279_v30 = vmul.f32 %v9151_v22, %v2262_v6 }
 0x9da   :  { %v2267_v34 = vmul.f32 %v7907_v5, %v2266_v61 }
 0x9dc   :  { %v2268_v44 = vadd.f32 %v7907_v5, %v2267_v34 }
 0x9de   :  { %v2272_v32 = vsel %vm2271_vm7, %v7907_v5, %v2268_v44  ;;  %v2334_v38 = vpop.f32.mrf.mxu3 }
 0x9df   :  { %v2277_v53 = vsel %vm2274_vm8, %v2276_v41, %v2272_v32  ;;  %v7454_v32 = vld [vmem:[#allocation19 + $0x18] sm:$0xff] }
 0x9e0   :  { %v2280_v58 = vmul.f32 %v9155_v25, %v2277_v53  ;;  %2534 = vmatpush.bf16.msrb.mxu2 %v7454_v32 }
 0x9e2   :  { %v2281_v55 = vpack.c.bf16 %v2280_v58, %v2279_v30  ;;  %v6933_v30 = vld [vmem:[%s11284_s25 + $0x48] sm:$0xf]  ;;  %v7469_v58 = vld [vmem:[%s11284_s25 + $0x50] sm:$0xf0] }
 0x9e4   :  { %6837 = vmatmul.msk.bf16.vlgmr.msra.gmra.mxu2 %vm922_vm2, %v2281_v55  ;;  %v7453_v55 = vld [vmem:[#allocation19 + $0x10] sm:$0xff] }
 0x9e5   :  { %2535 = vmatpush.bf16.msrb.mxu2 %v7453_v55 }
 0xa67   :  { %v2306_v57 = vpop.f32.mrf.mxu2 }
 0xa68   :  { %v2333_v13 = vadd.f32 %v2332_v8, %v2306_v57  ;;  %v6934_v8 = vor.u32 %v7469_v58, %v6933_v30 }
 0xa6a   :  { %v2340_v60 = vadd.f32 %v7832_v10, %v2333_v13  ;;  %2804 = vmatpush.bf16.msra.mxu2 %v6934_v8  ;;  %v7466_v13 = vld [vmem:[%s11284_s25 + $0x38] sm:$0xf0] }
 0xa6c   :  { %7908 = vtanh.f32 %v2340_v60 }
 0xa6f   :  { %v2308_v20 = vpop.f32.mrf.mxu2 }
 0xa70   :  { %v2335_v61 = vadd.f32 %v2334_v38, %v2308_v20  ;;  %v10168_v20 = vpack.c.bf16 %v9200_v47, %v9200_v47 }
 0xa72   :  { %v7909_v5 = vpop.eup %7908  ;;  %v2341_v45 = vadd.f32 %v7832_v10, %v2335_v61 }
 0xa73   :  { %v2344_v11 = vsub.f32 %v7909_v5, %v9151_v22 }
 0xa74   :  { %7910 = vtanh.f32 %v2341_v45  ;;  %v2909_v45 = vsel %vm922_vm2, %v10168_v20, 0 }
 0xa75   :  { %2348 = vrot.lane.b32.xlu1 %v2344_v11, %s8767_s13 }
 0xa7a   :  { %v7911_v34 = vpop.eup %7910 }
 0xa7b   :  { %v2345_v1 = vsub.f32 %v7911_v34, %v9155_v25 }
 0xa7d   :  { %2350 = vrot.lane.b32.xlu0 %v2345_v1, %s8767_s13 }
 0xae7   :  { %v2349_v16 = vpop.permute.xlu1 %2348 }
 0xae8   :  { %v2354_v39 = vmul.f32 %v2349_v16, %v2262_v6  ;;  %v6921_v6 = vld [vmem:[%s11284_s25 + $0x30] sm:$0xf] }
 0xae9   :  { %v6922_v60 = vor.u32 %v7466_v13, %v6921_v6  ;;  %v7459_v6 = vld [vmem:[#allocation25] sm:$0xff] }
 0xaea   :  { %2358 = vrot.lane.b32.xlu2 %v2354_v39, %s8765_s18 }
 0xaeb   :  { %2805 = vmatpush.bf16.msra.mxu2 %v6922_v60 }
 0xaef   :  { %v2351_v44 = vpop.permute.xlu0 %2350 }
 0xaf0   :  { %v2355_v41 = vmul.f32 %v2351_v44, %v2277_v53 }
 0xaf2   :  { %2360 = vrot.lane.b32.xlu1 %v2355_v41, %s8765_s18 }
 0xb44   :  { %v2359_v10 = vpop.permute.xlu2 %2358 }
 0xb45   :  { %v10160_v57 = vadd.f32 %v9151_v22, %v2359_v10  ;;  %v7460_v10 = vld [vmem:[#allocation25 + $0x8] sm:$0xff] }
 0xb46   :  { %2446 = vmatpush.bf16.msrb.mxu0 %v7460_v10 }
 0xb47   :  { %v2366_v53 = vsel %vm922_vm2, %v10160_v57, 0.0 }
 0xb48   :  { %2367 = vadd.xlane.f32.xlu0 %v2366_v53 }
 0xb4a   :  { %2447 = vmatpush.bf16.msrb.mxu0 %v7459_v6 }
 0xb64   :  { %v2361_v38 = vpop.permute.xlu1 %2360 }
 0xb65   :  { %v10171_v61 = vadd.f32 %v9155_v25, %v2361_v38 }
 0xb67   :  { %v2369_v22 = vsel %vm922_vm2, %v10171_v61, 0.0  ;;  %v2511_v5 = vpack.c.bf16 %v10171_v61, %v10160_v57 }
 0xb68   :  { %2370 = vadd.xlane.f32.xlu2 %v2369_v22 }
 0xb69   :  { %6881 = vmatmul.msk.bf16.vlgmr.msrb.gmra.mxu2 %vm922_vm2, %v2511_v5 }
 0xb6a   :  { %2918 = vmatpush.bf16.xpose.msrb.mxu2 %v2909_v45 }
 0xbbb   :  { %v2368_v11 = vpop.xlane.xlu0 %2367 }
 0xbbc   :  { %v2372_v47 = vmul.f32 %v2368_v11, %v9159_v33 }
 0xbbe   :  { %v2374_v34 = vsub.f32 %v10160_v57, %v2372_v47 }
 0xbc0   :  { %v2376_v25 = vmul.f32 %v2374_v34, %v2374_v34 }
 0xbc2   :  { %v2378_v1 = vsel %vm922_vm2, %v2376_v25, 0.0 }
 0xbc3   :  { %2379 = vadd.xlane.f32.xlu1 %v2378_v1 }
 0xbdb   :  { %v2371_v16 = vpop.xlane.xlu2 %2370 }
 0xbdc   :  { %v2373_v39 = vmul.f32 %v2371_v16, %v9159_v33 }
 0xbde   :  { %v2375_v44 = vsub.f32 %v10171_v61, %v2373_v39 }
 0xbe0   :  { %v2377_v41 = vmul.f32 %v2375_v44, %v2375_v44 }
 0xbe2   :  { %v2381_v32 = vsel %vm922_vm2, %v2377_v41, 0.0 }
 0xbe3   :  { %2382 = vadd.xlane.f32.xlu0 %v2381_v32  ;;  %v8062_v32 = vld [vmem:[#allocation14] sm:$0xf] }
 0xc36   :  { %v2380_v30 = vpop.xlane.xlu1 %2379 }
 0xc37   :  { %v2384_v58 = vmul.f32 %v2380_v30, %v9159_v33  ;;  %v2410_v30 = vperm.slane %v8062_v32, 2 }
 0xc39   :  { %v2386_v55 = vadd.f32 1e-05, %v2384_v58 }
 0xc3b   :  { %7912 = vrsqrt.f32 %v2386_v55  ;;  %vm2394_vm12 = vweird.f32 %v2386_v55 }
 0xc41   :  { %v7913_v8 = vpop.eup %7912 }
 0xc42   :  { %v2389_v13 = vmul.f32 %v7913_v8, %v2386_v55  ;;  %vm2395_vm9 = vweird.f32 %v7913_v8  ;;  %v2413_v55 = vperm.slane %v8062_v32, 3 }
 0xc43   :  { %vm2396_vm13 = vmor %vm2394_vm12, %vm2395_vm9 }
 0xc44   :  { %v2390_v60 = vmul.f32 %v7913_v8, %v2389_v13 }
 0xc46   :  { %v2391_v5 = vmul.f32 0.5, %v2390_v60 }
 0xc48   :  { %v2392_v45 = vsub.f32 1.5, %v2391_v5 }
 0xc4a   :  { %v2393_v47 = vmul.f32 %v7913_v8, %v2392_v45  ;;  %v7464_v45 = vld [vmem:[%s11384_s22 + $0x18] sm:$0xff] }
 0xc4b   :  { %2501 = vmatpush.bf16.msrb.mxu1 %v7464_v45  ;;  %v7835_v45 = vld [vmem:[#allocation22 + $0x1] ss:$0 sm:$0xff] }
 0xc4c   :  { %v2397_v16 = vsel %vm2396_vm13, %v7913_v8, %v2393_v47  ;;  %v7463_v47 = vld [vmem:[%s11384_s22 + $0x10] sm:$0xff] }
 0xc4d   :  { %v2408_v58 = vmul.f32 %v2397_v16, %v2374_v34  ;;  %v7462_v34 = vld [vmem:[%s11384_s22 + $0x8] sm:$0xff] }
 0xc4f   :  { %v2411_v13 = vmul.f32 %v2410_v30, %v2408_v58  ;;  %2502 = vmatpush.bf16.msrb.mxu1 %v7463_v47  ;;  %v7450_v58 = vld [vmem:[#allocation17 + $0x18] sm:$0xff] }
 0xc53   :  { %2503 = vmatpush.bf16.msrb.mxu1 %v7462_v34 }
 0xc56   :  { %v2383_v53 = vpop.xlane.xlu0 %2382 }
 0xc57   :  { %v2385_v38 = vmul.f32 %v2383_v53, %v9159_v33 }
 0xc59   :  { %v2387_v22 = vadd.f32 1e-05, %v2385_v38  ;;  %v2414_v38 = vadd.f32 %v2413_v55, %v2411_v13 }
 0xc5b   :  { %7914 = vrsqrt.f32 %v2387_v22  ;;  %vm2404_vm11 = vweird.f32 %v2387_v22 }
 0xc61   :  { %v7915_v11 = vpop.eup %7914 }
 0xc62   :  { %v2399_v25 = vmul.f32 %v7915_v11, %v2387_v22  ;;  %vm2405_vm14 = vweird.f32 %v7915_v11 }
 0xc63   :  { %vm2406_vm0 = vmor %vm2404_vm11, %vm2405_vm14 }
 0xc64   :  { %v2400_v1 = vmul.f32 %v7915_v11, %v2399_v25  ;;  %v7461_v25 = vld [vmem:[%s11384_s22] sm:$0xff] }
 0xc65   :  { %2504 = vmatpush.bf16.msrb.mxu1 %v7461_v25 }
 0xc66   :  { %v2401_v39 = vmul.f32 0.5, %v2400_v1  ;;  %v7833_v1 = vld [vmem:[#allocation26] ss:$0 sm:$0xff] }
 0xc68   :  { %v2402_v41 = vsub.f32 1.5, %v2401_v39 }
 0xc69   :  { %2664 = vmatpush.bf16.msra.mxu1 %v7450_v58 }
 0xc6a   :  { %v2403_v10 = vmul.f32 %v7915_v11, %v2402_v41 }
 0xc6c   :  { %v2407_v6 = vsel %vm2406_vm0, %v7915_v11, %v2403_v10  ;;  %v7445_v10 = vld [vmem:[#allocation16 + $0x10] sm:$0xff] }
 0xc6d   :  { %v2409_v60 = vmul.f32 %v2407_v6, %v2375_v44  ;;  %v7449_v6 = vld [vmem:[#allocation17 + $0x10] sm:$0xff] }
 0xc6e   :  { %2665 = vmatpush.bf16.msra.mxu1 %v7449_v6 }
 0xc6f   :  { %v2412_v53 = vmul.f32 %v2410_v30, %v2409_v60  ;;  %v7446_v30 = vld [vmem:[#allocation16 + $0x18] sm:$0xff]  ;;  %v7834_v60 = vld [vmem:[#allocation28] ss:$0 sm:$0xff] }
 0xc70   :  { %2563 = vmatpush.bf16.msrb.mxu3 %v7446_v30 }
 0xc71   :  { %v2415_v8 = vadd.f32 %v2413_v55, %v2412_v53 }
 0xc73   :  { %v2420_v5 = vpack.c.bf16 %v2415_v8, %v2414_v38 }
 0xc74   :  { %2564 = vmatpush.bf16.msrb.mxu3 %v7445_v10 }
 0xc75   :  { %6855 = vmatmul.msk.bf16.vlgmr.msrb.gmra.mxu0 %vm922_vm2, %v2420_v5  ;;  %v2537_v5 = vpop.f32.mrf.mxu2 }
 0xcf2   :  { %v2449_v22 = vpop.f32.mrf.mxu0 }
 0xcf3   :  { %v2450_v11 = vadd.f32 %v7833_v1, %v2449_v22  ;;  %v7458_v22 = vld [vmem:[#allocation20 + $0x18] sm:$0xff] }
 0xcf4   :  { %2638 = vmatpush.bf16.msra.mxu0 %v7458_v22 }
 0xcf5   :  { %v2454_v39 = vmax.f32 %v2450_v11, 0.0  ;;  %v7457_v11 = vld [vmem:[#allocation20 + $0x10] sm:$0xff] }
 0xcf8   :  { %2639 = vmatpush.bf16.msra.mxu0 %v7457_v11 }
 0xcfa   :  { %v2451_v16 = vpop.f32.mrf.mxu0 }
 0xcfb   :  { %v2452_v44 = vadd.f32 %v7833_v1, %v2451_v16  ;;  %v2539_v16 = vpop.f32.mrf.mxu2 }
 0xcfd   :  { %v2455_v41 = vmax.f32 %v2452_v44, 0.0 }
 0xcff   :  { %v2464_v32 = vpack.c.bf16 %v2455_v41, %v2454_v39 }
 0xd01   :  { %6872 = vmatmul.msk.bf16.vlgmr.msrb.gmra.mxu1 %vm2493_vm3, %v2464_v32 }
 0xd7e   :  { %v2506_v13 = vpop.f32.mrf.mxu1 }
 0xd7f   :  { %v2507_v53 = vadd.f32 %v7834_v60, %v2506_v13 }
 0xd86   :  { %v2508_v55 = vpop.f32.mrf.mxu1 }
 0xd87   :  { %v2509_v38 = vadd.f32 %v7834_v60, %v2508_v55 }
 0xd89   :  { %v2512_v8 = vpack.c.bf16 %v2509_v38, %v2507_v53 }
 0xd8b   :  { %6890 = vmatmul.msk.bf16.vlgmr.msrb.gmra.mxu3 %vm922_vm2, %v2512_v8  ;;  %6910 = vmatmul.msk.bf16.vlgmr.msra.gmra.mxu1 %vm922_vm2, %v2512_v8 }
 0xe0e   :  { %v2566_v47 = vpop.f32.mrf.mxu3 }
 0xe0f   :  { %v2567_v34 = vadd.f32 %v2566_v47, %v2537_v5 }
 0xe11   :  { %v2574_v25 = vadd.f32 %v7835_v45, %v2567_v34 }
 0xe13   :  { %v6891_v1 = vmul.f32 -1.442695, %v2574_v25 }
 0xe15   :  { %7916 = vpow2.f32 %v6891_v1 }
 0xe16   :  { %v2568_v44 = vpop.f32.mrf.mxu3 }
 0xe17   :  { %v2569_v39 = vadd.f32 %v2568_v44, %v2539_v16 }
 0xe19   :  { %v2575_v41 = vadd.f32 %v7835_v45, %v2569_v39 }
 0xe1b   :  { %v7917_v32 = vpop.eup %7916  ;;  %v6892_v30 = vmul.f32 -1.442695, %v2575_v41 }
 0xe1c   :  { %v2582_v58 = vadd.f32 1.0, %v7917_v32 }
 0xe1d   :  { %7918 = vpow2.f32 %v6892_v30 }
 0xe1e   :  { %7920 = vrcp.f32 %v2582_v58  ;;  %v2595_v47 = vand.u32 2147483648, %v2582_v58  ;;  %vm2589_vm4 = vweird.f32 %v2582_v58  ;;  %v2593_v45 = vand.u32 2147483647, %v2582_v58 }
 0xe20   :  { %v2596_v16 = vor.u32 1.1754944e-38, %v2595_v47  ;;  %vm2594_vm7 = vcmp.eq.f32.partialorder %v2593_v45, 8.507059e+37 }
 0xe23   :  { %v7919_v10 = vpop.eup %7918 }
 0xe24   :  { %v7921_v6 = vpop.eup %7920  ;;  %v2583_v13 = vadd.f32 1.0, %v7919_v10 }
 0xe25   :  { %v2585_v60 = vmul.f32 %v7921_v6, %v2582_v58  ;;  %vm2590_vm1 = vweird.f32 %v7921_v6 }
 0xe26   :  { %7922 = vrcp.f32 %v2583_v13  ;;  %vm2591_vm6 = vmor %vm2589_vm4, %vm2590_vm1  ;;  %v2610_v25 = vand.u32 2147483648, %v2583_v13  ;;  %v2608_v11 = vand.u32 2147483647, %v2583_v13  ;;  %vm2604_vm10 = vweird.f32 %v2583_v13 }
 0xe27   :  { %v2586_v55 = vsub.f32 1.0, %v2585_v60 }
 0xe28   :  { %v2611_v41 = vor.u32 1.1754944e-38, %v2610_v25  ;;  %vm2609_vm9 = vcmp.eq.f32.partialorder %v2608_v11, 8.507059e+37 }
 0xe29   :  { %v2587_v53 = vmul.f32 %v7921_v6, %v2586_v55  ;;  %v7836_v55 = vld [vmem:[#allocation23 + $0x1] ss:$0 sm:$0xff] }
 0xe2b   :  { %v2588_v5 = vadd.f32 %v7921_v6, %v2587_v53 }
 0xe2c   :  { %v7923_v38 = vpop.eup %7922 }
 0xe2d   :  { %v2600_v8 = vmul.f32 %v7923_v38, %v2583_v13  ;;  %v2592_v1 = vsel %vm2591_vm6, %v7921_v6, %v2588_v5  ;;  %vm2605_vm5 = vweird.f32 %v7923_v38  ;;  %v2667_v6 = vpop.f32.mrf.mxu1 }
 0xe2e   :  { %v2597_v39 = vsel %vm2594_vm7, %v2596_v16, %v2592_v1  ;;  %vm2606_vm8 = vmor %vm2604_vm10, %vm2605_vm5 }
 0xe2f   :  { %v2601_v34 = vsub.f32 1.0, %v2600_v8  ;;  %v2614_v10 = vmul.f32 %v2597_v39, %v10160_v57 }
 0xe31   :  { %v2602_v22 = vmul.f32 %v7923_v38, %v2601_v34 }
 0xe33   :  { %v2603_v44 = vadd.f32 %v7923_v38, %v2602_v22 }
 0xe35   :  { %v2607_v32 = vsel %vm2606_vm8, %v7923_v38, %v2603_v44  ;;  %v2669_v5 = vpop.f32.mrf.mxu1 }
 0xe36   :  { %v2612_v30 = vsel %vm2609_vm9, %v2611_v41, %v2607_v32 }
 0xe37   :  { %v2615_v58 = vmul.f32 %v2612_v30, %v10171_v61 }
 0xe39   :  { %v2616_v60 = vpack.c.bf16 %v2615_v58, %v2614_v10 }
 0xe3b   :  { %6901 = vmatmul.msk.bf16.vlgmr.msra.gmra.mxu0 %vm922_vm2, %v2616_v60 }
 0xeb8   :  { %v2641_v53 = vpop.f32.mrf.mxu0 }
 0xeb9   :  { %v2668_v8 = vadd.f32 %v2667_v6, %v2641_v53  ;;  %v7470_v53 = vld [vmem:[%s11284_s25 + $0x58] sm:$0xf0] }
 0xebb   :  { %v2675_v13 = vadd.f32 %v7836_v55, %v2668_v8 }
 0xebd   :  { %7924 = vtanh.f32 %v2675_v13 }
 0xec0   :  { %v2643_v47 = vpop.f32.mrf.mxu0 }
 0xec1   :  { %v2670_v34 = vadd.f32 %v2669_v5, %v2643_v47  ;;  %v7467_v47 = vld [vmem:[%s11284_s25 + $0x40] sm:$0xf0] }
 0xec3   :  { %v7925_v45 = vpop.eup %7924  ;;  %v2676_v38 = vadd.f32 %v7836_v55, %v2670_v34 }
 0xec4   :  { %v2679_v25 = vsub.f32 %v7925_v45, %v10160_v57 }
 0xec5   :  { %7926 = vtanh.f32 %v2676_v38 }
 0xec6   :  { %2683 = vrot.lane.b32.xlu2 %v2679_v25, %s8767_s13 }
 0xecb   :  { %v7927_v22 = vpop.eup %7926 }
 0xecc   :  { %v2680_v1 = vsub.f32 %v7927_v22, %v10171_v61 }
 0xece   :  { %2685 = vrot.lane.b32.xlu1 %v2680_v1, %s8767_s13 }
 0xf20   :  { %v2684_v11 = vpop.permute.xlu2 %2683 }
 0xf21   :  { %v2689_v16 = vmul.f32 %v2684_v11, %v2597_v39 }
 0xf23   :  { %2693 = vrot.lane.b32.xlu0 %v2689_v16, %s8765_s18 }
 0xf40   :  { %v2686_v44 = vpop.permute.xlu1 %2685 }
 0xf41   :  { %v2690_v41 = vmul.f32 %v2686_v44, %v2612_v30  ;;  %v2952_v30 = vunpack.c.l.b16 %v10168_v20 }
 0xf43   :  { %2695 = vrot.lane.b32.xlu2 %v2690_v41, %s8765_s18  ;;  %v10216_v55 = vpack.c.b16 %v2952_v30, %v2952_v30  ;;  %v7465_v30 = vld [vmem:[%s11284_s25 + $0x34] sm:$0xf] }
 0xf95   :  { %v2694_v32 = vpop.permute.xlu0 %2693 }
 0xf96   :  { %v10206_v10 = vadd.f32 %v2694_v32, %v10160_v57  ;;  %v6941_v57 = vld [vmem:[%s11284_s25 + $0x50] sm:$0xf] }
 0xf97   :  { %v6942_v8 = vor.u32 %v7470_v53, %v6941_v57  ;;  %v6923_v53 = vld [vmem:[%s11284_s25 + $0x3c] sm:$0xf0] }
 0xf98   :  { %11385 = vst [vmem:[#allocation141_spill] sm:$0xff] %v10206_v10  ;;  %v2703_v58 = vsel %vm922_vm2, %v10206_v10, 0.0 }
 0xf99   :  { %2704 = vadd.xlane.f32.xlu0 %v2703_v58  ;;  %2832 = vmatpush.bf16.msrb.mxu0 %v6942_v8 }
 0xf9d   :  { %v2696_v60 = vpop.permute.xlu2 %2695 }
 0xf9e   :  { %v10211_v39 = vadd.f32 %v2696_v60, %v10171_v61  ;;  %v6929_v61 = vld [vmem:[%s11284_s25 + $0x38] sm:$0xf]  ;;  %v7468_v60 = vld [vmem:[%s11284_s25 + $0x4c] sm:$0xf] }
 0xf9f   :  { %v6930_v34 = vor.u32 %v7467_v47, %v6929_v61 }
 0xfa0   :  { %11386 = vst [vmem:[#allocation142_spill] sm:$0xff] %v10211_v39  ;;  %v2706_v6 = vsel %vm922_vm2, %v10211_v39, 0.0 }
 0xfa1   :  { %2707 = vadd.xlane.f32.xlu1 %v2706_v6  ;;  %2833 = vmatpush.bf16.msrb.mxu0 %v6930_v34  ;;  %v6935_v6 = vld [vmem:[%s11284_s25 + $0x54] sm:$0xf0] }
 0xfa2   :  { %v6938_v57 = vor.u32 %v7468_v60, %v6935_v6 }
 0xfa4   :  { %2818 = vmatpush.bf16.msra.mxu3 %v6938_v57 }
 0xfba   :  { %2954 = vrot.lane.b32.xlu1 %v10216_v55, %s8765_s18 }
0x100c   :  { %v2705_v13 = vpop.xlane.xlu0 %2704 }
0x100d   :  { %v2709_v5 = vmul.f32 %v2705_v13, %v9159_v33  ;;  %v6926_v13 = vor.u32 %v7465_v30, %v6923_v53 }
0x100f   :  { %v2711_v45 = vsub.f32 %v10206_v10, %v2709_v5  ;;  %2819 = vmatpush.bf16.msra.mxu3 %v6926_v13 }
0x1011   :  { %v2713_v20 = vmul.f32 %v2711_v45, %v2711_v45 }
0x1013   :  { %v2715_v38 = vsel %vm922_vm2, %v2713_v20, 0.0 }
0x1014   :  { %2716 = vadd.xlane.f32.xlu2 %v2715_v38  ;;  %v2708_v25 = vpop.xlane.xlu1 %2707 }
0x1015   :  { %v2710_v22 = vmul.f32 %v2708_v25, %v9159_v33 }
0x1017   :  { %v2712_v1 = vsub.f32 %v10211_v39, %v2710_v22 }
0x1019   :  { %v2714_v11 = vmul.f32 %v2712_v1, %v2712_v1 }
0x101b   :  { %v2718_v16 = vsel %vm922_vm2, %v2714_v11, 0.0 }
0x101c   :  { %2719 = vadd.xlane.f32.xlu0 %v2718_v16 }
0x102c   :  { %v2955_v44 = vpop.permute.xlu1 %2954 }
0x102d   :  { %v2960_v41 = vsel %vm922_vm2, %v2955_v44, 0 }
0x102e   :  { %2969 = vmatpush.bf16.xpose.msra.mxu0 %v2960_v41 }
0x1087   :  { %v2717_v32 = vpop.xlane.xlu2 %2716 }
0x1088   :  { %v2721_v58 = vmul.f32 %v2717_v32, %v9159_v33  ;;  %v2702_v32 = vld [vmem:[#allocation14 + $0x4] sm:$0xf] }
0x1089   :  { %v2747_v30 = vperm.slane %v2702_v32, 0 }
0x108a   :  { %v2723_v8 = vadd.f32 1e-05, %v2721_v58 }
0x108c   :  { %7928 = vrsqrt.f32 %v2723_v8  ;;  %vm2731_vm13 = vweird.f32 %v2723_v8 }
0x108f   :  { %v2720_v5 = vpop.xlane.xlu0 %2719 }
0x1090   :  { %v2722_v61 = vmul.f32 %v2720_v5, %v9159_v33 }
0x1092   :  { %v7929_v47 = vpop.eup %7928  ;;  %v2724_v34 = vadd.f32 1e-05, %v2722_v61 }
0x1093   :  { %v2726_v20 = vmul.f32 %v7929_v47, %v2723_v8  ;;  %vm2732_vm12 = vweird.f32 %v7929_v47 }
0x1094   :  { %7930 = vrsqrt.f32 %v2724_v34  ;;  %vm2733_vm14 = vmor %vm2731_vm13, %vm2732_vm12  ;;  %vm2741_vm0 = vweird.f32 %v2724_v34 }
0x1095   :  { %v2727_v38 = vmul.f32 %v7929_v47, %v2726_v20  ;;  %v2750_v20 = vperm.slane %v2702_v32, 1 }
0x1097   :  { %v2728_v25 = vmul.f32 0.5, %v2727_v38 }
0x1099   :  { %v2729_v22 = vsub.f32 1.5, %v2728_v25 }
0x109a   :  { %v7931_v11 = vpop.eup %7930 }
0x109b   :  { %v2730_v16 = vmul.f32 %v7929_v47, %v2729_v22  ;;  %v2736_v44 = vmul.f32 %v7931_v11, %v2724_v34  ;;  %vm2742_vm11 = vweird.f32 %v7931_v11 }
0x109c   :  { %vm2743_vm1 = vmor %vm2741_vm0, %vm2742_vm11 }
0x109d   :  { %v2737_v41 = vmul.f32 %v7931_v11, %v2736_v44  ;;  %v2734_v58 = vsel %vm2733_vm14, %v7929_v47, %v2730_v16 }
0x109e   :  { %v2745_v57 = vmul.f32 %v2734_v58, %v2711_v45  ;;  %v8063_v45 = vld [vmem:[#allocation13 + $0x1] ss:$0 sm:$0xff] }
0x109f   :  { %v2738_v60 = vmul.f32 0.5, %v2737_v41 }
0x10a0   :  { %v2748_v5 = vmul.f32 %v2747_v30, %v2745_v57 }
0x10a1   :  { %v2739_v6 = vsub.f32 1.5, %v2738_v60 }
0x10a2   :  { %v2751_v25 = vadd.f32 %v2750_v20, %v2748_v5 }
0x10a3   :  { %v2740_v53 = vmul.f32 %v7931_v11, %v2739_v6 }
0x10a5   :  { %v2744_v13 = vsel %vm2743_vm1, %v7931_v11, %v2740_v53 }
0x10a6   :  { %v2746_v61 = vmul.f32 %v2744_v13, %v2712_v1  ;;  %v8064_v1 = vld [vmem:[#allocation13] ss:$0 sm:$0xff] }
0x10a8   :  { %v2749_v38 = vmul.f32 %v2747_v30, %v2746_v61 }
0x10aa   :  { %v2752_v22 = vadd.f32 %v2750_v20, %v2749_v38 }
0x10ac   :  { %v2762_v8 = vpack.c.bf16 %v2752_v22, %v2751_v25 }
0x10ae   :  { %6943 = vmatmul.msk.bf16.vlgmr.msra.gmra.mxu2 %vm922_vm2, %v2762_v8  ;;  %6944 = vmatmul.msk.bf16.vlgmr.msra.gmra.mxu3 %vm922_vm2, %v2762_v8 }
0x10af   :  { %6945 = vmatmul.msk.bf16.vlgmr.msrb.gmra.mxu0 %vm922_vm2, %v2762_v8 }
0x1131   :  { %v2807_v47 = vpop.f32.mrf.mxu2  ;;  %v2821_v16 = vpop.f32.mrf.mxu3 }
0x1132   :  { %v2849_v44 = vadd.f32 %v8063_v45, %v2807_v47  ;;  %v2840_v34 = vpack.c.bf16 %v2821_v16, %v2821_v16  ;;  %v2845_v30 = vadd.f32 %v8064_v1, %v2807_v47 }
0x1134   :  { %v2851_v58 = vpack.c.bf16 %v2849_v44, %v2849_v44  ;;  %v2877_v57 = vunpack.c.l.b16 %v2840_v34  ;;  %v2847_v25 = vpack.c.bf16 %v2845_v30, %v2845_v30  ;;  %v2835_v44 = vpop.f32.mrf.mxu0 }
0x1136   :  { %v2902_v5 = vunpack.c.l.b16 %v2851_v58  ;;  %v2872_v47 = vunpack.c.l.b16 %v2847_v25 }
0x1139   :  { %v2809_v41 = vpop.f32.mrf.mxu2  ;;  %v2823_v11 = vpop.f32.mrf.mxu3 }
0x113a   :  { %v2846_v32 = vadd.f32 %v8064_v1, %v2809_v41  ;;  %v2850_v60 = vadd.f32 %v8063_v45, %v2809_v41  ;;  %v2841_v6 = vpack.c.bf16 %v2823_v11, %v2823_v11  ;;  %v2842_v11 = vpack.c.bf16 %v2835_v44, %v2835_v44 }
0x113c   :  { %v2852_v53 = vpack.c.bf16 %v2850_v60, %v2850_v60  ;;  %v2878_v13 = vunpack.c.l.b16 %v2841_v6  ;;  %v2848_v61 = vpack.c.bf16 %v2846_v32, %v2846_v32  ;;  %v2837_v34 = vpop.f32.mrf.mxu0  ;;  %v3583_v1 = vunpack.c.l.b16 %v2842_v11 }
0x113d   :  { %v2843_v41 = vpack.c.bf16 %v2837_v34, %v2837_v34 }
0x113e   :  { %v2903_v20 = vunpack.c.l.b16 %v2852_v53  ;;  %v2879_v38 = vpack.c.b16 %v2878_v13, %v2877_v57  ;;  %v2873_v16 = vunpack.c.l.b16 %v2848_v61 }
0x113f   :  { %v3584_v58 = vunpack.c.l.b16 %v2843_v41  ;;  %v11388_v41 = vmov 0  }
0x1140   :  { %v2904_v22 = vpack.c.b16 %v2903_v20, %v2902_v5  ;;  %2927 = vrot.lane.b32.xlu0 %v2879_v38, %s8765_s18  ;;  %v2884_v8 = vsel %vm922_vm2, %v2879_v38, 0  ;;  %v2874_v45 = vpack.c.b16 %v2873_v16, %v2872_v47 }
0x1141   :  { %2893 = vmatpush.bf16.xpose.msrb.mxu1 %v2884_v8  ;;  %v10254_v32 = vpack.c.b16 %v3584_v58, %v3583_v1 }
0x1142   :  { %3000 = vrot.lane.b32.xlu1 %v2904_v22, %s8736_s8  ;;  %2949 = vrot.lane.b32.xlu2 %v2904_v22, %s8765_s18 }
0x1143   :  { %6947 = vmatmul.msk.bf16.vlgmr.msrb.gmra.mxu2 %vm922_vm2, %v2904_v22  ;;  %11387 = vst [vmem:[#allocation143_spill] sm:$0xff] %v10254_v32 }
0x1148   :  { %2925 = vrot.lane.b32.xlu0 %v2874_v45, %s8765_s18  ;;  %6946 = vmatmul.msk.bf16.vlgmr.msrb.gmra.mxu1 %vm922_vm2, %v2874_v45 }
0x114a   :  { %3002 = vrot.lane.b32.xlu2 %v10216_v55, %s8736_s8  ;;  %3024 = vrot.lane.b32.xlu1 %v2874_v45, %s8767_s13 }
0x1150   :  { %3050 = vrot.lane.b32.xlu0 %v10216_v55, %s8767_s13 }
0x1152   :  { %3026 = vrot.lane.b32.xlu2 %v2879_v38, %s8767_s13 }
0x115a   :  { %2978 = vrot.lane.b32.xlu2 %v2879_v38, %s8736_s8 }
0x1162   :  { %3610 = vrot.lane.b32.xlu2 %v10254_v32, %s8765_s18 }
0x116a   :  { %3048 = vrot.lane.b32.xlu2 %v2904_v22, %s8767_s13 }
0x1172   :  { %2976 = vrot.lane.b32.xlu2 %v2874_v45, %s8736_s8 }
0x119c   :  { %v2950_v60 = vpop.permute.xlu2 %2949 }
0x119d   :  { %6949 = vmatmul.msk.bf16.vlgmr.msra.gmra.mxu0 %vm922_vm2, %v2950_v60 }
0x11a4   :  { %v3003_v55 = vpop.permute.xlu2 %3002 }
0x11a5   :  { %v3008_v6 = vsel %vm922_vm2, %v3003_v55, 0 }
0x11a6   :  { %3017 = vmatpush.bf16.xpose.msra.mxu2 %v3008_v6 }
0x11ac   :  { %v3027_v30 = vpop.permute.xlu2 %3026 }
0x11ad   :  { %v3032_v13 = vsel %vm922_vm2, %v3027_v30, 0 }
0x11b2   :  { %v2928_v57 = vpop.permute.xlu0 %2927 }
0x11b3   :  { %v2933_v53 = vsel %vm922_vm2, %v2928_v57, 0 }
0x11b4   :  { %2942 = vmatpush.bf16.xpose.msrb.mxu3 %v2933_v53  ;;  %v3001_v5 = vpop.permute.xlu1 %3000  ;;  %v2979_v61 = vpop.permute.xlu2 %2978 }
0x11b5   :  { %v2984_v20 = vsel %vm922_vm2, %v2979_v61, 0  ;;  %6951 = vmatmul.msk.bf16.vlgmr.msra.gmra.mxu2 %vm922_vm2, %v3001_v5 }
0x11b6   :  { %2993 = vmatpush.bf16.xpose.msra.mxu1 %v2984_v20 }
0x11ba   :  { %v2926_v38 = vpop.permute.xlu0 %2925 }
0x11bb   :  { %6948 = vmatmul.msk.bf16.vlgmr.msrb.gmra.mxu3 %vm922_vm2, %v2926_v38 }
0x11bc   :  { %3041 = vmatpush.bf16.xpose.msra.mxu3 %v3032_v13  ;;  %v3611_v25 = vpop.permute.xlu2 %3610  ;;  %v3025_v45 = vpop.permute.xlu1 %3024 }
0x11bd   :  { %3623 = vmatpush.bf16.msrb.mxu2 %v3611_v25 }
0x11be   :  { %3597 = vmatpush.bf16.msrb.mxu1 %v10254_v32 }
0x11c2   :  { %v3051_v22 = vpop.permute.xlu0 %3050 }
0x11c3   :  { %v3056_v8 = vsel %vm922_vm2, %v3051_v22, 0 }
0x11c4   :  { %v3049_v16 = vpop.permute.xlu2 %3048  ;;  %3065 = vmatpush.bf16.xpose.msrb.mxu0 %v3056_v8 }
0x11c6   :  { %v10269_v47 = vpop.f32.mrf.mxu2 }
0x11c7   :  { %3129 = vperm.xlu2 %7710, %v10269_v47   ;;  %3273 = vperm.xlu1 %7713, %v10269_v47  }
0x11c8   :  { %3074 = vperm.xlu0 %7709, %v10269_v47  }
0x11cb   :  { %6952 = vmatmul.msk.bf16.vlgmr.msra.gmra.mxu3 %vm922_vm2, %v3025_v45  ;;  %6953 = vmatmul.msk.bf16.vlgmr.msrb.gmra.mxu0 %vm922_vm2, %v3049_v16 }
0x11cc   :  { %v2977_v44 = vpop.permute.xlu2 %2976 }
0x11cd   :  { %6950 = vmatmul.msk.bf16.vlgmr.msra.gmra.mxu1 %vm922_vm2, %v2977_v44 }
0x11ce   :  { %v2922_v34 = vpop.f32.mrf.mxu2 }
0x11cf   :  { %7711 = vset.pattern.permute.xlu2 %v11314_v49  ;;  %7714 = vset.pattern.permute.xlu1 %v11326_v42 }
0x11d0   :  { %7719 = vset.pattern.permute.xlu0 %v11317_v7  ;;  %3177 = vperm.xlu2 %7711, %v10269_v47  }
0x11d1   :  { %3321 = vperm.xlu1 %7714, %v10269_v47   ;;  %3229 = vperm.xlu0 %7719, %v2922_v34  }
0x11d8   :  { %7712 = vset.pattern.permute.xlu2 %v11317_v7 }
0x11d9   :  { %7716 = vset.pattern.permute.xlu1 %v11388_v41  ;;  %3225 = vperm.xlu2 %7712, %v10269_v47  }
0x11da   :  { %3079 = vperm.xlu1 %7716, %v2922_v34  }
0x11e1   :  { %7715 = vset.pattern.permute.xlu2 %v11315_v63 }
0x11e2   :  { %7717 = vset.pattern.permute.xlu1 %v11312_v14  ;;  %3417 = vperm.xlu2 %7715, %v10269_v47  }
0x11e3   :  { %3133 = vperm.xlu1 %7717, %v2922_v34  }
0x11ea   :  { %7720 = vset.pattern.permute.xlu2 %v11316_v0 }
0x11eb   :  { %7718 = vset.pattern.permute.xlu1 %v11314_v49  ;;  %3277 = vperm.xlu2 %7720, %v2922_v34  }
0x11ec   :  { %3181 = vperm.xlu1 %7718, %v2922_v34  }
0x11f3   :  { %7721 = vset.pattern.permute.xlu2 %v11326_v42 }
0x11f4   :  { %7722 = vset.pattern.permute.xlu1 %v11313_v3  ;;  %3325 = vperm.xlu2 %7721, %v2922_v34  }
0x11f5   :  { %3373 = vperm.xlu1 %7722, %v2922_v34  }
0x11fc   :  { %7725 = vset.pattern.permute.xlu2 %v11312_v14 }
0x11fd   :  { %7723 = vset.pattern.permute.xlu1 %v11315_v63 }
0x11fe   :  { %3421 = vperm.xlu1 %7723, %v2922_v34  }
0x1206   :  { %7724 = vset.pattern.permute.xlu1 %v11388_v41 }
0x121a   :  { %v2971_v11 = vpop.f32.mrf.mxu0 }
0x121b   :  { %3137 = vperm.xlu2 %7725, %v2971_v11   ;;  %3084 = vperm.xlu1 %7724, %v2971_v11  }
0x121c   :  { %3233 = vperm.xlu0 %7719, %v2971_v11  }
0x1221   :  { %v10333_v53 = vpop.permute.xlu2 %3129 }
0x1222   :  { %v2973_v58 = vpop.f32.mrf.mxu0 }
0x1223   :  { %7726 = vset.pattern.permute.xlu2 %v11314_v49  ;;  %7727 = vset.pattern.permute.xlu1 %v11316_v0 }
0x1224   :  { %7731 = vset.pattern.permute.xlu0 %v11388_v41  ;;  %3185 = vperm.xlu2 %7726, %v2971_v11  }
0x1225   :  { %3281 = vperm.xlu1 %7727, %v2971_v11   ;;  %3089 = vperm.xlu0 %7731, %v2973_v58  }
0x122a   :  { %v10341_v5 = vpop.permute.xlu2 %3177 }
0x122c   :  { %7734 = vset.pattern.permute.xlu2 %v11317_v7 }
0x122d   :  { %7728 = vset.pattern.permute.xlu1 %v11326_v42  ;;  %7736 = vset.pattern.permute.xlu0 %v11326_v42 }
0x122e   :  { %3237 = vperm.xlu2 %7734, %v2973_v58   ;;  %3329 = vperm.xlu1 %7728, %v2971_v11  }
0x122f   :  { %3333 = vperm.xlu0 %7736, %v2973_v58  }
0x1233   :  { %v10351_v38 = vpop.permute.xlu2 %3225 }
0x1236   :  { %7735 = vset.pattern.permute.xlu2 %v11316_v0  ;;  %7729 = vset.pattern.permute.xlu1 %v11313_v3 }
0x1237   :  { %7741 = vset.pattern.permute.xlu0 %v11315_v63  ;;  %3285 = vperm.xlu2 %7735, %v2973_v58  }
0x1238   :  { %3377 = vperm.xlu1 %7729, %v2971_v11   ;;  %3429 = vperm.xlu0 %7741, %v2973_v58   ;;  %v10304_v1 = vpop.f32.mrf.mxu2 }
0x1239   :  { %v10315_v6 = vpop.permute.xlu1 %3273 }
0x123a   :  { %v10373_v34 = vpop.permute.xlu0 %3074 }
0x123c   :  { %v10359_v22 = vpop.permute.xlu2 %3417 }
0x123d   :  { %11389 = vst [vmem:[#allocation144_spill] sm:$0xff] %v10359_v22  ;;  %v11406_v22 = vld [vmem:[#allocation91_spill] sm:$0xff] }
0x123e   :  { %v2944_v33 = vpop.f32.mrf.mxu3 }
0x123f   :  { %7737 = vset.pattern.permute.xlu2 %v11313_v3 }
0x1240   :  { %7730 = vset.pattern.permute.xlu1 %v11315_v63  ;;  %3381 = vperm.xlu2 %7737, %v2973_v58   ;;  %v10308_v60 = vpop.f32.mrf.mxu2 }
0x1241   :  { %3425 = vperm.xlu1 %7730, %v2971_v11   ;;  %7742 = vset.pattern.permute.xlu0 %v11388_v41 }
0x1242   :  { %3099 = vperm.xlu0 %7742, %v10308_v60  }
0x1243   :  { %v10324_v30 = vpop.permute.xlu1 %3321  ;;  %v10376_v39 = vpop.permute.xlu0 %3229 }
0x1245   :  { %v10366_v16 = vpop.permute.xlu2 %3277 }
0x1248   :  { %7738 = vset.pattern.permute.xlu2 %v11388_v41  ;;  %v10313_v55 = vpop.f32.mrf.mxu0 }
0x1249   :  { %7732 = vset.pattern.permute.xlu1 %v11312_v14  ;;  %3094 = vperm.xlu2 %7738, %v10304_v1  }
0x124a   :  { %3141 = vperm.xlu1 %7732, %v2973_v58   ;;  %7746 = vset.pattern.permute.xlu0 %v11312_v14 }
0x124b   :  { %3153 = vperm.xlu0 %7746, %v10313_v55  }
0x124c   :  { %v10331_v57 = vpop.permute.xlu1 %3079 }
0x124e   :  { %v10371_v44 = vpop.permute.xlu2 %3325 }
0x1250   :  { %v10343_v61 = vpop.f32.mrf.mxu0 }
0x1251   :  { %7740 = vset.pattern.permute.xlu2 %v11314_v49 }
0x1252   :  { %7733 = vset.pattern.permute.xlu1 %v11314_v49  ;;  %3193 = vperm.xlu2 %7740, %v10304_v1  }
0x1253   :  { %3189 = vperm.xlu1 %7733, %v2973_v58   ;;  %7750 = vset.pattern.permute.xlu0 %v11314_v49 }
0x1255   :  { %v10339_v13 = vpop.permute.xlu1 %3133 }
0x125a   :  { %7743 = vset.pattern.permute.xlu2 %v11312_v14 }
0x125b   :  { %7739 = vset.pattern.permute.xlu1 %v11312_v14  ;;  %3149 = vperm.xlu2 %7743, %v10308_v60  }
0x125c   :  { %3145 = vperm.xlu1 %7739, %v10304_v1  }
0x125e   :  { %v10349_v20 = vpop.permute.xlu1 %3181 }
0x1263   :  { %7747 = vset.pattern.permute.xlu2 %v11314_v49 }
0x1264   :  { %7744 = vset.pattern.permute.xlu1 %v11314_v49  ;;  %3201 = vperm.xlu2 %7747, %v10313_v55  }
0x1265   :  { %3197 = vperm.xlu1 %7744, %v10308_v60  }
0x1267   :  { %v10357_v25 = vpop.permute.xlu1 %3373 }
0x126c   :  { %7748 = vset.pattern.permute.xlu2 %v11388_v41 }
0x126d   :  { %7745 = vset.pattern.permute.xlu1 %v11388_v41  ;;  %3109 = vperm.xlu2 %7748, %v10343_v61  }
0x126e   :  { %3104 = vperm.xlu1 %7745, %v10313_v55  }
0x1270   :  { %v10363_v8 = vpop.permute.xlu1 %3421 }
0x1275   :  { %7752 = vset.pattern.permute.xlu2 %v11317_v7  ;;  %v3138_v58 = vpop.permute.xlu2 %3137 }
0x1276   :  { %7749 = vset.pattern.permute.xlu1 %v11312_v14  ;;  %3245 = vperm.xlu2 %7752, %v10308_v60   ;;  %v3162_v56 = vmul.f32 %v3138_v58, %v11391_v48  ;;  %v11397_v48 = vld [vmem:[#allocation82_spill] sm:$0xff] }
0x1277   :  { %3157 = vperm.xlu1 %7749, %v10343_v61  }
0x127e   :  { %3253 = vperm.xlu2 %7752, %v10343_v61   ;;  %v3186_v26 = vpop.permute.xlu2 %3185 }
0x127f   :  { %7751 = vset.pattern.permute.xlu1 %v11317_v7  ;;  %v11390_v7 = vld [vmem:[#allocation75_spill] sm:$0xff]  ;;  %v3210_v18 = vmul.f32 %v3186_v26, %v11392_v51 }
0x1286   :  { %7755 = vset.pattern.permute.xlu2 %v11316_v0 }
0x1287   :  { %3297 = vperm.xlu2 %7755, %v10313_v55  }
0x1288   :  { %v3238_v26 = vpop.permute.xlu2 %3237 }
0x128d   :  { %v3085_v45 = vpop.permute.xlu1 %3084 }
0x128e   :  { %v3114_v49 = vmul.f32 %v3085_v45, %v11390_v7  ;;  %v3234_v29 = vpop.permute.xlu0 %3233  ;;  %v11395_v45 = vld [vmem:[#allocation80_spill] sm:$0xff] }
0x128f   :  { %7756 = vset.pattern.permute.xlu2 %v11326_v42  ;;  %v3258_v40 = vmul.f32 %v3234_v29, %v11393_v59 }
0x1290   :  { %3337 = vperm.xlu2 %7756, %v10304_v1   ;;  %v3122_v10 = vadd.f32 %v3114_v49, %v2944_v33 }
0x1292   :  { %v3170_v36 = vadd.f32 %v3162_v56, %v3122_v10 }
0x1294   :  { %v3218_v15 = vadd.f32 %v3210_v18, %v3170_v36  ;;  %v11398_v36 = vld [vmem:[#allocation83_spill] sm:$0xff] }
0x1296   :  { %v3266_v2 = vadd.f32 %v3258_v40, %v3218_v15  ;;  %v11399_v15 = vld [vmem:[#allocation84_spill] sm:$0xff] }
0x1297   :  { %v3282_v11 = vpop.permute.xlu1 %3281  ;;  %v3090_v18 = vpop.permute.xlu0 %3089 }
0x1298   :  { %v3306_v4 = vmul.f32 %v3282_v11, %v11394_v19 }
0x129a   :  { %v3314_v62 = vadd.f32 %v3306_v4, %v3266_v2  ;;  %v3286_v4 = vpop.permute.xlu2 %3285  ;;  %v11400_v2 = vld [vmem:[#allocation85_spill] sm:$0xff] }
0x12a0   :  { %v3330_v32 = vpop.permute.xlu1 %3329 }
0x12a1   :  { %v3354_v7 = vmul.f32 %v3330_v32, %v11395_v45  ;;  %v3115_v32 = vmul.f32 %v3090_v18, %v11399_v15 }
0x12a2   :  { %v3382_v45 = vpop.permute.xlu2 %3381 }
0x12a3   :  { %v3362_v49 = vadd.f32 %v3354_v7, %v3314_v62  ;;  %v2946_v7 = vpop.f32.mrf.mxu3  ;;  %v3334_v62 = vpop.permute.xlu0 %3333 }
0x12a4   :  { %v3123_v11 = vadd.f32 %v3115_v32, %v2946_v7 }
0x12aa   :  { %v3378_v23 = vpop.permute.xlu1 %3377 }
0x12ab   :  { %v3402_v33 = vmul.f32 %v3378_v23, %v11396_v50  ;;  %v3430_v15 = vpop.permute.xlu0 %3429 }
0x12ac   :  { %v3451_v32 = vmul.f32 %v3430_v15, %v11406_v22 }
0x12ad   :  { %v3410_v58 = vadd.f32 %v3402_v33, %v3362_v49  ;;  %v11401_v49 = vld [vmem:[#allocation86_spill] sm:$0xff] }
0x12b3   :  { %v3426_v27 = vpop.permute.xlu1 %3425 }
0x12b4   :  { %v3450_v56 = vmul.f32 %v3426_v27, %v11397_v48 }
0x12b6   :  { %v3458_v10 = vadd.f32 %v3450_v56, %v3410_v58  ;;  %v11402_v56 = vld [vmem:[#allocation87_spill] sm:$0xff] }
0x12b8   :  { %v3466_v51 = vmul.f32 0.17677669, %v3458_v10  ;;  %v3259_v10 = vmul.f32 %v3238_v26, %v11402_v56  ;;  %v11407_v26 = vld [vmem:[#allocation92_spill] sm:$0xff] }
0x12ba   :  { %v3474_v29 = vadd.f32 %v3466_v51, %v11398_v36  ;;  %v11403_v51 = vld [vmem:[#allocation88_spill] sm:$0xff] }
0x12bb   :  { %v3307_v36 = vmul.f32 %v3286_v4, %v11403_v51 }
0x12bc   :  { %v3142_v59 = vpop.permute.xlu1 %3141  ;;  %v3486_v40 = vsel %vm1816_vm15, %v3474_v29, -inf }
0x12bd   :  { %3487 = vmax.xlane.f32.xlu1 %v3486_v40  ;;  %v3163_v23 = vmul.f32 %v3142_v59, %v11400_v2  ;;  %v11404_v40 = vld [vmem:[#allocation89_spill] sm:$0xff]  ;;  %v3403_v59 = vmul.f32 %v3382_v45, %v11405_v12 }
0x12be   :  { %v3355_v19 = vmul.f32 %v3334_v62, %v11404_v40  ;;  %v3100_v62 = vpop.permute.xlu0 %3099 }
0x12bf   :  { %v3171_v27 = vadd.f32 %v3163_v23, %v3123_v11 }
0x12c5   :  { %v3190_v33 = vpop.permute.xlu1 %3189 }
0x12c6   :  { %v3211_v58 = vmul.f32 %v3190_v33, %v11401_v49 }
0x12c8   :  { %v3219_v48 = vadd.f32 %v3211_v58, %v3171_v27 }
0x12ca   :  { %v3267_v50 = vadd.f32 %v3259_v10, %v3219_v48 }
0x12cc   :  { %v3315_v18 = vadd.f32 %v3307_v36, %v3267_v50 }
0x12ce   :  { %v3363_v2 = vadd.f32 %v3355_v19, %v3315_v18  ;;  %v10412_v50 = vpop.permute.xlu1 %3145  ;;  %v10430_v18 = vpop.permute.xlu0 %3153 }
0x12d0   :  { %v3411_v7 = vadd.f32 %v3403_v59, %v3363_v2  ;;  %v2895_v59 = vpop.f32.mrf.mxu1 }
0x12d2   :  { %v3459_v23 = vadd.f32 %v3451_v32, %v3411_v7 }
0x12d4   :  { %v3467_v11 = vmul.f32 0.17677669, %v3459_v23 }
0x12d6   :  { %3241 = vperm.xlu1 %7751, %v10304_v1   ;;  %v3475_v33 = vadd.f32 %v3467_v11, %v11407_v26 }
0x12d7   :  { %v3198_v19 = vpop.permute.xlu1 %3197 }
0x12d8   :  { %v3489_v4 = vsel %vm1816_vm15, %v3475_v33, -inf  ;;  %v2897_v11 = vpop.f32.mrf.mxu1 }
0x12d9   :  { %3490 = vmax.xlane.f32.xlu0 %v3489_v4 }
0x12de   :  { %3249 = vperm.xlu1 %7751, %v10313_v55  }
0x12e0   :  { %v10417_v48 = vpop.permute.xlu1 %3104 }
0x12e6   :  { %7754 = vset.pattern.permute.xlu1 %v11316_v0 }
0x12e7   :  { %3293 = vperm.xlu1 %7754, %v10308_v60  }
0x12e9   :  { %v10420_v45 = vpop.permute.xlu1 %3157 }
0x12ed   :  { %3205 = vperm.xlu0 %7750, %v10343_v61  }
0x12ef   :  { %3301 = vperm.xlu1 %7754, %v10343_v61  }
0x12f5   :  { %7753 = vset.pattern.permute.xlu0 %v11316_v0 }
0x12f6   :  { %3289 = vperm.xlu0 %7753, %v10304_v1  }
0x12f7   :  { %7759 = vset.pattern.permute.xlu1 %v11326_v42 }
0x12f8   :  { %3345 = vperm.xlu1 %7759, %v10313_v55  }
0x12fe   :  { %7757 = vset.pattern.permute.xlu0 %v11326_v42 }
0x12ff   :  { %3341 = vperm.xlu0 %7757, %v10308_v60  }
0x1300   :  { %7760 = vset.pattern.permute.xlu1 %v11313_v3 }
0x1307   :  { %7758 = vset.pattern.permute.xlu0 %v11313_v3 }
0x1308   :  { %3369 = vperm.xlu0 %7758, %v10269_v47   ;;  %v10422_v47 = vpop.permute.xlu2 %3094 }
0x1310   :  { %3393 = vperm.xlu0 %7758, %v10313_v55   ;;  %v10428_v10 = vpop.permute.xlu2 %3193 }
0x1318   :  { %7764 = vset.pattern.permute.xlu0 %v11315_v63  ;;  %v3150_v7 = vpop.permute.xlu2 %3149 }
0x1319   :  { %3445 = vperm.xlu0 %7764, %v10343_v61   ;;  %v3165_v12 = vmul.f32 %v3150_v7, %v10055_v21  ;;  %v11408_v7 = vld [vmem:[#allocation93_spill] sm:$0xff] }
0x1321   :  { %7765 = vset.pattern.permute.xlu0 %v11388_v41 }
0x1330   :  { %v3488_v36 = vpop.xlane.xlu1 %3487 }
0x1331   :  { %v3506_v15 = vsub.f32 %v3474_v29, %v3488_v36  ;;  %v10435_v36 = vpop.permute.xlu2 %3201 }
0x1333   :  { %v3516_v2 = vmul.f32 1.442695, %v3506_v15 }
0x1335   :  { %7932 = vpow2.f32 %v3516_v2 }
0x133b   :  { %v10424_v27 = vpop.eup %7932 }
0x133c   :  { %v3534_v58 = vsel %vm1816_vm15, %v10424_v27, 0.0 }
0x133d   :  { %3535 = vadd.xlane.f32.xlu2 %v3534_v58  ;;  %v10441_v58 = vpop.f32.mrf.mxu1 }
0x1345   :  { %v2997_v26 = vpop.f32.mrf.mxu1 }
0x1348   :  { %v10437_v15 = vpop.permute.xlu1 %3241 }
0x134c   :  { %v3491_v32 = vpop.xlane.xlu0 %3490 }
0x134d   :  { %v3507_v23 = vsub.f32 %v3475_v33, %v3491_v32  ;;  %v10447_v32 = vpop.permute.xlu2 %3109 }
0x134f   :  { %v3518_v29 = vmul.f32 1.442695, %v3507_v23 }
0x1350   :  { %v10449_v23 = vpop.permute.xlu1 %3249 }
0x1351   :  { %7934 = vpow2.f32 %v3518_v29  ;;  %v3117_v29 = vmul.f32 %v3100_v62, %v10029_v31 }
0x1353   :  { %v3125_v22 = vadd.f32 %v3117_v29, %v2997_v26  ;;  %v3113_v29 = vmul.f32 %v10331_v57, %v11408_v7 }
0x1355   :  { %3349 = vperm.xlu2 %7756, %v10343_v61   ;;  %v3173_v51 = vadd.f32 %v3165_v12, %v3125_v22  ;;  %v3246_v56 = vpop.permute.xlu2 %3245  ;;  %v11409_v12 = vld [vmem:[#allocation94_spill] sm:$0xff] }
0x1356   :  { %v3161_v22 = vmul.f32 %v10339_v13, %v11409_v12 }
0x1357   :  { %v10433_v4 = vpop.eup %7934 }
0x1358   :  { %v3537_v2 = vsel %vm1816_vm15, %v10433_v4, 0.0 }
0x1359   :  { %3538 = vadd.xlane.f32.xlu1 %v3537_v2  ;;  %v3213_v2 = vmul.f32 %v3198_v19, %v10068_v54  ;;  %v3294_v49 = vpop.permute.xlu1 %3293 }
0x135a   :  { %v3309_v62 = vmul.f32 %v3294_v49, %v10088_v24 }
0x135b   :  { %v3221_v41 = vadd.f32 %v3213_v2, %v3173_v51  ;;  %v11410_v2 = vld [vmem:[#allocation95_spill] sm:$0xff] }
0x135c   :  { %v3209_v49 = vmul.f32 %v10349_v20, %v11410_v2  ;;  %v11413_v20 = vld [vmem:[#allocation98_spill] sm:$0xff] }
0x135d   :  { %7761 = vset.pattern.permute.xlu2 %v11313_v3  ;;  %v3261_v3 = vmul.f32 %v3246_v56, %v10080_v28  ;;  %v3121_v56 = vadd.f32 %v3113_v29, %v2897_v11  ;;  %v3353_v11 = vmul.f32 %v10371_v44, %v11413_v20  ;;  %v11414_v29 = vld [vmem:[#allocation99_spill] sm:$0xff]  ;;  %v3208_v44 = vmul.f32 %v10341_v5, %v9724_v43 }
0x135e   :  { %3389 = vperm.xlu2 %7761, %v10308_v60  }
0x135f   :  { %v10445_v33 = vpop.permute.xlu0 %3205  ;;  %v3269_v26 = vadd.f32 %v3261_v3, %v3221_v41  ;;  %v11411_v41 = vld [vmem:[#allocation96_spill] sm:$0xff] }
0x1361   :  { %v3317_v31 = vadd.f32 %v3309_v62, %v3269_v26 }
0x1366   :  { %7762 = vset.pattern.permute.xlu2 %v11315_v63 }
0x1367   :  { %3433 = vperm.xlu2 %7762, %v10304_v1  }
0x1368   :  { %v10456_v40 = vpop.permute.xlu0 %3289 }
0x136f   :  { %3441 = vperm.xlu2 %7762, %v10313_v55   ;;  %v3169_v55 = vadd.f32 %v3161_v22, %v3121_v56 }
0x1371   :  { %v3342_v21 = vpop.permute.xlu0 %3341  ;;  %v3217_v3 = vadd.f32 %v3209_v49, %v3169_v55 }
0x1372   :  { %v3357_v19 = vmul.f32 %v3342_v21, %v10099_v9  ;;  %3385 = vperm.xlu1 %7760, %v10304_v1   ;;  %v3257_v21 = vmul.f32 %v10376_v39, %v11411_v41  ;;  %v11412_v1 = vld [vmem:[#allocation97_spill] sm:$0xff] }
0x1373   :  { %v3305_v62 = vmul.f32 %v10366_v16, %v11412_v1  ;;  %v11415_v16 = vld [vmem:[#allocation101_spill] sm:$0xff] }
0x1374   :  { %v10467_v51 = vadd.f32 %v3357_v19, %v3317_v31  ;;  %v3265_v57 = vadd.f32 %v3257_v21, %v3217_v3  ;;  %v3112_v31 = vmul.f32 %v10373_v34, %v9678_v17  ;;  %v3449_v19 = vmul.f32 %v10363_v8, %v11414_v29  ;;  %v11416_v3 = vld [vmem:[#allocation102_spill] sm:$0xff]  ;;  %v11417_v21 = vld [vmem:[#allocation100_spill] sm:$0xff] }
0x1375   :  { %v3160_v22 = vmul.f32 %v10333_v53, %v11415_v16  ;;  %v11418_v8 = vld [vmem:[#allocation104_spill] sm:$0xff] }
0x1376   :  { %v3313_v13 = vadd.f32 %v3305_v62, %v3265_v57  ;;  %v3120_v39 = vadd.f32 %v3112_v31, %v2895_v59  ;;  %v3304_v53 = vmul.f32 %v10315_v6, %v11418_v8  ;;  %v10499_v62 = vpop.permute.xlu2 %3253 }
0x1377   :  { %7766 = vset.pattern.permute.xlu2 %v11312_v14 }
0x1378   :  { %v3361_v26 = vadd.f32 %v3353_v11, %v3313_v13  ;;  %v3168_v34 = vadd.f32 %v3160_v22, %v3120_v39  ;;  %v3352_v11 = vmul.f32 %v10324_v30, %v9763_v52  ;;  %v11419_v39 = vld [vmem:[#allocation144_spill] sm:$0xff] }
0x137a   :  { %3397 = vperm.xlu1 %7760, %v10343_v61   ;;  %v3401_v61 = vmul.f32 %v10357_v25, %v9659_v37  ;;  %v3256_v25 = vmul.f32 %v10351_v38, %v11416_v3  ;;  %v3370_v13 = vpop.permute.xlu0 %3369 }
0x137c   :  { %v3409_v56 = vadd.f32 %v3401_v61, %v3361_v26  ;;  %v3400_v26 = vmul.f32 %v3370_v13, %v9802_v35  ;;  %v3043_v13 = vpop.f32.mrf.mxu3 }
0x137e   :  { %v3457_v49 = vadd.f32 %v3449_v19, %v3409_v56  ;;  %v3448_v19 = vmul.f32 %v11419_v39, %v9818_v46  ;;  %v3298_v22 = vpop.permute.xlu2 %3297  ;;  %v11423_v39 = vld [vmem:[#allocation115_spill] sm:$0xff] }
0x1380   :  { %v3465_v55 = vmul.f32 0.17677669, %v3457_v49  ;;  %v11420_v49 = vld [vmem:[#allocation112_spill] sm:$0xff] }
0x1382   :  { %7763 = vset.pattern.permute.xlu1 %v11315_v63  ;;  %v10495_v57 = vadd.f32 %v3465_v55, %v11417_v21 }
0x1383   :  { %3437 = vperm.xlu1 %7763, %v10308_v60   ;;  %v3216_v60 = vadd.f32 %v3208_v44, %v3168_v34 }
0x1384   :  { %v3483_v5 = vsel %vm1816_vm15, %v10495_v57, -inf }
0x1385   :  { %v3264_v59 = vadd.f32 %v3256_v25, %v3216_v60  ;;  %v10515_v25 = vpop.permute.xlu1 %3301 }
0x1386   :  { %v3338_v34 = vpop.permute.xlu2 %3337 }
0x1387   :  { %v3312_v31 = vadd.f32 %v3304_v53, %v3264_v59  ;;  %v11421_v59 = vld [vmem:[#allocation113_spill] sm:$0xff] }
0x1388   :  { %v3118_v53 = vmul.f32 %v10417_v48, %v11421_v59  ;;  %v3394_v48 = vpop.permute.xlu0 %3393  ;;  %v11425_v59 = vld [vmem:[#allocation118_spill] sm:$0xff] }
0x1389   :  { %v3360_v38 = vadd.f32 %v3352_v11, %v3312_v31 }
0x138a   :  { %v3126_v31 = vadd.f32 %v3118_v53, %v3043_v13  ;;  %v3310_v53 = vmul.f32 %v3298_v22, %v11425_v59  ;;  %v11426_v13 = vld [vmem:[#allocation119_spill] sm:$0xff] }
0x138b   :  { %7769 = vset.pattern.permute.xlu1 %v11316_v0  ;;  %v3408_v61 = vadd.f32 %v3400_v26, %v3360_v38 }
0x138d   :  { %v3456_v6 = vadd.f32 %v3448_v19, %v3408_v61  ;;  %v3346_v61 = vpop.permute.xlu1 %3345  ;;  %v3214_v19 = vmul.f32 %v10435_v36, %v11423_v39 }
0x138e   :  { %v3358_v24 = vmul.f32 %v3346_v61, %v11426_v13  ;;  %v11430_v13 = vld [vmem:[#allocation124_spill] sm:$0xff] }
0x138f   :  { %v3464_v56 = vmul.f32 0.17677669, %v3456_v6  ;;  %v11424_v6 = vld [vmem:[#allocation117_spill] sm:$0xff] }
0x1391   :  { %v10509_v44 = vadd.f32 %v3464_v56, %v11420_v49  ;;  %v3262_v56 = vmul.f32 %v10449_v23, %v11424_v6 }
0x1393   :  { %v3480_v30 = vsel %vm1816_vm15, %v10509_v44, -inf }
0x1398   :  { %3484 = vmax.xlane.f32.xlu2 %v3483_v5  ;;  %v11422_v5 = vld [vmem:[#allocation114_spill] sm:$0xff] }
0x1399   :  { %v3166_v26 = vmul.f32 %v10430_v18, %v11422_v5 }
0x139b   :  { %v3174_v38 = vadd.f32 %v3166_v26, %v3126_v31  ;;  %v11427_v31 = vld [vmem:[#allocation120_spill] sm:$0xff] }
0x139c   :  { %v3406_v26 = vmul.f32 %v3394_v48, %v11427_v31 }
0x13ad   :  { %3481 = vmax.xlane.f32.xlu1 %v3480_v30  ;;  %v3222_v30 = vadd.f32 %v3214_v19, %v3174_v38  ;;  %v11428_v38 = vld [vmem:[#allocation121_spill] sm:$0xff] }
0x13af   :  { %v3270_v9 = vadd.f32 %v3262_v56, %v3222_v30  ;;  %v11429_v56 = vld [vmem:[#allocation123_spill] sm:$0xff] }
0x13b0   :  { %v3536_v60 = vpop.xlane.xlu2 %3535  ;;  %v3116_v30 = vmul.f32 %v10422_v47, %v11429_v56 }
0x13b1   :  { %7936 = vrcp.f32 %v3536_v60  ;;  %v3318_v18 = vadd.f32 %v3310_v53, %v3270_v9  ;;  %v3164_v9 = vmul.f32 %v10412_v50, %v11430_v13 }
0x13b3   :  { %v3366_v5 = vadd.f32 %v3358_v24, %v3318_v18  ;;  %v3124_v24 = vadd.f32 %v3116_v30, %v10441_v58  ;;  %v11435_v30 = vld [vmem:[#allocation103_spill] sm:$0xff] }
0x13b5   :  { %v3414_v23 = vadd.f32 %v3406_v26, %v3366_v5  ;;  %v3172_v53 = vadd.f32 %v3164_v9, %v3124_v24  ;;  %v11432_v26 = vld [vmem:[#allocation125_spill] sm:$0xff]  ;;  %v3045_v24 = vpop.f32.mrf.mxu3 }
0x13b7   :  { %v7937_v54 = vpop.eup %7936 }
0x13b8   :  { %v10513_v55 = vpop.permute.xlu2 %3349  ;;  %v3562_v36 = vmul.f32 %v7937_v54, %v10424_v27  ;;  %v11431_v54 = vld [vmem:[#allocation122_spill] sm:$0xff] }
0x13ba   :  { %v3570_v59 = vpack.c.bf16 %v3562_v36, %v3562_v36  ;;  %v11433_v36 = vld [vmem:[#allocation126_spill] sm:$0xff] }
0x13bb   :  { %v3260_v50 = vmul.f32 %v10437_v15, %v11433_v36  ;;  %v11438_v15 = vld [vmem:[#allocation130_spill] sm:$0xff] }
0x13bc   :  { %v3607_v5 = vunpack.c.l.b16 %v3570_v59 }
0x13c0   :  { %v10519_v11 = vpop.permute.xlu2 %3389 }
0x13c8   :  { %v3434_v49 = vpop.permute.xlu2 %3433 }
0x13cc   :  { %v3539_v28 = vpop.xlane.xlu1 %3538 }
0x13cd   :  { %7938 = vrcp.f32 %v3539_v28 }
0x13d0   :  { %v3442_v39 = vpop.permute.xlu2 %3441 }
0x13d1   :  { %v3454_v60 = vmul.f32 %v3442_v39, %v11428_v38  ;;  %v11442_v38 = vld [vmem:[#allocation136_spill] sm:$0xff] }
0x13d3   :  { %v7939_v19 = vpop.eup %7938  ;;  %v3462_v22 = vadd.f32 %v3454_v60, %v3414_v23  ;;  %v11434_v23 = vld [vmem:[#allocation127_spill] sm:$0xff] }
0x13d4   :  { %v3563_v61 = vmul.f32 %v7939_v19, %v10433_v4  ;;  %v3212_v4 = vmul.f32 %v10428_v10, %v11432_v26  ;;  %v3308_v60 = vmul.f32 %v10456_v40, %v11434_v23  ;;  %v11440_v40 = vld [vmem:[#allocation132_spill] sm:$0xff] }
0x13d5   :  { %v3470_v48 = vmul.f32 0.17677669, %v3462_v22  ;;  %v3119_v22 = vmul.f32 %v10447_v32, %v11435_v30 }
0x13d6   :  { %v3571_v28 = vpack.c.bf16 %v3563_v61, %v3563_v61  ;;  %v3220_v58 = vadd.f32 %v3212_v4, %v3172_v53  ;;  %v11436_v61 = vld [vmem:[#allocation129_spill] sm:$0xff]  ;;  %v11439_v53 = vld [vmem:[#allocation106_spill] sm:$0xff]  ;;  %v3452_v4 = vmul.f32 %v3434_v49, %v11440_v40 }
0x13d7   :  { %v10539_v27 = vadd.f32 %v3470_v48, %v11431_v54  ;;  %v3356_v9 = vmul.f32 %v3338_v34, %v11436_v61  ;;  %v11437_v48 = vld [vmem:[#allocation105_spill] sm:$0xff]  ;;  %v11441_v34 = vld [vmem:[#allocation107_spill] sm:$0xff] }
0x13d8   :  { %v3608_v39 = vunpack.c.l.b16 %v3571_v28  ;;  %v3268_v59 = vadd.f32 %v3260_v50, %v3220_v58  ;;  %v3167_v28 = vmul.f32 %v10420_v45, %v11437_v48  ;;  %v3263_v54 = vmul.f32 %v10499_v62, %v11441_v34 }
0x13d9   :  { %v3498_v47 = vsel %vm1816_vm15, %v10539_v27, -inf }
0x13da   :  { %v3609_v18 = vpack.c.b16 %v3608_v39, %v3607_v5  ;;  %3499 = vmax.xlane.f32.xlu2 %v3498_v47  ;;  %v3316_v19 = vadd.f32 %v3308_v60, %v3268_v59  ;;  %v3127_v47 = vadd.f32 %v3119_v22, %v3045_v24  ;;  %v11443_v22 = vld [vmem:[#allocation108_spill] sm:$0xff]  ;;  %v11445_v24 = vld [vmem:[#allocation138_spill] sm:$0xff] }
0x13dc   :  { %6955 = vmatmul.msk.bf16.vlgmr.msrb.gmra.mxu2 %vm1816_vm15, %v3609_v18  ;;  %v3364_v5 = vadd.f32 %v3356_v9, %v3316_v19  ;;  %v3215_v18 = vmul.f32 %v10445_v33, %v11439_v53  ;;  %v3175_v58 = vadd.f32 %v3167_v28, %v3127_v47  ;;  %v11444_v33 = vld [vmem:[#allocation109_spill] sm:$0xff] }
0x13dd   :  { %v3359_v49 = vmul.f32 %v10513_v55, %v11444_v33 }
0x13de   :  { %v3223_v32 = vadd.f32 %v3215_v18, %v3175_v58  ;;  %v3446_v18 = vpop.permute.xlu0 %3445  ;;  %v11447_v58 = vld [vmem:[#allocation139_spill] sm:$0xff] }
0x13e0   :  { %v3271_v19 = vadd.f32 %v3263_v54, %v3223_v32  ;;  %v11448_v32 = vld [vmem:[#allocation111_spill] sm:$0xff] }
0x13e4   :  { %v3386_v10 = vpop.permute.xlu1 %3385 }
0x13e5   :  { %v3404_v39 = vmul.f32 %v3386_v10, %v11438_v15  ;;  %v3311_v10 = vmul.f32 %v10515_v25, %v11443_v22  ;;  %v3455_v25 = vmul.f32 %v3446_v18, %v11448_v32  ;;  %v7492_v32 = vld [vmem:[#allocation20 + $0x28] sm:$0xff] }
0x13e7   :  { %v3412_v50 = vadd.f32 %v3404_v39, %v3364_v5  ;;  %v3319_v28 = vadd.f32 %v3311_v10, %v3271_v19  ;;  %v3405_v5 = vmul.f32 %v10519_v11, %v11445_v24  ;;  %v11446_v39 = vld [vmem:[#allocation110_spill] sm:$0xff] }
0x13e9   :  { %v3460_v60 = vadd.f32 %v3452_v4, %v3412_v50  ;;  %v3367_v62 = vadd.f32 %v3359_v49, %v3319_v28  ;;  %v3413_v54 = vadd.f32 %v3405_v5, %v10467_v51 }
0x13eb   :  { %v3468_v59 = vmul.f32 0.17677669, %v3460_v60 }
0x13ec   :  { %v3398_v45 = vpop.permute.xlu1 %3397 }
0x13ed   :  { %v3476_v31 = vadd.f32 %v3468_v59, %v11442_v38  ;;  %v3407_v47 = vmul.f32 %v3398_v45, %v11446_v39  ;;  %v11450_v45 = vld [vmem:[#allocation116_spill] sm:$0xff] }
0x13ef   :  { %v3492_v9 = vsel %vm1816_vm15, %v3476_v31, -inf  ;;  %v3415_v50 = vadd.f32 %v3407_v47, %v3367_v62 }
0x13f0   :  { %3493 = vmax.xlane.f32.xlu0 %v3492_v9  ;;  %v11449_v9 = vld [vmem:[#allocation140_spill] sm:$0xff] }
0x13f1   :  { %v3463_v22 = vadd.f32 %v3455_v25, %v3415_v50  ;;  %v7474_v25 = vld [vmem:[#allocation11 + $0x58] sm:$0xff] }
0x13f2   :  { %3652 = vmatpush.bf16.msrb.mxu3 %v7474_v25 }
0x13f3   :  { %v3471_v11 = vmul.f32 0.17677669, %v3463_v22 }
0x13f5   :  { %v3438_v4 = vpop.permute.xlu1 %3437  ;;  %v3479_v49 = vadd.f32 %v3471_v11, %v11450_v45 }
0x13f6   :  { %v3453_v60 = vmul.f32 %v3438_v4, %v11447_v58 }
0x13f7   :  { %v3501_v28 = vsel %vm1816_vm15, %v3479_v49, -inf }
0x13f8   :  { %v3461_v59 = vadd.f32 %v3453_v60, %v3413_v54 }
0x13fa   :  { %v3469_v55 = vmul.f32 0.17677669, %v3461_v59  ;;  %v7473_v59 = vld [vmem:[#allocation11 + $0x50] sm:$0xff] }
0x13fb   :  { %3653 = vmatpush.bf16.msrb.mxu3 %v7473_v59 }
0x13fc   :  { %v3477_v19 = vadd.f32 %v3469_v55, %v11449_v9 }
0x13fe   :  { %v3495_v10 = vsel %vm1816_vm15, %v3477_v19, -inf }
0x13ff   :  { %3496 = vmax.xlane.f32.xlu1 %v3495_v10 }
0x1407   :  { %3502 = vmax.xlane.f32.xlu1 %v3501_v28 }
0x140b   :  { %v3485_v51 = vpop.xlane.xlu2 %3484 }
0x140c   :  { %v3505_v5 = vsub.f32 %v10495_v57, %v3485_v51 }
0x140e   :  { %v3514_v47 = vmul.f32 1.442695, %v3505_v5 }
0x1410   :  { %7940 = vpow2.f32 %v3514_v47 }
0x1416   :  { %v7941_v62 = vpop.eup %7940 }
0x1417   :  { %v3531_v18 = vsel %vm1816_vm15, %v7941_v62, 0.0 }
0x1418   :  { %3532 = vadd.xlane.f32.xlu0 %v3531_v18 }
0x1420   :  { %v3482_v4 = vpop.xlane.xlu1 %3481 }
0x1421   :  { %v3504_v54 = vsub.f32 %v10509_v44, %v3482_v4 }
0x1423   :  { %v3512_v50 = vmul.f32 1.442695, %v3504_v54 }
0x1425   :  { %7942 = vpow2.f32 %v3512_v50 }
0x142b   :  { %v7943_v22 = vpop.eup %7942 }
0x142c   :  { %v3528_v60 = vsel %vm1816_vm15, %v7943_v22, 0.0 }
0x142d   :  { %3529 = vadd.xlane.f32.xlu2 %v3528_v60 }
0x144d   :  { %v3500_v57 = vpop.xlane.xlu2 %3499 }
0x144e   :  { %v3510_v55 = vsub.f32 %v10539_v27, %v3500_v57  ;;  %v11451_v27 = vld [vmem:[#allocation143_spill] sm:$0xff] }
0x1450   :  { %v3524_v10 = vmul.f32 1.442695, %v3510_v55 }
0x1452   :  { %7944 = vpow2.f32 %v3524_v10 }
0x1458   :  { %v10582_v11 = vpop.eup %7944 }
0x1459   :  { %v3546_v44 = vsel %vm1816_vm15, %v10582_v11, 0.0 }
0x145a   :  { %3547 = vadd.xlane.f32.xlu0 %v3546_v44 }
0x145f   :  { %v3625_v28 = vpop.f32.mrf.mxu2 }
0x1463   :  { %v3494_v51 = vpop.xlane.xlu0 %3493 }
0x1464   :  { %v3508_v5 = vsub.f32 %v3476_v31, %v3494_v51 }
0x1466   :  { %v3520_v47 = vmul.f32 1.442695, %v3508_v5 }
0x1467   :  { %v3627_v18 = vpop.f32.mrf.mxu2 }
0x1468   :  { %7946 = vpow2.f32 %v3520_v47  ;;  %v3630_v4 = vpack.c.bf16 %v3627_v18, %v3625_v28 }
0x146a   :  { %6964 = vmatmul.msk.bf16.vlgmr.msrb.gmra.mxu3 %vm922_vm2, %v3630_v4 }
0x146e   :  { %v7947_v54 = vpop.eup %7946  ;;  %3751 = vrot.lane.b32.xlu0 %v11451_v27, %s8767_s13 }
0x146f   :  { %v3540_v50 = vsel %vm1816_vm15, %v7947_v54, 0.0 }
0x1470   :  { %3541 = vadd.xlane.f32.xlu1 %v3540_v50 }
0x1472   :  { %v3497_v60 = vpop.xlane.xlu1 %3496 }
0x1473   :  { %v3509_v25 = vsub.f32 %v3477_v19, %v3497_v60 }
0x1475   :  { %v3522_v59 = vmul.f32 1.442695, %v3509_v25 }
0x1477   :  { %7948 = vpow2.f32 %v3522_v59 }
0x147a   :  { %v3503_v57 = vpop.xlane.xlu1 %3502 }
0x147b   :  { %v3511_v55 = vsub.f32 %v3479_v49, %v3503_v57 }
0x147d   :  { %v7949_v31 = vpop.eup %7948  ;;  %v3526_v10 = vmul.f32 1.442695, %v3511_v55 }
0x147e   :  { %v3543_v44 = vsel %vm1816_vm15, %v7949_v31, 0.0 }
0x147f   :  { %7950 = vpow2.f32 %v3526_v10  ;;  %3544 = vadd.xlane.f32.xlu2 %v3543_v44 }
0x1485   :  { %v7951_v28 = vpop.eup %7950 }
0x1486   :  { %v3549_v51 = vsel %vm1816_vm15, %v7951_v28, 0.0 }
0x1487   :  { %3550 = vadd.xlane.f32.xlu1 %v3549_v51 }
0x148b   :  { %v3533_v5 = vpop.xlane.xlu0 %3532 }
0x148c   :  { %7952 = vrcp.f32 %v3533_v5 }
0x1492   :  { %v7953_v47 = vpop.eup %7952 }
0x1493   :  { %v3561_v18 = vmul.f32 %v7953_v47, %v7941_v62  ;;  %v7488_v62 = vld [vmem:[#allocation19 + $0x28] sm:$0xff] }
0x1495   :  { %v3569_v4 = vpack.c.bf16 %v3561_v18, %v3561_v18 }
0x1497   :  { %3694 = vrot.lane.b32.xlu2 %v11451_v27, %s8736_s8  ;;  %v3579_v25 = vunpack.c.l.b16 %v3569_v4 }
0x14a0   :  { %v3530_v19 = vpop.xlane.xlu2 %3529 }
0x14a1   :  { %7954 = vrcp.f32 %v3530_v19 }
0x14a7   :  { %v7955_v49 = vpop.eup %7954 }
0x14a8   :  { %v3560_v50 = vmul.f32 %v7955_v49, %v7943_v22 }
0x14aa   :  { %v3568_v60 = vpack.c.bf16 %v3560_v50, %v3560_v50 }
0x14ac   :  { %v3578_v59 = vunpack.c.l.b16 %v3568_v60  ;;  %v7487_v60 = vld [vmem:[#allocation19 + $0x20] sm:$0xff] }
0x14ae   :  { %v3580_v57 = vpack.c.b16 %v3579_v25, %v3578_v59 }
0x14b0   :  { %6954 = vmatmul.msk.bf16.vlgmr.msrb.gmra.mxu1 %vm1816_vm15, %v3580_v57 }
0x14cd   :  { %v3548_v55 = vpop.xlane.xlu0 %3547 }
0x14e0   :  { %v3752_v10 = vpop.permute.xlu0 %3751 }
0x14e1   :  { %3764 = vmatpush.bf16.msra.mxu3 %v3752_v10 }
0x14e3   :  { %v3542_v44 = vpop.xlane.xlu1 %3541 }
0x14e4   :  { %7956 = vrcp.f32 %v3542_v44 }
0x14e5   :  { %3972 = vmatpush.bf16.msrb.mxu3 %v7492_v32 }
0x14ea   :  { %v7957_v51 = vpop.eup %7956 }
0x14eb   :  { %v3564_v5 = vmul.f32 %v7957_v51, %v7947_v54 }
0x14ed   :  { %v3572_v47 = vpack.c.bf16 %v3564_v5, %v3564_v5 }
0x14ef   :  { %v3691_v59 = vunpack.c.l.b16 %v3572_v47  ;;  %v7471_v47 = vld [vmem:[#allocation11 + $0x40] sm:$0xff] }
0x14f2   :  { %v3545_v27 = vpop.xlane.xlu2 %3544 }
0x14f3   :  { %7958 = vrcp.f32 %v3545_v27 }
0x14f4   :  { %7960 = vrcp.f32 %v3548_v55 }
0x14f9   :  { %v7959_v19 = vpop.eup %7958 }
0x14fa   :  { %v3565_v22 = vmul.f32 %v7959_v19, %v7949_v31  ;;  %v3695_v18 = vpop.permute.xlu2 %3694  ;;  %v3551_v49 = vpop.xlane.xlu1 %3550  ;;  %v7472_v19 = vld [vmem:[#allocation11 + $0x48] sm:$0xff] }
0x14fb   :  { %v7961_v4 = vpop.eup %7960  ;;  %7962 = vrcp.f32 %v3551_v49  ;;  %3707 = vmatpush.bf16.msra.mxu1 %v3695_v18  ;;  %3681 = vmatpush.bf16.msra.mxu0 %v7472_v19  ;;  %v7479_v19 = vld [vmem:[#allocation16 + $0x20] sm:$0xff] }
0x14fc   :  { %v3573_v50 = vpack.c.bf16 %v3565_v22, %v3565_v22  ;;  %v3566_v25 = vmul.f32 %v7961_v4, %v10582_v11  ;;  %v11453_v22 = vld [vmem:[#allocation142_spill] sm:$0xff] }
0x14fd   :  { %v7476_v4 = vld [vmem:[#allocation11 + $0x68] sm:$0xff] }
0x14fe   :  { %v3692_v57 = vunpack.c.l.b16 %v3573_v50  ;;  %v3574_v54 = vpack.c.bf16 %v3566_v25, %v3566_v25  ;;  %3736 = vmatpush.bf16.msra.mxu2 %v7476_v4  ;;  %v7475_v50 = vld [vmem:[#allocation11 + $0x60] sm:$0xff]  ;;  %v7477_v25 = vld [vmem:[#allocation11 + $0x70] sm:$0xff] }
0x14ff   :  { %3868 = vmatpush.bf16.msrb.mxu1 %v7488_v62  ;;  %v11452_v62 = vld [vmem:[#allocation141_spill] sm:$0xff]  ;;  %3682 = vmatpush.bf16.msra.mxu0 %v7471_v47 }
0x1500   :  { %v3693_v10 = vpack.c.b16 %v3692_v57, %v3691_v59  ;;  %v3748_v27 = vunpack.c.l.b16 %v3574_v54  ;;  %v3845_v11 = vpack.c.bf16 %v11453_v22, %v11452_v62  ;;  %v3655_v59 = vpop.f32.mrf.mxu3 }
0x1501   :  { %v7963_v55 = vpop.eup %7962 }
0x1502   :  { %v3567_v44 = vmul.f32 %v7963_v55, %v7951_v28  ;;  %6974 = vmatmul.msk.bf16.vlgmr.msra.gmra.mxu1 %vm1816_vm15, %v3693_v10  ;;  %3737 = vmatpush.bf16.msra.mxu2 %v7475_v50 }
0x1503   :  { %3869 = vmatpush.bf16.msrb.mxu1 %v7487_v60  ;;  %v7478_v60 = vld [vmem:[#allocation11 + $0x78] sm:$0xff] }
0x1504   :  { %v3575_v31 = vpack.c.bf16 %v3567_v44, %v3567_v44  ;;  %3793 = vmatpush.bf16.msrb.mxu0 %v7478_v60 }
0x1506   :  { %v3749_v51 = vunpack.c.l.b16 %v3575_v31 }
0x1508   :  { %v3750_v5 = vpack.c.b16 %v3749_v51, %v3748_v27  ;;  %3794 = vmatpush.bf16.msrb.mxu0 %v7477_v25  ;;  %v3657_v10 = vpop.f32.mrf.mxu3  ;;  %v7480_v51 = vld [vmem:[#allocation16 + $0x28] sm:$0xff] }
0x1509   :  { %3897 = vmatpush.bf16.msrb.mxu2 %v7480_v51  ;;  %v7837_v51 = vld [vmem:[#allocation22 + $0x2] ss:$0 sm:$0xff] }
0x150a   :  { %6984 = vmatmul.msk.bf16.vlgmr.msra.gmra.mxu3 %vm1816_vm15, %v3750_v5  ;;  %v7484_v5 = vld [vmem:[#allocation17 + $0x28] sm:$0xff] }
0x150d   :  { %3898 = vmatpush.bf16.msrb.mxu2 %v7479_v19 }
0x1512   :  { %7002 = vmatmul.msk.bf16.vlgmr.msrb.gmra.mxu1 %vm922_vm2, %v3845_v11  ;;  %v7483_v11 = vld [vmem:[#allocation17 + $0x20] sm:$0xff] }
0x152d   :  { %v3599_v18 = vpop.f32.mrf.mxu1 }
0x1535   :  { %v3601_v49 = vpop.f32.mrf.mxu1 }
0x1536   :  { %v3604_v28 = vpack.c.bf16 %v3601_v49, %v3599_v18 }
0x1538   :  { %6973 = vmatmul.msk.bf16.vlgmr.msra.gmra.mxu0 %vm922_vm2, %v3604_v28 }
0x1539   :  { %3998 = vmatpush.bf16.msra.mxu0 %v7484_v5 }
0x153d   :  { %3999 = vmatpush.bf16.msra.mxu0 %v7483_v11 }
0x157f   :  { %v3709_v57 = vpop.f32.mrf.mxu1 }
0x1587   :  { %v3711_v55 = vpop.f32.mrf.mxu1 }
0x1588   :  { %v3714_v54 = vpack.c.bf16 %v3711_v55, %v3709_v57 }
0x158a   :  { %6983 = vmatmul.msk.bf16.vlgmr.msra.gmra.mxu2 %vm922_vm2, %v3714_v54 }
0x158d   :  { %v3766_v44 = vpop.f32.mrf.mxu3 }
0x1595   :  { %v3768_v31 = vpop.f32.mrf.mxu3 }
0x1596   :  { %v3771_v27 = vpack.c.bf16 %v3768_v31, %v3766_v44 }
0x1598   :  { %6993 = vmatmul.msk.bf16.vlgmr.msrb.gmra.mxu0 %vm922_vm2, %v3771_v27  ;;  %v3871_v27 = vpop.f32.mrf.mxu1 }
0x15b5   :  { %v3684_v47 = vpop.f32.mrf.mxu0 }
0x15b6   :  { %v3685_v50 = vadd.f32 %v3684_v47, %v3655_v59  ;;  %v3873_v59 = vpop.f32.mrf.mxu1 }
0x15bd   :  { %v3686_v18 = vpop.f32.mrf.mxu0 }
0x15be   :  { %v3687_v60 = vadd.f32 %v3686_v18, %v3657_v10  ;;  %v7491_v18 = vld [vmem:[#allocation20 + $0x20] sm:$0xff] }
0x15bf   :  { %3973 = vmatpush.bf16.msrb.mxu3 %v7491_v18 }
0x160d   :  { %v3739_v49 = vpop.f32.mrf.mxu2 }
0x160e   :  { %v3744_v25 = vadd.f32 %v3739_v49, %v3685_v50 }
0x1615   :  { %v3796_v28 = vpop.f32.mrf.mxu0  ;;  %v3741_v4 = vpop.f32.mrf.mxu2 }
0x1616   :  { %v3745_v57 = vadd.f32 %v3741_v4, %v3687_v60  ;;  %v3801_v54 = vadd.f32 %v3796_v28, %v3744_v25 }
0x161d   :  { %v3798_v55 = vpop.f32.mrf.mxu0 }
0x161e   :  { %v3802_v44 = vadd.f32 %v3798_v55, %v3745_v57 }
0x1620   :  { %v3846_v31 = vpack.c.bf16 %v3802_v44, %v3801_v54 }
0x1622   :  { %7011 = vmatmul.msk.bf16.vlgmr.msrb.gmra.mxu2 %vm922_vm2, %v3846_v31  ;;  %7031 = vmatmul.msk.bf16.vlgmr.msra.gmra.mxu0 %vm922_vm2, %v3846_v31 }
0x16a5   :  { %v3900_v5 = vpop.f32.mrf.mxu2 }
0x16a6   :  { %v3901_v19 = vadd.f32 %v3900_v5, %v3871_v27 }
0x16a8   :  { %v3908_v11 = vadd.f32 %v7837_v51, %v3901_v19 }
0x16aa   :  { %v7012_v45 = vmul.f32 -1.442695, %v3908_v11 }
0x16ac   :  { %7964 = vpow2.f32 %v7012_v45 }
0x16ad   :  { %v3902_v10 = vpop.f32.mrf.mxu2 }
0x16ae   :  { %v3903_v47 = vadd.f32 %v3902_v10, %v3873_v59 }
0x16b0   :  { %v3909_v49 = vadd.f32 %v7837_v51, %v3903_v47 }
0x16b2   :  { %v7965_v28 = vpop.eup %7964  ;;  %v7013_v4 = vmul.f32 -1.442695, %v3909_v49 }
0x16b3   :  { %v3916_v50 = vadd.f32 1.0, %v7965_v28 }
0x16b4   :  { %7966 = vpow2.f32 %v7013_v4 }
0x16b5   :  { %7968 = vrcp.f32 %v3916_v50  ;;  %v3929_v32 = vand.u32 2147483648, %v3916_v50  ;;  %vm3923_vm6 = vweird.f32 %v3916_v50  ;;  %v3927_v51 = vand.u32 2147483647, %v3916_v50 }
0x16b7   :  { %v3930_v47 = vor.u32 1.1754944e-38, %v3929_v32  ;;  %vm3928_vm7 = vcmp.eq.f32.partialorder %v3927_v51, 8.507059e+37 }
0x16ba   :  { %v7967_v60 = vpop.eup %7966 }
0x16bb   :  { %v7969_v25 = vpop.eup %7968  ;;  %v3917_v57 = vadd.f32 1.0, %v7967_v60 }
0x16bc   :  { %v3919_v55 = vmul.f32 %v7969_v25, %v3916_v50  ;;  %vm3924_vm4 = vweird.f32 %v7969_v25 }
0x16bd   :  { %7970 = vrcp.f32 %v3917_v57  ;;  %vm3925_vm5 = vmor %vm3923_vm6, %vm3924_vm4  ;;  %v3944_v19 = vand.u32 2147483648, %v3917_v57  ;;  %v3942_v10 = vand.u32 2147483647, %v3917_v57  ;;  %vm3938_vm8 = vweird.f32 %v3917_v57 }
0x16be   :  { %v3920_v54 = vsub.f32 1.0, %v3919_v55 }
0x16bf   :  { %v3945_v49 = vor.u32 1.1754944e-38, %v3944_v19  ;;  %vm3943_vm12 = vcmp.eq.f32.partialorder %v3942_v10, 8.507059e+37 }
0x16c0   :  { %v3921_v45 = vmul.f32 %v7969_v25, %v3920_v54 }
0x16c2   :  { %v3922_v31 = vadd.f32 %v7969_v25, %v3921_v45  ;;  %v7838_v45 = vld [vmem:[#allocation23 + $0x2] ss:$0 sm:$0xff] }
0x16c3   :  { %v7971_v44 = vpop.eup %7970 }
0x16c4   :  { %v3934_v27 = vmul.f32 %v7971_v44, %v3917_v57  ;;  %v3926_v11 = vsel %vm3925_vm5, %v7969_v25, %v3922_v31  ;;  %vm3939_vm10 = vweird.f32 %v7971_v44  ;;  %v4001_v25 = vpop.f32.mrf.mxu0 }
0x16c5   :  { %vm3940_vm9 = vmor %vm3938_vm8, %vm3939_vm10  ;;  %v3931_v28 = vsel %vm3928_vm7, %v3930_v47, %v3926_v11 }
0x16c6   :  { %v3935_v5 = vsub.f32 1.0, %v3934_v27  ;;  %v3948_v55 = vmul.f32 %v3931_v28, %v11452_v62 }
0x16c8   :  { %v3936_v59 = vmul.f32 %v7971_v44, %v3935_v5 }
0x16ca   :  { %v3937_v18 = vadd.f32 %v7971_v44, %v3936_v59 }
0x16cc   :  { %v3941_v4 = vsel %vm3940_vm9, %v7971_v44, %v3937_v18  ;;  %v4003_v57 = vpop.f32.mrf.mxu0 }
0x16cd   :  { %v3946_v60 = vsel %vm3943_vm12, %v3945_v49, %v3941_v4 }
0x16ce   :  { %v3949_v50 = vmul.f32 %v3946_v60, %v11453_v22 }
0x16d0   :  { %v3950_v54 = vpack.c.bf16 %v3949_v50, %v3948_v55  ;;  %v7490_v55 = vld [vmem:[#allocation19 + $0x38] sm:$0xff] }
0x16d1   :  { %v7126_v50 = vld [vmem:[%s11284_s25 + $0x78] sm:$0xf]  ;;  %4206 = vmatpush.bf16.msra.mxu3 %v7490_v55 }
0x16d2   :  { %7022 = vmatmul.msk.bf16.vlgmr.msrb.gmra.mxu3 %vm922_vm2, %v3950_v54  ;;  %v7505_v54 = vld [vmem:[%s11284_s25 + $0x80] sm:$0xf0] }
0x1755   :  { %v3975_v31 = vpop.f32.mrf.mxu3 }
0x1756   :  { %v4002_v27 = vadd.f32 %v4001_v25, %v3975_v31  ;;  %v7489_v25 = vld [vmem:[#allocation19 + $0x30] sm:$0xff] }
0x1757   :  { %4207 = vmatpush.bf16.msra.mxu3 %v7489_v25 }
0x1758   :  { %v4009_v32 = vadd.f32 %v7838_v45, %v4002_v27 }
0x175a   :  { %7972 = vtanh.f32 %v4009_v32  ;;  %v7502_v32 = vld [vmem:[%s11284_s25 + $0x68] sm:$0xf0] }
0x175d   :  { %v3977_v51 = vpop.f32.mrf.mxu3 }
0x175e   :  { %v4004_v5 = vadd.f32 %v4003_v57, %v3977_v51 }
0x1760   :  { %v7973_v44 = vpop.eup %7972  ;;  %v4010_v19 = vadd.f32 %v7838_v45, %v4004_v5  ;;  %v7127_v45 = vor.u32 %v7505_v54, %v7126_v50  ;;  %v11454_v5 = vld [vmem:[#allocation74_spill] sm:$0xff] }
0x1761   :  { %v4013_v11 = vsub.f32 %v7973_v44, %v11452_v62  ;;  %v10626_v44 = vpack.c.bf16 %v11454_v5, %v11454_v5  ;;  %v7495_v5 = vld [vmem:[#allocation25 + $0x10] sm:$0xff] }
0x1762   :  { %7974 = vtanh.f32 %v4010_v19  ;;  %4476 = vmatpush.bf16.msrb.mxu3 %v7127_v45 }
0x1763   :  { %4017 = vrot.lane.b32.xlu1 %v4013_v11, %s8767_s13 }
0x1768   :  { %v7975_v59 = vpop.eup %7974 }
0x1769   :  { %v4014_v10 = vsub.f32 %v7975_v59, %v11453_v22  ;;  %v4581_v59 = vsel %vm922_vm2, %v10626_v44, 0 }
0x176b   :  { %4019 = vrot.lane.b32.xlu0 %v4014_v10, %s8767_s13 }
0x17d5   :  { %v4018_v47 = vpop.permute.xlu1 %4017 }
0x17d6   :  { %v4023_v18 = vmul.f32 %v4018_v47, %v3931_v28  ;;  %v7114_v28 = vld [vmem:[%s11284_s25 + $0x60] sm:$0xf]  ;;  %v11455_v47 = vld [vmem:[#allocation73_spill] sm:$0xff] }
0x17d7   :  { %v7115_v57 = vor.u32 %v7502_v32, %v7114_v28 }
0x17d8   :  { %4027 = vrot.lane.b32.xlu2 %v4023_v18, %s8765_s18 }
0x17d9   :  { %4477 = vmatpush.bf16.msrb.mxu3 %v7115_v57 }
0x17dd   :  { %v4020_v49 = vpop.permute.xlu0 %4019 }
0x17de   :  { %v4024_v4 = vmul.f32 %v4020_v49, %v3946_v60 }
0x17e0   :  { %4029 = vrot.lane.b32.xlu1 %v4024_v4, %s8765_s18 }
0x1832   :  { %v4028_v31 = vpop.permute.xlu2 %4027 }
0x1833   :  { %v10618_v27 = vadd.f32 %v4028_v31, %v11452_v62 }
0x1835   :  { %v4035_v60 = vsel %vm922_vm2, %v10618_v27, 0.0 }
0x1836   :  { %4036 = vadd.xlane.f32.xlu0 %v4035_v60 }
0x1852   :  { %v4030_v51 = vpop.permute.xlu1 %4029 }
0x1853   :  { %v10629_v19 = vadd.f32 %v4030_v51, %v11453_v22  ;;  %v7496_v51 = vld [vmem:[#allocation25 + $0x18] sm:$0xff] }
0x1854   :  { %4117 = vmatpush.bf16.msra.mxu1 %v7496_v51 }
0x1855   :  { %v4038_v62 = vsel %vm922_vm2, %v10629_v19, 0.0  ;;  %v4183_v11 = vpack.c.bf16 %v10629_v19, %v10618_v27 }
0x1856   :  { %4039 = vadd.xlane.f32.xlu2 %v4038_v62 }
0x1857   :  { %7074 = vmatmul.msk.bf16.vlgmr.msra.gmra.mxu3 %vm922_vm2, %v4183_v11 }
0x1858   :  { %4590 = vmatpush.bf16.xpose.msra.mxu3 %v4581_v59  ;;  %4118 = vmatpush.bf16.msra.mxu1 %v7495_v5 }
0x18a9   :  { %v4037_v10 = vpop.xlane.xlu0 %4036 }
0x18aa   :  { %v4041_v18 = vmul.f32 %v4037_v10, %v11455_v47 }
0x18ac   :  { %v4043_v49 = vsub.f32 %v10618_v27, %v4041_v18 }
0x18ae   :  { %v4045_v22 = vmul.f32 %v4043_v49, %v4043_v49 }
0x18b0   :  { %v4047_v4 = vsel %vm922_vm2, %v4045_v22, 0.0 }
0x18b1   :  { %4048 = vadd.xlane.f32.xlu1 %v4047_v4 }
0x18c9   :  { %v4040_v55 = vpop.xlane.xlu2 %4039 }
0x18ca   :  { %v4042_v50 = vmul.f32 %v4040_v55, %v11455_v47 }
0x18cc   :  { %v4044_v54 = vsub.f32 %v10629_v19, %v4042_v50 }
0x18ce   :  { %v4046_v25 = vmul.f32 %v4044_v54, %v4044_v54 }
0x18d0   :  { %v4050_v45 = vsel %vm922_vm2, %v4046_v25, 0.0 }
0x18d1   :  { %4051 = vadd.xlane.f32.xlu0 %v4050_v45 }
0x1924   :  { %v4049_v31 = vpop.xlane.xlu1 %4048 }
0x1925   :  { %v4053_v28 = vmul.f32 %v4049_v31, %v11455_v47 }
0x1927   :  { %v4055_v32 = vadd.f32 1e-05, %v4053_v28 }
0x1929   :  { %7976 = vrsqrt.f32 %v4055_v32  ;;  %vm4063_vm14 = vweird.f32 %v4055_v32 }
0x192f   :  { %v7977_v57 = vpop.eup %7976 }
0x1930   :  { %v4058_v60 = vmul.f32 %v7977_v57, %v4055_v32  ;;  %vm4064_vm13 = vweird.f32 %v7977_v57 }
0x1931   :  { %vm4065_vm11 = vmor %vm4063_vm14, %vm4064_vm13 }
0x1932   :  { %v4059_v62 = vmul.f32 %v7977_v57, %v4058_v60  ;;  %v8065_v60 = vld [vmem:[#allocation14 + $0x4] sm:$0xf] }
0x1933   :  { %v4079_v51 = vperm.slane %v8065_v60, 2 }
0x1934   :  { %v4060_v18 = vmul.f32 0.5, %v4059_v62 }
0x1936   :  { %v4061_v22 = vsub.f32 1.5, %v4060_v18 }
0x1938   :  { %v4062_v55 = vmul.f32 %v7977_v57, %v4061_v22 }
0x193a   :  { %v4066_v45 = vsel %vm4065_vm11, %v7977_v57, %v4062_v55 }
0x1944   :  { %v4052_v11 = vpop.xlane.xlu0 %4051 }
0x1945   :  { %v4054_v59 = vmul.f32 %v4052_v11, %v11455_v47  ;;  %v4077_v11 = vmul.f32 %v4066_v45, %v4043_v49  ;;  %v7498_v49 = vld [vmem:[%s11384_s22 + $0x28] sm:$0xff]  ;;  %v7497_v45 = vld [vmem:[%s11384_s22 + $0x20] sm:$0xff] }
0x1947   :  { %v4056_v10 = vadd.f32 1e-05, %v4054_v59  ;;  %v4082_v59 = vperm.slane %v8065_v60, 3  ;;  %v4080_v18 = vmul.f32 %v4079_v51, %v4077_v11 }
0x1949   :  { %7978 = vrsqrt.f32 %v4056_v10  ;;  %vm4073_vm1 = vweird.f32 %v4056_v10 }
0x194f   :  { %v7979_v4 = vpop.eup %7978 }
0x1950   :  { %v4068_v50 = vmul.f32 %v7979_v4, %v4056_v10  ;;  %vm4074_vm0 = vweird.f32 %v7979_v4 }
0x1951   :  { %vm4075_vm4 = vmor %vm4073_vm1, %vm4074_vm0 }
0x1952   :  { %v4069_v25 = vmul.f32 %v7979_v4, %v4068_v50  ;;  %v4083_v50 = vadd.f32 %v4082_v59, %v4080_v18  ;;  %v7481_v18 = vld [vmem:[#allocation16 + $0x30] sm:$0xff] }
0x1954   :  { %v4070_v31 = vmul.f32 0.5, %v4069_v25  ;;  %v7500_v25 = vld [vmem:[%s11384_s22 + $0x38] sm:$0xff] }
0x1955   :  { %4173 = vmatpush.bf16.msra.mxu2 %v7500_v25 }
0x1956   :  { %v4071_v28 = vsub.f32 1.5, %v4070_v31  ;;  %v7499_v31 = vld [vmem:[%s11384_s22 + $0x30] sm:$0xff] }
0x1958   :  { %v4072_v5 = vmul.f32 %v7979_v4, %v4071_v28  ;;  %v7839_v28 = vld [vmem:[#allocation26 + $0x1] ss:$0 sm:$0xff] }
0x1959   :  { %4174 = vmatpush.bf16.msra.mxu2 %v7499_v31 }
0x195a   :  { %v4076_v62 = vsel %vm4075_vm4, %v7979_v4, %v4072_v5 }
0x195b   :  { %v4078_v32 = vmul.f32 %v4076_v62, %v4044_v54  ;;  %v7482_v62 = vld [vmem:[#allocation16 + $0x38] sm:$0xff] }
0x195c   :  { %4235 = vmatpush.bf16.msrb.mxu0 %v7482_v62  ;;  %v7493_v62 = vld [vmem:[#allocation20 + $0x30] sm:$0xff] }
0x195d   :  { %v4081_v22 = vmul.f32 %v4079_v51, %v4078_v32  ;;  %4175 = vmatpush.bf16.msra.mxu2 %v7498_v49  ;;  %v7485_v32 = vld [vmem:[#allocation17 + $0x30] sm:$0xff]  ;;  %v4209_v49 = vpop.f32.mrf.mxu3 }
0x195f   :  { %v4084_v57 = vadd.f32 %v4082_v59, %v4081_v22  ;;  %v7486_v59 = vld [vmem:[#allocation17 + $0x38] sm:$0xff] }
0x1960   :  { %4236 = vmatpush.bf16.msrb.mxu0 %v7481_v18 }
0x1961   :  { %v4090_v55 = vpack.c.bf16 %v4084_v57, %v4083_v50  ;;  %4176 = vmatpush.bf16.msra.mxu2 %v7497_v45  ;;  %v7840_v50 = vld [vmem:[#allocation28 + $0x1] ss:$0 sm:$0xff]  ;;  %v7841_v45 = vld [vmem:[#allocation22 + $0x3] ss:$0 sm:$0xff] }
0x1963   :  { %7040 = vmatmul.msk.bf16.vlgmr.msra.gmra.mxu1 %vm922_vm2, %v4090_v55 }
0x1965   :  { %4336 = vmatpush.bf16.msrb.mxu2 %v7486_v59 }
0x1969   :  { %4337 = vmatpush.bf16.msrb.mxu2 %v7485_v32 }
0x19e0   :  { %v4120_v10 = vpop.f32.mrf.mxu1 }
0x19e1   :  { %v4121_v4 = vadd.f32 %v7839_v28, %v4120_v10 }
0x19e3   :  { %v4125_v54 = vmax.f32 %v4121_v4, 0.0 }
0x19e8   :  { %v4122_v60 = vpop.f32.mrf.mxu1 }
0x19e9   :  { %v4123_v11 = vadd.f32 %v7839_v28, %v4122_v60 }
0x19eb   :  { %v4126_v51 = vmax.f32 %v4123_v11, 0.0  ;;  %v7494_v11 = vld [vmem:[#allocation20 + $0x38] sm:$0xff] }
0x19ec   :  { %4310 = vmatpush.bf16.msrb.mxu1 %v7494_v11 }
0x19ed   :  { %v4136_v5 = vpack.c.bf16 %v4126_v51, %v4125_v54  ;;  %v4211_v54 = vpop.f32.mrf.mxu3 }
0x19ef   :  { %7065 = vmatmul.msk.bf16.vlgmr.msra.gmra.mxu2 %vm2493_vm3, %v4136_v5 }
0x19f0   :  { %4311 = vmatpush.bf16.msrb.mxu1 %v7493_v62 }
0x1a72   :  { %v4178_v22 = vpop.f32.mrf.mxu2 }
0x1a73   :  { %v4179_v55 = vadd.f32 %v7840_v50, %v4178_v22 }
0x1a7a   :  { %v4180_v57 = vpop.f32.mrf.mxu2 }
0x1a7b   :  { %v4181_v25 = vadd.f32 %v7840_v50, %v4180_v57 }
0x1a7d   :  { %v4184_v31 = vpack.c.bf16 %v4181_v25, %v4179_v55 }
0x1a7f   :  { %7083 = vmatmul.msk.bf16.vlgmr.msrb.gmra.mxu0 %vm922_vm2, %v4184_v31  ;;  %7103 = vmatmul.msk.bf16.vlgmr.msrb.gmra.mxu2 %vm922_vm2, %v4184_v31 }
0x1afc   :  { %v4238_v10 = vpop.f32.mrf.mxu0 }
0x1afd   :  { %v4239_v28 = vadd.f32 %v4238_v10, %v4209_v49 }
0x1aff   :  { %v4246_v4 = vadd.f32 %v7841_v45, %v4239_v28 }
0x1b01   :  { %v7084_v60 = vmul.f32 -1.442695, %v4246_v4 }
0x1b03   :  { %7980 = vpow2.f32 %v7084_v60 }
0x1b04   :  { %v4240_v51 = vpop.f32.mrf.mxu0 }
0x1b05   :  { %v4241_v5 = vadd.f32 %v4240_v51, %v4211_v54 }
0x1b07   :  { %v4247_v59 = vadd.f32 %v7841_v45, %v4241_v5 }
0x1b09   :  { %v7981_v18 = vpop.eup %7980  ;;  %v7085_v32 = vmul.f32 -1.442695, %v4247_v59 }
0x1b0a   :  { %v4254_v22 = vadd.f32 1.0, %v7981_v18 }
0x1b0b   :  { %7982 = vpow2.f32 %v7085_v32 }
0x1b0c   :  { %7984 = vrcp.f32 %v4254_v22  ;;  %v4267_v60 = vand.u32 2147483648, %v4254_v22  ;;  %vm4261_vm5 = vweird.f32 %v4254_v22  ;;  %v4265_v45 = vand.u32 2147483647, %v4254_v22 }
0x1b0e   :  { %v4268_v59 = vor.u32 1.1754944e-38, %v4267_v60  ;;  %vm4266_vm8 = vcmp.eq.f32.partialorder %v4265_v45, 8.507059e+37 }
0x1b11   :  { %v7983_v50 = vpop.eup %7982 }
0x1b12   :  { %v7985_v57 = vpop.eup %7984  ;;  %v4255_v55 = vadd.f32 1.0, %v7983_v50 }
0x1b13   :  { %v4257_v25 = vmul.f32 %v7985_v57, %v4254_v22  ;;  %vm4262_vm6 = vweird.f32 %v7985_v57 }
0x1b14   :  { %7986 = vrcp.f32 %v4255_v55  ;;  %vm4263_vm10 = vmor %vm4261_vm5, %vm4262_vm6  ;;  %v4282_v54 = vand.u32 2147483648, %v4255_v55  ;;  %v4280_v62 = vand.u32 2147483647, %v4255_v55  ;;  %vm4276_vm9 = vweird.f32 %v4255_v55 }
0x1b15   :  { %v4258_v31 = vsub.f32 1.0, %v4257_v25 }
0x1b16   :  { %v4283_v32 = vor.u32 1.1754944e-38, %v4282_v54  ;;  %vm4281_vm13 = vcmp.eq.f32.partialorder %v4280_v62, 8.507059e+37 }
0x1b17   :  { %v4259_v49 = vmul.f32 %v7985_v57, %v4258_v31 }
0x1b19   :  { %v4260_v28 = vadd.f32 %v7985_v57, %v4259_v49 }
0x1b1a   :  { %v7987_v10 = vpop.eup %7986 }
0x1b1b   :  { %v4272_v4 = vmul.f32 %v7987_v10, %v4255_v55  ;;  %v4264_v51 = vsel %vm4263_vm10, %v7985_v57, %v4260_v28  ;;  %vm4277_vm7 = vweird.f32 %v7987_v10  ;;  %v4339_v57 = vpop.f32.mrf.mxu2  ;;  %v7842_v28 = vld [vmem:[#allocation23 + $0x3] ss:$0 sm:$0xff] }
0x1b1c   :  { %vm4278_vm12 = vmor %vm4276_vm9, %vm4277_vm7  ;;  %v4269_v50 = vsel %vm4266_vm8, %v4268_v59, %v4264_v51 }
0x1b1d   :  { %v4273_v11 = vsub.f32 1.0, %v4272_v4  ;;  %v4286_v49 = vmul.f32 %v4269_v50, %v10618_v27 }
0x1b1f   :  { %v4274_v5 = vmul.f32 %v7987_v10, %v4273_v11 }
0x1b21   :  { %v4275_v18 = vadd.f32 %v7987_v10, %v4274_v5 }
0x1b23   :  { %v4279_v25 = vsel %vm4278_vm12, %v7987_v10, %v4275_v18  ;;  %v4341_v55 = vpop.f32.mrf.mxu2 }
0x1b24   :  { %v4284_v31 = vsel %vm4281_vm13, %v4283_v32, %v4279_v25 }
0x1b25   :  { %v4287_v22 = vmul.f32 %v4284_v31, %v10629_v19 }
0x1b27   :  { %v4288_v4 = vpack.c.bf16 %v4287_v22, %v4286_v49 }
0x1b29   :  { %7094 = vmatmul.msk.bf16.vlgmr.msrb.gmra.mxu1 %vm922_vm2, %v4288_v4 }
0x1ba6   :  { %v4313_v11 = vpop.f32.mrf.mxu1 }
0x1ba7   :  { %v4340_v60 = vadd.f32 %v4339_v57, %v4313_v11 }
0x1ba9   :  { %v4347_v45 = vadd.f32 %v7842_v28, %v4340_v60 }
0x1bab   :  { %7988 = vtanh.f32 %v4347_v45 }
0x1bae   :  { %v4315_v5 = vpop.f32.mrf.mxu1 }
0x1baf   :  { %v4342_v54 = vadd.f32 %v4341_v55, %v4315_v5  ;;  %v7506_v55 = vld [vmem:[%s11284_s25 + $0x88] sm:$0xf0] }
0x1bb1   :  { %v7989_v51 = vpop.eup %7988  ;;  %v4348_v10 = vadd.f32 %v7842_v28, %v4342_v54 }
0x1bb2   :  { %v4351_v62 = vsub.f32 %v7989_v51, %v10618_v27 }
0x1bb3   :  { %7990 = vtanh.f32 %v4348_v10  ;;  %v7503_v10 = vld [vmem:[%s11284_s25 + $0x70] sm:$0xf0] }
0x1bb4   :  { %4355 = vrot.lane.b32.xlu2 %v4351_v62, %s8767_s13 }
0x1bb9   :  { %v7991_v59 = vpop.eup %7990 }
0x1bba   :  { %v4352_v18 = vsub.f32 %v7991_v59, %v10629_v19 }
0x1bbc   :  { %4357 = vrot.lane.b32.xlu1 %v4352_v18, %s8767_s13 }
0x1c0e   :  { %v4356_v32 = vpop.permute.xlu2 %4355 }
0x1c0f   :  { %v4361_v25 = vmul.f32 %v4356_v32, %v4269_v50 }
0x1c11   :  { %4365 = vrot.lane.b32.xlu0 %v4361_v25, %s8765_s18 }
0x1c2e   :  { %v4358_v49 = vpop.permute.xlu1 %4357 }
0x1c2f   :  { %v4362_v22 = vmul.f32 %v4358_v49, %v4284_v31  ;;  %v4624_v31 = vunpack.c.l.b16 %v10626_v44 }
0x1c31   :  { %4367 = vrot.lane.b32.xlu2 %v4362_v22, %s8765_s18  ;;  %v10674_v45 = vpack.c.b16 %v4624_v31, %v4624_v31 }
0x1c83   :  { %v4366_v4 = vpop.permute.xlu0 %4365 }
0x1c84   :  { %v10664_v57 = vadd.f32 %v4366_v4, %v10618_v27  ;;  %v7134_v27 = vld [vmem:[%s11284_s25 + $0x80] sm:$0xf] }
0x1c85   :  { %v7135_v5 = vor.u32 %v7506_v55, %v7134_v27  ;;  %v7504_v55 = vld [vmem:[%s11284_s25 + $0x7c] sm:$0xf] }
0x1c86   :  { %11456 = vst [vmem:[#allocation93_spill] sm:$0xff] %v10664_v57  ;;  %v4375_v28 = vsel %vm922_vm2, %v10664_v57, 0.0 }
0x1c87   :  { %4376 = vadd.xlane.f32.xlu0 %v4375_v28  ;;  %4504 = vmatpush.bf16.msra.mxu1 %v7135_v5  ;;  %v7128_v5 = vld [vmem:[%s11284_s25 + $0x84] sm:$0xf0] }
0x1c8b   :  { %v4368_v11 = vpop.permute.xlu2 %4367 }
0x1c8c   :  { %v10669_v50 = vadd.f32 %v4368_v11, %v10629_v19  ;;  %v7122_v19 = vld [vmem:[%s11284_s25 + $0x68] sm:$0xf] }
0x1c8d   :  { %v7123_v62 = vor.u32 %v7503_v10, %v7122_v19  ;;  %v7116_v19 = vld [vmem:[%s11284_s25 + $0x6c] sm:$0xf0] }
0x1c8e   :  { %11457 = vst [vmem:[#allocation94_spill] sm:$0xff] %v10669_v50  ;;  %v4378_v60 = vsel %vm922_vm2, %v10669_v50, 0.0 }
0x1c8f   :  { %4379 = vadd.xlane.f32.xlu1 %v4378_v60  ;;  %4505 = vmatpush.bf16.msra.mxu1 %v7123_v62 }
0x1ca8   :  { %4626 = vrot.lane.b32.xlu1 %v10674_v45, %s8765_s18 }
0x1cfa   :  { %v4377_v54 = vpop.xlane.xlu0 %4376 }
0x1cfb   :  { %v4381_v51 = vmul.f32 %v4377_v54, %v11455_v47  ;;  %v7501_v54 = vld [vmem:[%s11284_s25 + $0x64] sm:$0xf] }
0x1cfc   :  { %v7119_v62 = vor.u32 %v7501_v54, %v7116_v19 }
0x1cfd   :  { %v4383_v59 = vsub.f32 %v10664_v57, %v4381_v51  ;;  %v7131_v51 = vor.u32 %v7504_v55, %v7128_v5  ;;  %v4374_v5 = vld [vmem:[#allocation14 + $0x8] sm:$0xf] }
0x1cff   :  { %v4385_v18 = vmul.f32 %v4383_v59, %v4383_v59  ;;  %4490 = vmatpush.bf16.msra.mxu0 %v7131_v51 }
0x1d01   :  { %v4387_v44 = vsel %vm922_vm2, %v4385_v18, 0.0 }
0x1d02   :  { %4388 = vadd.xlane.f32.xlu2 %v4387_v44  ;;  %v4380_v32 = vpop.xlane.xlu1 %4379 }
0x1d03   :  { %v4382_v25 = vmul.f32 %v4380_v32, %v11455_v47  ;;  %4491 = vmatpush.bf16.msra.mxu0 %v7119_v62 }
0x1d05   :  { %v4384_v49 = vsub.f32 %v10669_v50, %v4382_v25 }
0x1d07   :  { %v4386_v22 = vmul.f32 %v4384_v49, %v4384_v49 }
0x1d09   :  { %v4390_v4 = vsel %vm922_vm2, %v4386_v22, 0.0 }
0x1d0a   :  { %4391 = vadd.xlane.f32.xlu0 %v4390_v4 }
0x1d1a   :  { %v4627_v28 = vpop.permute.xlu1 %4626 }
0x1d1b   :  { %v4632_v11 = vsel %vm922_vm2, %v4627_v28, 0 }
0x1d1c   :  { %4641 = vmatpush.bf16.xpose.msrb.mxu1 %v4632_v11 }
0x1d75   :  { %v4389_v60 = vpop.xlane.xlu2 %4388 }
0x1d76   :  { %v4393_v31 = vmul.f32 %v4389_v60, %v11455_v47 }
0x1d78   :  { %v4395_v27 = vadd.f32 1e-05, %v4393_v31 }
0x1d7a   :  { %7992 = vrsqrt.f32 %v4395_v27  ;;  %vm4403_vm11 = vweird.f32 %v4395_v27 }
0x1d7d   :  { %v4392_v10 = vpop.xlane.xlu0 %4391 }
0x1d7e   :  { %v4394_v18 = vmul.f32 %v4392_v10, %v11455_v47  ;;  %v4419_v10 = vperm.slane %v4374_v5, 0 }
0x1d80   :  { %v7993_v44 = vpop.eup %7992  ;;  %v4396_v32 = vadd.f32 1e-05, %v4394_v18 }
0x1d81   :  { %v4398_v25 = vmul.f32 %v7993_v44, %v4395_v27  ;;  %vm4404_vm14 = vweird.f32 %v7993_v44 }
0x1d82   :  { %7994 = vrsqrt.f32 %v4396_v32  ;;  %vm4405_vm0 = vmor %vm4403_vm11, %vm4404_vm14  ;;  %vm4413_vm4 = vweird.f32 %v4396_v32 }
0x1d83   :  { %v4399_v22 = vmul.f32 %v7993_v44, %v4398_v25  ;;  %v4422_v25 = vperm.slane %v4374_v5, 1  ;;  %v8067_v5 = vld [vmem:[#allocation13 + $0x1] ss:$0 sm:$0xff] }
0x1d85   :  { %v4400_v4 = vmul.f32 0.5, %v4399_v22 }
0x1d87   :  { %v4401_v28 = vsub.f32 1.5, %v4400_v4 }
0x1d88   :  { %v7995_v11 = vpop.eup %7994 }
0x1d89   :  { %v4402_v60 = vmul.f32 %v7993_v44, %v4401_v28  ;;  %v4408_v31 = vmul.f32 %v7995_v11, %v4396_v32  ;;  %vm4414_vm1 = vweird.f32 %v7995_v11 }
0x1d8a   :  { %vm4415_vm6 = vmor %vm4413_vm4, %vm4414_vm1 }
0x1d8b   :  { %v4409_v55 = vmul.f32 %v7995_v11, %v4408_v31  ;;  %v4406_v51 = vsel %vm4405_vm0, %v7993_v44, %v4402_v60 }
0x1d8c   :  { %v4417_v18 = vmul.f32 %v4406_v51, %v4383_v59 }
0x1d8d   :  { %v4410_v54 = vmul.f32 0.5, %v4409_v55  ;;  %v8066_v55 = vld [vmem:[#allocation13] ss:$0 sm:$0xff] }
0x1d8e   :  { %v4420_v22 = vmul.f32 %v4419_v10, %v4417_v18 }
0x1d8f   :  { %v4411_v19 = vsub.f32 1.5, %v4410_v54 }
0x1d90   :  { %v4423_v50 = vadd.f32 %v4422_v25, %v4420_v22 }
0x1d91   :  { %v4412_v47 = vmul.f32 %v7995_v11, %v4411_v19 }
0x1d93   :  { %v4416_v62 = vsel %vm4415_vm6, %v7995_v11, %v4412_v47 }
0x1d94   :  { %v4418_v4 = vmul.f32 %v4416_v62, %v4384_v49 }
0x1d96   :  { %v4421_v28 = vmul.f32 %v4419_v10, %v4418_v4 }
0x1d98   :  { %v4424_v57 = vadd.f32 %v4422_v25, %v4421_v28 }
0x1d9a   :  { %v4434_v27 = vpack.c.bf16 %v4424_v57, %v4423_v50 }
0x1d9c   :  { %7136 = vmatmul.msk.bf16.vlgmr.msrb.gmra.mxu3 %vm922_vm2, %v4434_v27  ;;  %7137 = vmatmul.msk.bf16.vlgmr.msra.gmra.mxu0 %vm922_vm2, %v4434_v27 }
0x1d9d   :  { %7138 = vmatmul.msk.bf16.vlgmr.msra.gmra.mxu1 %vm922_vm2, %v4434_v27 }
0x1e19   :  { %v4493_v44 = vpop.f32.mrf.mxu0 }
0x1e1a   :  { %v4512_v59 = vpack.c.bf16 %v4493_v44, %v4493_v44  ;;  %v4507_v25 = vpop.f32.mrf.mxu1 }
0x1e1c   :  { %v4549_v11 = vunpack.c.l.b16 %v4512_v59 }
0x1e1f   :  { %v4479_v60 = vpop.f32.mrf.mxu3 }
0x1e20   :  { %v4517_v47 = vadd.f32 %v8066_v55, %v4479_v60  ;;  %v4521_v49 = vadd.f32 %v8067_v5, %v4479_v60 }
0x1e21   :  { %v4495_v31 = vpop.f32.mrf.mxu0 }
0x1e22   :  { %v4513_v32 = vpack.c.bf16 %v4495_v31, %v4495_v31  ;;  %v4519_v19 = vpack.c.bf16 %v4517_v47, %v4517_v47  ;;  %v4523_v50 = vpack.c.bf16 %v4521_v49, %v4521_v49  ;;  %v4514_v47 = vpack.c.bf16 %v4507_v25, %v4507_v25 }
0x1e24   :  { %v4550_v51 = vunpack.c.l.b16 %v4513_v32  ;;  %v4544_v28 = vunpack.c.l.b16 %v4519_v19  ;;  %v4574_v27 = vunpack.c.l.b16 %v4523_v50  ;;  %v4509_v32 = vpop.f32.mrf.mxu1 }
0x1e26   :  { %v4551_v54 = vpack.c.b16 %v4550_v51, %v4549_v11 }
0x1e27   :  { %v4481_v57 = vpop.f32.mrf.mxu3 }
0x1e28   :  { %v4518_v10 = vadd.f32 %v8066_v55, %v4481_v57  ;;  %v4522_v18 = vadd.f32 %v8067_v5, %v4481_v57  ;;  %4650 = vrot.lane.b32.xlu1 %v4551_v54, %s8736_s8  ;;  %4599 = vrot.lane.b32.xlu0 %v4551_v54, %s8765_s18  ;;  %v4556_v62 = vsel %vm922_vm2, %v4551_v54, 0  ;;  %v4515_v55 = vpack.c.bf16 %v4509_v32, %v4509_v32 }
0x1e29   :  { %4565 = vmatpush.bf16.xpose.msra.mxu2 %v4556_v62  ;;  %v5255_v5 = vunpack.c.l.b16 %v4514_v47  ;;  %v11458_v32 = vmov 2   ;;  %v11460_v47 = vmov 0  }
0x1e2a   :  { %v4520_v22 = vpack.c.bf16 %v4518_v10, %v4518_v10  ;;  %v4524_v4 = vpack.c.bf16 %v4522_v18, %v4522_v18  ;;  %v5256_v11 = vunpack.c.l.b16 %v4515_v55  ;;  %v11459_v55 = vmov 6  }
0x1e2c   :  { %v4545_v44 = vunpack.c.l.b16 %v4520_v22  ;;  %v4575_v60 = vunpack.c.l.b16 %v4524_v4  ;;  %v10711_v49 = vpack.c.b16 %v5256_v11, %v5255_v5  ;;  %v11461_v5 = vmov 3  }
0x1e2e   :  { %v4546_v59 = vpack.c.b16 %v4545_v44, %v4544_v28  ;;  %v4576_v31 = vpack.c.b16 %v4575_v60, %v4574_v27 }
0x1e30   :  { %4698 = vrot.lane.b32.xlu1 %v4551_v54, %s8767_s13  ;;  %4621 = vrot.lane.b32.xlu2 %v4576_v31, %s8765_s18 }
0x1e31   :  { %7140 = vmatmul.msk.bf16.vlgmr.msra.gmra.mxu3 %vm922_vm2, %v4576_v31  ;;  %4597 = vrot.lane.b32.xlu0 %v4546_v59, %s8765_s18 }
0x1e32   :  { %7139 = vmatmul.msk.bf16.vlgmr.msra.gmra.mxu2 %vm922_vm2, %v4546_v59 }
0x1e38   :  { %4672 = vrot.lane.b32.xlu1 %v4576_v31, %s8736_s8  ;;  %4674 = vrot.lane.b32.xlu2 %v10674_v45, %s8736_s8 }
0x1e39   :  { %4722 = vrot.lane.b32.xlu0 %v10674_v45, %s8767_s13 }
0x1e40   :  { %5282 = vrot.lane.b32.xlu2 %v10711_v49, %s8765_s18 }
0x1e48   :  { %4720 = vrot.lane.b32.xlu2 %v4576_v31, %s8767_s13 }
0x1e50   :  { %4648 = vrot.lane.b32.xlu2 %v4546_v59, %s8736_s8 }
0x1e58   :  { %4696 = vrot.lane.b32.xlu2 %v4546_v59, %s8767_s13 }
0x1e8a   :  { %v4622_v51 = vpop.permute.xlu2 %4621 }
0x1e8b   :  { %7142 = vmatmul.msk.bf16.vlgmr.msrb.gmra.mxu1 %vm922_vm2, %v4622_v51 }
0x1e92   :  { %v4675_v54 = vpop.permute.xlu2 %4674 }
0x1e93   :  { %v4680_v19 = vsel %vm922_vm2, %v4675_v54, 0 }
0x1e94   :  { %4689 = vmatpush.bf16.xpose.msrb.mxu3 %v4680_v19 }
0x1e9a   :  { %v4651_v45 = vpop.permute.xlu1 %4650  ;;  %v4600_v57 = vpop.permute.xlu0 %4599 }
0x1e9b   :  { %v4656_v50 = vsel %vm922_vm2, %v4651_v45, 0  ;;  %v4605_v10 = vsel %vm922_vm2, %v4600_v57, 0  ;;  %v5283_v18 = vpop.permute.xlu2 %5282 }
0x1e9c   :  { %5295 = vmatpush.bf16.msra.mxu3 %v5283_v18  ;;  %4614 = vmatpush.bf16.xpose.msrb.mxu0 %v4605_v10 }
0x1e9d   :  { %4665 = vmatpush.bf16.xpose.msrb.mxu2 %v4656_v50 }
0x1ea2   :  { %v4699_v62 = vpop.permute.xlu1 %4698 }
0x1ea3   :  { %v4704_v25 = vsel %vm922_vm2, %v4699_v62, 0  ;;  %v4721_v22 = vpop.permute.xlu2 %4720  ;;  %v4598_v4 = vpop.permute.xlu0 %4597 }
0x1ea4   :  { %7141 = vmatmul.msk.bf16.vlgmr.msrb.gmra.mxu0 %vm922_vm2, %v4598_v4 }
0x1ea5   :  { %5269 = vmatpush.bf16.msra.mxu2 %v10711_v49  ;;  %4713 = vmatpush.bf16.xpose.msra.mxu0 %v4704_v25 }
0x1eaa   :  { %v4673_v28 = vpop.permute.xlu1 %4672 }
0x1eab   :  { %v4649_v27 = vpop.permute.xlu2 %4648  ;;  %v4723_v44 = vpop.permute.xlu0 %4722  ;;  %7144 = vmatmul.msk.bf16.vlgmr.msrb.gmra.mxu3 %vm922_vm2, %v4673_v28 }
0x1eac   :  { %v4728_v60 = vsel %vm922_vm2, %v4723_v44, 0  ;;  %7143 = vmatmul.msk.bf16.vlgmr.msrb.gmra.mxu2 %vm922_vm2, %v4649_v27 }
0x1ead   :  { %4737 = vmatpush.bf16.xpose.msra.mxu1 %v4728_v60 }
0x1eb3   :  { %v4697_v59 = vpop.permute.xlu2 %4696 }
0x1eb4   :  { %v4592_v31 = vpop.f32.mrf.mxu3  ;;  %7145 = vmatmul.msk.bf16.vlgmr.msra.gmra.mxu0 %vm922_vm2, %v4697_v59  ;;  %7146 = vmatmul.msk.bf16.vlgmr.msra.gmra.mxu1 %vm922_vm2, %v4721_v22 }
0x1eb5   :  { %4945 = vperm.xlu1 %7769, %v4592_v31   ;;  %4801 = vperm.xlu2 %7766, %v4592_v31   ;;  %v4567_v18 = vpop.f32.mrf.mxu2 }
0x1eb6   :  { %4746 = vperm.xlu0 %7765, %v4592_v31  }
0x1ebc   :  { %v4594_v11 = vpop.f32.mrf.mxu3 }
0x1ebd   :  { %7770 = vset.pattern.permute.xlu1 %v11326_v42  ;;  %7767 = vset.pattern.permute.xlu2 %v11458_v32 }
0x1ebe   :  { %7771 = vset.pattern.permute.xlu0 %v11459_v55  ;;  %4993 = vperm.xlu1 %7770, %v4592_v31  }
0x1ebf   :  { %4849 = vperm.xlu2 %7767, %v4592_v31   ;;  %5041 = vperm.xlu0 %7771, %v4592_v31  }
0x1ec6   :  { %7773 = vset.pattern.permute.xlu1 %v11460_v47 }
0x1ec7   :  { %7768 = vset.pattern.permute.xlu2 %v11461_v5  ;;  %7776 = vset.pattern.permute.xlu0 %v11461_v5 }
0x1ec8   :  { %4751 = vperm.xlu1 %7773, %v4594_v11   ;;  %4897 = vperm.xlu2 %7768, %v4592_v31  }
0x1ec9   :  { %4901 = vperm.xlu0 %7776, %v4594_v11  }
0x1ed0   :  { %7774 = vset.pattern.permute.xlu1 %v11312_v14  ;;  %7772 = vset.pattern.permute.xlu2 %v11315_v63 }
0x1ed1   :  { %4805 = vperm.xlu1 %7774, %v4594_v11   ;;  %5089 = vperm.xlu2 %7772, %v4592_v31  }
0x1ed2   :  { %7781 = vset.pattern.permute.xlu0 %v11460_v47 }
0x1ed9   :  { %7775 = vset.pattern.permute.xlu1 %v11458_v32  ;;  %7777 = vset.pattern.permute.xlu2 %v11316_v0 }
0x1eda   :  { %4853 = vperm.xlu1 %7775, %v4594_v11   ;;  %4949 = vperm.xlu2 %7777, %v4594_v11  }
0x1ee2   :  { %7779 = vset.pattern.permute.xlu1 %v11459_v55  ;;  %7778 = vset.pattern.permute.xlu2 %v11326_v42 }
0x1ee3   :  { %5045 = vperm.xlu1 %7779, %v4594_v11   ;;  %4997 = vperm.xlu2 %7778, %v4594_v11  }
0x1eeb   :  { %7780 = vset.pattern.permute.xlu1 %v11315_v63 }
0x1eec   :  { %5093 = vperm.xlu1 %7780, %v4594_v11  }
0x1ef4   :  { %7782 = vset.pattern.permute.xlu1 %v11312_v14 }
0x1f08   :  { %v4643_v51 = vpop.f32.mrf.mxu1 }
0x1f09   :  { %4809 = vperm.xlu1 %7782, %v4643_v51   ;;  %5001 = vperm.xlu2 %7778, %v4643_v51  }
0x1f0a   :  { %4756 = vperm.xlu0 %7781, %v4643_v51  }
0x1f0f   :  { %v4802_v54 = vpop.permute.xlu2 %4801 }
0x1f10   :  { %v10749_v19 = vpop.f32.mrf.mxu1  ;;  %v4832_v25 = vmul.f32 %v4802_v54, %v11415_v16 }
0x1f11   :  { %7783 = vset.pattern.permute.xlu1 %v11458_v32  ;;  %7786 = vset.pattern.permute.xlu2 %v11459_v55 }
0x1f12   :  { %7787 = vset.pattern.permute.xlu0 %v11315_v63  ;;  %4857 = vperm.xlu1 %7783, %v4643_v51  }
0x1f13   :  { %5049 = vperm.xlu2 %7786, %v4643_v51   ;;  %5097 = vperm.xlu0 %7787, %v4643_v51  }
0x1f19   :  { %v4850_v45 = vpop.permute.xlu2 %4849 }
0x1f1a   :  { %7784 = vset.pattern.permute.xlu1 %v11461_v5  ;;  %v4880_v4 = vmul.f32 %v4850_v45, %v9724_v43 }
0x1f1b   :  { %7792 = vset.pattern.permute.xlu0 %v11458_v32  ;;  %4905 = vperm.xlu1 %7784, %v4643_v51  }
0x1f1c   :  { %4861 = vperm.xlu0 %7792, %v10749_v19   ;;  %7788 = vset.pattern.permute.xlu2 %v11460_v47 }
0x1f22   :  { %v4898_v62 = vpop.permute.xlu2 %4897 }
0x1f23   :  { %7785 = vset.pattern.permute.xlu1 %v11316_v0  ;;  %v4928_v44 = vmul.f32 %v4898_v62, %v11416_v3 }
0x1f24   :  { %7794 = vset.pattern.permute.xlu0 %v11316_v0  ;;  %4953 = vperm.xlu1 %7785, %v4643_v51  }
0x1f25   :  { %4957 = vperm.xlu0 %7794, %v10749_v19  }
0x1f27   :  { %v4946_v57 = vpop.permute.xlu1 %4945 }
0x1f28   :  { %v4747_v50 = vpop.permute.xlu0 %4746  ;;  %v4976_v16 = vmul.f32 %v4946_v57, %v11418_v8 }
0x1f29   :  { %v4784_v10 = vmul.f32 %v4747_v50, %v9678_v17 }
0x1f2b   :  { %v4792_v22 = vadd.f32 %v4784_v10, %v4567_v18  ;;  %v5090_v51 = vpop.permute.xlu2 %5089 }
0x1f2c   :  { %7789 = vset.pattern.permute.xlu1 %v11312_v14  ;;  %v5120_v3 = vmul.f32 %v5090_v51, %v9818_v46  ;;  %v4569_v46 = vpop.f32.mrf.mxu2 }
0x1f2d   :  { %v4840_v28 = vadd.f32 %v4832_v25, %v4792_v22  ;;  %7798 = vset.pattern.permute.xlu0 %v11460_v47 }
0x1f2e   :  { %v10762_v27 = vpop.f32.mrf.mxu3 }
0x1f2f   :  { %v4888_v60 = vadd.f32 %v4880_v4, %v4840_v28  ;;  %4817 = vperm.xlu1 %7789, %v10762_v27   ;;  %4766 = vperm.xlu2 %7788, %v10762_v27  }
0x1f30   :  { %v4994_v17 = vpop.permute.xlu1 %4993 }
0x1f31   :  { %v4936_v59 = vadd.f32 %v4928_v44, %v4888_v60  ;;  %v5024_v31 = vmul.f32 %v4994_v17, %v9763_v52  ;;  %v5042_v11 = vpop.permute.xlu0 %5041 }
0x1f32   :  { %v5072_v45 = vmul.f32 %v5042_v11, %v9802_v35 }
0x1f33   :  { %v4984_v43 = vadd.f32 %v4976_v16, %v4936_v59 }
0x1f34   :  { %v4950_v25 = vpop.permute.xlu2 %4949 }
0x1f35   :  { %v5032_v54 = vadd.f32 %v5024_v31, %v4984_v43 }
0x1f36   :  { %v10770_v50 = vpop.f32.mrf.mxu3 }
0x1f37   :  { %v5080_v10 = vadd.f32 %v5072_v45, %v5032_v54  ;;  %7790 = vset.pattern.permute.xlu1 %v11458_v32  ;;  %4761 = vperm.xlu2 %7788, %v10749_v19  }
0x1f38   :  { %4771 = vperm.xlu0 %7798, %v10770_v50   ;;  %4865 = vperm.xlu1 %7790, %v10762_v27  }
0x1f39   :  { %v10777_v52 = vadd.f32 %v5120_v3, %v5080_v10 }
0x1f3a   :  { %v4752_v8 = vpop.permute.xlu1 %4751 }
0x1f3b   :  { %v4785_v35 = vmul.f32 %v4752_v8, %v11408_v7  ;;  %v4902_v7 = vpop.permute.xlu0 %4901  ;;  %v11462_v8 = vld [vmem:[#allocation75_spill] sm:$0xff] }
0x1f3c   :  { %v4929_v44 = vmul.f32 %v4902_v7, %v11411_v41 }
0x1f3d   :  { %v4793_v18 = vadd.f32 %v4785_v35, %v4569_v46  ;;  %v4998_v17 = vpop.permute.xlu2 %4997 }
0x1f3e   :  { %v5025_v59 = vmul.f32 %v4998_v17, %v11413_v20  ;;  %v10809_v20 = vpop.f32.mrf.mxu1 }
0x1f3f   :  { %7791 = vset.pattern.permute.xlu2 %v11312_v14 }
0x1f40   :  { %7795 = vset.pattern.permute.xlu1 %v11326_v42  ;;  %4813 = vperm.xlu2 %7791, %v10749_v19  }
0x1f41   :  { %5005 = vperm.xlu1 %7795, %v10749_v19   ;;  %7801 = vset.pattern.permute.xlu0 %v11461_v5 }
0x1f43   :  { %v4806_v57 = vpop.permute.xlu1 %4805 }
0x1f44   :  { %v4833_v62 = vmul.f32 %v4806_v57, %v11409_v12  ;;  %v4977_v12 = vmul.f32 %v4950_v25, %v11412_v1  ;;  %v4616_v57 = vpop.f32.mrf.mxu0 }
0x1f46   :  { %v4841_v22 = vadd.f32 %v4833_v62, %v4793_v18  ;;  %v10813_v45 = vpop.f32.mrf.mxu1  ;;  %v11463_v62 = vld [vmem:[#allocation76_spill] sm:$0xff] }
0x1f48   :  { %7793 = vset.pattern.permute.xlu2 %v11461_v5 }
0x1f49   :  { %7796 = vset.pattern.permute.xlu1 %v11459_v55  ;;  %4909 = vperm.xlu2 %7793, %v10749_v19  }
0x1f4a   :  { %5053 = vperm.xlu1 %7796, %v10749_v19  }
0x1f4c   :  { %v4854_v4 = vpop.permute.xlu1 %4853 }
0x1f4d   :  { %v4881_v28 = vmul.f32 %v4854_v4, %v11410_v2 }
0x1f4f   :  { %v4889_v60 = vadd.f32 %v4881_v28, %v4841_v22  ;;  %v11464_v22 = vld [vmem:[#allocation77_spill] sm:$0xff] }
0x1f51   :  { %v4937_v16 = vadd.f32 %v4929_v44, %v4889_v60  ;;  %7797 = vset.pattern.permute.xlu2 %v11315_v63  ;;  %v11465_v44 = vld [vmem:[#allocation78_spill] sm:$0xff] }
0x1f52   :  { %5101 = vperm.xlu2 %7797, %v10749_v19   ;;  %7802 = vset.pattern.permute.xlu1 %v11461_v5 }
0x1f53   :  { %v4985_v31 = vadd.f32 %v4977_v12, %v4937_v16 }
0x1f55   :  { %v5046_v11 = vpop.permute.xlu1 %5045  ;;  %v5033_v43 = vadd.f32 %v5025_v59, %v4985_v31  ;;  %v11466_v59 = vld [vmem:[#allocation79_spill] sm:$0xff] }
0x1f56   :  { %v5073_v2 = vmul.f32 %v5046_v11, %v9659_v37  ;;  %v11467_v11 = vld [vmem:[#allocation80_spill] sm:$0xff] }
0x1f58   :  { %v5081_v51 = vadd.f32 %v5073_v2, %v5033_v43 }
0x1f5a   :  { %7799 = vset.pattern.permute.xlu2 %v11312_v14 }
0x1f5b   :  { %4821 = vperm.xlu2 %7799, %v10770_v50  }
0x1f5e   :  { %v5094_v41 = vpop.permute.xlu1 %5093 }
0x1f5f   :  { %v5121_v1 = vmul.f32 %v5094_v41, %v11414_v29  ;;  %v11468_v41 = vld [vmem:[#allocation81_spill] sm:$0xff] }
0x1f61   :  { %v10801_v54 = vadd.f32 %v5121_v1, %v5081_v51 }
0x1f63   :  { %7800 = vset.pattern.permute.xlu2 %v11458_v32  ;;  %v5002_v29 = vpop.permute.xlu2 %5001 }
0x1f64   :  { %4869 = vperm.xlu2 %7800, %v10770_v50   ;;  %v5026_v43 = vmul.f32 %v5002_v29, %v11467_v11  ;;  %v4618_v11 = vpop.f32.mrf.mxu0 }
0x1f6c   :  { %7803 = vset.pattern.permute.xlu2 %v11316_v0 }
0x1f6d   :  { %4961 = vperm.xlu2 %7803, %v10762_v27   ;;  %v5050_v10 = vpop.permute.xlu2 %5049 }
0x1f6e   :  { %v5074_v1 = vmul.f32 %v5050_v10, %v11468_v41  ;;  %v11473_v41 = vld [vmem:[#allocation86_spill] sm:$0xff] }
0x1f75   :  { %7805 = vset.pattern.permute.xlu2 %v11326_v42 }
0x1f76   :  { %5009 = vperm.xlu2 %7805, %v10762_v27  }
0x1f7b   :  { %v4810_v37 = vpop.permute.xlu1 %4809 }
0x1f7c   :  { %v4757_v3 = vpop.permute.xlu0 %4756  ;;  %v4834_v25 = vmul.f32 %v4810_v37, %v11463_v62 }
0x1f7d   :  { %v4786_v35 = vmul.f32 %v4757_v3, %v11462_v8  ;;  %v11469_v3 = vld [vmem:[#allocation82_spill] sm:$0xff] }
0x1f7e   :  { %7807 = vset.pattern.permute.xlu2 %v11459_v55 }
0x1f7f   :  { %5061 = vperm.xlu2 %7807, %v10770_v50   ;;  %v4794_v18 = vadd.f32 %v4786_v35, %v4616_v57 }
0x1f81   :  { %v4842_v28 = vadd.f32 %v4834_v25, %v4794_v18  ;;  %v4667_v18 = vpop.f32.mrf.mxu2 }
0x1f84   :  { %v4858_v19 = vpop.permute.xlu1 %4857 }
0x1f85   :  { %v4882_v7 = vmul.f32 %v4858_v19, %v11464_v22  ;;  %v5098_v51 = vpop.permute.xlu0 %5097 }
0x1f86   :  { %v5122_v8 = vmul.f32 %v5098_v51, %v11469_v3 }
0x1f87   :  { %7809 = vset.pattern.permute.xlu2 %v11460_v47  ;;  %v4890_v17 = vadd.f32 %v4882_v7, %v4842_v28  ;;  %v11470_v7 = vld [vmem:[#allocation83_spill] sm:$0xff] }
0x1f88   :  { %4781 = vperm.xlu2 %7809, %v10813_v45  }
0x1f89   :  { %v4767_v4 = vpop.permute.xlu2 %4766 }
0x1f8d   :  { %v4906_v46 = vpop.permute.xlu1 %4905 }
0x1f8e   :  { %v4930_v60 = vmul.f32 %v4906_v46, %v11465_v44  ;;  %v4788_v46 = vmul.f32 %v4767_v4, %v11429_v56  ;;  %v11471_v56 = vld [vmem:[#allocation84_spill] sm:$0xff] }
0x1f90   :  { %7811 = vset.pattern.permute.xlu2 %v11312_v14  ;;  %v4938_v16 = vadd.f32 %v4930_v60, %v4890_v17  ;;  %v4796_v29 = vadd.f32 %v4788_v46, %v4667_v18  ;;  %v11476_v18 = vld [vmem:[#allocation89_spill] sm:$0xff] }
0x1f91   :  { %4825 = vperm.xlu2 %7811, %v10809_v20   ;;  %v4762_v19 = vpop.permute.xlu2 %4761 }
0x1f92   :  { %v4787_v4 = vmul.f32 %v4762_v19, %v11471_v56 }
0x1f96   :  { %v4954_v12 = vpop.permute.xlu1 %4953 }
0x1f97   :  { %v4978_v31 = vmul.f32 %v4954_v12, %v11466_v59 }
0x1f99   :  { %v4986_v2 = vadd.f32 %v4978_v31, %v4938_v16  ;;  %7813 = vset.pattern.permute.xlu2 %v11458_v32  ;;  %v4862_v16 = vpop.permute.xlu0 %4861 }
0x1f9a   :  { %4873 = vperm.xlu2 %7813, %v10809_v20   ;;  %v4814_v60 = vpop.permute.xlu2 %4813 }
0x1f9b   :  { %v5034_v37 = vadd.f32 %v5026_v43, %v4986_v2  ;;  %v4795_v43 = vadd.f32 %v4787_v4, %v4618_v11 }
0x1f9d   :  { %v5082_v35 = vadd.f32 %v5074_v1, %v5034_v37  ;;  %v4883_v1 = vmul.f32 %v4862_v16, %v11473_v41  ;;  %v11474_v37 = vld [vmem:[#allocation87_spill] sm:$0xff]  ;;  %v11479_v16 = vld [vmem:[#allocation92_spill] sm:$0xff] }
0x1f9f   :  { %v5130_v57 = vadd.f32 %v5122_v8, %v5082_v35 }
0x1fa1   :  { %v4818_v62 = vpop.permute.xlu1 %4817  ;;  %v5138_v25 = vmul.f32 0.17677669, %v5130_v57  ;;  %v4958_v19 = vpop.permute.xlu0 %4957 }
0x1fa2   :  { %v4836_v22 = vmul.f32 %v4818_v62, %v11430_v13  ;;  %7817 = vset.pattern.permute.xlu2 %v11461_v5  ;;  %v11472_v13 = vld [vmem:[#allocation85_spill] sm:$0xff] }
0x1fa3   :  { %4925 = vperm.xlu2 %7817, %v10813_v45   ;;  %v5146_v10 = vadd.f32 %v5138_v25, %v11470_v7  ;;  %v4835_v59 = vmul.f32 %v4814_v60, %v11472_v13  ;;  %v4910_v2 = vpop.permute.xlu2 %4909  ;;  %v11478_v60 = vld [vmem:[#allocation91_spill] sm:$0xff] }
0x1fa4   :  { %v4844_v28 = vadd.f32 %v4836_v22, %v4796_v29  ;;  %v4931_v3 = vmul.f32 %v4910_v2, %v11474_v37 }
0x1fa5   :  { %v5158_v44 = vsel %vm1816_vm15, %v5146_v10, -inf  ;;  %v4843_v51 = vadd.f32 %v4835_v59, %v4795_v43 }
0x1fa6   :  { %5159 = vmax.xlane.f32.xlu1 %v5158_v44 }
0x1fa7   :  { %v4891_v35 = vadd.f32 %v4883_v1, %v4843_v51 }
0x1fa9   :  { %v4939_v46 = vadd.f32 %v4931_v3, %v4891_v35 }
0x1faa   :  { %v4866_v17 = vpop.permute.xlu1 %4865 }
0x1fab   :  { %v4884_v12 = vmul.f32 %v4866_v17, %v11432_v26  ;;  %7819 = vset.pattern.permute.xlu2 %v11316_v0  ;;  %v11475_v26 = vld [vmem:[#allocation88_spill] sm:$0xff] }
0x1fac   :  { %v4979_v57 = vmul.f32 %v4958_v19, %v11475_v26  ;;  %v5102_v29 = vpop.permute.xlu2 %5101 }
0x1fad   :  { %v10839_v31 = vadd.f32 %v4884_v12, %v4844_v28  ;;  %v11477_v28 = vld [vmem:[#allocation90_spill] sm:$0xff]  ;;  %v5123_v17 = vmul.f32 %v5102_v29, %v11478_v60 }
0x1fae   :  { %v4987_v25 = vadd.f32 %v4979_v57, %v4939_v46 }
0x1fb3   :  { %v5006_v8 = vpop.permute.xlu1 %5005 }
0x1fb4   :  { %v5027_v62 = vmul.f32 %v5006_v8, %v11476_v18 }
0x1fb5   :  { %v4822_v51 = vpop.permute.xlu2 %4821 }
0x1fb6   :  { %v5035_v7 = vadd.f32 %v5027_v62, %v4987_v25 }
0x1fbc   :  { %v5054_v22 = vpop.permute.xlu1 %5053 }
0x1fbd   :  { %v5075_v44 = vmul.f32 %v5054_v22, %v11477_v28 }
0x1fbe   :  { %v4870_v1 = vpop.permute.xlu2 %4869 }
0x1fbf   :  { %v5083_v56 = vadd.f32 %v5075_v44, %v5035_v7  ;;  %4917 = vperm.xlu1 %7802, %v10770_v50  }
0x1fc1   :  { %v5131_v4 = vadd.f32 %v5123_v17, %v5083_v56  ;;  %v4669_v56 = vpop.f32.mrf.mxu2 }
0x1fc3   :  { %v5139_v12 = vmul.f32 0.17677669, %v5131_v4  ;;  %v11482_v4 = vld [vmem:[#allocation133_spill] sm:$0xff] }
0x1fc5   :  { %v5147_v13 = vadd.f32 %v5139_v12, %v11479_v16  ;;  %v4885_v12 = vmul.f32 %v4870_v1, %v11482_v4 }
0x1fc7   :  { %7804 = vset.pattern.permute.xlu1 %v11316_v0  ;;  %v5161_v59 = vsel %vm1816_vm15, %v5147_v13, -inf  ;;  %v4962_v8 = vpop.permute.xlu2 %4961 }
0x1fc8   :  { %4965 = vperm.xlu1 %7804, %v10770_v50   ;;  %5162 = vmax.xlane.f32.xlu0 %v5161_v59  ;;  %v4980_v57 = vmul.f32 %v4962_v8, %v11434_v23  ;;  %v5136_v8 = vmul.f32 0.17677669, %v10777_v52 }
0x1fd0   :  { %7806 = vset.pattern.permute.xlu1 %v11459_v55 }
0x1fd1   :  { %5057 = vperm.xlu1 %7806, %v10762_v27  }
0x1fd9   :  { %7808 = vset.pattern.permute.xlu1 %v11460_v47 }
0x1fda   :  { %4776 = vperm.xlu1 %7808, %v10809_v20  }
0x1fdc   :  { %4913 = vperm.xlu0 %7801, %v10762_v27  }
0x1fe2   :  { %7810 = vset.pattern.permute.xlu1 %v11315_v63 }
0x1fe3   :  { %5109 = vperm.xlu1 %7810, %v10770_v50  }
0x1fe4   :  { %7814 = vset.pattern.permute.xlu0 %v11458_v32 }
0x1fe5   :  { %4877 = vperm.xlu0 %7814, %v10813_v45  }
0x1feb   :  { %7812 = vset.pattern.permute.xlu1 %v11312_v14 }
0x1fec   :  { %4829 = vperm.xlu1 %7812, %v10813_v45  }
0x1fed   :  { %7815 = vset.pattern.permute.xlu0 %v11326_v42 }
0x1fee   :  { %5013 = vperm.xlu0 %7815, %v10770_v50   ;;  %v4772_v50 = vpop.permute.xlu0 %4771 }
0x1ff4   :  { %7816 = vset.pattern.permute.xlu1 %v11461_v5 }
0x1ff5   :  { %4921 = vperm.xlu1 %7816, %v10809_v20  }
0x1ff6   :  { %5017 = vperm.xlu0 %7815, %v10809_v20  }
0x1ffd   :  { %7818 = vset.pattern.permute.xlu1 %v11316_v0 }
0x1ffe   :  { %7820 = vset.pattern.permute.xlu0 %v11315_v63 }
0x1fff   :  { %5105 = vperm.xlu0 %7820, %v10762_v27  }
0x2007   :  { %5117 = vperm.xlu0 %7820, %v10813_v45  }
0x2019   :  { %v5160_v14 = vpop.xlane.xlu1 %5159 }
0x201a   :  { %v5178_v32 = vsub.f32 %v5146_v10, %v5160_v14 }
0x201c   :  { %v5188_v47 = vmul.f32 1.442695, %v5178_v32  ;;  %v11484_v32 = vld [vmem:[#allocation135_spill] sm:$0xff] }
0x201e   :  { %7996 = vpow2.f32 %v5188_v47 }
0x2024   :  { %v10872_v11 = vpop.eup %7996 }
0x2025   :  { %v5206_v5 = vsel %vm1816_vm15, %v10872_v11, 0.0 }
0x2026   :  { %5207 = vadd.xlane.f32.xlu2 %v5206_v5 }
0x2031   :  { %v4918_v3 = vpop.permute.xlu1 %4917 }
0x203a   :  { %v4966_v46 = vpop.permute.xlu1 %4965 }
0x203b   :  { %v5163_v43 = vpop.xlane.xlu0 %5162  ;;  %v4981_v47 = vmul.f32 %v4966_v46, %v11484_v32  ;;  %v11490_v32 = vld [vmem:[#allocation118_spill] sm:$0xff] }
0x203c   :  { %v5179_v2 = vsub.f32 %v5147_v13, %v5163_v43  ;;  %v11483_v13 = vld [vmem:[#allocation134_spill] sm:$0xff]  ;;  %v11485_v43 = vld [vmem:[#allocation137_spill] sm:$0xff] }
0x203d   :  { %v4933_v59 = vmul.f32 %v4918_v3, %v11483_v13  ;;  %v11486_v3 = vld [vmem:[#allocation112_spill] sm:$0xff] }
0x203e   :  { %v5190_v0 = vmul.f32 1.442695, %v5179_v2  ;;  %4973 = vperm.xlu2 %7819, %v10813_v45  }
0x2040   :  { %7998 = vpow2.f32 %v5190_v0 }
0x2043   :  { %v5058_v29 = vpop.permute.xlu1 %5057 }
0x2046   :  { %v10877_v27 = vpop.eup %7998  ;;  %7822 = vset.pattern.permute.xlu2 %v11459_v55 }
0x2047   :  { %5065 = vperm.xlu2 %7822, %v10809_v20   ;;  %v5209_v10 = vsel %vm1816_vm15, %v10877_v27, 0.0 }
0x2048   :  { %5210 = vadd.xlane.f32.xlu1 %v5209_v10 }
0x204c   :  { %v4777_v14 = vpop.permute.xlu1 %4776 }
0x204e   :  { %v4914_v41 = vpop.permute.xlu0 %4913 }
0x204f   :  { %7824 = vset.pattern.permute.xlu2 %v11315_v63  ;;  %v4932_v19 = vmul.f32 %v4914_v41, %v11433_v36  ;;  %v5010_v63 = vpop.permute.xlu2 %5009  ;;  %v5076_v36 = vmul.f32 %v5058_v29, %v11438_v15 }
0x2050   :  { %5113 = vperm.xlu2 %7824, %v10809_v20   ;;  %v5028_v25 = vmul.f32 %v5010_v63, %v11436_v61 }
0x2051   :  { %v4940_v26 = vadd.f32 %v4932_v19, %v10839_v31 }
0x2053   :  { %v4988_v62 = vadd.f32 %v4980_v57, %v4940_v26  ;;  %v10921_v57 = vadd.f32 %v5136_v8, %v11486_v3  ;;  %v11492_v8 = vld [vmem:[#allocation120_spill] sm:$0xff] }
0x2055   :  { %v5036_v22 = vadd.f32 %v5028_v25, %v4988_v62  ;;  %v5152_v46 = vsel %vm1816_vm15, %v10921_v57, -inf }
0x2057   :  { %v10885_v37 = vpop.permute.xlu0 %4877  ;;  %v5084_v31 = vadd.f32 %v5076_v36, %v5036_v22  ;;  %v5062_v60 = vpop.permute.xlu2 %5061 }
0x2058   :  { %v5077_v41 = vmul.f32 %v5062_v60, %v11445_v24  ;;  %v4715_v60 = vpop.f32.mrf.mxu0 }
0x205f   :  { %v4782_v0 = vpop.permute.xlu2 %4781 }
0x2060   :  { %v5014_v35 = vpop.permute.xlu0 %5013 }
0x2061   :  { %4969 = vperm.xlu1 %7818, %v10809_v20   ;;  %v5137_v20 = vmul.f32 0.17677669, %v10801_v54  ;;  %v5029_v2 = vmul.f32 %v5014_v35, %v11485_v43  ;;  %v11491_v43 = vld [vmem:[#allocation119_spill] sm:$0xff] }
0x2063   :  { %v10902_v28 = vadd.f32 %v5137_v20, %v11417_v21 }
0x2065   :  { %v5155_v61 = vsel %vm1816_vm15, %v10902_v28, -inf }
0x2067   :  { %v4826_v26 = vpop.permute.xlu2 %4825 }
0x2068   :  { %v10891_v18 = vpop.permute.xlu0 %5017 }
0x2069   :  { %7821 = vset.pattern.permute.xlu1 %v11326_v42 }
0x206a   :  { %5021 = vperm.xlu1 %7821, %v10813_v45  }
0x206f   :  { %v4874_v24 = vpop.permute.xlu2 %4873 }
0x2071   :  { %v5106_v7 = vpop.permute.xlu0 %5105 }
0x2072   :  { %v5124_v23 = vmul.f32 %v5106_v7, %v11440_v40  ;;  %7823 = vset.pattern.permute.xlu1 %v11459_v55  ;;  %v11480_v40 = vld [vmem:[#allocation128_spill] sm:$0xff] }
0x2073   :  { %5069 = vperm.xlu1 %7823, %v10813_v45   ;;  %v4789_v55 = vmul.f32 %v4772_v50, %v11480_v40  ;;  %v11481_v45 = vld [vmem:[#allocation131_spill] sm:$0xff] }
0x2074   :  { %v5132_v42 = vadd.f32 %v5124_v23, %v5084_v31  ;;  %v4837_v17 = vmul.f32 %v4822_v51, %v11481_v45  ;;  %v5110_v51 = vpop.permute.xlu1 %5109 }
0x2075   :  { %v4797_v21 = vadd.f32 %v4789_v55, %v4669_v56  ;;  %v5125_v1 = vmul.f32 %v5110_v51, %v11447_v58  ;;  %v11488_v56 = vld [vmem:[#allocation114_spill] sm:$0xff] }
0x2076   :  { %v5140_v44 = vmul.f32 0.17677669, %v5132_v42 }
0x2077   :  { %v4845_v16 = vadd.f32 %v4837_v17, %v4797_v21  ;;  %v4926_v58 = vpop.permute.xlu2 %4925  ;;  %v4838_v21 = vmul.f32 %v4826_v26, %v11488_v56  ;;  %v11493_v26 = vld [vmem:[#allocation121_spill] sm:$0xff] }
0x2078   :  { %v10907_v54 = vadd.f32 %v5140_v44, %v11442_v38 }
0x2079   :  { %5156 = vmax.xlane.f32.xlu2 %v5155_v61  ;;  %v4893_v38 = vadd.f32 %v4885_v12, %v4845_v16  ;;  %v11487_v61 = vld [vmem:[#allocation113_spill] sm:$0xff] }
0x207a   :  { %v5164_v15 = vsel %vm1816_vm15, %v10907_v54, -inf }
0x207b   :  { %5165 = vmax.xlane.f32.xlu0 %v5164_v15  ;;  %v4941_v5 = vadd.f32 %v4933_v59, %v4893_v38  ;;  %v4790_v15 = vmul.f32 %v4777_v14, %v11487_v61  ;;  %v4791_v38 = vmul.f32 %v4782_v0, %v11435_v30  ;;  %v4887_v30 = vmul.f32 %v10885_v37, %v11439_v53 }
0x207c   :  { %v4830_v25 = vpop.permute.xlu1 %4829 }
0x207d   :  { %v4989_v10 = vadd.f32 %v4981_v47, %v4941_v5  ;;  %v4798_v17 = vadd.f32 %v4790_v15, %v4715_v60  ;;  %v4839_v5 = vmul.f32 %v4830_v25, %v11437_v48  ;;  %v11495_v25 = vld [vmem:[#allocation122_spill] sm:$0xff] }
0x207f   :  { %v5037_v50 = vadd.f32 %v5029_v2, %v4989_v10  ;;  %v4846_v12 = vadd.f32 %v4838_v21, %v4798_v17  ;;  %v5030_v2 = vmul.f32 %v10891_v18, %v11491_v43  ;;  %v4935_v18 = vmul.f32 %v4926_v58, %v11441_v34 }
0x2081   :  { %v5085_v19 = vadd.f32 %v5077_v41, %v5037_v50  ;;  %v4717_v50 = vpop.f32.mrf.mxu0 }
0x2082   :  { %v4799_v51 = vadd.f32 %v4791_v38, %v4717_v50 }
0x2083   :  { %v5133_v63 = vadd.f32 %v5125_v1, %v5085_v19 }
0x2084   :  { %v4922_v29 = vpop.permute.xlu1 %4921 }
0x2085   :  { %v5141_v35 = vmul.f32 0.17677669, %v5133_v63  ;;  %v4934_v13 = vmul.f32 %v4922_v29, %v11424_v6  ;;  %v4847_v6 = vadd.f32 %v4839_v5, %v4799_v51  ;;  %v7509_v5 = vld [vmem:[#allocation11 + $0x90] sm:$0xff] }
0x2087   :  { %v10926_v62 = vadd.f32 %v5141_v35, %v11449_v9  ;;  %v4895_v48 = vadd.f32 %v4887_v30, %v4847_v6 }
0x2089   :  { %v5167_v52 = vsel %vm1816_vm15, %v10926_v62, -inf }
0x2099   :  { %v5208_v22 = vpop.xlane.xlu2 %5207 }
0x209a   :  { %8000 = vrcp.f32 %v5208_v22  ;;  %v4943_v22 = vadd.f32 %v4935_v18, %v4895_v48 }
0x209d   :  { %5153 = vmax.xlane.f32.xlu1 %v5152_v46 }
0x20a0   :  { %v8001_v36 = vpop.eup %8000 }
0x20a1   :  { %v5234_v7 = vmul.f32 %v8001_v36, %v10872_v11  ;;  %v4974_v42 = vpop.permute.xlu2 %4973  ;;  %v11489_v11 = vld [vmem:[#allocation115_spill] sm:$0xff] }
0x20a2   :  { %v4886_v16 = vmul.f32 %v4874_v24, %v11489_v11  ;;  %v11494_v24 = vld [vmem:[#allocation108_spill] sm:$0xff] }
0x20a3   :  { %v5242_v23 = vpack.c.bf16 %v5234_v7, %v5234_v7 }
0x20a4   :  { %v4894_v59 = vadd.f32 %v4886_v16, %v4846_v12 }
0x20a5   :  { %5168 = vmax.xlane.f32.xlu1 %v5167_v52  ;;  %v5279_v40 = vunpack.c.l.b16 %v5242_v23  ;;  %v4983_v52 = vmul.f32 %v4974_v42, %v11494_v24 }
0x20a6   :  { %v4942_v14 = vadd.f32 %v4934_v13, %v4894_v59 }
0x20a7   :  { %v4991_v7 = vadd.f32 %v4983_v52, %v4943_v22 }
0x20a9   :  { %v5066_v4 = vpop.permute.xlu2 %5065 }
0x20aa   :  { %v5078_v19 = vmul.f32 %v5066_v4, %v11492_v8 }
0x20b1   :  { %v5114_v41 = vpop.permute.xlu2 %5113 }
0x20b2   :  { %v5126_v3 = vmul.f32 %v5114_v41, %v11493_v26 }
0x20bb   :  { %v5211_v20 = vpop.xlane.xlu1 %5210 }
0x20bc   :  { %8002 = vrcp.f32 %v5211_v20 }
0x20c2   :  { %v8003_v31 = vpop.eup %8002 }
0x20c3   :  { %v5235_v9 = vmul.f32 %v8003_v31, %v10877_v27  ;;  %v5118_v31 = vpop.permute.xlu0 %5117 }
0x20c5   :  { %v5243_v44 = vpack.c.bf16 %v5235_v9, %v5235_v9  ;;  %v11496_v9 = vld [vmem:[#allocation111_spill] sm:$0xff] }
0x20c7   :  { %v5280_v55 = vunpack.c.l.b16 %v5243_v44  ;;  %v5127_v44 = vmul.f32 %v5118_v31, %v11496_v9  ;;  %v7523_v31 = vld [vmem:[#allocation19 + $0x40] sm:$0xff] }
0x20c9   :  { %v5281_v45 = vpack.c.b16 %v5280_v55, %v5279_v40  ;;  %v11497_v55 = vld [vmem:[#allocation116_spill] sm:$0xff] }
0x20cb   :  { %7148 = vmatmul.msk.bf16.vlgmr.msra.gmra.mxu3 %vm1816_vm15, %v5281_v45 }
0x20d3   :  { %v4970_v27 = vpop.permute.xlu1 %4969 }
0x20d4   :  { %v4982_v47 = vmul.f32 %v4970_v27, %v11490_v32 }
0x20d6   :  { %v4990_v10 = vadd.f32 %v4982_v47, %v4942_v14  ;;  %v7510_v47 = vld [vmem:[#allocation11 + $0x98] sm:$0xff] }
0x20d7   :  { %5324 = vmatpush.bf16.msrb.mxu0 %v7510_v47 }
0x20d8   :  { %v5038_v1 = vadd.f32 %v5030_v2, %v4990_v10 }
0x20da   :  { %v5086_v63 = vadd.f32 %v5078_v19, %v5038_v1 }
0x20db   :  { %5325 = vmatpush.bf16.msrb.mxu0 %v7509_v5  ;;  %v7514_v5 = vld [vmem:[#allocation11 + $0xb8] sm:$0xff] }
0x20dc   :  { %v5022_v0 = vpop.permute.xlu1 %5021  ;;  %v5134_v46 = vadd.f32 %v5126_v3, %v5086_v63 }
0x20dd   :  { %v5031_v20 = vmul.f32 %v5022_v0, %v11444_v33 }
0x20de   :  { %v5142_v35 = vmul.f32 0.17677669, %v5134_v46 }
0x20df   :  { %v5039_v53 = vadd.f32 %v5031_v20, %v4991_v7  ;;  %v7524_v20 = vld [vmem:[#allocation19 + $0x48] sm:$0xff] }
0x20e0   :  { %v5150_v29 = vadd.f32 %v5142_v35, %v11495_v25 }
0x20e2   :  { %v5170_v36 = vsel %vm1816_vm15, %v5150_v29, -inf }
0x20e3   :  { %5171 = vmax.xlane.f32.xlu2 %v5170_v36 }
0x20e5   :  { %v5070_v23 = vpop.permute.xlu1 %5069 }
0x20e6   :  { %v5079_v37 = vmul.f32 %v5070_v23, %v11446_v39 }
0x20e8   :  { %v5087_v61 = vadd.f32 %v5079_v37, %v5039_v53 }
0x20ea   :  { %v5135_v34 = vadd.f32 %v5127_v44, %v5087_v61 }
0x20ec   :  { %v5143_v58 = vmul.f32 0.17677669, %v5135_v34  ;;  %v5157_v42 = vpop.xlane.xlu2 %5156 }
0x20ed   :  { %v5177_v15 = vsub.f32 %v10902_v28, %v5157_v42  ;;  %v11499_v42 = vld [vmem:[#allocation94_spill] sm:$0xff] }
0x20ee   :  { %v5166_v40 = vpop.xlane.xlu0 %5165  ;;  %v5151_v33 = vadd.f32 %v5143_v58, %v11497_v55  ;;  %v11498_v58 = vld [vmem:[#allocation93_spill] sm:$0xff] }
0x20ef   :  { %v5186_v60 = vmul.f32 1.442695, %v5177_v15  ;;  %v5180_v45 = vsub.f32 %v10907_v54, %v5166_v40  ;;  %v5517_v15 = vpack.c.bf16 %v11499_v42, %v11498_v58 }
0x20f0   :  { %v5173_v17 = vsel %vm1816_vm15, %v5151_v33, -inf }
0x20f1   :  { %8004 = vpow2.f32 %v5186_v60  ;;  %v5192_v56 = vmul.f32 1.442695, %v5180_v45  ;;  %5174 = vmax.xlane.f32.xlu1 %v5173_v17 }
0x20f3   :  { %8006 = vpow2.f32 %v5192_v56 }
0x20f7   :  { %v8005_v39 = vpop.eup %8004 }
0x20f8   :  { %v5203_v21 = vsel %vm1816_vm15, %v8005_v39, 0.0 }
0x20f9   :  { %v10958_v4 = vpop.eup %8006  ;;  %5204 = vadd.xlane.f32.xlu0 %v5203_v21 }
0x20fa   :  { %v5212_v28 = vsel %vm1816_vm15, %v10958_v4, 0.0 }
0x20fb   :  { %5213 = vadd.xlane.f32.xlu1 %v5212_v28 }
0x210d   :  { %5366 = vrot.lane.b32.xlu0 %v10711_v49, %s8736_s8  ;;  %s11501_s8 = sld [smem:[#allocation68_spill]] }
0x2110   :  { %v5154_v54 = vpop.xlane.xlu1 %5153 }
0x2111   :  { %v5176_v12 = vsub.f32 %v10921_v57, %v5154_v54 }
0x2113   :  { %v5184_v11 = vmul.f32 1.442695, %v5176_v12  ;;  %v7508_v12 = vld [vmem:[#allocation11 + $0x88] sm:$0xff] }
0x2114   :  { %5353 = vmatpush.bf16.msrb.mxu1 %v7508_v12 }
0x2115   :  { %8008 = vpow2.f32 %v5184_v11  ;;  %v7507_v11 = vld [vmem:[#allocation11 + $0x80] sm:$0xff] }
0x2118   :  { %v5169_v16 = vpop.xlane.xlu1 %5168  ;;  %5354 = vmatpush.bf16.msrb.mxu1 %v7507_v11 }
0x2119   :  { %v5181_v13 = vsub.f32 %v10926_v62, %v5169_v16  ;;  %v7512_v16 = vld [vmem:[#allocation11 + $0xa8] sm:$0xff] }
0x211a   :  { %5408 = vmatpush.bf16.msrb.mxu3 %v7512_v16 }
0x211b   :  { %v8009_v59 = vpop.eup %8008  ;;  %v5194_v27 = vmul.f32 1.442695, %v5181_v13  ;;  %v7511_v13 = vld [vmem:[#allocation11 + $0xa0] sm:$0xff] }
0x211c   :  { %v5200_v38 = vsel %vm1816_vm15, %v8009_v59, 0.0  ;;  %5465 = vmatpush.bf16.msra.mxu1 %v7514_v5 }
0x211d   :  { %8010 = vpow2.f32 %v5194_v27  ;;  %5201 = vadd.xlane.f32.xlu2 %v5200_v38 }
0x211e   :  { %5409 = vmatpush.bf16.msrb.mxu3 %v7511_v13 }
0x2123   :  { %v8011_v14 = vpop.eup %8010 }
0x2124   :  { %v5215_v32 = vsel %vm1816_vm15, %v8011_v14, 0.0 }
0x2125   :  { %5216 = vadd.xlane.f32.xlu2 %v5215_v32 }
0x214e   :  { %v5297_v57 = vpop.f32.mrf.mxu3 }
0x2156   :  { %v5299_v43 = vpop.f32.mrf.mxu3  ;;  %v5172_v2 = vpop.xlane.xlu2 %5171 }
0x2157   :  { %v5302_v10 = vpack.c.bf16 %v5299_v43, %v5297_v57  ;;  %v5182_v50 = vsub.f32 %v5150_v29, %v5172_v2  ;;  %v7513_v57 = vld [vmem:[#allocation11 + $0xb0] sm:$0xff] }
0x2158   :  { %5466 = vmatpush.bf16.msra.mxu1 %v7513_v57 }
0x2159   :  { %v5196_v62 = vmul.f32 1.442695, %v5182_v50  ;;  %7157 = vmatmul.msk.bf16.vlgmr.msrb.gmra.mxu0 %vm922_vm2, %v5302_v10 }
0x215b   :  { %8012 = vpow2.f32 %v5196_v62 }
0x2161   :  { %v8013_v41 = vpop.eup %8012 }
0x2162   :  { %v5218_v51 = vsel %vm1816_vm15, %v8013_v41, 0.0 }
0x2163   :  { %5219 = vadd.xlane.f32.xlu1 %v5218_v51  ;;  %v7520_v51 = vld [vmem:[#allocation17 + $0x48] sm:$0xff] }
0x2164   :  { %v5175_v8 = vpop.xlane.xlu1 %5174 }
0x2165   :  { %v5183_v19 = vsub.f32 %v5151_v33, %v5175_v8  ;;  %v7515_v8 = vld [vmem:[#allocation16 + $0x40] sm:$0xff] }
0x2167   :  { %v5198_v1 = vmul.f32 1.442695, %v5183_v19  ;;  %v7519_v19 = vld [vmem:[#allocation17 + $0x40] sm:$0xff] }
0x2169   :  { %8014 = vpow2.f32 %v5198_v1 }
0x216c   :  { %v5205_v3 = vpop.xlane.xlu0 %5204 }
0x216d   :  { %8016 = vrcp.f32 %v5205_v3 }
0x216e   :  { %v5214_v18 = vpop.xlane.xlu1 %5213 }
0x216f   :  { %v8015_v6 = vpop.eup %8014 }
0x2170   :  { %v5221_v26 = vsel %vm1816_vm15, %v8015_v6, 0.0 }
0x2171   :  { %5222 = vadd.xlane.f32.xlu2 %v5221_v26 }
0x2173   :  { %v8017_v0 = vpop.eup %8016 }
0x2174   :  { %v5233_v46 = vmul.f32 %v8017_v0, %v8005_v39 }
0x2176   :  { %v5241_v35 = vpack.c.bf16 %v5233_v46, %v5233_v46 }
0x2178   :  { %v5251_v29 = vunpack.c.l.b16 %v5241_v35 }
0x217c   :  { %5423 = vrot.lane.b32.xlu1 %v10711_v49, %s8767_s13 }
0x217f   :  { %v5367_v63 = vpop.permute.xlu0 %5366 }
0x2180   :  { %5379 = vmatpush.bf16.msrb.mxu2 %v5367_v63 }
0x2190   :  { %v5202_v30 = vpop.xlane.xlu2 %5201 }
0x2191   :  { %8018 = vrcp.f32 %v5202_v30 }
0x2197   :  { %v8019_v48 = vpop.eup %8018 }
0x2198   :  { %v5232_v24 = vmul.f32 %v8019_v48, %v8009_v59  ;;  %v5217_v52 = vpop.xlane.xlu2 %5216 }
0x2199   :  { %8020 = vrcp.f32 %v5217_v52 }
0x219a   :  { %v5240_v25 = vpack.c.bf16 %v5232_v24, %v5232_v24  ;;  %8022 = vrcp.f32 %v5214_v18 }
0x219c   :  { %v5250_v22 = vunpack.c.l.b16 %v5240_v25 }
0x219e   :  { %v5252_v36 = vpack.c.b16 %v5251_v29, %v5250_v22  ;;  %v7843_v29 = vld [vmem:[#allocation22 + $0x4] ss:$0 sm:$0xff] }
0x219f   :  { %v8021_v49 = vpop.eup %8020 }
0x21a0   :  { %7147 = vmatmul.msk.bf16.vlgmr.msra.gmra.mxu2 %vm1816_vm15, %v5252_v36  ;;  %v8023_v7 = vpop.eup %8022  ;;  %v5237_v23 = vmul.f32 %v8021_v49, %v8011_v14 }
0x21a1   :  { %5540 = vmatpush.bf16.msra.mxu2 %v7524_v20  ;;  %v5236_v53 = vmul.f32 %v8023_v7, %v10958_v4  ;;  %v7528_v7 = vld [vmem:[#allocation20 + $0x48] sm:$0xff] }
0x21a2   :  { %v5245_v37 = vpack.c.bf16 %v5237_v23, %v5237_v23 }
0x21a3   :  { %v5244_v9 = vpack.c.bf16 %v5236_v53, %v5236_v53 }
0x21a4   :  { %v5364_v44 = vunpack.c.l.b16 %v5245_v37  ;;  %v7527_v37 = vld [vmem:[#allocation20 + $0x40] sm:$0xff] }
0x21a5   :  { %5541 = vmatpush.bf16.msra.mxu2 %v7523_v31  ;;  %v5363_v61 = vunpack.c.l.b16 %v5244_v9 }
0x21a7   :  { %v5365_v34 = vpack.c.b16 %v5364_v44, %v5363_v61 }
0x21b0   :  { %7167 = vmatmul.msk.bf16.vlgmr.msrb.gmra.mxu2 %vm1816_vm15, %v5365_v34 }
0x21c0   :  { %7195 = vmatmul.msk.bf16.vlgmr.msra.gmra.mxu2 %vm922_vm2, %v5517_v15 }
0x21d6   :  { %v5220_v40 = vpop.xlane.xlu1 %5219  ;;  %v5327_v43 = vpop.f32.mrf.mxu0 }
0x21d7   :  { %8024 = vrcp.f32 %v5220_v40 }
0x21dd   :  { %v8025_v33 = vpop.eup %8024 }
0x21de   :  { %v5238_v60 = vmul.f32 %v8025_v33, %v8013_v41  ;;  %v5329_v2 = vpop.f32.mrf.mxu0  ;;  %v7516_v41 = vld [vmem:[#allocation16 + $0x48] sm:$0xff] }
0x21df   :  { %5569 = vmatpush.bf16.msra.mxu3 %v7516_v41 }
0x21e0   :  { %v5246_v17 = vpack.c.bf16 %v5238_v60, %v5238_v60 }
0x21e2   :  { %v5420_v4 = vunpack.c.l.b16 %v5246_v17 }
0x21e3   :  { %5570 = vmatpush.bf16.msra.mxu3 %v7515_v8 }
0x21e4   :  { %v5223_v55 = vpop.xlane.xlu2 %5222 }
0x21e5   :  { %8026 = vrcp.f32 %v5223_v55 }
0x21eb   :  { %v8027_v45 = vpop.eup %8026 }
0x21ec   :  { %v5239_v56 = vmul.f32 %v8027_v45, %v8015_v6 }
0x21ee   :  { %v5247_v39 = vpack.c.bf16 %v5239_v56, %v5239_v56  ;;  %v5424_v21 = vpop.permute.xlu1 %5423 }
0x21ef   :  { %5436 = vmatpush.bf16.msra.mxu0 %v5424_v21 }
0x21f0   :  { %v5421_v28 = vunpack.c.l.b16 %v5247_v39 }
0x21f2   :  { %v5422_v54 = vpack.c.b16 %v5421_v28, %v5420_v4 }
0x21f3   :  { %5644 = vmatpush.bf16.msrb.mxu0 %v7528_v7 }
0x21f4   :  { %7177 = vmatmul.msk.bf16.vlgmr.msra.gmra.mxu0 %vm1816_vm15, %v5422_v54 }
0x21f7   :  { %5645 = vmatpush.bf16.msrb.mxu0 %v7527_v37 }
0x2223   :  { %v5271_v59 = vpop.f32.mrf.mxu2 }
0x222b   :  { %v5273_v27 = vpop.f32.mrf.mxu2 }
0x222c   :  { %v5276_v38 = vpack.c.bf16 %v5273_v27, %v5271_v59 }
0x222e   :  { %7166 = vmatmul.msk.bf16.vlgmr.msrb.gmra.mxu1 %vm922_vm2, %v5276_v38 }
0x222f   :  { %5670 = vmatpush.bf16.msrb.mxu1 %v7520_v51 }
0x2233   :  { %v5381_v14 = vpop.f32.mrf.mxu2  ;;  %5671 = vmatpush.bf16.msrb.mxu1 %v7519_v19 }
0x223b   :  { %v5383_v32 = vpop.f32.mrf.mxu2 }
0x223c   :  { %v5386_v47 = vpack.c.bf16 %v5383_v32, %v5381_v14 }
0x223e   :  { %7176 = vmatmul.msk.bf16.vlgmr.msrb.gmra.mxu3 %vm922_vm2, %v5386_v47 }
0x2243   :  { %v5543_v25 = vpop.f32.mrf.mxu2 }
0x224b   :  { %v5545_v31 = vpop.f32.mrf.mxu2 }
0x2271   :  { %v5438_v10 = vpop.f32.mrf.mxu0 }
0x2279   :  { %v5440_v50 = vpop.f32.mrf.mxu0 }
0x227a   :  { %v5443_v62 = vpack.c.bf16 %v5440_v50, %v5438_v10 }
0x227c   :  { %7186 = vmatmul.msk.bf16.vlgmr.msra.gmra.mxu1 %vm922_vm2, %v5443_v62 }
0x22ab   :  { %v5356_v1 = vpop.f32.mrf.mxu1 }
0x22ac   :  { %v5357_v30 = vadd.f32 %v5356_v1, %v5327_v43 }
0x22b3   :  { %v5358_v6 = vpop.f32.mrf.mxu1 }
0x22b4   :  { %v5359_v0 = vadd.f32 %v5358_v6, %v5329_v2  ;;  %v7844_v2 = vld [vmem:[#allocation23 + $0x4] ss:$0 sm:$0xff] }
0x22c1   :  { %v5411_v26 = vpop.f32.mrf.mxu3 }
0x22c2   :  { %v5416_v46 = vadd.f32 %v5411_v26, %v5357_v30 }
0x22c9   :  { %v5413_v63 = vpop.f32.mrf.mxu3 }
0x22ca   :  { %v5417_v48 = vadd.f32 %v5413_v63, %v5359_v0 }
0x22f9   :  { %v5468_v3 = vpop.f32.mrf.mxu1 }
0x22fa   :  { %v5473_v18 = vadd.f32 %v5468_v3, %v5416_v46 }
0x2301   :  { %v5470_v35 = vpop.f32.mrf.mxu1 }
0x2302   :  { %v5474_v24 = vadd.f32 %v5470_v35, %v5417_v48  ;;  %v7526_v48 = vld [vmem:[#allocation19 + $0x58] sm:$0xff] }
0x2303   :  { %5878 = vmatpush.bf16.msra.mxu0 %v7526_v48  ;;  %v7518_v48 = vld [vmem:[#allocation16 + $0x58] sm:$0xff] }
0x2304   :  { %v5518_v52 = vpack.c.bf16 %v5474_v24, %v5473_v18  ;;  %v7525_v24 = vld [vmem:[#allocation19 + $0x50] sm:$0xff]  ;;  %5907 = vmatpush.bf16.msra.mxu1 %v7518_v48 }
0x2306   :  { %7204 = vmatmul.msk.bf16.vlgmr.msra.gmra.mxu3 %vm922_vm2, %v5518_v52  ;;  %7224 = vmatmul.msk.bf16.vlgmr.msrb.gmra.mxu1 %vm922_vm2, %v5518_v52 }
0x2307   :  { %5879 = vmatpush.bf16.msra.mxu0 %v7525_v24  ;;  %v7517_v24 = vld [vmem:[#allocation16 + $0x50] sm:$0xff] }
0x2308   :  { %5908 = vmatpush.bf16.msra.mxu1 %v7517_v24 }
0x2383   :  { %v5673_v43 = vpop.f32.mrf.mxu1 }
0x2389   :  { %v5572_v22 = vpop.f32.mrf.mxu3 }
0x238a   :  { %v5573_v20 = vadd.f32 %v5572_v22, %v5543_v25 }
0x238b   :  { %v5675_v41 = vpop.f32.mrf.mxu1 }
0x238c   :  { %v5580_v36 = vadd.f32 %v7843_v29, %v5573_v20 }
0x238e   :  { %v7205_v49 = vmul.f32 -1.442695, %v5580_v36  ;;  %v11500_v36 = vld [vmem:[#allocation73_spill] sm:$0xff] }
0x2390   :  { %8028 = vpow2.f32 %v7205_v49 }
0x2391   :  { %v5574_v23 = vpop.f32.mrf.mxu3 }
0x2392   :  { %v5575_v53 = vadd.f32 %v5574_v23, %v5545_v31 }
0x2394   :  { %v5581_v9 = vadd.f32 %v7843_v29, %v5575_v53 }
0x2396   :  { %v8029_v44 = vpop.eup %8028  ;;  %v7206_v61 = vmul.f32 -1.442695, %v5581_v9 }
0x2397   :  { %v5588_v34 = vadd.f32 1.0, %v8029_v44 }
0x2398   :  { %8030 = vpow2.f32 %v7206_v61 }
0x2399   :  { %8032 = vrcp.f32 %v5588_v34  ;;  %v5601_v21 = vand.u32 2147483648, %v5588_v34  ;;  %vm5595_vm10 = vweird.f32 %v5588_v34  ;;  %v5599_v4 = vand.u32 2147483647, %v5588_v34 }
0x239b   :  { %v5602_v13 = vor.u32 1.1754944e-38, %v5601_v21  ;;  %vm5600_vm9 = vcmp.eq.f32.partialorder %v5599_v4, 8.507059e+37 }
0x239e   :  { %v8031_v15 = vpop.eup %8030 }
0x239f   :  { %v8033_v40 = vpop.eup %8032  ;;  %v5589_v55 = vadd.f32 1.0, %v8031_v15 }
0x23a0   :  { %v5591_v33 = vmul.f32 %v8033_v40, %v5588_v34  ;;  %vm5596_vm5 = vweird.f32 %v8033_v40 }
0x23a1   :  { %8034 = vrcp.f32 %v5589_v55  ;;  %vm5597_vm7 = vmor %vm5595_vm10, %vm5596_vm5  ;;  %v5616_v54 = vand.u32 2147483648, %v5589_v55  ;;  %v5614_v16 = vand.u32 2147483647, %v5589_v55  ;;  %vm5610_vm12 = vweird.f32 %v5589_v55 }
0x23a2   :  { %v5592_v60 = vsub.f32 1.0, %v5591_v33  ;;  %v7532_v33 = vld [vmem:[#allocation25 + $0x28] sm:$0xff] }
0x23a3   :  { %v5617_v27 = vor.u32 1.1754944e-38, %v5616_v54  ;;  %vm5615_vm14 = vcmp.eq.f32.partialorder %v5614_v16, 8.507059e+37  ;;  %5789 = vmatpush.bf16.msrb.mxu2 %v7532_v33 }
0x23a4   :  { %v5593_v45 = vmul.f32 %v8033_v40, %v5592_v60  ;;  %v7531_v60 = vld [vmem:[#allocation25 + $0x20] sm:$0xff] }
0x23a6   :  { %v5594_v56 = vadd.f32 %v8033_v40, %v5593_v45 }
0x23a7   :  { %v8035_v17 = vpop.eup %8034  ;;  %5790 = vmatpush.bf16.msrb.mxu2 %v7531_v60 }
0x23a8   :  { %v5606_v39 = vmul.f32 %v8035_v17, %v5589_v55  ;;  %v5598_v12 = vsel %vm5597_vm7, %v8033_v40, %v5594_v56  ;;  %vm5611_vm8 = vweird.f32 %v8035_v17 }
0x23a9   :  { %vm5612_vm13 = vmor %vm5610_vm12, %vm5611_vm8  ;;  %v5603_v38 = vsel %vm5600_vm9, %v5602_v13, %v5598_v12 }
0x23aa   :  { %v5607_v28 = vsub.f32 1.0, %v5606_v39  ;;  %v5620_v47 = vmul.f32 %v5603_v38, %v11498_v58 }
0x23ac   :  { %v5608_v11 = vmul.f32 %v8035_v17, %v5607_v28 }
0x23ae   :  { %v5609_v59 = vadd.f32 %v8035_v17, %v5608_v11 }
0x23b0   :  { %v5613_v14 = vsel %vm5612_vm13, %v8035_v17, %v5609_v59 }
0x23b1   :  { %v5618_v32 = vsel %vm5615_vm14, %v5617_v27, %v5613_v14  ;;  %v8068_v27 = vld [vmem:[#allocation14 + $0x8] sm:$0xf] }
0x23b2   :  { %v5621_v5 = vmul.f32 %v5618_v32, %v11499_v42 }
0x23b4   :  { %v5622_v57 = vpack.c.bf16 %v5621_v5, %v5620_v47  ;;  %v5754_v5 = vperm.slane %v8068_v27, 3 }
0x23b6   :  { %7215 = vmatmul.msk.bf16.vlgmr.msrb.gmra.mxu0 %vm922_vm2, %v5622_v57 }
0x2433   :  { %v5647_v10 = vpop.f32.mrf.mxu0 }
0x2434   :  { %v5674_v50 = vadd.f32 %v5673_v43, %v5647_v10 }
0x2436   :  { %v5681_v62 = vadd.f32 %v7844_v2, %v5674_v50 }
0x2438   :  { %8036 = vtanh.f32 %v5681_v62 }
0x243b   :  { %v5649_v51 = vpop.f32.mrf.mxu0 }
0x243c   :  { %v5676_v8 = vadd.f32 %v5675_v41, %v5649_v51  ;;  %v7536_v41 = vld [vmem:[%s11384_s22 + $0x58] sm:$0xff]  ;;  %v7535_v51 = vld [vmem:[%s11384_s22 + $0x50] sm:$0xff] }
0x243d   :  { %5845 = vmatpush.bf16.msrb.mxu3 %v7536_v41 }
0x243e   :  { %v8037_v19 = vpop.eup %8036  ;;  %v5682_v1 = vadd.f32 %v7844_v2, %v5676_v8  ;;  %v7534_v8 = vld [vmem:[%s11384_s22 + $0x48] sm:$0xff] }
0x243f   :  { %v5685_v6 = vsub.f32 %v8037_v19, %v11498_v58  ;;  %v7533_v19 = vld [vmem:[%s11384_s22 + $0x40] sm:$0xff] }
0x2440   :  { %8038 = vtanh.f32 %v5682_v1 }
0x2441   :  { %5689 = vrot.lane.b32.xlu2 %v5685_v6, %s8767_s13  ;;  %5846 = vmatpush.bf16.msrb.mxu3 %v7535_v51  ;;  %v7845_v6 = vld [vmem:[#allocation26 + $0x2] ss:$0 sm:$0xff]  ;;  %v7848_v51 = vld [vmem:[#allocation23 + $0x5] ss:$0 sm:$0xff] }
0x2445   :  { %5847 = vmatpush.bf16.msrb.mxu3 %v7534_v8 }
0x2446   :  { %v8039_v26 = vpop.eup %8038 }
0x2447   :  { %v5686_v3 = vsub.f32 %v8039_v26, %v11499_v42 }
0x2449   :  { %5691 = vrot.lane.b32.xlu0 %v5686_v3, %s8767_s13  ;;  %5848 = vmatpush.bf16.msrb.mxu3 %v7533_v19 }
0x249b   :  { %v5690_v63 = vpop.permute.xlu2 %5689 }
0x249c   :  { %v5695_v30 = vmul.f32 %v5690_v63, %v5603_v38  ;;  %v5751_v38 = vperm.slane %v8068_v27, 2 }
0x249e   :  { %5699 = vrot.lane.b32.xlu0 %v5695_v30, %s8765_s18 }
0x24bb   :  { %v5692_v0 = vpop.permute.xlu0 %5691 }
0x24bc   :  { %v5696_v46 = vmul.f32 %v5692_v0, %v5618_v32 }
0x24be   :  { %5701 = vrot.lane.b32.xlu1 %v5696_v46, %s8765_s18 }
0x2510   :  { %v5700_v35 = vpop.permute.xlu0 %5699 }
0x2511   :  { %v10995_v18 = vadd.f32 %v5700_v35, %v11498_v58  ;;  %v7522_v35 = vld [vmem:[#allocation17 + $0x58] sm:$0xff] }
0x2512   :  { %6008 = vmatpush.bf16.msra.mxu3 %v7522_v35 }
0x2513   :  { %v5707_v52 = vsel %vm922_vm2, %v10995_v18, 0.0 }
0x2514   :  { %5708 = vadd.xlane.f32.xlu0 %v5707_v52  ;;  %v7521_v52 = vld [vmem:[#allocation17 + $0x50] sm:$0xff] }
0x2516   :  { %6009 = vmatpush.bf16.msra.mxu3 %v7521_v52 }
0x2530   :  { %v5702_v25 = vpop.permute.xlu1 %5701 }
0x2531   :  { %v11000_v29 = vadd.f32 %v5702_v25, %v11499_v42 }
0x2533   :  { %v5710_v22 = vsel %vm922_vm2, %v11000_v29, 0.0  ;;  %v5855_v20 = vpack.c.bf16 %v11000_v29, %v10995_v18 }
0x2534   :  { %5711 = vadd.xlane.f32.xlu2 %v5710_v22  ;;  %v7846_v22 = vld [vmem:[#allocation28 + $0x2] ss:$0 sm:$0xff] }
0x2535   :  { %7267 = vmatmul.msk.bf16.vlgmr.msra.gmra.mxu0 %vm922_vm2, %v5855_v20 }
0x2587   :  { %v5709_v58 = vpop.xlane.xlu0 %5708 }
0x2588   :  { %v5713_v49 = vmul.f32 %v5709_v58, %v11500_v36 }
0x258a   :  { %v5715_v7 = vsub.f32 %v10995_v18, %v5713_v49 }
0x258c   :  { %v5717_v31 = vmul.f32 %v5715_v7, %v5715_v7 }
0x258e   :  { %v5719_v23 = vsel %vm922_vm2, %v5717_v31, 0.0  ;;  %v7847_v31 = vld [vmem:[#allocation22 + $0x5] ss:$0 sm:$0xff] }
0x258f   :  { %5720 = vadd.xlane.f32.xlu1 %v5719_v23 }
0x25a7   :  { %v5712_v42 = vpop.xlane.xlu2 %5711 }
0x25a8   :  { %v5714_v53 = vmul.f32 %v5712_v42, %v11500_v36 }
0x25aa   :  { %v5716_v37 = vsub.f32 %v11000_v29, %v5714_v53 }
0x25ac   :  { %v5718_v9 = vmul.f32 %v5716_v37, %v5716_v37 }
0x25ae   :  { %v5722_v44 = vsel %vm922_vm2, %v5718_v9, 0.0  ;;  %v7530_v9 = vld [vmem:[#allocation20 + $0x58] sm:$0xff] }
0x25af   :  { %5723 = vadd.xlane.f32.xlu0 %v5722_v44  ;;  %5982 = vmatpush.bf16.msra.mxu2 %v7530_v9  ;;  %v7373_v9 = vld [vmem:[%s11501_s8 + $0x7] sm:$0x1] }
0x2602   :  { %v5721_v61 = vpop.xlane.xlu1 %5720 }
0x2603   :  { %v5725_v34 = vmul.f32 %v5721_v61, %v11500_v36 }
0x2605   :  { %v5727_v15 = vadd.f32 1e-05, %v5725_v34 }
0x2607   :  { %8040 = vrsqrt.f32 %v5727_v15  ;;  %vm5735_vm0 = vweird.f32 %v5727_v15 }
0x260d   :  { %v8041_v40 = vpop.eup %8040 }
0x260e   :  { %v5730_v55 = vmul.f32 %v8041_v40, %v5727_v15  ;;  %vm5736_vm11 = vweird.f32 %v8041_v40  ;;  %v7529_v15 = vld [vmem:[#allocation20 + $0x50] sm:$0xff] }
0x260f   :  { %vm5737_vm1 = vmor %vm5735_vm0, %vm5736_vm11  ;;  %5983 = vmatpush.bf16.msra.mxu2 %v7529_v15  ;;  %v7542_v15 = vld [vmem:[#allocation31 + $0x28] sm:$0xff]  ;;  %vm6635_vm11 = vcmask 269312   ;;  %vm6637_vm0 = vcmask 334848  }
0x2610   :  { %v5731_v45 = vmul.f32 %v8041_v40, %v5730_v55 }
0x2612   :  { %v5732_v21 = vmul.f32 0.5, %v5731_v45 }
0x2614   :  { %v5733_v4 = vsub.f32 1.5, %v5732_v21 }
0x2616   :  { %v5734_v54 = vmul.f32 %v8041_v40, %v5733_v4 }
0x2618   :  { %v5738_v16 = vsel %vm5737_vm1, %v8041_v40, %v5734_v54 }
0x2619   :  { %v5749_v14 = vmul.f32 %v5738_v16, %v5715_v7  ;;  %v5881_v7 = vpop.f32.mrf.mxu0 }
0x261b   :  { %v5752_v57 = vmul.f32 %v5751_v38, %v5749_v14 }
0x261d   :  { %v5755_v10 = vadd.f32 %v5754_v5, %v5752_v57 }
0x2621   :  { %v5883_v44 = vpop.f32.mrf.mxu0 }
0x2622   :  { %v5724_v17 = vpop.xlane.xlu0 %5723 }
0x2623   :  { %v5726_v56 = vmul.f32 %v5724_v17, %v11500_v36 }
0x2625   :  { %v5728_v39 = vadd.f32 1e-05, %v5726_v56 }
0x2627   :  { %8042 = vrsqrt.f32 %v5728_v39  ;;  %vm5745_vm6 = vweird.f32 %v5728_v39 }
0x262d   :  { %v8043_v28 = vpop.eup %8042 }
0x262e   :  { %v5740_v12 = vmul.f32 %v8043_v28, %v5728_v39  ;;  %vm5746_vm4 = vweird.f32 %v8043_v28 }
0x262f   :  { %vm5747_vm5 = vmor %vm5745_vm6, %vm5746_vm4 }
0x2630   :  { %v5741_v11 = vmul.f32 %v8043_v28, %v5740_v12 }
0x2632   :  { %v5742_v13 = vmul.f32 0.5, %v5741_v11 }
0x2634   :  { %v5743_v59 = vsub.f32 1.5, %v5742_v13 }
0x2636   :  { %v5744_v32 = vmul.f32 %v8043_v28, %v5743_v59 }
0x2638   :  { %v5748_v47 = vsel %vm5747_vm5, %v8043_v28, %v5744_v32 }
0x2639   :  { %v5750_v43 = vmul.f32 %v5748_v47, %v5716_v37 }
0x263b   :  { %v5753_v2 = vmul.f32 %v5751_v38, %v5750_v43 }
0x263d   :  { %v5756_v50 = vadd.f32 %v5754_v5, %v5753_v2 }
0x263f   :  { %v5762_v62 = vpack.c.bf16 %v5756_v50, %v5755_v10 }
0x2641   :  { %7233 = vmatmul.msk.bf16.vlgmr.msrb.gmra.mxu2 %vm922_vm2, %v5762_v62 }
0x26c4   :  { %v5792_v1 = vpop.f32.mrf.mxu2 }
0x26c5   :  { %v5793_v26 = vadd.f32 %v7845_v6, %v5792_v1 }
0x26c7   :  { %v5797_v30 = vmax.f32 %v5793_v26, 0.0 }
0x26cc   :  { %v5794_v3 = vpop.f32.mrf.mxu2 }
0x26cd   :  { %v5795_v63 = vadd.f32 %v7845_v6, %v5794_v3 }
0x26cf   :  { %v5798_v0 = vmax.f32 %v5795_v63, 0.0 }
0x26d1   :  { %v5808_v46 = vpack.c.bf16 %v5798_v0, %v5797_v30 }
0x26d3   :  { %7258 = vmatmul.msk.bf16.vlgmr.msrb.gmra.mxu3 %vm2493_vm3, %v5808_v46 }
0x2756   :  { %v5850_v25 = vpop.f32.mrf.mxu3 }
0x2757   :  { %v5851_v58 = vadd.f32 %v7846_v22, %v5850_v25 }
0x275e   :  { %v5852_v20 = vpop.f32.mrf.mxu3 }
0x275f   :  { %v5853_v36 = vadd.f32 %v7846_v22, %v5852_v20 }
0x2761   :  { %v5856_v49 = vpack.c.bf16 %v5853_v36, %v5851_v58 }
0x2763   :  { %7276 = vmatmul.msk.bf16.vlgmr.msra.gmra.mxu1 %vm922_vm2, %v5856_v49  ;;  %7296 = vmatmul.msk.bf16.vlgmr.msra.gmra.mxu3 %vm922_vm2, %v5856_v49 }
0x27e0   :  { %v5910_v23 = vpop.f32.mrf.mxu1 }
0x27e1   :  { %v5911_v42 = vadd.f32 %v5910_v23, %v5881_v7  ;;  %v6047_v7 = vld [vmem:[%s11501_s8] sm:$0x1]  ;;  %v7329_v23 = vld [vmem:[%s11501_s8 + $0x3] sm:$0x1] }
0x27e3   :  { %v5918_v53 = vadd.f32 %v7847_v31, %v5911_v42  ;;  %v7340_v42 = vld [vmem:[%s11501_s8 + $0x4] sm:$0x1] }
0x27e5   :  { %v7277_v37 = vmul.f32 -1.442695, %v5918_v53  ;;  %v7351_v53 = vld [vmem:[%s11501_s8 + $0x5] sm:$0x1] }
0x27e6   :  { %v6011_v41 = vpop.f32.mrf.mxu3 }
0x27e7   :  { %8044 = vpow2.f32 %v7277_v37  ;;  %v7362_v37 = vld [vmem:[%s11501_s8 + $0x6] sm:$0x1] }
0x27e8   :  { %v5912_v61 = vpop.f32.mrf.mxu1 }
0x27e9   :  { %v5913_v34 = vadd.f32 %v5912_v61, %v5883_v44  ;;  %v7537_v44 = vld [vmem:[#allocation31] sm:$0xff]  ;;  %v7540_v61 = vld [vmem:[#allocation31 + $0x18] sm:$0xff] }
0x27ea   :  { %6146 = vmatpush.bf16.msrb.mxu3 %v7540_v61 }
0x27eb   :  { %v5919_v40 = vadd.f32 %v7847_v31, %v5913_v34  ;;  %v7307_v31 = vld [vmem:[%s11501_s8 + $0x1] sm:$0x1] }
0x27ec   :  { %v7539_v34 = vld [vmem:[#allocation31 + $0x10] sm:$0xff] }
0x27ed   :  { %v8045_v55 = vpop.eup %8044  ;;  %v7278_v33 = vmul.f32 -1.442695, %v5919_v40  ;;  %v7541_v40 = vld [vmem:[#allocation31 + $0x20] sm:$0xff] }
0x27ee   :  { %v5926_v60 = vadd.f32 1.0, %v8045_v55  ;;  %v6013_v6 = vpop.f32.mrf.mxu3  ;;  %6147 = vmatpush.bf16.msrb.mxu3 %v7539_v34  ;;  %v7544_v55 = vld [vmem:[#allocation31 + $0x38] sm:$0xff] }
0x27ef   :  { %8046 = vpow2.f32 %v7278_v33  ;;  %v7543_v33 = vld [vmem:[#allocation31 + $0x30] sm:$0xff] }
0x27f0   :  { %8048 = vrcp.f32 %v5926_v60  ;;  %v5939_v11 = vand.u32 2147483648, %v5926_v60  ;;  %vm5933_vm10 = vweird.f32 %v5926_v60  ;;  %v5937_v16 = vand.u32 2147483647, %v5926_v60 }
0x27f2   :  { %v5940_v32 = vor.u32 1.1754944e-38, %v5939_v11  ;;  %vm5938_vm9 = vcmp.eq.f32.partialorder %v5937_v16, 8.507059e+37  ;;  %6252 = vmatpush.bf16.msra.mxu3 %v7544_v55  ;;  %v7550_v16 = vld [vmem:[#allocation31 + $0x68] sm:$0xff] }
0x27f5   :  { %v8047_v45 = vpop.eup %8046 }
0x27f6   :  { %v8049_v17 = vpop.eup %8048  ;;  %v5927_v56 = vadd.f32 1.0, %v8047_v45  ;;  %6253 = vmatpush.bf16.msra.mxu3 %v7543_v33  ;;  %v7546_v45 = vld [vmem:[#allocation31 + $0x48] sm:$0xff]  ;;  %v7558_v33 = vld [vmem:[%s11502_s2 + $0x8] sm:$0xff] }
0x27f7   :  { %v5929_v39 = vmul.f32 %v8049_v17, %v5926_v60  ;;  %vm5934_vm3 = vweird.f32 %v8049_v17 }
0x27f8   :  { %8050 = vrcp.f32 %v5927_v56  ;;  %vm5935_vm7 = vmor %vm5933_vm10, %vm5934_vm3  ;;  %v5954_v59 = vand.u32 2147483648, %v5927_v56  ;;  %v5952_v14 = vand.u32 2147483647, %v5927_v56  ;;  %vm5948_vm12 = vweird.f32 %v5927_v56 }
0x27f9   :  { %v5930_v21 = vsub.f32 1.0, %v5929_v39 }
0x27fa   :  { %v5955_v5 = vor.u32 1.1754944e-38, %v5954_v59  ;;  %vm5953_vm14 = vcmp.eq.f32.partialorder %v5952_v14, 8.507059e+37  ;;  %v7549_v59 = vld [vmem:[#allocation31 + $0x60] sm:$0xff] }
0x27fb   :  { %v5931_v4 = vmul.f32 %v8049_v17, %v5930_v21  ;;  %v7548_v21 = vld [vmem:[#allocation31 + $0x58] sm:$0xff] }
0x27fd   :  { %v5932_v54 = vadd.f32 %v8049_v17, %v5931_v4 }
0x27fe   :  { %v8051_v28 = vpop.eup %8050 }
0x27ff   :  { %v5944_v12 = vmul.f32 %v8051_v28, %v5927_v56  ;;  %v5936_v27 = vsel %vm5935_vm7, %v8049_v17, %v5932_v54  ;;  %vm5949_vm8 = vweird.f32 %v8051_v28  ;;  %v7545_v56 = vld [vmem:[#allocation31 + $0x40] sm:$0xff]  ;;  %v7547_v54 = vld [vmem:[#allocation31 + $0x50] sm:$0xff] }
0x2800   :  { %vm5950_vm13 = vmor %vm5948_vm12, %vm5949_vm8  ;;  %v5941_v57 = vsel %vm5938_vm9, %v5940_v32, %v5936_v27 }
0x2801   :  { %v5945_v13 = vsub.f32 1.0, %v5944_v12  ;;  %v5958_v10 = vmul.f32 %v5941_v57, %v10995_v18 }
0x2803   :  { %v5946_v38 = vmul.f32 %v8051_v28, %v5945_v13 }
0x2805   :  { %v5947_v47 = vadd.f32 %v8051_v28, %v5946_v38  ;;  %v7552_v38 = vld [vmem:[#allocation31 + $0x78] sm:$0xff] }
0x2807   :  { %v5951_v43 = vsel %vm5950_vm13, %v8051_v28, %v5947_v47  ;;  %v7551_v47 = vld [vmem:[#allocation31 + $0x70] sm:$0xff] }
0x2808   :  { %v5956_v2 = vsel %vm5953_vm14, %v5955_v5, %v5951_v43 }
0x2809   :  { %v5959_v50 = vmul.f32 %v5956_v2, %v11000_v29 }
0x280b   :  { %v5960_v62 = vpack.c.bf16 %v5959_v50, %v5958_v10 }
0x280d   :  { %7287 = vmatmul.msk.bf16.vlgmr.msra.gmra.mxu2 %vm922_vm2, %v5960_v62 }
0x2890   :  { %v5985_v8 = vpop.f32.mrf.mxu2 }
0x2891   :  { %v6012_v19 = vadd.f32 %v6011_v41, %v5985_v8 }
0x2893   :  { %v6019_v1 = vadd.f32 %v7848_v51, %v6012_v19 }
0x2895   :  { %8052 = vtanh.f32 %v6019_v1 }
0x2898   :  { %v5987_v26 = vpop.f32.mrf.mxu2 }
0x2899   :  { %v6014_v3 = vadd.f32 %v6013_v6, %v5987_v26 }
0x289b   :  { %v8053_v63 = vpop.eup %8052  ;;  %v6020_v30 = vadd.f32 %v7848_v51, %v6014_v3 }
0x289c   :  { %v6023_v0 = vsub.f32 %v8053_v63, %v10995_v18 }
0x289d   :  { %8054 = vtanh.f32 %v6020_v30 }
0x289e   :  { %6027 = vrot.lane.b32.xlu2 %v6023_v0, %s8767_s13 }
0x28a3   :  { %v8055_v46 = vpop.eup %8054 }
0x28a4   :  { %v6024_v48 = vsub.f32 %v8055_v46, %v11000_v29 }
0x28a6   :  { %6029 = vrot.lane.b32.xlu1 %v6024_v48, %s8767_s13 }
0x28f8   :  { %v6028_v35 = vpop.permute.xlu2 %6027 }
0x28f9   :  { %v6033_v24 = vmul.f32 %v6028_v35, %v5941_v57 }
0x28fb   :  { %6037 = vrot.lane.b32.xlu0 %v6033_v24, %s8765_s18 }
0x2918   :  { %v6030_v52 = vpop.permute.xlu1 %6029 }
0x2919   :  { %v6034_v25 = vmul.f32 %v6030_v52, %v5956_v2  ;;  %v7554_v52 = vld [vmem:[#allocation34 + $0x8] sm:$0xff] }
0x291b   :  { %6039 = vrot.lane.b32.xlu2 %v6034_v25, %s8765_s18 }
0x296d   :  { %v6038_v22 = vpop.permute.xlu0 %6037 }
0x296e   :  { %v6043_v58 = vadd.f32 %v6038_v22, %v10995_v18  ;;  %v7318_v18 = vld [vmem:[%s11501_s8 + $0x2] sm:$0x1]  ;;  %v7553_v22 = vld [vmem:[#allocation34] sm:$0xff] }
0x2975   :  { %v6040_v20 = vpop.permute.xlu2 %6039 }
0x2976   :  { %v6044_v36 = vadd.f32 %v6040_v20, %v11000_v29  ;;  %v7538_v29 = vld [vmem:[#allocation31 + $0x8] sm:$0xff]  ;;  %v7556_v20 = vld [vmem:[#allocation37 + $0x8] sm:$0xff] }
0x2977   :  { %6090 = vmatpush.bf16.msrb.mxu1 %v7538_v29 }
0x2978   :  { %v6045_v49 = vpack.c.bf16 %v6044_v36, %v6043_v58  ;;  %v7849_v58 = vld [vmem:[#allocation32] ss:$0 sm:$0xff]  ;;  %v7555_v36 = vld [vmem:[#allocation37] sm:$0xff] }
0x297a   :  { %6058 = vmatpush.bf16.msrb.mxu0 %v6045_v49  ;;  %6113 = vmatpush.bf16.msrb.mxu2 %v6045_v49 }
0x297b   :  { %6091 = vmatpush.bf16.msrb.mxu1 %v7537_v44 }
0x297d   :  { %7297 = vmatmul.msk.bf16.vlgmr.msrb.gmra.mxu0 %vm1816_vm15, %v6047_v7  ;;  %7308 = vmatmul.msk.bf16.vlgmr.msrb.gmra.mxu2 %vm1816_vm15, %v7307_v31 }
0x297e   :  { %6166 = vmatpush.bf16.msra.mxu0 %v6045_v49  ;;  %6219 = vmatpush.bf16.msra.mxu2 %v6045_v49 }
0x297f   :  { %6199 = vmatpush.bf16.msra.mxu1 %v7542_v15 }
0x2982   :  { %6272 = vmatpush.bf16.msrb.mxu0 %v6045_v49  ;;  %6325 = vmatpush.bf16.msrb.mxu2 %v6045_v49 }
0x2983   :  { %6200 = vmatpush.bf16.msra.mxu1 %v7541_v40 }
0x298d   :  { %7319 = vmatmul.msk.bf16.vlgmr.msra.gmra.mxu0 %vm1816_vm15, %v7318_v18  ;;  %7330 = vmatmul.msk.bf16.vlgmr.msra.gmra.mxu2 %vm1816_vm15, %v7329_v23 }
0x298e   :  { %6378 = vmatpush.bf16.msra.mxu0 %v6045_v49  ;;  %6431 = vmatpush.bf16.msra.mxu2 %v6045_v49 }
0x299d   :  { %7341 = vmatmul.msk.bf16.vlgmr.msrb.gmra.mxu0 %vm1816_vm15, %v7340_v42  ;;  %7352 = vmatmul.msk.bf16.vlgmr.msrb.gmra.mxu2 %vm1816_vm15, %v7351_v53 }
0x299e   :  { %6503 = vmatpush.bf16.msrb.mxu0 %v7554_v52  ;;  %6581 = vmatpush.bf16.msrb.mxu2 %v7558_v33 }
0x29a2   :  { %6504 = vmatpush.bf16.msrb.mxu0 %v7553_v22 }
0x29ad   :  { %7363 = vmatmul.msk.bf16.vlgmr.msra.gmra.mxu0 %vm1816_vm15, %v7362_v37  ;;  %7374 = vmatmul.msk.bf16.vlgmr.msra.gmra.mxu2 %vm1816_vm15, %v7373_v9  ;;  %vm6633_vm15 = vcmask 7168  }
0x29fa   :  { %v6060_v60 = vpop.f32.mrf.mxu0 }
0x29fb   :  { %v6068_v17 = vpack.c.bf16 %v6060_v60, %v6060_v60  ;;  %v7557_v60 = vld [vmem:[%s11502_s2] sm:$0xff] }
0x29fc   :  { %6582 = vmatpush.bf16.msrb.mxu2 %v7557_v60 }
0x29fd   :  { %7306 = vmatmul.msk.bf16.vlgmr.msrb.gmra.mxu1 %vm922_vm2, %v6068_v17  ;;  %v7850_v17 = vld [vmem:[#allocation35] ss:$0 sm:$0xff] }
0x29fe   :  { %6305 = vmatpush.bf16.msrb.mxu1 %v7546_v45 }
0x2a00   :  { %v6115_v39 = vpop.f32.mrf.mxu2 }
0x2a01   :  { %v6124_v4 = vpack.c.bf16 %v6115_v39, %v6115_v39 }
0x2a02   :  { %v6062_v28 = vpop.f32.mrf.mxu0  ;;  %6306 = vmatpush.bf16.msrb.mxu1 %v7545_v56 }
0x2a03   :  { %7317 = vmatmul.msk.bf16.vlgmr.msrb.gmra.mxu3 %vm922_vm2, %v6124_v4 }
0x2a04   :  { %6358 = vmatpush.bf16.msrb.mxu3 %v7548_v21 }
0x2a08   :  { %v6117_v12 = vpop.f32.mrf.mxu2  ;;  %6359 = vmatpush.bf16.msrb.mxu3 %v7547_v54  ;;  %v7560_v54 = vld [vmem:[%s8954_s5 + $0x8] sm:$0xff] }
0x2a09   :  { %v7559_v12 = vld [vmem:[%s8954_s5] sm:$0xff] }
0x2a0a   :  { %v6168_v11 = vpop.f32.mrf.mxu0 }
0x2a0b   :  { %v6177_v13 = vpack.c.bf16 %v6168_v11, %v6168_v11  ;;  %v7851_v11 = vld [vmem:[#allocation38] ss:$0 sm:$0xff] }
0x2a0d   :  { %7328 = vmatmul.msk.bf16.vlgmr.msra.gmra.mxu1 %vm922_vm2, %v6177_v13 }
0x2a0e   :  { %6411 = vmatpush.bf16.msra.mxu1 %v7550_v16 }
0x2a10   :  { %v6221_v27 = vpop.f32.mrf.mxu2 }
0x2a11   :  { %v6230_v14 = vpack.c.bf16 %v6221_v27, %v6221_v27 }
0x2a12   :  { %v6170_v32 = vpop.f32.mrf.mxu0  ;;  %6412 = vmatpush.bf16.msra.mxu1 %v7549_v59 }
0x2a13   :  { %7339 = vmatmul.msk.bf16.vlgmr.msra.gmra.mxu3 %vm922_vm2, %v6230_v14 }
0x2a14   :  { %6464 = vmatpush.bf16.msra.mxu3 %v7552_v38 }
0x2a18   :  { %v6223_v5 = vpop.f32.mrf.mxu2  ;;  %6465 = vmatpush.bf16.msra.mxu3 %v7551_v47  ;;  %v7853_v47 = vld [vmem:[#allocation40] ss:$0 sm:$0xff] }
0x2a1a   :  { %v6274_v57 = vpop.f32.mrf.mxu0 }
0x2a1b   :  { %v6283_v43 = vpack.c.bf16 %v6274_v57, %v6274_v57 }
0x2a1d   :  { %7350 = vmatmul.msk.bf16.vlgmr.msrb.gmra.mxu1 %vm922_vm2, %v6283_v43 }
0x2a1e   :  { %6543 = vmatpush.bf16.msrb.mxu1 %v7556_v20 }
0x2a20   :  { %v6327_v2 = vpop.f32.mrf.mxu2 }
0x2a21   :  { %v6336_v10 = vpack.c.bf16 %v6327_v2, %v6327_v2  ;;  %v7852_v2 = vld [vmem:[#allocation2] ss:$0 sm:$0xff] }
0x2a22   :  { %v6276_v50 = vpop.f32.mrf.mxu0  ;;  %6544 = vmatpush.bf16.msrb.mxu1 %v7555_v36 }
0x2a23   :  { %7361 = vmatmul.msk.bf16.vlgmr.msrb.gmra.mxu3 %vm922_vm2, %v6336_v10 }
0x2a24   :  { %6618 = vmatpush.bf16.msrb.mxu3 %v7560_v54 }
0x2a28   :  { %v6329_v62 = vpop.f32.mrf.mxu2  ;;  %6619 = vmatpush.bf16.msrb.mxu3 %v7559_v12 }
0x2a2a   :  { %v6380_v41 = vpop.f32.mrf.mxu0 }
0x2a2b   :  { %v6389_v51 = vpack.c.bf16 %v6380_v41, %v6380_v41 }
0x2a2d   :  { %7372 = vmatmul.msk.bf16.vlgmr.msra.gmra.mxu1 %vm922_vm2, %v6389_v51 }
0x2a30   :  { %v6433_v8 = vpop.f32.mrf.mxu2 }
0x2a31   :  { %v6442_v19 = vpack.c.bf16 %v6433_v8, %v6433_v8 }
0x2a32   :  { %v6382_v1 = vpop.f32.mrf.mxu0 }
0x2a33   :  { %7383 = vmatmul.msk.bf16.vlgmr.msra.gmra.mxu3 %vm922_vm2, %v6442_v19 }
0x2a38   :  { %v6435_v6 = vpop.f32.mrf.mxu2 }
0x2a7a   :  { %v6093_v26 = vpop.f32.mrf.mxu1 }
0x2a7b   :  { %v6100_v7 = vadd.f32 %v7849_v58, %v6093_v26 }
0x2a82   :  { %v6095_v3 = vpop.f32.mrf.mxu1 }
0x2a86   :  { %v6149_v63 = vpop.f32.mrf.mxu3 }
0x2a87   :  { %v6153_v18 = vadd.f32 %v6149_v63, %v6100_v7 }
0x2a8a   :  { %v6202_v30 = vpop.f32.mrf.mxu1 }
0x2a8b   :  { %v6206_v23 = vadd.f32 %v6202_v30, %v6153_v18 }
0x2a8e   :  { %v6151_v0 = vpop.f32.mrf.mxu3 }
0x2a92   :  { %v6204_v46 = vpop.f32.mrf.mxu1 }
0x2a96   :  { %v6255_v48 = vpop.f32.mrf.mxu3 }
0x2a97   :  { %v6259_v42 = vadd.f32 %v6255_v48, %v6206_v23 }
0x2a9a   :  { %v6308_v35 = vpop.f32.mrf.mxu1 }
0x2a9b   :  { %v6312_v53 = vadd.f32 %v6308_v35, %v6259_v42 }
0x2a9e   :  { %v6257_v24 = vpop.f32.mrf.mxu3 }
0x2aa2   :  { %v6310_v25 = vpop.f32.mrf.mxu1 }
0x2aa6   :  { %v6361_v49 = vpop.f32.mrf.mxu3 }
0x2aa7   :  { %v6365_v9 = vadd.f32 %v6361_v49, %v6312_v53 }
0x2aaa   :  { %v6414_v31 = vpop.f32.mrf.mxu1 }
0x2aab   :  { %v6418_v44 = vadd.f32 %v6414_v31, %v6365_v9 }
0x2aae   :  { %v6363_v29 = vpop.f32.mrf.mxu3 }
0x2ab2   :  { %v6416_v37 = vpop.f32.mrf.mxu1 }
0x2ab6   :  { %v6467_v61 = vpop.f32.mrf.mxu3 }
0x2ab7   :  { %v6471_v34 = vadd.f32 %v6467_v61, %v6418_v44 }
0x2ab9   :  { %8056 = vtanh.f32 %v6471_v34 }
0x2abe   :  { %v6469_v15 = vpop.f32.mrf.mxu3 }
0x2abf   :  { %v8057_v40 = vpop.eup %8056 }
0x2ac0   :  { %v6477_v55 = vpack.c.bf16 %v8057_v40, %v8057_v40 }
0x2ac2   :  { %6520 = vrot.lane.b32.xlu0 %v6477_v55, %s8765_s18  ;;  %7392 = vmatmul.msk.bf16.vlgmr.msrb.gmra.mxu0 %vm922_vm2, %v6477_v55 }
0x2b34   :  { %v6521_v45 = vpop.permute.xlu0 %6520 }
0x2b35   :  { %7401 = vmatmul.msk.bf16.vlgmr.msrb.gmra.mxu1 %vm922_vm2, %v6521_v45 }
0x2b3f   :  { %v6506_v56 = vpop.f32.mrf.mxu0 }
0x2b40   :  { %v6507_v39 = vadd.f32 %v7850_v17, %v6506_v56 }
0x2b42   :  { %8058 = vtanh.f32 %v6507_v39 }
0x2b47   :  { %v6508_v21 = vpop.f32.mrf.mxu0 }
0x2b48   :  { %v8059_v4 = vpop.eup %8058 }
0x2b49   :  { %v6555_v28 = vpack.c.bf16 %v8059_v4, %v8059_v4 }
0x2b4b   :  { %7410 = vmatmul.msk.bf16.vlgmr.msrb.gmra.mxu2 %vm922_vm2, %v6555_v28 }
0x2bb2   :  { %v6546_v16 = vpop.f32.mrf.mxu1 }
0x2bb3   :  { %v6547_v13 = vadd.f32 %v7851_v11, %v6546_v16 }
0x2bb5   :  { %8060 = vtanh.f32 %v6547_v13 }
0x2bba   :  { %v6548_v59 = vpop.f32.mrf.mxu1 }
0x2bbb   :  { %v8061_v27 = vpop.eup %8060 }
0x2bbc   :  { %v6592_v38 = vpack.c.bf16 %v8061_v27, %v8061_v27  ;;  %6626 = vrot.lane.b32.xlu1 %v8061_v27, %s8743_s23 }
0x2bbe   :  { %7419 = vmatmul.msk.bf16.vlgmr.msrb.gmra.mxu3 %vm922_vm2, %v6592_v38 }
0x2bce   :  { %v6584_v14 = vpop.f32.mrf.mxu2 }
0x2bcf   :  { %v6585_v50 = vadd.f32 %v7852_v2, %v6584_v14 }
0x2bd6   :  { %v6586_v32 = vpop.f32.mrf.mxu2 }
0x2c2e   :  { %v6627_v10 = vpop.permute.xlu1 %6626 }
0x2c2f   :  { %v6634_v62 = vsel %vm6633_vm15, %v6585_v50, %v6627_v10 }
0x2c41   :  { %v6621_v5 = vpop.f32.mrf.mxu3 }
0x2c42   :  { %v6622_v57 = vadd.f32 %v7853_v47, %v6621_v5 }
0x2c44   :  { %6630 = vrot.lane.b32.xlu2 %v6622_v57, %s8777_s3 }
0x2c49   :  { %v6623_v43 = vpop.f32.mrf.mxu3 }
0x2c9e   :  { %v6631_v41 = vpop.permute.xlu2 %6630 }
0x2c9f   :  { %v6636_v51 = vsel %vm6635_vm11, %v6634_v62, %v6631_v41 }
0x2ca0   :  { %v6638_v8 = vsel %vm6637_vm0, %v6636_v51, 0.0 }
0x2ca1   :  { %6639 = vst [vmem:[%s8964_s27] sm:$0x3] %v6638_v8 }
0x2ca2   :  { %6644 = vsyncpa [#allocation4], 1 }
0x2ca3   :  { %6645 = vsyncpa [#allocation6], 1 }
0x2ca4   :  { %6646 = vsyncpa [#allocation9], 1 }
0x2ca5   :  { %6647 = vsyncpa [#allocation12], 1 }
0x2ca6   :  { %6648 = vsyncpa [#allocation15], 1 }
0x2ca7   :  { %6649 = vsyncpa [#allocation18], 1 }
0x2ca8   :  { %6650 = vsyncpa [#allocation21], 1 }
0x2ca9   :  { %6651 = vsyncpa [#allocation24], 1 }
0x2caa   :  { %6652 = vsyncpa [#allocation27], 1 }
0x2cab   :  { %6653 = vsyncpa [#allocation30], 1 }
0x2cac   :  { %6654 = vsyncpa [#allocation33], 1 }
0x2cad   :  { %6655 = vsyncpa [#allocation36], 1 }
0x2cae   :  { %6656 = vsyncpa [#allocation39], 1 }

</bundles_post_ra>
